<compile_context>
chip_gen: v7x
topology: tpu7x:2x2x1
jax: 0.10.0
libtpu: 0.0.40
codegen_flags: <defaults>
</compile_context>

<pallas_src>
import functools
import numpy as np
import jax
import jax.numpy as jnp
from jax.experimental import pallas as pl
from jax.experimental.pallas import tpu as pltpu

# ----------------------------- configuration -----------------------------
FEATURE_DIM = 32            # trix_cfg.feature_dim == input_dim of Rel/EntityNet
HIDDEN_DIMS = [32, 32]      # hidden dims of each conv stack (dims = [32, 32, 32])
NUM_TRIX_LAYERS = 2         # trix_cfg.num_layer
NUM_MLP_LAYER = 2           # trix_cfg.num_mlp_layer (score MLP)        -- hard-wired to 2 below
NUM_ENTITY_MLP_LAYERS = 2   # BaseNBFNet.num_mlp_layers (entity MLP)    -- hard-wired to 2 below
SHORT_CUT = True
LN_EPS = 1e-5

N_NODES = 16                # entity-graph nodes
N_RELATIONS = 8             # entity-graph relation types == relation-graph nodes
N_ENTITY_EDGES = 40
N_REL_EDGES = 12            # per hh/ht/th/tt relation sub-graph
N_GROUPS = 4                # hh, ht, th, tt
N_CONV = len(HIDDEN_DIMS)   # conv layers per Entity/Rel stack
BATCH = 2
NUM_NEG = 4


# --------------------------- BlockSpec helpers ----------------------------
def _batch_spec(shape):
    """Per-batch-element block: leading batch dim squeezed, rest full."""
    nd = len(shape)
    return pl.BlockSpec((None,) + tuple(shape[1:]),
                        lambda b, _n=nd: (b,) + (0,) * (_n - 1))


def _const_spec(shape):
    """Whole-array block, same for every grid step (params / adjacency / constants)."""
    nd = len(shape)
    return pl.BlockSpec(tuple(shape), lambda b, _n=nd: (0,) * _n)


# --------------- Pallas kernel: the whole TRIX forward, fused ---------------
def _trix_fused_kernel(
        node0_ref, bdy_ref, gath_ref,                                   # per-batch inputs
        eadj_ref, radj_ref, blkm_ref, pmat_ref, smat_ref,               # constant data
        e_rpw1, e_rpb1, e_rpw2, e_rpb2, e_wx, e_wa, e_b, e_ga, e_be,    # entity convs (Le,...)
        em_w1, em_b1, em_w2, em_b2,                                     # entity MLPs (T,...)
        r_rpw1, r_rpb1, r_rpw2, r_rpb2, r_wx, r_wa, r_b, r_ga, r_be,    # rel convs packed (Lr,...)
        s_w1, s_b1, s_w2, s_b2,                                         # score MLP
        out_ref,
        *, n_trix, n_conv, n_groups):
    N, F = node0_ref.shape          # entity nodes, feature dim
    R = gath_ref.shape[-1]          # relation-graph nodes == entity relation types
    GD = n_groups * F               # packed lane width (128)

    node = node0_ref[...]           # (N, F)   current node representations
    bdy = bdy_ref[...]              # (N, F)   entity boundary (same for every TRIX layer)
    eadj = eadj_ref[...]            # (N, R*N) bf16 entity adjacency, flat [dst, r*N + src]
    radj = radj_ref[...]            # (R, G*N*R) bf16 rel adjacency, flat [dst, g*N*R + typ*R + src]
    blkm = blkm_ref[...]            # (G, 1, GD)  lane-block mask for block-diag messages
    P = pmat_ref[...]               # (GD, GD)    per-group mean-broadcast matrix (LayerNorm)
    S = smat_ref[...]               # (GD, F)     group-sum fold matrix

    rel = jnp.ones((R, F), jnp.float32)   # initial relation representations (all ones)

    for t in range(n_trix):
        # ---------------- EntityNet: N_CONV GeneralizedRelationalConv layers ----------------
        x = node
        for c in range(n_conv):
            li = t * n_conv + c
            # relation projection (project_relations=True): Linear -> ReLU -> Linear
            h = jnp.maximum(
                jnp.dot(rel, e_rpw1[li], preferred_element_type=jnp.float32) + e_rpb1[li], 0.0)
            relp = jnp.dot(h, e_rpw2[li], preferred_element_type=jnp.float32) + e_rpb2[li]
            # all distmult messages: row r*N+src = x[src] * relp[r]   -> (R*N, F)
            msg = (relp[:, None, :] * x[None, :, :]).reshape(R * N, F)
            # sum aggregation (+ boundary self-loop) = one 128-deep MXU contraction (bf16 operands)
            agg = bdy + jnp.dot(eadj, msg.astype(jnp.bfloat16),
                                preferred_element_type=jnp.float32)
            # update: Linear(cat([input, agg])) -> LayerNorm -> ReLU
            hu = (jnp.dot(x, e_wx[li], preferred_element_type=jnp.float32)
                  + jnp.dot(agg, e_wa[li], preferred_element_type=jnp.float32) + e_b[li])
            mean = jnp.mean(hu, axis=-1, keepdims=True)
            diff = hu - mean
            var = jnp.mean(diff * diff, axis=-1, keepdims=True)
            hu = diff * jax.lax.rsqrt(var + LN_EPS) * e_ga[li] + e_be[li]
            x = jnp.maximum(hu, 0.0) + x          # short_cut residual (din == dout)
        # entity MLP; node_query is all-ones and is folded into em_b1 host-side.
        h1 = jnp.maximum(
            jnp.dot(x, em_w1[t], preferred_element_type=jnp.float32) + em_b1[t], 0.0)
        node = jnp.dot(h1, em_w2[t], preferred_element_type=jnp.float32) + em_b2[t]

        # ---------------- RelNet: lane-packed hh/ht/th/tt conv layers ----------------
        y = rel
        for c in range(n_conv):
            li = t * n_conv + c
            # relation projection for all 4 groups at once (32 -> 128 lanes, block-diag W2)
            hp = jnp.maximum(
                jnp.dot(node, r_rpw1[li], preferred_element_type=jnp.float32) + r_rpb1[li], 0.0)
            rel_all = jnp.dot(hp, r_rpw2[li], preferred_element_type=jnp.float32) + r_rpb2[li]
            # packed distmult messages, then block-diagonal layout so all groups aggregate in
            # ONE (R, G*N*R) @ (G*N*R, GD) contraction (K = 512).
            y_t = jnp.tile(y, (1, n_groups))                                      # (R, GD)
            msg_all = (rel_all[:, None, :] * y_t[None, :, :]).reshape(N * R, GD)  # (N*R, GD)
            msg_bd = (jnp.broadcast_to(msg_all[None], (n_groups, N * R, GD)) * blkm
                      ).reshape(n_groups * N * R, GD)
            agg = 1.0 + jnp.dot(radj, msg_bd.astype(jnp.bfloat16),
                                preferred_element_type=jnp.float32)               # (R, GD)
            # update for all groups: x-part concatenated, agg-part block-diagonal
            hu = (jnp.dot(y, r_wx[li], preferred_element_type=jnp.float32)
                  + jnp.dot(agg, r_wa[li], preferred_element_type=jnp.float32) + r_b[li])
            # per-group LayerNorm via block-averaging matmuls (no lane reshapes)
            mean = jnp.dot(hu, P, preferred_element_type=jnp.float32)
            diff = hu - mean
            var = jnp.dot(diff * diff, P, preferred_element_type=jnp.float32)
            hn = diff * jax.lax.rsqrt(var + LN_EPS) * r_ga[li] + r_be[li]
            hg = jnp.maximum(hn, 0.0)
            # sum the 4 sub-graph outputs + short_cut residual
            y = jnp.dot(hg, S, preferred_element_type=jnp.float32) + y
        rel = y

    # final gather of relation reps at r_index (one-hot matmul) + score MLP (32 -> 32 -> 1)
    feat = jnp.dot(gath_ref[...], rel, preferred_element_type=jnp.float32)        # (neg, F)
    h = jnp.maximum(
        jnp.dot(feat, s_w1[...], preferred_element_type=jnp.float32) + s_b1[...], 0.0)
    out_ref[...] = jnp.dot(h, s_w2[...], preferred_element_type=jnp.float32) + s_b2[...]


def trix_pallas_call(params, data, node0, bdy, gath):
    """One pallas_call for the whole TRIX forward.  grid=(batch,), 'parallel' for v7x's 2 TCs."""
    args = [node0, bdy, gath,
            data["eadj"], data["radj"], data["blkmask"], data["pmat"], data["smat"]]
    for k in ("rp_w1", "rp_b1", "rp_w2", "rp_b2", "wx", "wagg", "b", "gamma", "beta"):
        args.append(params["e"][k])
    for k in ("w1", "b1", "w2", "b2"):
        args.append(params["em"][k])
    for k in ("rp_w1", "rp_b1", "rp_w2", "rp_b2", "wx", "wagg", "b", "gamma", "beta"):
        args.append(params["r"][k])
    for k in ("w1", "b1", "w2", "b2"):
        args.append(params["s"][k])

    b_, num_neg = node0.shape[0], gath.shape[1]
    in_specs = ([_batch_spec(a.shape) for a in args[:3]]
                + [_const_spec(a.shape) for a in args[3:]])
    out = pl.pallas_call(
        functools.partial(_trix_fused_kernel, n_trix=NUM_TRIX_LAYERS,
                          n_conv=N_CONV, n_groups=N_GROUPS),
        out_shape=jax.ShapeDtypeStruct((b_, num_neg, 1), jnp.float32),
        grid=(b_,),
        in_specs=in_specs,
        out_specs=pl.BlockSpec((None, num_neg, 1), lambda b: (b, 0, 0)),
        compiler_params=pltpu.CompilerParams(dimension_semantics=("parallel",)),
    )(*args)
    return out[..., 0]


# ------------------------------- parameters -------------------------------
def init_linear(key, din, dout):
    kw, kb = jax.random.split(key)
    bound = 1.0 / np.sqrt(din)
    return (jax.random.uniform(kw, (din, dout), jnp.float32, -bound, bound),
            jax.random.uniform(kb, (dout,), jnp.float32, -bound, bound))


def init_conv(key, d):
    """One GeneralizedRelationalConv: relation-projection MLP + update Linear + LayerNorm."""
    k1, k2, k3 = jax.random.split(key, 3)
    rp_w1, rp_b1 = init_linear(k1, d, d)
    rp_w2, rp_b2 = init_linear(k2, d, d)
    w, b = init_linear(k3, 2 * d, d)
    return dict(rp_w1=rp_w1, rp_b1=rp_b1, rp_w2=rp_w2, rp_b2=rp_b2,
                Wx=w[:d], Wagg=w[d:], b=b,
                gamma=jnp.ones((d,), jnp.float32), beta=jnp.zeros((d,), jnp.float32))


def _block_diag(mats):
    g = len(mats)
    a, b = mats[0].shape
    out = jnp.zeros((g * a, g * b), jnp.float32)
    for i, m in enumerate(mats):
        out = out.at[i * a:(i + 1) * a, i * b:(i + 1) * b].set(m)
    return out


def pack_entity_convs(convs):
    return dict(
        rp_w1=jnp.stack([c["rp_w1"] for c in convs]),
        rp_b1=jnp.stack([c["rp_b1"][None, :] for c in convs]),
        rp_w2=jnp.stack([c["rp_w2"] for c in convs]),
        rp_b2=jnp.stack([c["rp_b2"][None, :] for c in convs]),
        wx=jnp.stack([c["Wx"] for c in convs]),
        wagg=jnp.stack([c["Wagg"] for c in convs]),
        b=jnp.stack([c["b"][None, :] for c in convs]),
        gamma=jnp.stack([c["gamma"][None, :] for c in convs]),
        beta=jnp.stack([c["beta"][None, :] for c in convs]))


def pack_rel_layer(groups):
    """Lane-pack the 4 hh/ht/th/tt convs of one RelNet layer (concat / block-diag)."""
    cat = lambda k: jnp.concatenate([g[k] for g in groups], axis=1)       # (d, 4d)
    catb = lambda k: jnp.concatenate([g[k] for g in groups])[None, :]     # (1, 4d)
    return dict(
        rp_w1=cat("rp_w1"), rp_b1=catb("rp_b1"),
        rp_w2=_block_diag([g["rp_w2"] for g in groups]), rp_b2=catb("rp_b2"),
        wx=cat("Wx"), wagg=_block_diag([g["Wagg"] for g in groups]),
        b=catb("b"), gamma=catb("gamma"), beta=catb("beta"))


def init_entity_mlp(key):
    """EntityNet 2-layer MLP; node_query is always all-ones -> fold its term into the bias."""
    fd = HIDDEN_DIMS[-1] + FEATURE_DIM
    k1, k2 = jax.random.split(key)
    w1, b1 = init_linear(k1, fd, fd)
    w2, b2 = init_linear(k2, fd, FEATURE_DIM)
    return dict(w1=w1[:HIDDEN_DIMS[-1]],
                b1=(b1 + jnp.sum(w1[HIDDEN_DIMS[-1]:], axis=0))[None, :],
                w2=w2, b2=b2[None, :])


def init_score_mlp(key):
    k1, k2 = jax.random.split(key)
    w1, b1 = init_linear(k1, FEATURE_DIM, FEATURE_DIM)
    w2, b2 = init_linear(k2, FEATURE_DIM, 1)
    return dict(w1=w1, b1=b1[None, :], w2=w2, b2=b2[None, :])


def init_trix(key):
    n_e = NUM_TRIX_LAYERS * N_CONV
    n_r = NUM_TRIX_LAYERS * N_CONV
    keys = jax.random.split(key, n_e + NUM_TRIX_LAYERS + n_r * N_GROUPS + 1)
    idx = 0
    e_convs = [init_conv(keys[idx + i], FEATURE_DIM) for i in range(n_e)]
    idx += n_e
    em = [init_entity_mlp(keys[idx + i]) for i in range(NUM_TRIX_LAYERS)]
    idx += NUM_TRIX_LAYERS
    r_layers = []
    for l in range(n_r):
        groups = [init_conv(keys[idx + l * N_GROUPS + g], FEATURE_DIM) for g in range(N_GROUPS)]
        r_layers.append(pack_rel_layer(groups))
    idx += n_r * N_GROUPS
    return dict(
        e=pack_entity_convs(e_convs),
        em={k: jnp.stack([m[k] for m in em]) for k in ("w1", "b1", "w2", "b2")},
        r={k: jnp.stack([ld[k] for ld in r_layers]) for k in r_layers[0]},
        s=init_score_mlp(keys[idx]))


# --------------------------------- model ----------------------------------
def trix_forward(params, data, batch):
    h_index, t_index, r_index = batch[..., 0], batch[..., 1], batch[..., 2]
    bs = batch.shape[0]
    num_direct = data["num_relations"] // 2

    # initial node representations (TRIX.forward): query = ones (relation reps are ones)
    ones_q = jnp.ones((bs, FEATURE_DIM), jnp.float32)
    node0 = jnp.zeros((bs, data["num_nodes"], FEATURE_DIM), jnp.float32)
    node0 = node0.at[jnp.arange(bs), h_index[:, 0]].add(ones_q)
    node0 = node0.at[jnp.arange(bs), t_index[:, 0]].add(-ones_q)

    # EntityNet boundary: identical for every TRIX layer -> computed once, passed to the kernel.
    # negative_sample_to_tail: head-negatives -> tail-negatives via inverse relations.
    is_t_neg = jnp.all(h_index == h_index[:, :1], axis=-1)
    h0 = jnp.where(is_t_neg, h_index[:, 0], t_index[:, 0])
    t0 = jnp.where(is_t_neg, t_index[:, 0], h_index[:, 0])
    _r0 = jnp.where(is_t_neg, r_index[:, 0], r_index[:, 0] + num_direct)  # gathers from ones only
    bdy = jnp.zeros((bs, data["num_nodes"], FEATURE_DIM), jnp.float32)
    bdy = bdy.at[jnp.arange(bs), h0].add(ones_q)
    bdy = bdy.at[jnp.arange(bs), t0].add(-ones_q)

    # score-time gather of relation representations, expressed as a one-hot matmul in-kernel
    gath = (r_index[..., None]
            == jnp.arange(data["num_rel_nodes"])[None, None, :]).astype(jnp.float32)

    return trix_pallas_call(params, data, node0, bdy, gath)
    # TODO(synk): remove_easy_edges (training-only edge dropout) has no eval-time effect; skipped.


# ------------------------------ synthetic data -----------------------------
def build_dense_adj_flat(edge_index, edge_type, num_types, num_nodes):
    """adj[r, dst, src] (edge_weight == 1) flattened to (dst, r*num_nodes + src)."""
    src, dst = edge_index[0], edge_index[1]
    adj = jnp.zeros((num_types, num_nodes, num_nodes), jnp.float32)
    adj = adj.at[edge_type, dst, src].add(1.0)
    return jnp.transpose(adj, (1, 0, 2)).reshape(num_nodes, num_types * num_nodes)


if __name__ == "__main__":
    key = jax.random.PRNGKey(0)
    k_param, k_eidx, k_etype, k_rel, k_h, k_t, k_r = jax.random.split(key, 7)

    # entity graph: contraction depth of the conv matmul = R * N = 8 * 16 = 128
    e_idx = jax.random.randint(k_eidx, (2, N_ENTITY_EDGES), 0, N_NODES)
    e_typ = jax.random.randint(k_etype, (N_ENTITY_EDGES,), 0, N_RELATIONS)
    eadj = build_dense_adj_flat(e_idx, e_typ, N_RELATIONS, N_NODES).astype(jnp.bfloat16)  # (16,128)

    # relation graphs (nodes = relations; edge types index entity nodes); concat groups -> K = 512
    rel_adj_list = []
    for i in range(N_GROUPS):                               # hh, ht, th, tt
        ka, kb = jax.random.split(jax.random.fold_in(k_rel, i))
        ridx = jax.random.randint(ka, (2, N_REL_EDGES), 0, N_RELATIONS)
        rtyp = jax.random.randint(kb, (N_REL_EDGES,), 0, N_NODES)
        rel_adj_list.append(build_dense_adj_flat(ridx, rtyp, N_NODES, N_RELATIONS))
    radj = jnp.concatenate(rel_adj_list, axis=1).astype(jnp.bfloat16)                     # (8,512)

    # constant lane-packing matrices (group mask, per-group mean matrix, group-sum fold)
    lane_group = np.arange(N_GROUPS * FEATURE_DIM) // FEATURE_DIM
    blkmask = jnp.asarray(
        (np.arange(N_GROUPS)[:, None, None] == lane_group[None, None, :]).astype(np.float32))
    pmat = jnp.asarray(
        (lane_group[:, None] == lane_group[None, :]).astype(np.float32) / FEATURE_DIM)
    smat = jnp.asarray(
        (np.arange(N_GROUPS * FEATURE_DIM)[:, None] % FEATURE_DIM
         == np.arange(FEATURE_DIM)[None, :]).astype(np.float32))

    data = dict(num_nodes=N_NODES, num_relations=N_RELATIONS, num_rel_nodes=N_RELATIONS,
                eadj=eadj, radj=radj, blkmask=blkmask, pmat=pmat, smat=smat)

    # batch: (B, NUM_NEG, 3) = (h, t, r); tail negatives -> h, r constant along negatives
    h = jax.random.randint(k_h, (BATCH, 1), 0, N_NODES)
    t = jax.random.randint(k_t, (BATCH, NUM_NEG), 0, N_NODES)
    r = jax.random.randint(k_r, (BATCH, 1), 0, N_RELATIONS // 2)
    batch = jnp.stack([jnp.broadcast_to(h, (BATCH, NUM_NEG)), t,
                       jnp.broadcast_to(r, (BATCH, NUM_NEG))], axis=-1)

    # host-side version of EntityNet's asserts (h constant across negatives after to-tail)
    assert bool((np.asarray(batch[:, :, 0]) == np.asarray(batch[:, :1, 0])).all())

    params = init_trix(k_param)
    forward = jax.jit(lambda p, b: trix_forward(p, data, b))
    score = jax.block_until_ready(forward(params, batch))
    assert score.shape == (BATCH, NUM_NEG) and bool(jnp.all(jnp.isfinite(score)))
    print("KERNEL_OK")
</pallas_src>

<mosaic_0001>
module attributes {stable_mosaic.version = 11 : i64} {
  func.func @_trix_fused_kernel(%arg0: i32, %arg1: memref<1x16x32xf32, #tpu.memory_space<vmem>>, %arg2: memref<1x16x32xf32, #tpu.memory_space<vmem>>, %arg3: memref<1x4x8xf32, #tpu.memory_space<vmem>>, %arg4: memref<16x128xbf16, #tpu.memory_space<vmem>>, %arg5: memref<8x512xbf16, #tpu.memory_space<vmem>>, %arg6: memref<4x1x128xf32, #tpu.memory_space<vmem>>, %arg7: memref<128x128xf32, #tpu.memory_space<vmem>>, %arg8: memref<128x32xf32, #tpu.memory_space<vmem>>, %arg9: memref<4x32x32xf32, #tpu.memory_space<vmem>>, %arg10: memref<4x1x32xf32, #tpu.memory_space<vmem>>, %arg11: memref<4x32x32xf32, #tpu.memory_space<vmem>>, %arg12: memref<4x1x32xf32, #tpu.memory_space<vmem>>, %arg13: memref<4x32x32xf32, #tpu.memory_space<vmem>>, %arg14: memref<4x32x32xf32, #tpu.memory_space<vmem>>, %arg15: memref<4x1x32xf32, #tpu.memory_space<vmem>>, %arg16: memref<4x1x32xf32, #tpu.memory_space<vmem>>, %arg17: memref<4x1x32xf32, #tpu.memory_space<vmem>>, %arg18: memref<2x32x64xf32, #tpu.memory_space<vmem>>, %arg19: memref<2x1x64xf32, #tpu.memory_space<vmem>>, %arg20: memref<2x64x32xf32, #tpu.memory_space<vmem>>, %arg21: memref<2x1x32xf32, #tpu.memory_space<vmem>>, %arg22: memref<4x32x128xf32, #tpu.memory_space<vmem>>, %arg23: memref<4x1x128xf32, #tpu.memory_space<vmem>>, %arg24: memref<4x128x128xf32, #tpu.memory_space<vmem>>, %arg25: memref<4x1x128xf32, #tpu.memory_space<vmem>>, %arg26: memref<4x32x128xf32, #tpu.memory_space<vmem>>, %arg27: memref<4x128x128xf32, #tpu.memory_space<vmem>>, %arg28: memref<4x1x128xf32, #tpu.memory_space<vmem>>, %arg29: memref<4x1x128xf32, #tpu.memory_space<vmem>>, %arg30: memref<4x1x128xf32, #tpu.memory_space<vmem>>, %arg31: memref<32x32xf32, #tpu.memory_space<vmem>>, %arg32: memref<1x32xf32, #tpu.memory_space<vmem>>, %arg33: memref<32x1xf32, #tpu.memory_space<vmem>>, %arg34: memref<1x1xf32, #tpu.memory_space<vmem>>, %arg35: memref<1x4x1xf32, #tpu.memory_space<vmem>>) attributes {dimension_semantics = [#tpu.dimension_semantics<parallel>], iteration_bounds = array<i64: 2>, scalar_prefetch = 0 : i64, scratch_operands = 0 : i64, tpu.core_type = #tpu.core_type<tc>, window_params = [{transform_indices = @transform_0, window_bounds = array<i64: 1, 16, 32>}, {transform_indices = @transform_1, window_bounds = array<i64: 1, 16, 32>}, {transform_indices = @transform_2, window_bounds = array<i64: 1, 4, 8>}, {pipeline_mode = #tpu.pipeline_mode<synchronous>, transform_indices = @transform_3, window_bounds = array<i64: 16, 128>}, {pipeline_mode = #tpu.pipeline_mode<synchronous>, transform_indices = @transform_4, window_bounds = array<i64: 8, 512>}, {pipeline_mode = #tpu.pipeline_mode<synchronous>, transform_indices = @transform_5, window_bounds = array<i64: 4, 1, 128>}, {pipeline_mode = #tpu.pipeline_mode<synchronous>, transform_indices = @transform_6, window_bounds = array<i64: 128, 128>}, {pipeline_mode = #tpu.pipeline_mode<synchronous>, transform_indices = @transform_7, window_bounds = array<i64: 128, 32>}, {pipeline_mode = #tpu.pipeline_mode<synchronous>, transform_indices = @transform_8, window_bounds = array<i64: 4, 32, 32>}, {pipeline_mode = #tpu.pipeline_mode<synchronous>, transform_indices = @transform_9, window_bounds = array<i64: 4, 1, 32>}, {pipeline_mode = #tpu.pipeline_mode<synchronous>, transform_indices = @transform_10, window_bounds = array<i64: 4, 32, 32>}, {pipeline_mode = #tpu.pipeline_mode<synchronous>, transform_indices = @transform_11, window_bounds = array<i64: 4, 1, 32>}, {pipeline_mode = #tpu.pipeline_mode<synchronous>, transform_indices = @transform_12, window_bounds = array<i64: 4, 32, 32>}, {pipeline_mode = #tpu.pipeline_mode<synchronous>, transform_indices = @transform_13, window_bounds = array<i64: 4, 32, 32>}, {pipeline_mode = #tpu.pipeline_mode<synchronous>, transform_indices = @transform_14, window_bounds = array<i64: 4, 1, 32>}, {pipeline_mode = #tpu.pipeline_mode<synchronous>, transform_indices = @transform_15, window_bounds = array<i64: 4, 1, 32>}, {pipeline_mode = #tpu.pipeline_mode<synchronous>, transform_indices = @transform_16, window_bounds = array<i64: 4, 1, 32>}, {pipeline_mode = #tpu.pipeline_mode<synchronous>, transform_indices = @transform_17, window_bounds = array<i64: 2, 32, 64>}, {pipeline_mode = #tpu.pipeline_mode<synchronous>, transform_indices = @transform_18, window_bounds = array<i64: 2, 1, 64>}, {pipeline_mode = #tpu.pipeline_mode<synchronous>, transform_indices = @transform_19, window_bounds = array<i64: 2, 64, 32>}, {pipeline_mode = #tpu.pipeline_mode<synchronous>, transform_indices = @transform_20, window_bounds = array<i64: 2, 1, 32>}, {pipeline_mode = #tpu.pipeline_mode<synchronous>, transform_indices = @transform_21, window_bounds = array<i64: 4, 32, 128>}, {pipeline_mode = #tpu.pipeline_mode<synchronous>, transform_indices = @transform_22, window_bounds = array<i64: 4, 1, 128>}, {pipeline_mode = #tpu.pipeline_mode<synchronous>, transform_indices = @transform_23, window_bounds = array<i64: 4, 128, 128>}, {pipeline_mode = #tpu.pipeline_mode<synchronous>, transform_indices = @transform_24, window_bounds = array<i64: 4, 1, 128>}, {pipeline_mode = #tpu.pipeline_mode<synchronous>, transform_indices = @transform_25, window_bounds = array<i64: 4, 32, 128>}, {pipeline_mode = #tpu.pipeline_mode<synchronous>, transform_indices = @transform_26, window_bounds = array<i64: 4, 128, 128>}, {pipeline_mode = #tpu.pipeline_mode<synchronous>, transform_indices = @transform_27, window_bounds = array<i64: 4, 1, 128>}, {pipeline_mode = #tpu.pipeline_mode<synchronous>, transform_indices = @transform_28, window_bounds = array<i64: 4, 1, 128>}, {pipeline_mode = #tpu.pipeline_mode<synchronous>, transform_indices = @transform_29, window_bounds = array<i64: 4, 1, 128>}, {pipeline_mode = #tpu.pipeline_mode<synchronous>, transform_indices = @transform_30, window_bounds = array<i64: 32, 32>}, {pipeline_mode = #tpu.pipeline_mode<synchronous>, transform_indices = @transform_31, window_bounds = array<i64: 1, 32>}, {pipeline_mode = #tpu.pipeline_mode<synchronous>, transform_indices = @transform_32, window_bounds = array<i64: 32, 1>}, {pipeline_mode = #tpu.pipeline_mode<synchronous>, transform_indices = @transform_33, window_bounds = array<i64: 1, 1>}, {transform_indices = @transform_34, window_bounds = array<i64: 1, 4, 1>}]} {
    %c0 = arith.constant 0 : index
    %c0_0 = arith.constant 0 : index
    %c0_1 = arith.constant 0 : index
    %0 = vector.load %arg1[%c0, %c0_0, %c0_1] : memref<1x16x32xf32, #tpu.memory_space<vmem>>, vector<1x16x32xf32>
    %1 = vector.shape_cast %0 : vector<1x16x32xf32> to vector<16x32xf32>
    %c0_2 = arith.constant 0 : index
    %c0_3 = arith.constant 0 : index
    %c0_4 = arith.constant 0 : index
    %2 = vector.load %arg2[%c0_2, %c0_3, %c0_4] : memref<1x16x32xf32, #tpu.memory_space<vmem>>, vector<1x16x32xf32>
    %3 = vector.shape_cast %2 : vector<1x16x32xf32> to vector<16x32xf32>
    %c0_5 = arith.constant 0 : index
    %c0_6 = arith.constant 0 : index
    %4 = vector.load %arg4[%c0_5, %c0_6] : memref<16x128xbf16, #tpu.memory_space<vmem>>, vector<16x128xbf16>
    %c0_7 = arith.constant 0 : index
    %c0_8 = arith.constant 0 : index
    %5 = vector.load %arg5[%c0_7, %c0_8] : memref<8x512xbf16, #tpu.memory_space<vmem>>, vector<8x512xbf16>
    %c0_9 = arith.constant 0 : index
    %c0_10 = arith.constant 0 : index
    %c0_11 = arith.constant 0 : index
    %6 = vector.load %arg6[%c0_9, %c0_10, %c0_11] : memref<4x1x128xf32, #tpu.memory_space<vmem>>, vector<4x1x128xf32>
    %c0_12 = arith.constant 0 : index
    %c0_13 = arith.constant 0 : index
    %7 = vector.load %arg7[%c0_12, %c0_13] : memref<128x128xf32, #tpu.memory_space<vmem>>, vector<128x128xf32>
    %c0_14 = arith.constant 0 : index
    %c0_15 = arith.constant 0 : index
    %8 = vector.load %arg8[%c0_14, %c0_15] : memref<128x32xf32, #tpu.memory_space<vmem>>, vector<128x32xf32>
    %cst = arith.constant 1.000000e+00 : f32
    %9 = vector.broadcast %cst : f32 to vector<8x32xf32>
    %c0_16 = arith.constant 0 : index
    %c0_17 = arith.constant 0 : index
    %c0_18 = arith.constant 0 : index
    %10 = vector.load %arg9[%c0_16, %c0_17, %c0_18] : memref<4x32x32xf32, #tpu.memory_space<vmem>>, vector<1x32x32xf32>
    %11 = vector.shape_cast %10 : vector<1x32x32xf32> to vector<32x32xf32>
    %cst_19 = arith.constant dense<0.000000e+00> : vector<8x32xf32>
    %12 = tpu.matmul %9, %11, %cst_19 {dimension_numbers = #tpu.dot_dimension_numbers<[1], [0], [0], [1], [0, 0, 1, 1], [], []>} : vector<8x32xf32>, vector<32x32xf32>, vector<8x32xf32> -> vector<8x32xf32>
    %c0_20 = arith.constant 0 : index
    %c0_21 = arith.constant 0 : index
    %c0_22 = arith.constant 0 : index
    %13 = vector.load %arg10[%c0_20, %c0_21, %c0_22] : memref<4x1x32xf32, #tpu.memory_space<vmem>>, vector<1x1x32xf32>
    %14 = vector.shape_cast %13 : vector<1x1x32xf32> to vector<1x32xf32>
    %15 = vector.broadcast %14 : vector<1x32xf32> to vector<8x32xf32>
    %16 = arith.addf %12, %15 : vector<8x32xf32>
    %cst_23 = arith.constant 0.000000e+00 : f32
    %17 = vector.broadcast %cst_23 : f32 to vector<8x32xf32>
    %18 = arith.maximumf %16, %17 : vector<8x32xf32>
    %c0_24 = arith.constant 0 : index
    %c0_25 = arith.constant 0 : index
    %c0_26 = arith.constant 0 : index
    %19 = vector.load %arg11[%c0_24, %c0_25, %c0_26] : memref<4x32x32xf32, #tpu.memory_space<vmem>>, vector<1x32x32xf32>
    %20 = vector.shape_cast %19 : vector<1x32x32xf32> to vector<32x32xf32>
    %cst_27 = arith.constant dense<0.000000e+00> : vector<8x32xf32>
    %21 = tpu.matmul %18, %20, %cst_27 {dimension_numbers = #tpu.dot_dimension_numbers<[1], [0], [0], [1], [0, 0, 1, 1], [], []>} : vector<8x32xf32>, vector<32x32xf32>, vector<8x32xf32> -> vector<8x32xf32>
    %c0_28 = arith.constant 0 : index
    %c0_29 = arith.constant 0 : index
    %c0_30 = arith.constant 0 : index
    %22 = vector.load %arg12[%c0_28, %c0_29, %c0_30] : memref<4x1x32xf32, #tpu.memory_space<vmem>>, vector<1x1x32xf32>
    %23 = vector.shape_cast %22 : vector<1x1x32xf32> to vector<1x32xf32>
    %24 = vector.broadcast %23 : vector<1x32xf32> to vector<8x32xf32>
    %25 = arith.addf %21, %24 : vector<8x32xf32>
    %26 = vector.shape_cast %25 : vector<8x32xf32> to vector<8x1x32xf32>
    %27 = vector.shape_cast %1 : vector<16x32xf32> to vector<1x16x32xf32>
    %28 = vector.broadcast %26 : vector<8x1x32xf32> to vector<8x16x32xf32>
    %29 = vector.broadcast %27 : vector<1x16x32xf32> to vector<8x16x32xf32>
    %30 = arith.mulf %28, %29 : vector<8x16x32xf32>
    %31 = vector.shape_cast %30 : vector<8x16x32xf32> to vector<128x32xf32>
    %32 = arith.truncf %31 : vector<128x32xf32> to vector<128x32xbf16>
    %cst_31 = arith.constant dense<0.000000e+00> : vector<16x32xf32>
    %33 = tpu.matmul %4, %32, %cst_31 {dimension_numbers = #tpu.dot_dimension_numbers<[1], [0], [0], [1], [0, 0, 1, 1], [], []>} : vector<16x128xbf16>, vector<128x32xbf16>, vector<16x32xf32> -> vector<16x32xf32>
    %34 = arith.addf %3, %33 : vector<16x32xf32>
    %c0_32 = arith.constant 0 : index
    %c0_33 = arith.constant 0 : index
    %c0_34 = arith.constant 0 : index
    %35 = vector.load %arg13[%c0_32, %c0_33, %c0_34] : memref<4x32x32xf32, #tpu.memory_space<vmem>>, vector<1x32x32xf32>
    %36 = vector.shape_cast %35 : vector<1x32x32xf32> to vector<32x32xf32>
    %cst_35 = arith.constant dense<0.000000e+00> : vector<16x32xf32>
    %37 = tpu.matmul %1, %36, %cst_35 {dimension_numbers = #tpu.dot_dimension_numbers<[1], [0], [0], [1], [0, 0, 1, 1], [], []>} : vector<16x32xf32>, vector<32x32xf32>, vector<16x32xf32> -> vector<16x32xf32>
    %c0_36 = arith.constant 0 : index
    %c0_37 = arith.constant 0 : index
    %c0_38 = arith.constant 0 : index
    %38 = vector.load %arg14[%c0_36, %c0_37, %c0_38] : memref<4x32x32xf32, #tpu.memory_space<vmem>>, vector<1x32x32xf32>
    %39 = vector.shape_cast %38 : vector<1x32x32xf32> to vector<32x32xf32>
    %cst_39 = arith.constant dense<0.000000e+00> : vector<16x32xf32>
    %40 = tpu.matmul %34, %39, %cst_39 {dimension_numbers = #tpu.dot_dimension_numbers<[1], [0], [0], [1], [0, 0, 1, 1], [], []>} : vector<16x32xf32>, vector<32x32xf32>, vector<16x32xf32> -> vector<16x32xf32>
    %41 = arith.addf %37, %40 : vector<16x32xf32>
    %c0_40 = arith.constant 0 : index
    %c0_41 = arith.constant 0 : index
    %c0_42 = arith.constant 0 : index
    %42 = vector.load %arg15[%c0_40, %c0_41, %c0_42] : memref<4x1x32xf32, #tpu.memory_space<vmem>>, vector<1x1x32xf32>
    %43 = vector.shape_cast %42 : vector<1x1x32xf32> to vector<1x32xf32>
    %44 = vector.broadcast %43 : vector<1x32xf32> to vector<16x32xf32>
    %45 = arith.addf %41, %44 : vector<16x32xf32>
    %cst_43 = arith.constant dense<0.000000e+00> : vector<16xf32>
    %46 = vector.multi_reduction <add>, %45, %cst_43 [1] : vector<16x32xf32> to vector<16xf32>
    %47 = vector.shape_cast %46 : vector<16xf32> to vector<16x1xf32>
    %cst_44 = arith.constant 3.200000e+01 : f32
    %48 = vector.broadcast %cst_44 : f32 to vector<16x1xf32>
    %49 = arith.divf %47, %48 : vector<16x1xf32>
    %50 = vector.broadcast %49 : vector<16x1xf32> to vector<16x32xf32>
    %51 = arith.subf %45, %50 : vector<16x32xf32>
    %52 = arith.mulf %51, %51 : vector<16x32xf32>
    %cst_45 = arith.constant dense<0.000000e+00> : vector<16xf32>
    %53 = vector.multi_reduction <add>, %52, %cst_45 [1] : vector<16x32xf32> to vector<16xf32>
    %54 = vector.shape_cast %53 : vector<16xf32> to vector<16x1xf32>
    %cst_46 = arith.constant 3.200000e+01 : f32
    %55 = vector.broadcast %cst_46 : f32 to vector<16x1xf32>
    %56 = arith.divf %54, %55 : vector<16x1xf32>
    %cst_47 = arith.constant 9.99999974E-6 : f32
    %57 = vector.broadcast %cst_47 : f32 to vector<16x1xf32>
    %58 = arith.addf %56, %57 : vector<16x1xf32>
    %59 = math.rsqrt %58 : vector<16x1xf32>
    %60 = vector.broadcast %59 : vector<16x1xf32> to vector<16x32xf32>
    %61 = arith.mulf %51, %60 : vector<16x32xf32>
    %c0_48 = arith.constant 0 : index
    %c0_49 = arith.constant 0 : index
    %c0_50 = arith.constant 0 : index
    %62 = vector.load %arg16[%c0_48, %c0_49, %c0_50] : memref<4x1x32xf32, #tpu.memory_space<vmem>>, vector<1x1x32xf32>
    %63 = vector.shape_cast %62 : vector<1x1x32xf32> to vector<1x32xf32>
    %64 = vector.broadcast %63 : vector<1x32xf32> to vector<16x32xf32>
    %65 = arith.mulf %61, %64 : vector<16x32xf32>
    %c0_51 = arith.constant 0 : index
    %c0_52 = arith.constant 0 : index
    %c0_53 = arith.constant 0 : index
    %66 = vector.load %arg17[%c0_51, %c0_52, %c0_53] : memref<4x1x32xf32, #tpu.memory_space<vmem>>, vector<1x1x32xf32>
    %67 = vector.shape_cast %66 : vector<1x1x32xf32> to vector<1x32xf32>
    %68 = vector.broadcast %67 : vector<1x32xf32> to vector<16x32xf32>
    %69 = arith.addf %65, %68 : vector<16x32xf32>
    %cst_54 = arith.constant 0.000000e+00 : f32
    %70 = vector.broadcast %cst_54 : f32 to vector<16x32xf32>
    %71 = arith.maximumf %69, %70 : vector<16x32xf32>
    %72 = arith.addf %71, %1 : vector<16x32xf32>
    %c1 = arith.constant 1 : index
    %c0_55 = arith.constant 0 : index
    %c0_56 = arith.constant 0 : index
    %73 = vector.load %arg9[%c1, %c0_55, %c0_56] : memref<4x32x32xf32, #tpu.memory_space<vmem>>, vector<1x32x32xf32>
    %74 = vector.shape_cast %73 : vector<1x32x32xf32> to vector<32x32xf32>
    %cst_57 = arith.constant dense<0.000000e+00> : vector<8x32xf32>
    %75 = tpu.matmul %9, %74, %cst_57 {dimension_numbers = #tpu.dot_dimension_numbers<[1], [0], [0], [1], [0, 0, 1, 1], [], []>} : vector<8x32xf32>, vector<32x32xf32>, vector<8x32xf32> -> vector<8x32xf32>
    %c1_58 = arith.constant 1 : index
    %c0_59 = arith.constant 0 : index
    %c0_60 = arith.constant 0 : index
    %76 = vector.load %arg10[%c1_58, %c0_59, %c0_60] : memref<4x1x32xf32, #tpu.memory_space<vmem>>, vector<1x1x32xf32>
    %77 = vector.shape_cast %76 : vector<1x1x32xf32> to vector<1x32xf32>
    %78 = vector.broadcast %77 : vector<1x32xf32> to vector<8x32xf32>
    %79 = arith.addf %75, %78 : vector<8x32xf32>
    %cst_61 = arith.constant 0.000000e+00 : f32
    %80 = vector.broadcast %cst_61 : f32 to vector<8x32xf32>
    %81 = arith.maximumf %79, %80 : vector<8x32xf32>
    %c1_62 = arith.constant 1 : index
    %c0_63 = arith.constant 0 : index
    %c0_64 = arith.constant 0 : index
    %82 = vector.load %arg11[%c1_62, %c0_63, %c0_64] : memref<4x32x32xf32, #tpu.memory_space<vmem>>, vector<1x32x32xf32>
    %83 = vector.shape_cast %82 : vector<1x32x32xf32> to vector<32x32xf32>
    %cst_65 = arith.constant dense<0.000000e+00> : vector<8x32xf32>
    %84 = tpu.matmul %81, %83, %cst_65 {dimension_numbers = #tpu.dot_dimension_numbers<[1], [0], [0], [1], [0, 0, 1, 1], [], []>} : vector<8x32xf32>, vector<32x32xf32>, vector<8x32xf32> -> vector<8x32xf32>
    %c1_66 = arith.constant 1 : index
    %c0_67 = arith.constant 0 : index
    %c0_68 = arith.constant 0 : index
    %85 = vector.load %arg12[%c1_66, %c0_67, %c0_68] : memref<4x1x32xf32, #tpu.memory_space<vmem>>, vector<1x1x32xf32>
    %86 = vector.shape_cast %85 : vector<1x1x32xf32> to vector<1x32xf32>
    %87 = vector.broadcast %86 : vector<1x32xf32> to vector<8x32xf32>
    %88 = arith.addf %84, %87 : vector<8x32xf32>
    %89 = vector.shape_cast %88 : vector<8x32xf32> to vector<8x1x32xf32>
    %90 = vector.shape_cast %72 : vector<16x32xf32> to vector<1x16x32xf32>
    %91 = vector.broadcast %89 : vector<8x1x32xf32> to vector<8x16x32xf32>
    %92 = vector.broadcast %90 : vector<1x16x32xf32> to vector<8x16x32xf32>
    %93 = arith.mulf %91, %92 : vector<8x16x32xf32>
    %94 = vector.shape_cast %93 : vector<8x16x32xf32> to vector<128x32xf32>
    %95 = arith.truncf %94 : vector<128x32xf32> to vector<128x32xbf16>
    %cst_69 = arith.constant dense<0.000000e+00> : vector<16x32xf32>
    %96 = tpu.matmul %4, %95, %cst_69 {dimension_numbers = #tpu.dot_dimension_numbers<[1], [0], [0], [1], [0, 0, 1, 1], [], []>} : vector<16x128xbf16>, vector<128x32xbf16>, vector<16x32xf32> -> vector<16x32xf32>
    %97 = arith.addf %3, %96 : vector<16x32xf32>
    %c1_70 = arith.constant 1 : index
    %c0_71 = arith.constant 0 : index
    %c0_72 = arith.constant 0 : index
    %98 = vector.load %arg13[%c1_70, %c0_71, %c0_72] : memref<4x32x32xf32, #tpu.memory_space<vmem>>, vector<1x32x32xf32>
    %99 = vector.shape_cast %98 : vector<1x32x32xf32> to vector<32x32xf32>
    %cst_73 = arith.constant dense<0.000000e+00> : vector<16x32xf32>
    %100 = tpu.matmul %72, %99, %cst_73 {dimension_numbers = #tpu.dot_dimension_numbers<[1], [0], [0], [1], [0, 0, 1, 1], [], []>} : vector<16x32xf32>, vector<32x32xf32>, vector<16x32xf32> -> vector<16x32xf32>
    %c1_74 = arith.constant 1 : index
    %c0_75 = arith.constant 0 : index
    %c0_76 = arith.constant 0 : index
    %101 = vector.load %arg14[%c1_74, %c0_75, %c0_76] : memref<4x32x32xf32, #tpu.memory_space<vmem>>, vector<1x32x32xf32>
    %102 = vector.shape_cast %101 : vector<1x32x32xf32> to vector<32x32xf32>
    %cst_77 = arith.constant dense<0.000000e+00> : vector<16x32xf32>
    %103 = tpu.matmul %97, %102, %cst_77 {dimension_numbers = #tpu.dot_dimension_numbers<[1], [0], [0], [1], [0, 0, 1, 1], [], []>} : vector<16x32xf32>, vector<32x32xf32>, vector<16x32xf32> -> vector<16x32xf32>
    %104 = arith.addf %100, %103 : vector<16x32xf32>
    %c1_78 = arith.constant 1 : index
    %c0_79 = arith.constant 0 : index
    %c0_80 = arith.constant 0 : index
    %105 = vector.load %arg15[%c1_78, %c0_79, %c0_80] : memref<4x1x32xf32, #tpu.memory_space<vmem>>, vector<1x1x32xf32>
    %106 = vector.shape_cast %105 : vector<1x1x32xf32> to vector<1x32xf32>
    %107 = vector.broadcast %106 : vector<1x32xf32> to vector<16x32xf32>
    %108 = arith.addf %104, %107 : vector<16x32xf32>
    %cst_81 = arith.constant dense<0.000000e+00> : vector<16xf32>
    %109 = vector.multi_reduction <add>, %108, %cst_81 [1] : vector<16x32xf32> to vector<16xf32>
    %110 = vector.shape_cast %109 : vector<16xf32> to vector<16x1xf32>
    %cst_82 = arith.constant 3.200000e+01 : f32
    %111 = vector.broadcast %cst_82 : f32 to vector<16x1xf32>
    %112 = arith.divf %110, %111 : vector<16x1xf32>
    %113 = vector.broadcast %112 : vector<16x1xf32> to vector<16x32xf32>
    %114 = arith.subf %108, %113 : vector<16x32xf32>
    %115 = arith.mulf %114, %114 : vector<16x32xf32>
    %cst_83 = arith.constant dense<0.000000e+00> : vector<16xf32>
    %116 = vector.multi_reduction <add>, %115, %cst_83 [1] : vector<16x32xf32> to vector<16xf32>
    %117 = vector.shape_cast %116 : vector<16xf32> to vector<16x1xf32>
    %cst_84 = arith.constant 3.200000e+01 : f32
    %118 = vector.broadcast %cst_84 : f32 to vector<16x1xf32>
    %119 = arith.divf %117, %118 : vector<16x1xf32>
    %cst_85 = arith.constant 9.99999974E-6 : f32
    %120 = vector.broadcast %cst_85 : f32 to vector<16x1xf32>
    %121 = arith.addf %119, %120 : vector<16x1xf32>
    %122 = math.rsqrt %121 : vector<16x1xf32>
    %123 = vector.broadcast %122 : vector<16x1xf32> to vector<16x32xf32>
    %124 = arith.mulf %114, %123 : vector<16x32xf32>
    %c1_86 = arith.constant 1 : index
    %c0_87 = arith.constant 0 : index
    %c0_88 = arith.constant 0 : index
    %125 = vector.load %arg16[%c1_86, %c0_87, %c0_88] : memref<4x1x32xf32, #tpu.memory_space<vmem>>, vector<1x1x32xf32>
    %126 = vector.shape_cast %125 : vector<1x1x32xf32> to vector<1x32xf32>
    %127 = vector.broadcast %126 : vector<1x32xf32> to vector<16x32xf32>
    %128 = arith.mulf %124, %127 : vector<16x32xf32>
    %c1_89 = arith.constant 1 : index
    %c0_90 = arith.constant 0 : index
    %c0_91 = arith.constant 0 : index
    %129 = vector.load %arg17[%c1_89, %c0_90, %c0_91] : memref<4x1x32xf32, #tpu.memory_space<vmem>>, vector<1x1x32xf32>
    %130 = vector.shape_cast %129 : vector<1x1x32xf32> to vector<1x32xf32>
    %131 = vector.broadcast %130 : vector<1x32xf32> to vector<16x32xf32>
    %132 = arith.addf %128, %131 : vector<16x32xf32>
    %cst_92 = arith.constant 0.000000e+00 : f32
    %133 = vector.broadcast %cst_92 : f32 to vector<16x32xf32>
    %134 = arith.maximumf %132, %133 : vector<16x32xf32>
    %135 = arith.addf %134, %72 : vector<16x32xf32>
    %c0_93 = arith.constant 0 : index
    %c0_94 = arith.constant 0 : index
    %c0_95 = arith.constant 0 : index
    %136 = vector.load %arg18[%c0_93, %c0_94, %c0_95] : memref<2x32x64xf32, #tpu.memory_space<vmem>>, vector<1x32x64xf32>
    %137 = vector.shape_cast %136 : vector<1x32x64xf32> to vector<32x64xf32>
    %cst_96 = arith.constant dense<0.000000e+00> : vector<16x64xf32>
    %138 = tpu.matmul %135, %137, %cst_96 {dimension_numbers = #tpu.dot_dimension_numbers<[1], [0], [0], [1], [0, 0, 1, 1], [], []>} : vector<16x32xf32>, vector<32x64xf32>, vector<16x64xf32> -> vector<16x64xf32>
    %c0_97 = arith.constant 0 : index
    %c0_98 = arith.constant 0 : index
    %c0_99 = arith.constant 0 : index
    %139 = vector.load %arg19[%c0_97, %c0_98, %c0_99] : memref<2x1x64xf32, #tpu.memory_space<vmem>>, vector<1x1x64xf32>
    %140 = vector.shape_cast %139 : vector<1x1x64xf32> to vector<1x64xf32>
    %141 = vector.broadcast %140 : vector<1x64xf32> to vector<16x64xf32>
    %142 = arith.addf %138, %141 : vector<16x64xf32>
    %cst_100 = arith.constant 0.000000e+00 : f32
    %143 = vector.broadcast %cst_100 : f32 to vector<16x64xf32>
    %144 = arith.maximumf %142, %143 : vector<16x64xf32>
    %c0_101 = arith.constant 0 : index
    %c0_102 = arith.constant 0 : index
    %c0_103 = arith.constant 0 : index
    %145 = vector.load %arg20[%c0_101, %c0_102, %c0_103] : memref<2x64x32xf32, #tpu.memory_space<vmem>>, vector<1x64x32xf32>
    %146 = vector.shape_cast %145 : vector<1x64x32xf32> to vector<64x32xf32>
    %cst_104 = arith.constant dense<0.000000e+00> : vector<16x32xf32>
    %147 = tpu.matmul %144, %146, %cst_104 {dimension_numbers = #tpu.dot_dimension_numbers<[1], [0], [0], [1], [0, 0, 1, 1], [], []>} : vector<16x64xf32>, vector<64x32xf32>, vector<16x32xf32> -> vector<16x32xf32>
    %c0_105 = arith.constant 0 : index
    %c0_106 = arith.constant 0 : index
    %c0_107 = arith.constant 0 : index
    %148 = vector.load %arg21[%c0_105, %c0_106, %c0_107] : memref<2x1x32xf32, #tpu.memory_space<vmem>>, vector<1x1x32xf32>
    %149 = vector.shape_cast %148 : vector<1x1x32xf32> to vector<1x32xf32>
    %150 = vector.broadcast %149 : vector<1x32xf32> to vector<16x32xf32>
    %151 = arith.addf %147, %150 : vector<16x32xf32>
    %c0_108 = arith.constant 0 : index
    %c0_109 = arith.constant 0 : index
    %c0_110 = arith.constant 0 : index
    %152 = vector.load %arg22[%c0_108, %c0_109, %c0_110] : memref<4x32x128xf32, #tpu.memory_space<vmem>>, vector<1x32x128xf32>
    %153 = vector.shape_cast %152 : vector<1x32x128xf32> to vector<32x128xf32>
    %cst_111 = arith.constant dense<0.000000e+00> : vector<16x128xf32>
    %154 = tpu.matmul %151, %153, %cst_111 {dimension_numbers = #tpu.dot_dimension_numbers<[1], [0], [0], [1], [0, 0, 1, 1], [], []>} : vector<16x32xf32>, vector<32x128xf32>, vector<16x128xf32> -> vector<16x128xf32>
    %c0_112 = arith.constant 0 : index
    %c0_113 = arith.constant 0 : index
    %c0_114 = arith.constant 0 : index
    %155 = vector.load %arg23[%c0_112, %c0_113, %c0_114] : memref<4x1x128xf32, #tpu.memory_space<vmem>>, vector<1x1x128xf32>
    %156 = vector.shape_cast %155 : vector<1x1x128xf32> to vector<1x128xf32>
    %157 = vector.broadcast %156 : vector<1x128xf32> to vector<16x128xf32>
    %158 = arith.addf %154, %157 : vector<16x128xf32>
    %cst_115 = arith.constant 0.000000e+00 : f32
    %159 = vector.broadcast %cst_115 : f32 to vector<16x128xf32>
    %160 = arith.maximumf %158, %159 : vector<16x128xf32>
    %c0_116 = arith.constant 0 : index
    %c0_117 = arith.constant 0 : index
    %c0_118 = arith.constant 0 : index
    %161 = vector.load %arg24[%c0_116, %c0_117, %c0_118] : memref<4x128x128xf32, #tpu.memory_space<vmem>>, vector<1x128x128xf32>
    %162 = vector.shape_cast %161 : vector<1x128x128xf32> to vector<128x128xf32>
    %cst_119 = arith.constant dense<0.000000e+00> : vector<16x128xf32>
    %163 = tpu.matmul %160, %162, %cst_119 {dimension_numbers = #tpu.dot_dimension_numbers<[1], [0], [0], [1], [0, 0, 1, 1], [], []>} : vector<16x128xf32>, vector<128x128xf32>, vector<16x128xf32> -> vector<16x128xf32>
    %c0_120 = arith.constant 0 : index
    %c0_121 = arith.constant 0 : index
    %c0_122 = arith.constant 0 : index
    %164 = vector.load %arg25[%c0_120, %c0_121, %c0_122] : memref<4x1x128xf32, #tpu.memory_space<vmem>>, vector<1x1x128xf32>
    %165 = vector.shape_cast %164 : vector<1x1x128xf32> to vector<1x128xf32>
    %166 = vector.broadcast %165 : vector<1x128xf32> to vector<16x128xf32>
    %167 = arith.addf %163, %166 : vector<16x128xf32>
    %168 = tpu.concatenate %9, %9, %9, %9 in 1 : vector<8x32xf32>, vector<8x32xf32>, vector<8x32xf32>, vector<8x32xf32> -> vector<8x128xf32>
    %169 = vector.shape_cast %167 : vector<16x128xf32> to vector<16x1x128xf32>
    %170 = vector.shape_cast %168 : vector<8x128xf32> to vector<1x8x128xf32>
    %171 = vector.broadcast %169 : vector<16x1x128xf32> to vector<16x8x128xf32>
    %172 = vector.broadcast %170 : vector<1x8x128xf32> to vector<16x8x128xf32>
    %173 = arith.mulf %171, %172 : vector<16x8x128xf32>
    %174 = vector.shape_cast %173 : vector<16x8x128xf32> to vector<128x128xf32>
    %175 = vector.shape_cast %174 : vector<128x128xf32> to vector<1x128x128xf32>
    %176 = vector.shape_cast %175 : vector<1x128x128xf32> to vector<1x128x128xf32>
    %177 = vector.broadcast %176 : vector<1x128x128xf32> to vector<4x128x128xf32>
    %178 = vector.broadcast %6 : vector<4x1x128xf32> to vector<4x128x128xf32>
    %179 = arith.mulf %177, %178 : vector<4x128x128xf32>
    %180 = vector.shape_cast %179 : vector<4x128x128xf32> to vector<512x128xf32>
    %181 = arith.truncf %180 : vector<512x128xf32> to vector<512x128xbf16>
    %cst_123 = arith.constant dense<0.000000e+00> : vector<8x128xf32>
    %182 = tpu.matmul %5, %181, %cst_123 {dimension_numbers = #tpu.dot_dimension_numbers<[1], [0], [0], [1], [0, 0, 1, 1], [], []>} : vector<8x512xbf16>, vector<512x128xbf16>, vector<8x128xf32> -> vector<8x128xf32>
    %cst_124 = arith.constant 1.000000e+00 : f32
    %183 = vector.broadcast %cst_124 : f32 to vector<8x128xf32>
    %184 = arith.addf %183, %182 : vector<8x128xf32>
    %c0_125 = arith.constant 0 : index
    %c0_126 = arith.constant 0 : index
    %c0_127 = arith.constant 0 : index
    %185 = vector.load %arg26[%c0_125, %c0_126, %c0_127] : memref<4x32x128xf32, #tpu.memory_space<vmem>>, vector<1x32x128xf32>
    %186 = vector.shape_cast %185 : vector<1x32x128xf32> to vector<32x128xf32>
    %cst_128 = arith.constant dense<0.000000e+00> : vector<8x128xf32>
    %187 = tpu.matmul %9, %186, %cst_128 {dimension_numbers = #tpu.dot_dimension_numbers<[1], [0], [0], [1], [0, 0, 1, 1], [], []>} : vector<8x32xf32>, vector<32x128xf32>, vector<8x128xf32> -> vector<8x128xf32>
    %c0_129 = arith.constant 0 : index
    %c0_130 = arith.constant 0 : index
    %c0_131 = arith.constant 0 : index
    %188 = vector.load %arg27[%c0_129, %c0_130, %c0_131] : memref<4x128x128xf32, #tpu.memory_space<vmem>>, vector<1x128x128xf32>
    %189 = vector.shape_cast %188 : vector<1x128x128xf32> to vector<128x128xf32>
    %cst_132 = arith.constant dense<0.000000e+00> : vector<8x128xf32>
    %190 = tpu.matmul %184, %189, %cst_132 {dimension_numbers = #tpu.dot_dimension_numbers<[1], [0], [0], [1], [0, 0, 1, 1], [], []>} : vector<8x128xf32>, vector<128x128xf32>, vector<8x128xf32> -> vector<8x128xf32>
    %191 = arith.addf %187, %190 : vector<8x128xf32>
    %c0_133 = arith.constant 0 : index
    %c0_134 = arith.constant 0 : index
    %c0_135 = arith.constant 0 : index
    %192 = vector.load %arg28[%c0_133, %c0_134, %c0_135] : memref<4x1x128xf32, #tpu.memory_space<vmem>>, vector<1x1x128xf32>
    %193 = vector.shape_cast %192 : vector<1x1x128xf32> to vector<1x128xf32>
    %194 = vector.broadcast %193 : vector<1x128xf32> to vector<8x128xf32>
    %195 = arith.addf %191, %194 : vector<8x128xf32>
    %cst_136 = arith.constant dense<0.000000e+00> : vector<8x128xf32>
    %196 = tpu.matmul %195, %7, %cst_136 {dimension_numbers = #tpu.dot_dimension_numbers<[1], [0], [0], [1], [0, 0, 1, 1], [], []>} : vector<8x128xf32>, vector<128x128xf32>, vector<8x128xf32> -> vector<8x128xf32>
    %197 = arith.subf %195, %196 : vector<8x128xf32>
    %198 = arith.mulf %197, %197 : vector<8x128xf32>
    %cst_137 = arith.constant dense<0.000000e+00> : vector<8x128xf32>
    %199 = tpu.matmul %198, %7, %cst_137 {dimension_numbers = #tpu.dot_dimension_numbers<[1], [0], [0], [1], [0, 0, 1, 1], [], []>} : vector<8x128xf32>, vector<128x128xf32>, vector<8x128xf32> -> vector<8x128xf32>
    %cst_138 = arith.constant 9.99999974E-6 : f32
    %200 = vector.broadcast %cst_138 : f32 to vector<8x128xf32>
    %201 = arith.addf %199, %200 : vector<8x128xf32>
    %202 = math.rsqrt %201 : vector<8x128xf32>
    %203 = arith.mulf %197, %202 : vector<8x128xf32>
    %c0_139 = arith.constant 0 : index
    %c0_140 = arith.constant 0 : index
    %c0_141 = arith.constant 0 : index
    %204 = vector.load %arg29[%c0_139, %c0_140, %c0_141] : memref<4x1x128xf32, #tpu.memory_space<vmem>>, vector<1x1x128xf32>
    %205 = vector.shape_cast %204 : vector<1x1x128xf32> to vector<1x128xf32>
    %206 = vector.broadcast %205 : vector<1x128xf32> to vector<8x128xf32>
    %207 = arith.mulf %203, %206 : vector<8x128xf32>
    %c0_142 = arith.constant 0 : index
    %c0_143 = arith.constant 0 : index
    %c0_144 = arith.constant 0 : index
    %208 = vector.load %arg30[%c0_142, %c0_143, %c0_144] : memref<4x1x128xf32, #tpu.memory_space<vmem>>, vector<1x1x128xf32>
    %209 = vector.shape_cast %208 : vector<1x1x128xf32> to vector<1x128xf32>
    %210 = vector.broadcast %209 : vector<1x128xf32> to vector<8x128xf32>
    %211 = arith.addf %207, %210 : vector<8x128xf32>
    %cst_145 = arith.constant 0.000000e+00 : f32
    %212 = vector.broadcast %cst_145 : f32 to vector<8x128xf32>
    %213 = arith.maximumf %211, %212 : vector<8x128xf32>
    %cst_146 = arith.constant dense<0.000000e+00> : vector<8x32xf32>
    %214 = tpu.matmul %213, %8, %cst_146 {dimension_numbers = #tpu.dot_dimension_numbers<[1], [0], [0], [1], [0, 0, 1, 1], [], []>} : vector<8x128xf32>, vector<128x32xf32>, vector<8x32xf32> -> vector<8x32xf32>
    %215 = arith.addf %214, %9 : vector<8x32xf32>
    %c1_147 = arith.constant 1 : index
    %c0_148 = arith.constant 0 : index
    %c0_149 = arith.constant 0 : index
    %216 = vector.load %arg22[%c1_147, %c0_148, %c0_149] : memref<4x32x128xf32, #tpu.memory_space<vmem>>, vector<1x32x128xf32>
    %217 = vector.shape_cast %216 : vector<1x32x128xf32> to vector<32x128xf32>
    %cst_150 = arith.constant dense<0.000000e+00> : vector<16x128xf32>
    %218 = tpu.matmul %151, %217, %cst_150 {dimension_numbers = #tpu.dot_dimension_numbers<[1], [0], [0], [1], [0, 0, 1, 1], [], []>} : vector<16x32xf32>, vector<32x128xf32>, vector<16x128xf32> -> vector<16x128xf32>
    %c1_151 = arith.constant 1 : index
    %c0_152 = arith.constant 0 : index
    %c0_153 = arith.constant 0 : index
    %219 = vector.load %arg23[%c1_151, %c0_152, %c0_153] : memref<4x1x128xf32, #tpu.memory_space<vmem>>, vector<1x1x128xf32>
    %220 = vector.shape_cast %219 : vector<1x1x128xf32> to vector<1x128xf32>
    %221 = vector.broadcast %220 : vector<1x128xf32> to vector<16x128xf32>
    %222 = arith.addf %218, %221 : vector<16x128xf32>
    %cst_154 = arith.constant 0.000000e+00 : f32
    %223 = vector.broadcast %cst_154 : f32 to vector<16x128xf32>
    %224 = arith.maximumf %222, %223 : vector<16x128xf32>
    %c1_155 = arith.constant 1 : index
    %c0_156 = arith.constant 0 : index
    %c0_157 = arith.constant 0 : index
    %225 = vector.load %arg24[%c1_155, %c0_156, %c0_157] : memref<4x128x128xf32, #tpu.memory_space<vmem>>, vector<1x128x128xf32>
    %226 = vector.shape_cast %225 : vector<1x128x128xf32> to vector<128x128xf32>
    %cst_158 = arith.constant dense<0.000000e+00> : vector<16x128xf32>
    %227 = tpu.matmul %224, %226, %cst_158 {dimension_numbers = #tpu.dot_dimension_numbers<[1], [0], [0], [1], [0, 0, 1, 1], [], []>} : vector<16x128xf32>, vector<128x128xf32>, vector<16x128xf32> -> vector<16x128xf32>
    %c1_159 = arith.constant 1 : index
    %c0_160 = arith.constant 0 : index
    %c0_161 = arith.constant 0 : index
    %228 = vector.load %arg25[%c1_159, %c0_160, %c0_161] : memref<4x1x128xf32, #tpu.memory_space<vmem>>, vector<1x1x128xf32>
    %229 = vector.shape_cast %228 : vector<1x1x128xf32> to vector<1x128xf32>
    %230 = vector.broadcast %229 : vector<1x128xf32> to vector<16x128xf32>
    %231 = arith.addf %227, %230 : vector<16x128xf32>
    %232 = tpu.concatenate %215, %215, %215, %215 in 1 : vector<8x32xf32>, vector<8x32xf32>, vector<8x32xf32>, vector<8x32xf32> -> vector<8x128xf32>
    %233 = vector.shape_cast %231 : vector<16x128xf32> to vector<16x1x128xf32>
    %234 = vector.shape_cast %232 : vector<8x128xf32> to vector<1x8x128xf32>
    %235 = vector.broadcast %233 : vector<16x1x128xf32> to vector<16x8x128xf32>
    %236 = vector.broadcast %234 : vector<1x8x128xf32> to vector<16x8x128xf32>
    %237 = arith.mulf %235, %236 : vector<16x8x128xf32>
    %238 = vector.shape_cast %237 : vector<16x8x128xf32> to vector<128x128xf32>
    %239 = vector.shape_cast %238 : vector<128x128xf32> to vector<1x128x128xf32>
    %240 = vector.shape_cast %239 : vector<1x128x128xf32> to vector<1x128x128xf32>
    %241 = vector.broadcast %240 : vector<1x128x128xf32> to vector<4x128x128xf32>
    %242 = vector.broadcast %6 : vector<4x1x128xf32> to vector<4x128x128xf32>
    %243 = arith.mulf %241, %242 : vector<4x128x128xf32>
    %244 = vector.shape_cast %243 : vector<4x128x128xf32> to vector<512x128xf32>
    %245 = arith.truncf %244 : vector<512x128xf32> to vector<512x128xbf16>
    %cst_162 = arith.constant dense<0.000000e+00> : vector<8x128xf32>
    %246 = tpu.matmul %5, %245, %cst_162 {dimension_numbers = #tpu.dot_dimension_numbers<[1], [0], [0], [1], [0, 0, 1, 1], [], []>} : vector<8x512xbf16>, vector<512x128xbf16>, vector<8x128xf32> -> vector<8x128xf32>
    %cst_163 = arith.constant 1.000000e+00 : f32
    %247 = vector.broadcast %cst_163 : f32 to vector<8x128xf32>
    %248 = arith.addf %247, %246 : vector<8x128xf32>
    %c1_164 = arith.constant 1 : index
    %c0_165 = arith.constant 0 : index
    %c0_166 = arith.constant 0 : index
    %249 = vector.load %arg26[%c1_164, %c0_165, %c0_166] : memref<4x32x128xf32, #tpu.memory_space<vmem>>, vector<1x32x128xf32>
    %250 = vector.shape_cast %249 : vector<1x32x128xf32> to vector<32x128xf32>
    %cst_167 = arith.constant dense<0.000000e+00> : vector<8x128xf32>
    %251 = tpu.matmul %215, %250, %cst_167 {dimension_numbers = #tpu.dot_dimension_numbers<[1], [0], [0], [1], [0, 0, 1, 1], [], []>} : vector<8x32xf32>, vector<32x128xf32>, vector<8x128xf32> -> vector<8x128xf32>
    %c1_168 = arith.constant 1 : index
    %c0_169 = arith.constant 0 : index
    %c0_170 = arith.constant 0 : index
    %252 = vector.load %arg27[%c1_168, %c0_169, %c0_170] : memref<4x128x128xf32, #tpu.memory_space<vmem>>, vector<1x128x128xf32>
    %253 = vector.shape_cast %252 : vector<1x128x128xf32> to vector<128x128xf32>
    %cst_171 = arith.constant dense<0.000000e+00> : vector<8x128xf32>
    %254 = tpu.matmul %248, %253, %cst_171 {dimension_numbers = #tpu.dot_dimension_numbers<[1], [0], [0], [1], [0, 0, 1, 1], [], []>} : vector<8x128xf32>, vector<128x128xf32>, vector<8x128xf32> -> vector<8x128xf32>
    %255 = arith.addf %251, %254 : vector<8x128xf32>
    %c1_172 = arith.constant 1 : index
    %c0_173 = arith.constant 0 : index
    %c0_174 = arith.constant 0 : index
    %256 = vector.load %arg28[%c1_172, %c0_173, %c0_174] : memref<4x1x128xf32, #tpu.memory_space<vmem>>, vector<1x1x128xf32>
    %257 = vector.shape_cast %256 : vector<1x1x128xf32> to vector<1x128xf32>
    %258 = vector.broadcast %257 : vector<1x128xf32> to vector<8x128xf32>
    %259 = arith.addf %255, %258 : vector<8x128xf32>
    %cst_175 = arith.constant dense<0.000000e+00> : vector<8x128xf32>
    %260 = tpu.matmul %259, %7, %cst_175 {dimension_numbers = #tpu.dot_dimension_numbers<[1], [0], [0], [1], [0, 0, 1, 1], [], []>} : vector<8x128xf32>, vector<128x128xf32>, vector<8x128xf32> -> vector<8x128xf32>
    %261 = arith.subf %259, %260 : vector<8x128xf32>
    %262 = arith.mulf %261, %261 : vector<8x128xf32>
    %cst_176 = arith.constant dense<0.000000e+00> : vector<8x128xf32>
    %263 = tpu.matmul %262, %7, %cst_176 {dimension_numbers = #tpu.dot_dimension_numbers<[1], [0], [0], [1], [0, 0, 1, 1], [], []>} : vector<8x128xf32>, vector<128x128xf32>, vector<8x128xf32> -> vector<8x128xf32>
    %cst_177 = arith.constant 9.99999974E-6 : f32
    %264 = vector.broadcast %cst_177 : f32 to vector<8x128xf32>
    %265 = arith.addf %263, %264 : vector<8x128xf32>
    %266 = math.rsqrt %265 : vector<8x128xf32>
    %267 = arith.mulf %261, %266 : vector<8x128xf32>
    %c1_178 = arith.constant 1 : index
    %c0_179 = arith.constant 0 : index
    %c0_180 = arith.constant 0 : index
    %268 = vector.load %arg29[%c1_178, %c0_179, %c0_180] : memref<4x1x128xf32, #tpu.memory_space<vmem>>, vector<1x1x128xf32>
    %269 = vector.shape_cast %268 : vector<1x1x128xf32> to vector<1x128xf32>
    %270 = vector.broadcast %269 : vector<1x128xf32> to vector<8x128xf32>
    %271 = arith.mulf %267, %270 : vector<8x128xf32>
    %c1_181 = arith.constant 1 : index
    %c0_182 = arith.constant 0 : index
    %c0_183 = arith.constant 0 : index
    %272 = vector.load %arg30[%c1_181, %c0_182, %c0_183] : memref<4x1x128xf32, #tpu.memory_space<vmem>>, vector<1x1x128xf32>
    %273 = vector.shape_cast %272 : vector<1x1x128xf32> to vector<1x128xf32>
    %274 = vector.broadcast %273 : vector<1x128xf32> to vector<8x128xf32>
    %275 = arith.addf %271, %274 : vector<8x128xf32>
    %cst_184 = arith.constant 0.000000e+00 : f32
    %276 = vector.broadcast %cst_184 : f32 to vector<8x128xf32>
    %277 = arith.maximumf %275, %276 : vector<8x128xf32>
    %cst_185 = arith.constant dense<0.000000e+00> : vector<8x32xf32>
    %278 = tpu.matmul %277, %8, %cst_185 {dimension_numbers = #tpu.dot_dimension_numbers<[1], [0], [0], [1], [0, 0, 1, 1], [], []>} : vector<8x128xf32>, vector<128x32xf32>, vector<8x32xf32> -> vector<8x32xf32>
    %279 = arith.addf %278, %215 : vector<8x32xf32>
    %c2 = arith.constant 2 : index
    %c0_186 = arith.constant 0 : index
    %c0_187 = arith.constant 0 : index
    %280 = vector.load %arg9[%c2, %c0_186, %c0_187] : memref<4x32x32xf32, #tpu.memory_space<vmem>>, vector<1x32x32xf32>
    %281 = vector.shape_cast %280 : vector<1x32x32xf32> to vector<32x32xf32>
    %cst_188 = arith.constant dense<0.000000e+00> : vector<8x32xf32>
    %282 = tpu.matmul %279, %281, %cst_188 {dimension_numbers = #tpu.dot_dimension_numbers<[1], [0], [0], [1], [0, 0, 1, 1], [], []>} : vector<8x32xf32>, vector<32x32xf32>, vector<8x32xf32> -> vector<8x32xf32>
    %c2_189 = arith.constant 2 : index
    %c0_190 = arith.constant 0 : index
    %c0_191 = arith.constant 0 : index
    %283 = vector.load %arg10[%c2_189, %c0_190, %c0_191] : memref<4x1x32xf32, #tpu.memory_space<vmem>>, vector<1x1x32xf32>
    %284 = vector.shape_cast %283 : vector<1x1x32xf32> to vector<1x32xf32>
    %285 = vector.broadcast %284 : vector<1x32xf32> to vector<8x32xf32>
    %286 = arith.addf %282, %285 : vector<8x32xf32>
    %cst_192 = arith.constant 0.000000e+00 : f32
    %287 = vector.broadcast %cst_192 : f32 to vector<8x32xf32>
    %288 = arith.maximumf %286, %287 : vector<8x32xf32>
    %c2_193 = arith.constant 2 : index
    %c0_194 = arith.constant 0 : index
    %c0_195 = arith.constant 0 : index
    %289 = vector.load %arg11[%c2_193, %c0_194, %c0_195] : memref<4x32x32xf32, #tpu.memory_space<vmem>>, vector<1x32x32xf32>
    %290 = vector.shape_cast %289 : vector<1x32x32xf32> to vector<32x32xf32>
    %cst_196 = arith.constant dense<0.000000e+00> : vector<8x32xf32>
    %291 = tpu.matmul %288, %290, %cst_196 {dimension_numbers = #tpu.dot_dimension_numbers<[1], [0], [0], [1], [0, 0, 1, 1], [], []>} : vector<8x32xf32>, vector<32x32xf32>, vector<8x32xf32> -> vector<8x32xf32>
    %c2_197 = arith.constant 2 : index
    %c0_198 = arith.constant 0 : index
    %c0_199 = arith.constant 0 : index
    %292 = vector.load %arg12[%c2_197, %c0_198, %c0_199] : memref<4x1x32xf32, #tpu.memory_space<vmem>>, vector<1x1x32xf32>
    %293 = vector.shape_cast %292 : vector<1x1x32xf32> to vector<1x32xf32>
    %294 = vector.broadcast %293 : vector<1x32xf32> to vector<8x32xf32>
    %295 = arith.addf %291, %294 : vector<8x32xf32>
    %296 = vector.shape_cast %295 : vector<8x32xf32> to vector<8x1x32xf32>
    %297 = vector.shape_cast %151 : vector<16x32xf32> to vector<1x16x32xf32>
    %298 = vector.broadcast %296 : vector<8x1x32xf32> to vector<8x16x32xf32>
    %299 = vector.broadcast %297 : vector<1x16x32xf32> to vector<8x16x32xf32>
    %300 = arith.mulf %298, %299 : vector<8x16x32xf32>
    %301 = vector.shape_cast %300 : vector<8x16x32xf32> to vector<128x32xf32>
    %302 = arith.truncf %301 : vector<128x32xf32> to vector<128x32xbf16>
    %cst_200 = arith.constant dense<0.000000e+00> : vector<16x32xf32>
    %303 = tpu.matmul %4, %302, %cst_200 {dimension_numbers = #tpu.dot_dimension_numbers<[1], [0], [0], [1], [0, 0, 1, 1], [], []>} : vector<16x128xbf16>, vector<128x32xbf16>, vector<16x32xf32> -> vector<16x32xf32>
    %304 = arith.addf %3, %303 : vector<16x32xf32>
    %c2_201 = arith.constant 2 : index
    %c0_202 = arith.constant 0 : index
    %c0_203 = arith.constant 0 : index
    %305 = vector.load %arg13[%c2_201, %c0_202, %c0_203] : memref<4x32x32xf32, #tpu.memory_space<vmem>>, vector<1x32x32xf32>
    %306 = vector.shape_cast %305 : vector<1x32x32xf32> to vector<32x32xf32>
    %cst_204 = arith.constant dense<0.000000e+00> : vector<16x32xf32>
    %307 = tpu.matmul %151, %306, %cst_204 {dimension_numbers = #tpu.dot_dimension_numbers<[1], [0], [0], [1], [0, 0, 1, 1], [], []>} : vector<16x32xf32>, vector<32x32xf32>, vector<16x32xf32> -> vector<16x32xf32>
    %c2_205 = arith.constant 2 : index
    %c0_206 = arith.constant 0 : index
    %c0_207 = arith.constant 0 : index
    %308 = vector.load %arg14[%c2_205, %c0_206, %c0_207] : memref<4x32x32xf32, #tpu.memory_space<vmem>>, vector<1x32x32xf32>
    %309 = vector.shape_cast %308 : vector<1x32x32xf32> to vector<32x32xf32>
    %cst_208 = arith.constant dense<0.000000e+00> : vector<16x32xf32>
    %310 = tpu.matmul %304, %309, %cst_208 {dimension_numbers = #tpu.dot_dimension_numbers<[1], [0], [0], [1], [0, 0, 1, 1], [], []>} : vector<16x32xf32>, vector<32x32xf32>, vector<16x32xf32> -> vector<16x32xf32>
    %311 = arith.addf %307, %310 : vector<16x32xf32>
    %c2_209 = arith.constant 2 : index
    %c0_210 = arith.constant 0 : index
    %c0_211 = arith.constant 0 : index
    %312 = vector.load %arg15[%c2_209, %c0_210, %c0_211] : memref<4x1x32xf32, #tpu.memory_space<vmem>>, vector<1x1x32xf32>
    %313 = vector.shape_cast %312 : vector<1x1x32xf32> to vector<1x32xf32>
    %314 = vector.broadcast %313 : vector<1x32xf32> to vector<16x32xf32>
    %315 = arith.addf %311, %314 : vector<16x32xf32>
    %cst_212 = arith.constant dense<0.000000e+00> : vector<16xf32>
    %316 = vector.multi_reduction <add>, %315, %cst_212 [1] : vector<16x32xf32> to vector<16xf32>
    %317 = vector.shape_cast %316 : vector<16xf32> to vector<16x1xf32>
    %cst_213 = arith.constant 3.200000e+01 : f32
    %318 = vector.broadcast %cst_213 : f32 to vector<16x1xf32>
    %319 = arith.divf %317, %318 : vector<16x1xf32>
    %320 = vector.broadcast %319 : vector<16x1xf32> to vector<16x32xf32>
    %321 = arith.subf %315, %320 : vector<16x32xf32>
    %322 = arith.mulf %321, %321 : vector<16x32xf32>
    %cst_214 = arith.constant dense<0.000000e+00> : vector<16xf32>
    %323 = vector.multi_reduction <add>, %322, %cst_214 [1] : vector<16x32xf32> to vector<16xf32>
    %324 = vector.shape_cast %323 : vector<16xf32> to vector<16x1xf32>
    %cst_215 = arith.constant 3.200000e+01 : f32
    %325 = vector.broadcast %cst_215 : f32 to vector<16x1xf32>
    %326 = arith.divf %324, %325 : vector<16x1xf32>
    %cst_216 = arith.constant 9.99999974E-6 : f32
    %327 = vector.broadcast %cst_216 : f32 to vector<16x1xf32>
    %328 = arith.addf %326, %327 : vector<16x1xf32>
    %329 = math.rsqrt %328 : vector<16x1xf32>
    %330 = vector.broadcast %329 : vector<16x1xf32> to vector<16x32xf32>
    %331 = arith.mulf %321, %330 : vector<16x32xf32>
    %c2_217 = arith.constant 2 : index
    %c0_218 = arith.constant 0 : index
    %c0_219 = arith.constant 0 : index
    %332 = vector.load %arg16[%c2_217, %c0_218, %c0_219] : memref<4x1x32xf32, #tpu.memory_space<vmem>>, vector<1x1x32xf32>
    %333 = vector.shape_cast %332 : vector<1x1x32xf32> to vector<1x32xf32>
    %334 = vector.broadcast %333 : vector<1x32xf32> to vector<16x32xf32>
    %335 = arith.mulf %331, %334 : vector<16x32xf32>
    %c2_220 = arith.constant 2 : index
    %c0_221 = arith.constant 0 : index
    %c0_222 = arith.constant 0 : index
    %336 = vector.load %arg17[%c2_220, %c0_221, %c0_222] : memref<4x1x32xf32, #tpu.memory_space<vmem>>, vector<1x1x32xf32>
    %337 = vector.shape_cast %336 : vector<1x1x32xf32> to vector<1x32xf32>
    %338 = vector.broadcast %337 : vector<1x32xf32> to vector<16x32xf32>
    %339 = arith.addf %335, %338 : vector<16x32xf32>
    %cst_223 = arith.constant 0.000000e+00 : f32
    %340 = vector.broadcast %cst_223 : f32 to vector<16x32xf32>
    %341 = arith.maximumf %339, %340 : vector<16x32xf32>
    %342 = arith.addf %341, %151 : vector<16x32xf32>
    %c3 = arith.constant 3 : index
    %c0_224 = arith.constant 0 : index
    %c0_225 = arith.constant 0 : index
    %343 = vector.load %arg9[%c3, %c0_224, %c0_225] : memref<4x32x32xf32, #tpu.memory_space<vmem>>, vector<1x32x32xf32>
    %344 = vector.shape_cast %343 : vector<1x32x32xf32> to vector<32x32xf32>
    %cst_226 = arith.constant dense<0.000000e+00> : vector<8x32xf32>
    %345 = tpu.matmul %279, %344, %cst_226 {dimension_numbers = #tpu.dot_dimension_numbers<[1], [0], [0], [1], [0, 0, 1, 1], [], []>} : vector<8x32xf32>, vector<32x32xf32>, vector<8x32xf32> -> vector<8x32xf32>
    %c3_227 = arith.constant 3 : index
    %c0_228 = arith.constant 0 : index
    %c0_229 = arith.constant 0 : index
    %346 = vector.load %arg10[%c3_227, %c0_228, %c0_229] : memref<4x1x32xf32, #tpu.memory_space<vmem>>, vector<1x1x32xf32>
    %347 = vector.shape_cast %346 : vector<1x1x32xf32> to vector<1x32xf32>
    %348 = vector.broadcast %347 : vector<1x32xf32> to vector<8x32xf32>
    %349 = arith.addf %345, %348 : vector<8x32xf32>
    %cst_230 = arith.constant 0.000000e+00 : f32
    %350 = vector.broadcast %cst_230 : f32 to vector<8x32xf32>
    %351 = arith.maximumf %349, %350 : vector<8x32xf32>
    %c3_231 = arith.constant 3 : index
    %c0_232 = arith.constant 0 : index
    %c0_233 = arith.constant 0 : index
    %352 = vector.load %arg11[%c3_231, %c0_232, %c0_233] : memref<4x32x32xf32, #tpu.memory_space<vmem>>, vector<1x32x32xf32>
    %353 = vector.shape_cast %352 : vector<1x32x32xf32> to vector<32x32xf32>
    %cst_234 = arith.constant dense<0.000000e+00> : vector<8x32xf32>
    %354 = tpu.matmul %351, %353, %cst_234 {dimension_numbers = #tpu.dot_dimension_numbers<[1], [0], [0], [1], [0, 0, 1, 1], [], []>} : vector<8x32xf32>, vector<32x32xf32>, vector<8x32xf32> -> vector<8x32xf32>
    %c3_235 = arith.constant 3 : index
    %c0_236 = arith.constant 0 : index
    %c0_237 = arith.constant 0 : index
    %355 = vector.load %arg12[%c3_235, %c0_236, %c0_237] : memref<4x1x32xf32, #tpu.memory_space<vmem>>, vector<1x1x32xf32>
    %356 = vector.shape_cast %355 : vector<1x1x32xf32> to vector<1x32xf32>
    %357 = vector.broadcast %356 : vector<1x32xf32> to vector<8x32xf32>
    %358 = arith.addf %354, %357 : vector<8x32xf32>
    %359 = vector.shape_cast %358 : vector<8x32xf32> to vector<8x1x32xf32>
    %360 = vector.shape_cast %342 : vector<16x32xf32> to vector<1x16x32xf32>
    %361 = vector.broadcast %359 : vector<8x1x32xf32> to vector<8x16x32xf32>
    %362 = vector.broadcast %360 : vector<1x16x32xf32> to vector<8x16x32xf32>
    %363 = arith.mulf %361, %362 : vector<8x16x32xf32>
    %364 = vector.shape_cast %363 : vector<8x16x32xf32> to vector<128x32xf32>
    %365 = arith.truncf %364 : vector<128x32xf32> to vector<128x32xbf16>
    %cst_238 = arith.constant dense<0.000000e+00> : vector<16x32xf32>
    %366 = tpu.matmul %4, %365, %cst_238 {dimension_numbers = #tpu.dot_dimension_numbers<[1], [0], [0], [1], [0, 0, 1, 1], [], []>} : vector<16x128xbf16>, vector<128x32xbf16>, vector<16x32xf32> -> vector<16x32xf32>
    %367 = arith.addf %3, %366 : vector<16x32xf32>
    %c3_239 = arith.constant 3 : index
    %c0_240 = arith.constant 0 : index
    %c0_241 = arith.constant 0 : index
    %368 = vector.load %arg13[%c3_239, %c0_240, %c0_241] : memref<4x32x32xf32, #tpu.memory_space<vmem>>, vector<1x32x32xf32>
    %369 = vector.shape_cast %368 : vector<1x32x32xf32> to vector<32x32xf32>
    %cst_242 = arith.constant dense<0.000000e+00> : vector<16x32xf32>
    %370 = tpu.matmul %342, %369, %cst_242 {dimension_numbers = #tpu.dot_dimension_numbers<[1], [0], [0], [1], [0, 0, 1, 1], [], []>} : vector<16x32xf32>, vector<32x32xf32>, vector<16x32xf32> -> vector<16x32xf32>
    %c3_243 = arith.constant 3 : index
    %c0_244 = arith.constant 0 : index
    %c0_245 = arith.constant 0 : index
    %371 = vector.load %arg14[%c3_243, %c0_244, %c0_245] : memref<4x32x32xf32, #tpu.memory_space<vmem>>, vector<1x32x32xf32>
    %372 = vector.shape_cast %371 : vector<1x32x32xf32> to vector<32x32xf32>
    %cst_246 = arith.constant dense<0.000000e+00> : vector<16x32xf32>
    %373 = tpu.matmul %367, %372, %cst_246 {dimension_numbers = #tpu.dot_dimension_numbers<[1], [0], [0], [1], [0, 0, 1, 1], [], []>} : vector<16x32xf32>, vector<32x32xf32>, vector<16x32xf32> -> vector<16x32xf32>
    %374 = arith.addf %370, %373 : vector<16x32xf32>
    %c3_247 = arith.constant 3 : index
    %c0_248 = arith.constant 0 : index
    %c0_249 = arith.constant 0 : index
    %375 = vector.load %arg15[%c3_247, %c0_248, %c0_249] : memref<4x1x32xf32, #tpu.memory_space<vmem>>, vector<1x1x32xf32>
    %376 = vector.shape_cast %375 : vector<1x1x32xf32> to vector<1x32xf32>
    %377 = vector.broadcast %376 : vector<1x32xf32> to vector<16x32xf32>
    %378 = arith.addf %374, %377 : vector<16x32xf32>
    %cst_250 = arith.constant dense<0.000000e+00> : vector<16xf32>
    %379 = vector.multi_reduction <add>, %378, %cst_250 [1] : vector<16x32xf32> to vector<16xf32>
    %380 = vector.shape_cast %379 : vector<16xf32> to vector<16x1xf32>
    %cst_251 = arith.constant 3.200000e+01 : f32
    %381 = vector.broadcast %cst_251 : f32 to vector<16x1xf32>
    %382 = arith.divf %380, %381 : vector<16x1xf32>
    %383 = vector.broadcast %382 : vector<16x1xf32> to vector<16x32xf32>
    %384 = arith.subf %378, %383 : vector<16x32xf32>
    %385 = arith.mulf %384, %384 : vector<16x32xf32>
    %cst_252 = arith.constant dense<0.000000e+00> : vector<16xf32>
    %386 = vector.multi_reduction <add>, %385, %cst_252 [1] : vector<16x32xf32> to vector<16xf32>
    %387 = vector.shape_cast %386 : vector<16xf32> to vector<16x1xf32>
    %cst_253 = arith.constant 3.200000e+01 : f32
    %388 = vector.broadcast %cst_253 : f32 to vector<16x1xf32>
    %389 = arith.divf %387, %388 : vector<16x1xf32>
    %cst_254 = arith.constant 9.99999974E-6 : f32
    %390 = vector.broadcast %cst_254 : f32 to vector<16x1xf32>
    %391 = arith.addf %389, %390 : vector<16x1xf32>
    %392 = math.rsqrt %391 : vector<16x1xf32>
    %393 = vector.broadcast %392 : vector<16x1xf32> to vector<16x32xf32>
    %394 = arith.mulf %384, %393 : vector<16x32xf32>
    %c3_255 = arith.constant 3 : index
    %c0_256 = arith.constant 0 : index
    %c0_257 = arith.constant 0 : index
    %395 = vector.load %arg16[%c3_255, %c0_256, %c0_257] : memref<4x1x32xf32, #tpu.memory_space<vmem>>, vector<1x1x32xf32>
    %396 = vector.shape_cast %395 : vector<1x1x32xf32> to vector<1x32xf32>
    %397 = vector.broadcast %396 : vector<1x32xf32> to vector<16x32xf32>
    %398 = arith.mulf %394, %397 : vector<16x32xf32>
    %c3_258 = arith.constant 3 : index
    %c0_259 = arith.constant 0 : index
    %c0_260 = arith.constant 0 : index
    %399 = vector.load %arg17[%c3_258, %c0_259, %c0_260] : memref<4x1x32xf32, #tpu.memory_space<vmem>>, vector<1x1x32xf32>
    %400 = vector.shape_cast %399 : vector<1x1x32xf32> to vector<1x32xf32>
    %401 = vector.broadcast %400 : vector<1x32xf32> to vector<16x32xf32>
    %402 = arith.addf %398, %401 : vector<16x32xf32>
    %cst_261 = arith.constant 0.000000e+00 : f32
    %403 = vector.broadcast %cst_261 : f32 to vector<16x32xf32>
    %404 = arith.maximumf %402, %403 : vector<16x32xf32>
    %405 = arith.addf %404, %342 : vector<16x32xf32>
    %c1_262 = arith.constant 1 : index
    %c0_263 = arith.constant 0 : index
    %c0_264 = arith.constant 0 : index
    %406 = vector.load %arg18[%c1_262, %c0_263, %c0_264] : memref<2x32x64xf32, #tpu.memory_space<vmem>>, vector<1x32x64xf32>
    %407 = vector.shape_cast %406 : vector<1x32x64xf32> to vector<32x64xf32>
    %cst_265 = arith.constant dense<0.000000e+00> : vector<16x64xf32>
    %408 = tpu.matmul %405, %407, %cst_265 {dimension_numbers = #tpu.dot_dimension_numbers<[1], [0], [0], [1], [0, 0, 1, 1], [], []>} : vector<16x32xf32>, vector<32x64xf32>, vector<16x64xf32> -> vector<16x64xf32>
    %c1_266 = arith.constant 1 : index
    %c0_267 = arith.constant 0 : index
    %c0_268 = arith.constant 0 : index
    %409 = vector.load %arg19[%c1_266, %c0_267, %c0_268] : memref<2x1x64xf32, #tpu.memory_space<vmem>>, vector<1x1x64xf32>
    %410 = vector.shape_cast %409 : vector<1x1x64xf32> to vector<1x64xf32>
    %411 = vector.broadcast %410 : vector<1x64xf32> to vector<16x64xf32>
    %412 = arith.addf %408, %411 : vector<16x64xf32>
    %cst_269 = arith.constant 0.000000e+00 : f32
    %413 = vector.broadcast %cst_269 : f32 to vector<16x64xf32>
    %414 = arith.maximumf %412, %413 : vector<16x64xf32>
    %c1_270 = arith.constant 1 : index
    %c0_271 = arith.constant 0 : index
    %c0_272 = arith.constant 0 : index
    %415 = vector.load %arg20[%c1_270, %c0_271, %c0_272] : memref<2x64x32xf32, #tpu.memory_space<vmem>>, vector<1x64x32xf32>
    %416 = vector.shape_cast %415 : vector<1x64x32xf32> to vector<64x32xf32>
    %cst_273 = arith.constant dense<0.000000e+00> : vector<16x32xf32>
    %417 = tpu.matmul %414, %416, %cst_273 {dimension_numbers = #tpu.dot_dimension_numbers<[1], [0], [0], [1], [0, 0, 1, 1], [], []>} : vector<16x64xf32>, vector<64x32xf32>, vector<16x32xf32> -> vector<16x32xf32>
    %c1_274 = arith.constant 1 : index
    %c0_275 = arith.constant 0 : index
    %c0_276 = arith.constant 0 : index
    %418 = vector.load %arg21[%c1_274, %c0_275, %c0_276] : memref<2x1x32xf32, #tpu.memory_space<vmem>>, vector<1x1x32xf32>
    %419 = vector.shape_cast %418 : vector<1x1x32xf32> to vector<1x32xf32>
    %420 = vector.broadcast %419 : vector<1x32xf32> to vector<16x32xf32>
    %421 = arith.addf %417, %420 : vector<16x32xf32>
    %c2_277 = arith.constant 2 : index
    %c0_278 = arith.constant 0 : index
    %c0_279 = arith.constant 0 : index
    %422 = vector.load %arg22[%c2_277, %c0_278, %c0_279] : memref<4x32x128xf32, #tpu.memory_space<vmem>>, vector<1x32x128xf32>
    %423 = vector.shape_cast %422 : vector<1x32x128xf32> to vector<32x128xf32>
    %cst_280 = arith.constant dense<0.000000e+00> : vector<16x128xf32>
    %424 = tpu.matmul %421, %423, %cst_280 {dimension_numbers = #tpu.dot_dimension_numbers<[1], [0], [0], [1], [0, 0, 1, 1], [], []>} : vector<16x32xf32>, vector<32x128xf32>, vector<16x128xf32> -> vector<16x128xf32>
    %c2_281 = arith.constant 2 : index
    %c0_282 = arith.constant 0 : index
    %c0_283 = arith.constant 0 : index
    %425 = vector.load %arg23[%c2_281, %c0_282, %c0_283] : memref<4x1x128xf32, #tpu.memory_space<vmem>>, vector<1x1x128xf32>
    %426 = vector.shape_cast %425 : vector<1x1x128xf32> to vector<1x128xf32>
    %427 = vector.broadcast %426 : vector<1x128xf32> to vector<16x128xf32>
    %428 = arith.addf %424, %427 : vector<16x128xf32>
    %cst_284 = arith.constant 0.000000e+00 : f32
    %429 = vector.broadcast %cst_284 : f32 to vector<16x128xf32>
    %430 = arith.maximumf %428, %429 : vector<16x128xf32>
    %c2_285 = arith.constant 2 : index
    %c0_286 = arith.constant 0 : index
    %c0_287 = arith.constant 0 : index
    %431 = vector.load %arg24[%c2_285, %c0_286, %c0_287] : memref<4x128x128xf32, #tpu.memory_space<vmem>>, vector<1x128x128xf32>
    %432 = vector.shape_cast %431 : vector<1x128x128xf32> to vector<128x128xf32>
    %cst_288 = arith.constant dense<0.000000e+00> : vector<16x128xf32>
    %433 = tpu.matmul %430, %432, %cst_288 {dimension_numbers = #tpu.dot_dimension_numbers<[1], [0], [0], [1], [0, 0, 1, 1], [], []>} : vector<16x128xf32>, vector<128x128xf32>, vector<16x128xf32> -> vector<16x128xf32>
    %c2_289 = arith.constant 2 : index
    %c0_290 = arith.constant 0 : index
    %c0_291 = arith.constant 0 : index
    %434 = vector.load %arg25[%c2_289, %c0_290, %c0_291] : memref<4x1x128xf32, #tpu.memory_space<vmem>>, vector<1x1x128xf32>
    %435 = vector.shape_cast %434 : vector<1x1x128xf32> to vector<1x128xf32>
    %436 = vector.broadcast %435 : vector<1x128xf32> to vector<16x128xf32>
    %437 = arith.addf %433, %436 : vector<16x128xf32>
    %438 = tpu.concatenate %279, %279, %279, %279 in 1 : vector<8x32xf32>, vector<8x32xf32>, vector<8x32xf32>, vector<8x32xf32> -> vector<8x128xf32>
    %439 = vector.shape_cast %437 : vector<16x128xf32> to vector<16x1x128xf32>
    %440 = vector.shape_cast %438 : vector<8x128xf32> to vector<1x8x128xf32>
    %441 = vector.broadcast %439 : vector<16x1x128xf32> to vector<16x8x128xf32>
    %442 = vector.broadcast %440 : vector<1x8x128xf32> to vector<16x8x128xf32>
    %443 = arith.mulf %441, %442 : vector<16x8x128xf32>
    %444 = vector.shape_cast %443 : vector<16x8x128xf32> to vector<128x128xf32>
    %445 = vector.shape_cast %444 : vector<128x128xf32> to vector<1x128x128xf32>
    %446 = vector.shape_cast %445 : vector<1x128x128xf32> to vector<1x128x128xf32>
    %447 = vector.broadcast %446 : vector<1x128x128xf32> to vector<4x128x128xf32>
    %448 = vector.broadcast %6 : vector<4x1x128xf32> to vector<4x128x128xf32>
    %449 = arith.mulf %447, %448 : vector<4x128x128xf32>
    %450 = vector.shape_cast %449 : vector<4x128x128xf32> to vector<512x128xf32>
    %451 = arith.truncf %450 : vector<512x128xf32> to vector<512x128xbf16>
    %cst_292 = arith.constant dense<0.000000e+00> : vector<8x128xf32>
    %452 = tpu.matmul %5, %451, %cst_292 {dimension_numbers = #tpu.dot_dimension_numbers<[1], [0], [0], [1], [0, 0, 1, 1], [], []>} : vector<8x512xbf16>, vector<512x128xbf16>, vector<8x128xf32> -> vector<8x128xf32>
    %cst_293 = arith.constant 1.000000e+00 : f32
    %453 = vector.broadcast %cst_293 : f32 to vector<8x128xf32>
    %454 = arith.addf %453, %452 : vector<8x128xf32>
    %c2_294 = arith.constant 2 : index
    %c0_295 = arith.constant 0 : index
    %c0_296 = arith.constant 0 : index
    %455 = vector.load %arg26[%c2_294, %c0_295, %c0_296] : memref<4x32x128xf32, #tpu.memory_space<vmem>>, vector<1x32x128xf32>
    %456 = vector.shape_cast %455 : vector<1x32x128xf32> to vector<32x128xf32>
    %cst_297 = arith.constant dense<0.000000e+00> : vector<8x128xf32>
    %457 = tpu.matmul %279, %456, %cst_297 {dimension_numbers = #tpu.dot_dimension_numbers<[1], [0], [0], [1], [0, 0, 1, 1], [], []>} : vector<8x32xf32>, vector<32x128xf32>, vector<8x128xf32> -> vector<8x128xf32>
    %c2_298 = arith.constant 2 : index
    %c0_299 = arith.constant 0 : index
    %c0_300 = arith.constant 0 : index
    %458 = vector.load %arg27[%c2_298, %c0_299, %c0_300] : memref<4x128x128xf32, #tpu.memory_space<vmem>>, vector<1x128x128xf32>
    %459 = vector.shape_cast %458 : vector<1x128x128xf32> to vector<128x128xf32>
    %cst_301 = arith.constant dense<0.000000e+00> : vector<8x128xf32>
    %460 = tpu.matmul %454, %459, %cst_301 {dimension_numbers = #tpu.dot_dimension_numbers<[1], [0], [0], [1], [0, 0, 1, 1], [], []>} : vector<8x128xf32>, vector<128x128xf32>, vector<8x128xf32> -> vector<8x128xf32>
    %461 = arith.addf %457, %460 : vector<8x128xf32>
    %c2_302 = arith.constant 2 : index
    %c0_303 = arith.constant 0 : index
    %c0_304 = arith.constant 0 : index
    %462 = vector.load %arg28[%c2_302, %c0_303, %c0_304] : memref<4x1x128xf32, #tpu.memory_space<vmem>>, vector<1x1x128xf32>
    %463 = vector.shape_cast %462 : vector<1x1x128xf32> to vector<1x128xf32>
    %464 = vector.broadcast %463 : vector<1x128xf32> to vector<8x128xf32>
    %465 = arith.addf %461, %464 : vector<8x128xf32>
    %cst_305 = arith.constant dense<0.000000e+00> : vector<8x128xf32>
    %466 = tpu.matmul %465, %7, %cst_305 {dimension_numbers = #tpu.dot_dimension_numbers<[1], [0], [0], [1], [0, 0, 1, 1], [], []>} : vector<8x128xf32>, vector<128x128xf32>, vector<8x128xf32> -> vector<8x128xf32>
    %467 = arith.subf %465, %466 : vector<8x128xf32>
    %468 = arith.mulf %467, %467 : vector<8x128xf32>
    %cst_306 = arith.constant dense<0.000000e+00> : vector<8x128xf32>
    %469 = tpu.matmul %468, %7, %cst_306 {dimension_numbers = #tpu.dot_dimension_numbers<[1], [0], [0], [1], [0, 0, 1, 1], [], []>} : vector<8x128xf32>, vector<128x128xf32>, vector<8x128xf32> -> vector<8x128xf32>
    %cst_307 = arith.constant 9.99999974E-6 : f32
    %470 = vector.broadcast %cst_307 : f32 to vector<8x128xf32>
    %471 = arith.addf %469, %470 : vector<8x128xf32>
    %472 = math.rsqrt %471 : vector<8x128xf32>
    %473 = arith.mulf %467, %472 : vector<8x128xf32>
    %c2_308 = arith.constant 2 : index
    %c0_309 = arith.constant 0 : index
    %c0_310 = arith.constant 0 : index
    %474 = vector.load %arg29[%c2_308, %c0_309, %c0_310] : memref<4x1x128xf32, #tpu.memory_space<vmem>>, vector<1x1x128xf32>
    %475 = vector.shape_cast %474 : vector<1x1x128xf32> to vector<1x128xf32>
    %476 = vector.broadcast %475 : vector<1x128xf32> to vector<8x128xf32>
    %477 = arith.mulf %473, %476 : vector<8x128xf32>
    %c2_311 = arith.constant 2 : index
    %c0_312 = arith.constant 0 : index
    %c0_313 = arith.constant 0 : index
    %478 = vector.load %arg30[%c2_311, %c0_312, %c0_313] : memref<4x1x128xf32, #tpu.memory_space<vmem>>, vector<1x1x128xf32>
    %479 = vector.shape_cast %478 : vector<1x1x128xf32> to vector<1x128xf32>
    %480 = vector.broadcast %479 : vector<1x128xf32> to vector<8x128xf32>
    %481 = arith.addf %477, %480 : vector<8x128xf32>
    %cst_314 = arith.constant 0.000000e+00 : f32
    %482 = vector.broadcast %cst_314 : f32 to vector<8x128xf32>
    %483 = arith.maximumf %481, %482 : vector<8x128xf32>
    %cst_315 = arith.constant dense<0.000000e+00> : vector<8x32xf32>
    %484 = tpu.matmul %483, %8, %cst_315 {dimension_numbers = #tpu.dot_dimension_numbers<[1], [0], [0], [1], [0, 0, 1, 1], [], []>} : vector<8x128xf32>, vector<128x32xf32>, vector<8x32xf32> -> vector<8x32xf32>
    %485 = arith.addf %484, %279 : vector<8x32xf32>
    %c3_316 = arith.constant 3 : index
    %c0_317 = arith.constant 0 : index
    %c0_318 = arith.constant 0 : index
    %486 = vector.load %arg22[%c3_316, %c0_317, %c0_318] : memref<4x32x128xf32, #tpu.memory_space<vmem>>, vector<1x32x128xf32>
    %487 = vector.shape_cast %486 : vector<1x32x128xf32> to vector<32x128xf32>
    %cst_319 = arith.constant dense<0.000000e+00> : vector<16x128xf32>
    %488 = tpu.matmul %421, %487, %cst_319 {dimension_numbers = #tpu.dot_dimension_numbers<[1], [0], [0], [1], [0, 0, 1, 1], [], []>} : vector<16x32xf32>, vector<32x128xf32>, vector<16x128xf32> -> vector<16x128xf32>
    %c3_320 = arith.constant 3 : index
    %c0_321 = arith.constant 0 : index
    %c0_322 = arith.constant 0 : index
    %489 = vector.load %arg23[%c3_320, %c0_321, %c0_322] : memref<4x1x128xf32, #tpu.memory_space<vmem>>, vector<1x1x128xf32>
    %490 = vector.shape_cast %489 : vector<1x1x128xf32> to vector<1x128xf32>
    %491 = vector.broadcast %490 : vector<1x128xf32> to vector<16x128xf32>
    %492 = arith.addf %488, %491 : vector<16x128xf32>
    %cst_323 = arith.constant 0.000000e+00 : f32
    %493 = vector.broadcast %cst_323 : f32 to vector<16x128xf32>
    %494 = arith.maximumf %492, %493 : vector<16x128xf32>
    %c3_324 = arith.constant 3 : index
    %c0_325 = arith.constant 0 : index
    %c0_326 = arith.constant 0 : index
    %495 = vector.load %arg24[%c3_324, %c0_325, %c0_326] : memref<4x128x128xf32, #tpu.memory_space<vmem>>, vector<1x128x128xf32>
    %496 = vector.shape_cast %495 : vector<1x128x128xf32> to vector<128x128xf32>
    %cst_327 = arith.constant dense<0.000000e+00> : vector<16x128xf32>
    %497 = tpu.matmul %494, %496, %cst_327 {dimension_numbers = #tpu.dot_dimension_numbers<[1], [0], [0], [1], [0, 0, 1, 1], [], []>} : vector<16x128xf32>, vector<128x128xf32>, vector<16x128xf32> -> vector<16x128xf32>
    %c3_328 = arith.constant 3 : index
    %c0_329 = arith.constant 0 : index
    %c0_330 = arith.constant 0 : index
    %498 = vector.load %arg25[%c3_328, %c0_329, %c0_330] : memref<4x1x128xf32, #tpu.memory_space<vmem>>, vector<1x1x128xf32>
    %499 = vector.shape_cast %498 : vector<1x1x128xf32> to vector<1x128xf32>
    %500 = vector.broadcast %499 : vector<1x128xf32> to vector<16x128xf32>
    %501 = arith.addf %497, %500 : vector<16x128xf32>
    %502 = tpu.concatenate %485, %485, %485, %485 in 1 : vector<8x32xf32>, vector<8x32xf32>, vector<8x32xf32>, vector<8x32xf32> -> vector<8x128xf32>
    %503 = vector.shape_cast %501 : vector<16x128xf32> to vector<16x1x128xf32>
    %504 = vector.shape_cast %502 : vector<8x128xf32> to vector<1x8x128xf32>
    %505 = vector.broadcast %503 : vector<16x1x128xf32> to vector<16x8x128xf32>
    %506 = vector.broadcast %504 : vector<1x8x128xf32> to vector<16x8x128xf32>
    %507 = arith.mulf %505, %506 : vector<16x8x128xf32>
    %508 = vector.shape_cast %507 : vector<16x8x128xf32> to vector<128x128xf32>
    %509 = vector.shape_cast %508 : vector<128x128xf32> to vector<1x128x128xf32>
    %510 = vector.shape_cast %509 : vector<1x128x128xf32> to vector<1x128x128xf32>
    %511 = vector.broadcast %510 : vector<1x128x128xf32> to vector<4x128x128xf32>
    %512 = vector.broadcast %6 : vector<4x1x128xf32> to vector<4x128x128xf32>
    %513 = arith.mulf %511, %512 : vector<4x128x128xf32>
    %514 = vector.shape_cast %513 : vector<4x128x128xf32> to vector<512x128xf32>
    %515 = arith.truncf %514 : vector<512x128xf32> to vector<512x128xbf16>
    %cst_331 = arith.constant dense<0.000000e+00> : vector<8x128xf32>
    %516 = tpu.matmul %5, %515, %cst_331 {dimension_numbers = #tpu.dot_dimension_numbers<[1], [0], [0], [1], [0, 0, 1, 1], [], []>} : vector<8x512xbf16>, vector<512x128xbf16>, vector<8x128xf32> -> vector<8x128xf32>
    %cst_332 = arith.constant 1.000000e+00 : f32
    %517 = vector.broadcast %cst_332 : f32 to vector<8x128xf32>
    %518 = arith.addf %517, %516 : vector<8x128xf32>
    %c3_333 = arith.constant 3 : index
    %c0_334 = arith.constant 0 : index
    %c0_335 = arith.constant 0 : index
    %519 = vector.load %arg26[%c3_333, %c0_334, %c0_335] : memref<4x32x128xf32, #tpu.memory_space<vmem>>, vector<1x32x128xf32>
    %520 = vector.shape_cast %519 : vector<1x32x128xf32> to vector<32x128xf32>
    %cst_336 = arith.constant dense<0.000000e+00> : vector<8x128xf32>
    %521 = tpu.matmul %485, %520, %cst_336 {dimension_numbers = #tpu.dot_dimension_numbers<[1], [0], [0], [1], [0, 0, 1, 1], [], []>} : vector<8x32xf32>, vector<32x128xf32>, vector<8x128xf32> -> vector<8x128xf32>
    %c3_337 = arith.constant 3 : index
    %c0_338 = arith.constant 0 : index
    %c0_339 = arith.constant 0 : index
    %522 = vector.load %arg27[%c3_337, %c0_338, %c0_339] : memref<4x128x128xf32, #tpu.memory_space<vmem>>, vector<1x128x128xf32>
    %523 = vector.shape_cast %522 : vector<1x128x128xf32> to vector<128x128xf32>
    %cst_340 = arith.constant dense<0.000000e+00> : vector<8x128xf32>
    %524 = tpu.matmul %518, %523, %cst_340 {dimension_numbers = #tpu.dot_dimension_numbers<[1], [0], [0], [1], [0, 0, 1, 1], [], []>} : vector<8x128xf32>, vector<128x128xf32>, vector<8x128xf32> -> vector<8x128xf32>
    %525 = arith.addf %521, %524 : vector<8x128xf32>
    %c3_341 = arith.constant 3 : index
    %c0_342 = arith.constant 0 : index
    %c0_343 = arith.constant 0 : index
    %526 = vector.load %arg28[%c3_341, %c0_342, %c0_343] : memref<4x1x128xf32, #tpu.memory_space<vmem>>, vector<1x1x128xf32>
    %527 = vector.shape_cast %526 : vector<1x1x128xf32> to vector<1x128xf32>
    %528 = vector.broadcast %527 : vector<1x128xf32> to vector<8x128xf32>
    %529 = arith.addf %525, %528 : vector<8x128xf32>
    %cst_344 = arith.constant dense<0.000000e+00> : vector<8x128xf32>
    %530 = tpu.matmul %529, %7, %cst_344 {dimension_numbers = #tpu.dot_dimension_numbers<[1], [0], [0], [1], [0, 0, 1, 1], [], []>} : vector<8x128xf32>, vector<128x128xf32>, vector<8x128xf32> -> vector<8x128xf32>
    %531 = arith.subf %529, %530 : vector<8x128xf32>
    %532 = arith.mulf %531, %531 : vector<8x128xf32>
    %cst_345 = arith.constant dense<0.000000e+00> : vector<8x128xf32>
    %533 = tpu.matmul %532, %7, %cst_345 {dimension_numbers = #tpu.dot_dimension_numbers<[1], [0], [0], [1], [0, 0, 1, 1], [], []>} : vector<8x128xf32>, vector<128x128xf32>, vector<8x128xf32> -> vector<8x128xf32>
    %cst_346 = arith.constant 9.99999974E-6 : f32
    %534 = vector.broadcast %cst_346 : f32 to vector<8x128xf32>
    %535 = arith.addf %533, %534 : vector<8x128xf32>
    %536 = math.rsqrt %535 : vector<8x128xf32>
    %537 = arith.mulf %531, %536 : vector<8x128xf32>
    %c3_347 = arith.constant 3 : index
    %c0_348 = arith.constant 0 : index
    %c0_349 = arith.constant 0 : index
    %538 = vector.load %arg29[%c3_347, %c0_348, %c0_349] : memref<4x1x128xf32, #tpu.memory_space<vmem>>, vector<1x1x128xf32>
    %539 = vector.shape_cast %538 : vector<1x1x128xf32> to vector<1x128xf32>
    %540 = vector.broadcast %539 : vector<1x128xf32> to vector<8x128xf32>
    %541 = arith.mulf %537, %540 : vector<8x128xf32>
    %c3_350 = arith.constant 3 : index
    %c0_351 = arith.constant 0 : index
    %c0_352 = arith.constant 0 : index
    %542 = vector.load %arg30[%c3_350, %c0_351, %c0_352] : memref<4x1x128xf32, #tpu.memory_space<vmem>>, vector<1x1x128xf32>
    %543 = vector.shape_cast %542 : vector<1x1x128xf32> to vector<1x128xf32>
    %544 = vector.broadcast %543 : vector<1x128xf32> to vector<8x128xf32>
    %545 = arith.addf %541, %544 : vector<8x128xf32>
    %cst_353 = arith.constant 0.000000e+00 : f32
    %546 = vector.broadcast %cst_353 : f32 to vector<8x128xf32>
    %547 = arith.maximumf %545, %546 : vector<8x128xf32>
    %cst_354 = arith.constant dense<0.000000e+00> : vector<8x32xf32>
    %548 = tpu.matmul %547, %8, %cst_354 {dimension_numbers = #tpu.dot_dimension_numbers<[1], [0], [0], [1], [0, 0, 1, 1], [], []>} : vector<8x128xf32>, vector<128x32xf32>, vector<8x32xf32> -> vector<8x32xf32>
    %549 = arith.addf %548, %485 : vector<8x32xf32>
    %c0_355 = arith.constant 0 : index
    %c0_356 = arith.constant 0 : index
    %c0_357 = arith.constant 0 : index
    %550 = vector.load %arg3[%c0_355, %c0_356, %c0_357] : memref<1x4x8xf32, #tpu.memory_space<vmem>>, vector<1x4x8xf32>
    %551 = vector.shape_cast %550 : vector<1x4x8xf32> to vector<4x8xf32>
    %cst_358 = arith.constant dense<0.000000e+00> : vector<4x32xf32>
    %552 = tpu.matmul %551, %549, %cst_358 {dimension_numbers = #tpu.dot_dimension_numbers<[1], [0], [0], [1], [0, 0, 1, 1], [], []>} : vector<4x8xf32>, vector<8x32xf32>, vector<4x32xf32> -> vector<4x32xf32>
    %c0_359 = arith.constant 0 : index
    %c0_360 = arith.constant 0 : index
    %553 = vector.load %arg31[%c0_359, %c0_360] : memref<32x32xf32, #tpu.memory_space<vmem>>, vector<32x32xf32>
    %cst_361 = arith.constant dense<0.000000e+00> : vector<4x32xf32>
    %554 = tpu.matmul %552, %553, %cst_361 {dimension_numbers = #tpu.dot_dimension_numbers<[1], [0], [0], [1], [0, 0, 1, 1], [], []>} : vector<4x32xf32>, vector<32x32xf32>, vector<4x32xf32> -> vector<4x32xf32>
    %c0_362 = arith.constant 0 : index
    %c0_363 = arith.constant 0 : index
    %555 = vector.load %arg32[%c0_362, %c0_363] : memref<1x32xf32, #tpu.memory_space<vmem>>, vector<1x32xf32>
    %556 = vector.broadcast %555 : vector<1x32xf32> to vector<4x32xf32>
    %557 = arith.addf %554, %556 : vector<4x32xf32>
    %cst_364 = arith.constant 0.000000e+00 : f32
    %558 = vector.broadcast %cst_364 : f32 to vector<4x32xf32>
    %559 = arith.maximumf %557, %558 : vector<4x32xf32>
    %c0_365 = arith.constant 0 : index
    %c0_366 = arith.constant 0 : index
    %560 = vector.load %arg33[%c0_365, %c0_366] : memref<32x1xf32, #tpu.memory_space<vmem>>, vector<32x1xf32>
    %cst_367 = arith.constant dense<0.000000e+00> : vector<4x1xf32>
    %561 = tpu.matmul %559, %560, %cst_367 {dimension_numbers = #tpu.dot_dimension_numbers<[1], [0], [0], [1], [0, 0, 1, 1], [], []>} : vector<4x32xf32>, vector<32x1xf32>, vector<4x1xf32> -> vector<4x1xf32>
    %c0_368 = arith.constant 0 : index
    %c0_369 = arith.constant 0 : index
    %562 = vector.load %arg34[%c0_368, %c0_369] : memref<1x1xf32, #tpu.memory_space<vmem>>, vector<1x1xf32>
    %563 = vector.broadcast %562 : vector<1x1xf32> to vector<4x1xf32>
    %564 = arith.addf %561, %563 : vector<4x1xf32>
    %c0_370 = arith.constant 0 : index
    %c0_371 = arith.constant 0 : index
    %c0_372 = arith.constant 0 : index
    %565 = vector.load %arg35[%c0_370, %c0_371, %c0_372] : memref<1x4x1xf32, #tpu.memory_space<vmem>>, vector<1x4x1xf32>
    %566 = vector.shape_cast %565 : vector<1x4x1xf32> to vector<4x1xf32>
    %567 = vector.shape_cast %564 : vector<4x1xf32> to vector<1x4x1xf32>
    tpu.vector_store %arg35[%c0_370, %c0_371, %c0_372], %567 {strides = array<i32>} : memref<1x4x1xf32, #tpu.memory_space<vmem>>, vector<1x4x1xf32>,
    return
  }
  func.func @transform_0(%arg0: i32) -> (i32, i32, i32) {
    %c0_i32 = arith.constant 0 : i32
    %c0_i32_0 = arith.constant 0 : i32
    %c0_i32_1 = arith.constant 0 : i32
    return %arg0, %c0_i32, %c0_i32_0 : i32, i32, i32
  }
  func.func @transform_1(%arg0: i32) -> (i32, i32, i32) {
    %c0_i32 = arith.constant 0 : i32
    %c0_i32_0 = arith.constant 0 : i32
    %c0_i32_1 = arith.constant 0 : i32
    return %arg0, %c0_i32, %c0_i32_0 : i32, i32, i32
  }
  func.func @transform_2(%arg0: i32) -> (i32, i32, i32) {
    %c0_i32 = arith.constant 0 : i32
    %c0_i32_0 = arith.constant 0 : i32
    %c0_i32_1 = arith.constant 0 : i32
    return %arg0, %c0_i32, %c0_i32_0 : i32, i32, i32
  }
  func.func @transform_3(%arg0: i32) -> (i32, i32) {
    %c0_i32 = arith.constant 0 : i32
    %c0_i32_0 = arith.constant 0 : i32
    %c0_i32_1 = arith.constant 0 : i32
    return %c0_i32, %c0_i32_0 : i32, i32
  }
  func.func @transform_4(%arg0: i32) -> (i32, i32) {
    %c0_i32 = arith.constant 0 : i32
    %c0_i32_0 = arith.constant 0 : i32
    %c0_i32_1 = arith.constant 0 : i32
    return %c0_i32, %c0_i32_0 : i32, i32
  }
  func.func @transform_5(%arg0: i32) -> (i32, i32, i32) {
    %c0_i32 = arith.constant 0 : i32
    %c0_i32_0 = arith.constant 0 : i32
    %c0_i32_1 = arith.constant 0 : i32
    %c0_i32_2 = arith.constant 0 : i32
    return %c0_i32, %c0_i32_0, %c0_i32_1 : i32, i32, i32
  }
  func.func @transform_6(%arg0: i32) -> (i32, i32) {
    %c0_i32 = arith.constant 0 : i32
    %c0_i32_0 = arith.constant 0 : i32
    %c0_i32_1 = arith.constant 0 : i32
    return %c0_i32, %c0_i32_0 : i32, i32
  }
  func.func @transform_7(%arg0: i32) -> (i32, i32) {
    %c0_i32 = arith.constant 0 : i32
    %c0_i32_0 = arith.constant 0 : i32
    %c0_i32_1 = arith.constant 0 : i32
    return %c0_i32, %c0_i32_0 : i32, i32
  }
  func.func @transform_8(%arg0: i32) -> (i32, i32, i32) {
    %c0_i32 = arith.constant 0 : i32
    %c0_i32_0 = arith.constant 0 : i32
    %c0_i32_1 = arith.constant 0 : i32
    %c0_i32_2 = arith.constant 0 : i32
    return %c0_i32, %c0_i32_0, %c0_i32_1 : i32, i32, i32
  }
  func.func @transform_9(%arg0: i32) -> (i32, i32, i32) {
    %c0_i32 = arith.constant 0 : i32
    %c0_i32_0 = arith.constant 0 : i32
    %c0_i32_1 = arith.constant 0 : i32
    %c0_i32_2 = arith.constant 0 : i32
    return %c0_i32, %c0_i32_0, %c0_i32_1 : i32, i32, i32
  }
  func.func @transform_10(%arg0: i32) -> (i32, i32, i32) {
    %c0_i32 = arith.constant 0 : i32
    %c0_i32_0 = arith.constant 0 : i32
    %c0_i32_1 = arith.constant 0 : i32
    %c0_i32_2 = arith.constant 0 : i32
    return %c0_i32, %c0_i32_0, %c0_i32_1 : i32, i32, i32
  }
  func.func @transform_11(%arg0: i32) -> (i32, i32, i32) {
    %c0_i32 = arith.constant 0 : i32
    %c0_i32_0 = arith.constant 0 : i32
    %c0_i32_1 = arith.constant 0 : i32
    %c0_i32_2 = arith.constant 0 : i32
    return %c0_i32, %c0_i32_0, %c0_i32_1 : i32, i32, i32
  }
  func.func @transform_12(%arg0: i32) -> (i32, i32, i32) {
    %c0_i32 = arith.constant 0 : i32
    %c0_i32_0 = arith.constant 0 : i32
    %c0_i32_1 = arith.constant 0 : i32
    %c0_i32_2 = arith.constant 0 : i32
    return %c0_i32, %c0_i32_0, %c0_i32_1 : i32, i32, i32
  }
  func.func @transform_13(%arg0: i32) -> (i32, i32, i32) {
    %c0_i32 = arith.constant 0 : i32
    %c0_i32_0 = arith.constant 0 : i32
    %c0_i32_1 = arith.constant 0 : i32
    %c0_i32_2 = arith.constant 0 : i32
    return %c0_i32, %c0_i32_0, %c0_i32_1 : i32, i32, i32
  }
  func.func @transform_14(%arg0: i32) -> (i32, i32, i32) {
    %c0_i32 = arith.constant 0 : i32
    %c0_i32_0 = arith.constant 0 : i32
    %c0_i32_1 = arith.constant 0 : i32
    %c0_i32_2 = arith.constant 0 : i32
    return %c0_i32, %c0_i32_0, %c0_i32_1 : i32, i32, i32
  }
  func.func @transform_15(%arg0: i32) -> (i32, i32, i32) {
    %c0_i32 = arith.constant 0 : i32
    %c0_i32_0 = arith.constant 0 : i32
    %c0_i32_1 = arith.constant 0 : i32
    %c0_i32_2 = arith.constant 0 : i32
    return %c0_i32, %c0_i32_0, %c0_i32_1 : i32, i32, i32
  }
  func.func @transform_16(%arg0: i32) -> (i32, i32, i32) {
    %c0_i32 = arith.constant 0 : i32
    %c0_i32_0 = arith.constant 0 : i32
    %c0_i32_1 = arith.constant 0 : i32
    %c0_i32_2 = arith.constant 0 : i32
    return %c0_i32, %c0_i32_0, %c0_i32_1 : i32, i32, i32
  }
  func.func @transform_17(%arg0: i32) -> (i32, i32, i32) {
    %c0_i32 = arith.constant 0 : i32
    %c0_i32_0 = arith.constant 0 : i32
    %c0_i32_1 = arith.constant 0 : i32
    %c0_i32_2 = arith.constant 0 : i32
    return %c0_i32, %c0_i32_0, %c0_i32_1 : i32, i32, i32
  }
  func.func @transform_18(%arg0: i32) -> (i32, i32, i32) {
    %c0_i32 = arith.constant 0 : i32
    %c0_i32_0 = arith.constant 0 : i32
    %c0_i32_1 = arith.constant 0 : i32
    %c0_i32_2 = arith.constant 0 : i32
    return %c0_i32, %c0_i32_0, %c0_i32_1 : i32, i32, i32
  }
  func.func @transform_19(%arg0: i32) -> (i32, i32, i32) {
    %c0_i32 = arith.constant 0 : i32
    %c0_i32_0 = arith.constant 0 : i32
    %c0_i32_1 = arith.constant 0 : i32
    %c0_i32_2 = arith.constant 0 : i32
    return %c0_i32, %c0_i32_0, %c0_i32_1 : i32, i32, i32
  }
  func.func @transform_20(%arg0: i32) -> (i32, i32, i32) {
    %c0_i32 = arith.constant 0 : i32
    %c0_i32_0 = arith.constant 0 : i32
    %c0_i32_1 = arith.constant 0 : i32
    %c0_i32_2 = arith.constant 0 : i32
    return %c0_i32, %c0_i32_0, %c0_i32_1 : i32, i32, i32
  }
  func.func @transform_21(%arg0: i32) -> (i32, i32, i32) {
    %c0_i32 = arith.constant 0 : i32
    %c0_i32_0 = arith.constant 0 : i32
    %c0_i32_1 = arith.constant 0 : i32
    %c0_i32_2 = arith.constant 0 : i32
    return %c0_i32, %c0_i32_0, %c0_i32_1 : i32, i32, i32
  }
  func.func @transform_22(%arg0: i32) -> (i32, i32, i32) {
    %c0_i32 = arith.constant 0 : i32
    %c0_i32_0 = arith.constant 0 : i32
    %c0_i32_1 = arith.constant 0 : i32
    %c0_i32_2 = arith.constant 0 : i32
    return %c0_i32, %c0_i32_0, %c0_i32_1 : i32, i32, i32
  }
  func.func @transform_23(%arg0: i32) -> (i32, i32, i32) {
    %c0_i32 = arith.constant 0 : i32
    %c0_i32_0 = arith.constant 0 : i32
    %c0_i32_1 = arith.constant 0 : i32
    %c0_i32_2 = arith.constant 0 : i32
    return %c0_i32, %c0_i32_0, %c0_i32_1 : i32, i32, i32
  }
  func.func @transform_24(%arg0: i32) -> (i32, i32, i32) {
    %c0_i32 = arith.constant 0 : i32
    %c0_i32_0 = arith.constant 0 : i32
    %c0_i32_1 = arith.constant 0 : i32
    %c0_i32_2 = arith.constant 0 : i32
    return %c0_i32, %c0_i32_0, %c0_i32_1 : i32, i32, i32
  }
  func.func @transform_25(%arg0: i32) -> (i32, i32, i32) {
    %c0_i32 = arith.constant 0 : i32
    %c0_i32_0 = arith.constant 0 : i32
    %c0_i32_1 = arith.constant 0 : i32
    %c0_i32_2 = arith.constant 0 : i32
    return %c0_i32, %c0_i32_0, %c0_i32_1 : i32, i32, i32
  }
  func.func @transform_26(%arg0: i32) -> (i32, i32, i32) {
    %c0_i32 = arith.constant 0 : i32
    %c0_i32_0 = arith.constant 0 : i32
    %c0_i32_1 = arith.constant 0 : i32
    %c0_i32_2 = arith.constant 0 : i32
    return %c0_i32, %c0_i32_0, %c0_i32_1 : i32, i32, i32
  }
  func.func @transform_27(%arg0: i32) -> (i32, i32, i32) {
    %c0_i32 = arith.constant 0 : i32
    %c0_i32_0 = arith.constant 0 : i32
    %c0_i32_1 = arith.constant 0 : i32
    %c0_i32_2 = arith.constant 0 : i32
    return %c0_i32, %c0_i32_0, %c0_i32_1 : i32, i32, i32
  }
  func.func @transform_28(%arg0: i32) -> (i32, i32, i32) {
    %c0_i32 = arith.constant 0 : i32
    %c0_i32_0 = arith.constant 0 : i32
    %c0_i32_1 = arith.constant 0 : i32
    %c0_i32_2 = arith.constant 0 : i32
    return %c0_i32, %c0_i32_0, %c0_i32_1 : i32, i32, i32
  }
  func.func @transform_29(%arg0: i32) -> (i32, i32, i32) {
    %c0_i32 = arith.constant 0 : i32
    %c0_i32_0 = arith.constant 0 : i32
    %c0_i32_1 = arith.constant 0 : i32
    %c0_i32_2 = arith.constant 0 : i32
    return %c0_i32, %c0_i32_0, %c0_i32_1 : i32, i32, i32
  }
  func.func @transform_30(%arg0: i32) -> (i32, i32) {
    %c0_i32 = arith.constant 0 : i32
    %c0_i32_0 = arith.constant 0 : i32
    %c0_i32_1 = arith.constant 0 : i32
    return %c0_i32, %c0_i32_0 : i32, i32
  }
  func.func @transform_31(%arg0: i32) -> (i32, i32) {
    %c0_i32 = arith.constant 0 : i32
    %c0_i32_0 = arith.constant 0 : i32
    %c0_i32_1 = arith.constant 0 : i32
    return %c0_i32, %c0_i32_0 : i32, i32
  }
  func.func @transform_32(%arg0: i32) -> (i32, i32) {
    %c0_i32 = arith.constant 0 : i32
    %c0_i32_0 = arith.constant 0 : i32
    %c0_i32_1 = arith.constant 0 : i32
    return %c0_i32, %c0_i32_0 : i32, i32
  }
  func.func @transform_33(%arg0: i32) -> (i32, i32) {
    %c0_i32 = arith.constant 0 : i32
    %c0_i32_0 = arith.constant 0 : i32
    %c0_i32_1 = arith.constant 0 : i32
    return %c0_i32, %c0_i32_0 : i32, i32
  }
  func.func @transform_34(%arg0: i32) -> (i32, i32, i32) {
    %c0_i32 = arith.constant 0 : i32
    %c0_i32_0 = arith.constant 0 : i32
    %c0_i32_1 = arith.constant 0 : i32
    return %arg0, %c0_i32, %c0_i32_0 : i32, i32, i32
  }
}

</mosaic_0001>

<bundles_post_ra>
// kernel: _lambda_.1
= control target key start
LH: loop header
LB: loop body
LE: loop exit
PB: predicated region body
PF: predicated region fallthrough
CT: control target
= control target key end

     0   :  { %s12450_s6 = smov 1   ;;  %s12451_s10 = smov 2   ;;  %s14565_s0 = inlined_call_operand.smem [shape: u32[35], index: -1, kind: input, shape index: {}] }
   0x1   :  { %s12527_s5 = sld [smem:[%s14565_s0]]   ;;  %s12452_s14 = smov 3  }
   0x2   :  { %s12532_s9 = sld [smem:[%s14565_s0 + %s12450_s6]]   ;;  %s12453_s18 = smov 4  }
   0x3   :  { %s12537_s13 = sld [smem:[%s14565_s0 + %s12451_s10]]   ;;  %s12454_s22 = smov 5  }
   0x4   :  { %s12542_s17 = sld [smem:[%s14565_s0 + %s12452_s14]]   ;;  %s12455_s26 = smov 6  }
   0x5   :  { %s12547_s21 = sld [smem:[%s14565_s0 + %s12453_s18]]   ;;  %s12456_s30 = smov 7  }
   0x6   :  { %s12552_s25 = sld [smem:[%s14565_s0 + %s12454_s22]]   ;;  %s12457_s4 = smov 8  }
   0x7   :  { %14606 = sst [smem:[#allocation50_spill]] %s12527_s5  ;;  %s12458_s10 = smov 9  }
   0x8   :  { %14607 = sst [smem:[#allocation51_spill]] %s12532_s9  ;;  %s12459_s15 = smov 10  }
   0x9   :  { %14608 = sst [smem:[#allocation52_spill]] %s12537_s13  ;;  %s12460_s20 = smov 11  }
   0xa   :  { %14609 = sst [smem:[#allocation53_spill]] %s12542_s17  ;;  %s12462_s1 = smov 13  }
   0xb   :  { %14610 = sst [smem:[#allocation54_spill]] %s12547_s21  ;;  %s12463_s7 = smov 14  }
   0xc   :  { %14611 = sst [smem:[#allocation55_spill]] %s12552_s25  ;;  %s12465_s22 = smov 16  }
   0xd   :  { %s12557_s29 = sld [smem:[%s14565_s0 + %s12455_s26]]   ;;  %s12461_s26 = smov 12  }
   0xe   :  { %s12562_s3 = sld [smem:[%s14565_s0 + %s12456_s30]]   ;;  %s12466_s28 = smov 17  }
   0xf   :  { %s12567_s8 = sld [smem:[%s14565_s0 + %s12457_s4]]  }
  0x10   :  { %s12572_s14 = sld [smem:[%s14565_s0 + %s12458_s10]]   ;;  %s12483_s10 = smov 34  }
  0x11   :  { %s12577_s19 = sld [smem:[%s14565_s0 + %s12459_s15]]   ;;  %s12464_s15 = smov 15  }
  0x12   :  { %s12582_s24 = sld [smem:[%s14565_s0 + %s12460_s20]]  }
  0x13   :  { %s12587_s30 = sld [smem:[%s14565_s0 + %s12461_s26]]  }
  0x14   :  { %14612 = sst [smem:[#allocation56_spill]] %s12562_s3 }
  0x15   :  { %14613 = sst [smem:[#allocation57_spill]] %s12567_s8 }
  0x16   :  { %s12592_s6 = sld [smem:[%s14565_s0 + %s12462_s1]]  }
  0x17   :  { %s12597_s12 = sld [smem:[%s14565_s0 + %s12463_s7]]   ;;  %s12467_s7 = smov 18  }
  0x18   :  { %s12602_s20 = sld [smem:[%s14565_s0 + %s12464_s15]]   ;;  %s12468_s15 = smov 19  }
  0x19   :  { %14614 = sst [smem:[#allocation58_spill]] %s12587_s30 }
  0x1a   :  { %s12607_s27 = sld [smem:[%s14565_s0 + %s12465_s22]]   ;;  %s12469_s22 = smov 20  }
  0x1b   :  { %s12612_s4 = sld [smem:[%s14565_s0 + %s12466_s28]]   ;;  %s12470_s28 = smov 21  }
  0x1c   :  { %14615 = sst [smem:[#allocation59_spill]] %s12592_s6 }
  0x1d   :  { %14616 = sst [smem:[#allocation60_spill]] %s12597_s12 }
  0x1e   :  { %s12617_s13 = sld [smem:[%s14565_s0 + %s12467_s7]]   ;;  %s12471_s7 = smov 22  }
  0x1f   :  { %s12622_s25 = sld [smem:[%s14565_s0 + %s12468_s15]]   ;;  %s12472_s15 = smov 23  }
  0x20   :  { %14617 = sst [smem:[#allocation61_spill]] %s12607_s27 }
  0x21   :  { %14618 = sst [smem:[#allocation62_spill]] %s12612_s4 }
  0x22   :  { %s12627_s21 = sld [smem:[%s14565_s0 + %s12469_s22]]   ;;  %s12473_s22 = smov 24  }
  0x23   :  { %s12632_s4 = sld [smem:[%s14565_s0 + %s12470_s28]]   ;;  %s12474_s28 = smov 25  }
  0x24   :  { %14619 = sst [smem:[#allocation63_spill]] %s12617_s13 }
  0x25   :  { %14620 = sst [smem:[#allocation64_spill]] %s12622_s25 }
  0x26   :  { %s12637_s9 = sld [smem:[%s14565_s0 + %s12471_s7]]   ;;  %s12475_s7 = smov 26  }
  0x27   :  { %s12642_s25 = sld [smem:[%s14565_s0 + %s12472_s15]]   ;;  %s12476_s15 = smov 27  }
  0x28   :  { %14621 = sst [smem:[#allocation65_spill]] %s12627_s21 }
  0x29   :  { %14622 = sst [smem:[#allocation66_spill]] %s12632_s4 }
  0x2a   :  { %s12647_s17 = sld [smem:[%s14565_s0 + %s12473_s22]]   ;;  %s12477_s22 = smov 28  }
  0x2b   :  { %s12652_s5 = sld [smem:[%s14565_s0 + %s12474_s28]]   ;;  %s12478_s28 = smov 29  }
  0x2c   :  { %14623 = sst [smem:[#allocation67_spill]] %s12637_s9 }
  0x2d   :  { %14624 = sst [smem:[#allocation68_spill]] %s12642_s25 }
  0x2e   :  { %s12657_s9 = sld [smem:[%s14565_s0 + %s12475_s7]]   ;;  %s12479_s7 = smov 30  }
  0x2f   :  { %s12662_s25 = sld [smem:[%s14565_s0 + %s12476_s15]]   ;;  %s12480_s15 = smov 31  }
  0x30   :  { %s12667_s21 = sld [smem:[%s14565_s0 + %s12477_s22]]   ;;  %s12481_s22 = smov 32  }
  0x31   :  { %14625 = sst [smem:[#allocation69_spill]] %s12652_s5 }
  0x32   :  { %s12672_s5 = sld [smem:[%s14565_s0 + %s12478_s28]]   ;;  %s12482_s28 = smov 33  }
  0x33   :  { %s12677_s27 = sld [smem:[%s14565_s0 + %s12479_s7]]  }
  0x34   :  { %14626 = sst [smem:[#allocation70_spill]] %s12657_s9 }
  0x35   :  { %14627 = sst [smem:[#allocation71_spill]] %s12662_s25 }
  0x36   :  { %s12682_s25 = sld [smem:[%s14565_s0 + %s12480_s15]]  }
  0x37   :  { %s12687_s12 = sld [smem:[%s14565_s0 + %s12481_s22]]  }
  0x38   :  { %14628 = sst [smem:[#allocation72_spill]] %s12672_s5 }
  0x39   :  { %s8585_s5 = sld [smem:[%s14565_s0 + %s12482_s28]]  }
  0x3a   :  { %s12695_s30 = sld [smem:[%s14565_s0 + %s12483_s10]]  }
  0x3f   :  { %v74_v0 = vstv %s8585_s5 }
  0x40   :  { %75 = vst [vmem:[#allocation2] sm:$0x1] %v74_v0 }
  0x41   :  { %76 = vsyncpa [#allocation4], 0 }
  0x42   :  { %77 = vsyncpa [#allocation6], 0 }
  0x43   :  { %78 = vsyncpa [#allocation9], 0 }
  0x44   :  { %79 = vsyncpa [#allocation12], 0 }
  0x45   :  { %80 = vsyncpa [#allocation15], 0 }
  0x46   :  { %81 = vsyncpa [#allocation18], 0 }
  0x47   :  { %82 = vsyncpa [#allocation21], 0 }
  0x48   :  { %83 = vsyncpa [#allocation24], 0 }
  0x49   :  { %84 = vsyncpa [#allocation27], 0 }
  0x4a   :  { %85 = vsyncpa [#allocation30], 0 }
  0x4b   :  { %86 = vsyncpa [#allocation33], 0 }
  0x4c   :  { %87 = vsyncpa [#allocation36], 0  ;;  %s12697_s15 = smov 0  }
  0x4d LB: > { %s14629_s13 = sld [smem:[#allocation63_spill]]  ;;  %s14630_s9 = sld [smem:[#allocation70_spill]]  ;;  %s12448_s15 = sphi %s12697_s15, %s93_s15  }
  0x4e   : > { %s14631_s8 = sld [smem:[#allocation57_spill]]  ;;  %s14632_s6 = sld [smem:[#allocation59_spill]] }
  0x4f   : > { %s14633_s4 = sld [smem:[#allocation66_spill]]  ;;  %s14634_s3 = sld [smem:[#allocation56_spill]] }
  0x50   : > { %s12703_s0 = sadd.s32 4294967295, %s12448_s15   ;;  %p8589_p0 = scmp.ge.s32.totalorder %s12448_s15, 1 }
  0x51   : > { %p853_p1 = scmp.lt.s32.totalorder %s12448_s15, 3  ;;  %p14580_p2 = scmp.eq.s32.totalorder %s12703_s0, 0 }
  0x52   : > { %s12484_s16 = smov [#allocation5]   ;;  %s12485_s22 = smov [#allocation8]  }
  0x53   : > { %p12708_p3 = pnand %p8589_p0, %p853_p1  ;;  %s887_s18 = sshll.u32 %s12484_s16, 4  ;;  %s12712_s18 = int_to_ptr.vmem [resolvable:$true] %s887_s18 }
  0x54   : > { %s913_s23 = sshll.u32 %s12485_s22, 4  ;;  %s12486_s28 = smov [#allocation11]   ;;  %s12716_s23 = int_to_ptr.vmem [resolvable:$true] %s913_s23 }
  0x55   : > { %s14635_s5 = scalar_select %p12708_p3, 1, 0 }
  0x56   : > { %p11513_p4 = pneg %p12708_p3  ;;  %s12724_s1 = sshll.u32 %s12486_s28, 4  ;;  %s940_s1 = int_to_ptr.vmem [resolvable:$true] %s12724_s1 }
  0x57   : > { %s11750_s2 = scalar_lea.hbm %s14634_s3, 2048 }
  0x58   : > { %p12720_p5 = pnand %p14580_p2, %p11513_p4  ;;  %p11751_p6 = scmp.ne.s32.totalorder %s14634_s3, %s11750_s2 }
  0x59   : > { %p11757_p10 = scmp.lt.u32.totalorder %s11750_s2, %s14634_s3 }
  0x5a   : > { %p12730_p7 = pneg %p12720_p5 }
  0x5c   : > { %p11753_p8 = pnand %p12730_p7, %p11751_p6 }
  0x5e   : > { %p11754_p9 = pneg %p11753_p8 }
  0x60   : > { %p11759_p11 = pnand %p11757_p10, %p11754_p9 }
  0x62   : > { %11762 = shalt.err (!%p11759_p11)
}
  0x63   : > { %s11763_s7 = scalar_lea.vmem %s12712_s18, 2048  ;;  %p11771_p1 = scmp.lt.s32.totalorder %s12712_s18, %s12712_s18 }
  0x64   : > { %p11764_p12 = scmp.ne.s32.totalorder %s12712_s18, %s11763_s7  ;;  %p11772_p4 = scmp.lt.s32.totalorder %s11763_s7, %s11763_s7 }
  0x66   : > { %p11766_p13 = pnand %p11764_p12, %p12730_p7  ;;  %p11773_p2 = por %p11772_p4, %p11771_p1 }
  0x68   : > { %p11767_p0 = pneg %p11766_p13 }
  0x6a   : > { %p11774_p3 = pnand %p11773_p2, %p11767_p0 }
  0x6c   : > { %11777 = shalt.err (!%p11774_p3)
}
  0x6d   : > { %s14582_s11 = smov 128   ;;  %s14588_s16 = smov 8  }
  0x6e   : > { %11519 = dma.hbm_to_vmem [thread:$0]  (!%p12720_p5), %s14634_s3, 2048, %s12712_s18, [#allocation6], %s14582_s11, %s14582_s11, %s14588_s16  }
  0x6f   : > { %s11778_s22 = scalar_lea.hbm %s12572_s14, 64 }
  0x70   : > { %p11779_p6 = scmp.ne.s32.totalorder %s12572_s14, %s11778_s22  ;;  %p11785_p3 = scmp.lt.u32.totalorder %s11778_s22, %s12572_s14 }
  0x72   : > { %p11781_p8 = pnand %p11779_p6, %p12730_p7 }
  0x74   : > { %p11782_p2 = pneg %p11781_p8 }
  0x76   : > { %p11787_p9 = pnand %p11785_p3, %p11782_p2 }
  0x78   : > { %11790 = shalt.err (!%p11787_p9)
}
  0x79   : > { %s11791_s28 = scalar_lea.vmem %s12716_s23, 64  ;;  %p11799_p13 = scmp.lt.s32.totalorder %s12716_s23, %s12716_s23 }
  0x7a   : > { %p11792_p10 = scmp.ne.s32.totalorder %s12716_s23, %s11791_s28  ;;  %p11800_p0 = scmp.lt.s32.totalorder %s11791_s28, %s11791_s28 }
  0x7c   : > { %p11794_p11 = pnand %p11792_p10, %p12730_p7  ;;  %p11801_p1 = por %p11800_p0, %p11799_p13 }
  0x7e   : > { %p11795_p12 = pneg %p11794_p11 }
  0x80   : > { %p11802_p4 = pnand %p11801_p1, %p11795_p12 }
  0x82   : > { %11805 = shalt.err (!%p11802_p4)
}
  0x83   : > { %s14584_s18 = smov 16   ;;  %s14586_s2 = smov 1  }
  0x84   : > { %11525 = dma.hbm_to_vmem [thread:$0]  (!%p12720_p5), %s12572_s14, 64, %s12716_s23, [#allocation9], %s14584_s18, %s14584_s18, %s14586_s2  }
  0x85   : > { %s12491_s7 = smov [#allocation14]   ;;  %s11806_s28 = scalar_lea.hbm %s12582_s24, 64 }
  0x86   : > { %s965_s22 = sshll.u32 %s12491_s7, 4  ;;  %p11807_p6 = scmp.ne.s32.totalorder %s12582_s24, %s11806_s28  ;;  %s966_s22 = int_to_ptr.vmem [resolvable:$true] %s965_s22 }
  0x87   : > { %p11813_p3 = scmp.lt.u32.totalorder %s11806_s28, %s12582_s24 }
  0x88   : > { %p11809_p8 = pnand %p11807_p6, %p12730_p7 }
  0x8a   : > { %p11810_p2 = pneg %p11809_p8 }
  0x8c   : > { %p11815_p9 = pnand %p11813_p3, %p11810_p2 }
  0x8e   : > { %11818 = shalt.err (!%p11815_p9)
}
  0x8f   : > { %s11819_s11 = scalar_lea.vmem %s940_s1, 64  ;;  %p11827_p13 = scmp.lt.s32.totalorder %s940_s1, %s940_s1 }
  0x90   : > { %p11820_p10 = scmp.ne.s32.totalorder %s940_s1, %s11819_s11  ;;  %p11828_p0 = scmp.lt.s32.totalorder %s11819_s11, %s11819_s11 }
  0x92   : > { %p11822_p11 = pnand %p11820_p10, %p12730_p7  ;;  %p11829_p1 = por %p11828_p0, %p11827_p13 }
  0x94   : > { %p11823_p12 = pneg %p11822_p11 }
  0x96   : > { %p11830_p4 = pnand %p11829_p1, %p11823_p12 }
  0x98   : > { %11833 = shalt.err (!%p11830_p4)
}
  0x99   : > { %11531 = dma.hbm_to_vmem [thread:$0]  (!%p12720_p5), %s12582_s24, 64, %s940_s1, [#allocation12], %s14584_s18, %s14584_s18, %s14586_s2  }
  0x9a   : > { %s11834_s23 = scalar_lea.hbm %s14632_s6, 2048 }
  0x9b   : > { %p11835_p6 = scmp.ne.s32.totalorder %s14632_s6, %s11834_s23  ;;  %p11841_p3 = scmp.lt.u32.totalorder %s11834_s23, %s14632_s6 }
  0x9d   : > { %p11837_p8 = pnand %p11835_p6, %p12730_p7 }
  0x9f   : > { %p11838_p2 = pneg %p11837_p8 }
  0xa1   : > { %p11843_p9 = pnand %p11841_p3, %p11838_p2 }
  0xa3   : > { %11846 = shalt.err (!%p11843_p9)
}
  0xa4   : > { %s11847_s11 = scalar_lea.vmem %s966_s22, 2048  ;;  %p11855_p13 = scmp.lt.s32.totalorder %s966_s22, %s966_s22 }
  0xa5   : > { %p11848_p10 = scmp.ne.s32.totalorder %s966_s22, %s11847_s11  ;;  %p11856_p0 = scmp.lt.s32.totalorder %s11847_s11, %s11847_s11 }
  0xa7   : > { %p11850_p11 = pnand %p11848_p10, %p12730_p7  ;;  %p11857_p1 = por %p11856_p0, %p11855_p13 }
  0xa9   : > { %p11851_p12 = pneg %p11850_p11 }
  0xab   : > { %p11858_p4 = pnand %p11857_p1, %p11851_p12 }
  0xad   : > { %11861 = shalt.err (!%p11858_p4)
}
  0xae   : > { %s14638_s1 = smov 128   ;;  %s12492_s7 = smov [#allocation17]  }
  0xaf   : > { %11537 = dma.hbm_to_vmem [thread:$0]  (!%p12720_p5), %s14632_s6, 2048, %s966_s22, [#allocation15], %s14638_s1, %s14638_s1, %s14588_s16  }
  0xb0   : > { %s991_s28 = sshll.u32 %s12492_s7, 4  ;;  %s12493_s23 = smov [#allocation20]   ;;  %s992_s28 = int_to_ptr.vmem [resolvable:$true] %s991_s28 }
  0xb1   : > { %s1020_s18 = sshll.u32 %s12493_s23, 4  ;;  %s11862_s11 = scalar_lea.hbm %s12602_s20, 64  ;;  %s1021_s18 = int_to_ptr.vmem [resolvable:$true] %s1020_s18 }
  0xb2   : > { %p11863_p6 = scmp.ne.s32.totalorder %s12602_s20, %s11862_s11  ;;  %p11869_p3 = scmp.lt.u32.totalorder %s11862_s11, %s12602_s20 }
  0xb4   : > { %p11865_p8 = pnand %p11863_p6, %p12730_p7 }
  0xb6   : > { %p11866_p2 = pneg %p11865_p8 }
  0xb8   : > { %p11871_p9 = pnand %p11869_p3, %p11866_p2 }
  0xba   : > { %11874 = shalt.err (!%p11871_p9)
}
  0xbb   : > { %s11875_s2 = scalar_lea.vmem %s992_s28, 64  ;;  %p11883_p13 = scmp.lt.s32.totalorder %s992_s28, %s992_s28 }
  0xbc   : > { %p11876_p10 = scmp.ne.s32.totalorder %s992_s28, %s11875_s2  ;;  %p11884_p0 = scmp.lt.s32.totalorder %s11875_s2, %s11875_s2 }
  0xbe   : > { %p11878_p11 = pnand %p11876_p10, %p12730_p7  ;;  %p11885_p1 = por %p11884_p0, %p11883_p13 }
  0xc0   : > { %p11879_p12 = pneg %p11878_p11 }
  0xc2   : > { %p11886_p4 = pnand %p11885_p1, %p11879_p12 }
  0xc4   : > { %11889 = shalt.err (!%p11886_p4)
}
  0xc5   : > { %s14639_s22 = smov 1   ;;  %s14640_s7 = smov 16  }
  0xc6   : > { %11543 = dma.hbm_to_vmem [thread:$0]  (!%p12720_p5), %s12602_s20, 64, %s992_s28, [#allocation18], %s14640_s7, %s14640_s7, %s14639_s22  }
  0xc7   : > { %s11890_s23 = scalar_lea.hbm %s14629_s13, 32 }
  0xc8   : > { %p11891_p6 = scmp.ne.s32.totalorder %s14629_s13, %s11890_s23  ;;  %p11897_p3 = scmp.lt.u32.totalorder %s11890_s23, %s14629_s13 }
  0xca   : > { %p11893_p8 = pnand %p11891_p6, %p12730_p7 }
  0xcc   : > { %p11894_p2 = pneg %p11893_p8 }
  0xce   : > { %p11899_p9 = pnand %p11897_p3, %p11894_p2 }
  0xd0   : > { %11902 = shalt.err (!%p11899_p9)
}
  0xd1   : > { %s11903_s2 = scalar_lea.vmem %s1021_s18, 32  ;;  %p11911_p13 = scmp.lt.s32.totalorder %s1021_s18, %s1021_s18 }
  0xd2   : > { %p11904_p10 = scmp.ne.s32.totalorder %s1021_s18, %s11903_s2  ;;  %p11912_p0 = scmp.lt.s32.totalorder %s11903_s2, %s11903_s2 }
  0xd4   : > { %p11906_p11 = pnand %p11904_p10, %p12730_p7  ;;  %p11913_p1 = por %p11912_p0, %p11911_p13 }
  0xd6   : > { %p11907_p12 = pneg %p11906_p11 }
  0xd8   : > { %p11914_p4 = pnand %p11913_p1, %p11907_p12 }
  0xda   : > { %11917 = shalt.err (!%p11914_p4)
}
  0xdb   : > { %11549 = dma.hbm_to_vmem [thread:$0]  (!%p12720_p5), %s14629_s13, 32, %s1021_s18, [#allocation21], %s14640_s7, %s14640_s7, %s14639_s22  }
  0xdc   : > { %s12494_s28 = smov [#allocation23]   ;;  %s12495_s23 = smov [#allocation26]  }
  0xdd   : > { %s1049_s11 = sshll.u32 %s12494_s28, 4  ;;  %s1078_s16 = sshll.u32 %s12495_s23, 4  ;;  %s1050_s11 = int_to_ptr.vmem [resolvable:$true] %s1049_s11  ;;  %s1079_s16 = int_to_ptr.vmem [resolvable:$true] %s1078_s16 }
  0xde   : > { %s11918_s2 = scalar_lea.hbm %s14633_s4, 2048 }
  0xdf   : > { %p11919_p6 = scmp.ne.s32.totalorder %s14633_s4, %s11918_s2  ;;  %p11925_p3 = scmp.lt.u32.totalorder %s11918_s2, %s14633_s4 }
  0xe1   : > { %p11921_p8 = pnand %p11919_p6, %p12730_p7 }
  0xe3   : > { %p11922_p2 = pneg %p11921_p8 }
  0xe5   : > { %p11927_p9 = pnand %p11925_p3, %p11922_p2 }
  0xe7   : > { %11930 = shalt.err (!%p11927_p9)
}
  0xe8   : > { %s11931_s3 = scalar_lea.vmem %s1050_s11, 2048  ;;  %p11939_p13 = scmp.lt.s32.totalorder %s1050_s11, %s1050_s11 }
  0xe9   : > { %p11932_p10 = scmp.ne.s32.totalorder %s1050_s11, %s11931_s3  ;;  %p11940_p0 = scmp.lt.s32.totalorder %s11931_s3, %s11931_s3 }
  0xeb   : > { %p11934_p11 = pnand %p11932_p10, %p12730_p7  ;;  %p11941_p1 = por %p11940_p0, %p11939_p13 }
  0xed   : > { %p11935_p12 = pneg %p11934_p11 }
  0xef   : > { %p11942_p4 = pnand %p11941_p1, %p11935_p12 }
  0xf1   : > { %11945 = shalt.err (!%p11942_p4)
}
  0xf2   : > { %s14641_s18 = smov 8   ;;  %s11946_s28 = scalar_lea.hbm %s12647_s17, 64 }
  0xf3   : > { %11555 = dma.hbm_to_vmem [thread:$0]  (!%p12720_p5), %s14633_s4, 2048, %s1050_s11, [#allocation24], %s14638_s1, %s14638_s1, %s14641_s18  }
  0xf4   : > { %p11947_p6 = scmp.ne.s32.totalorder %s12647_s17, %s11946_s28  ;;  %p11953_p3 = scmp.lt.u32.totalorder %s11946_s28, %s12647_s17 }
  0xf6   : > { %p11949_p8 = pnand %p11947_p6, %p12730_p7 }
  0xf8   : > { %p11950_p2 = pneg %p11949_p8 }
  0xfa   : > { %p11955_p9 = pnand %p11953_p3, %p11950_p2 }
  0xfc   : > { %11958 = shalt.err (!%p11955_p9)
}
  0xfd   : > { %s11959_s3 = scalar_lea.vmem %s1079_s16, 64  ;;  %p11967_p13 = scmp.lt.s32.totalorder %s1079_s16, %s1079_s16 }
  0xfe   : > { %p11960_p10 = scmp.ne.s32.totalorder %s1079_s16, %s11959_s3  ;;  %p11968_p0 = scmp.lt.s32.totalorder %s11959_s3, %s11959_s3 }
 0x100   : > { %p11962_p11 = pnand %p11960_p10, %p12730_p7  ;;  %p11969_p1 = por %p11968_p0, %p11967_p13 }
 0x102   : > { %p11963_p12 = pneg %p11962_p11 }
 0x104   : > { %p11970_p4 = pnand %p11969_p1, %p11963_p12 }
 0x106   : > { %11973 = shalt.err (!%p11970_p4)
}
 0x107   : > { %11561 = dma.hbm_to_vmem [thread:$0]  (!%p12720_p5), %s12647_s17, 64, %s1079_s16, [#allocation27], %s14640_s7, %s14640_s7, %s14639_s22  }
 0x108   : > { %s12496_s11 = smov [#allocation29]   ;;  %s12497_s2 = smov [#allocation32]  }
 0x109   : > { %s1104_s23 = sshll.u32 %s12496_s11, 4  ;;  %s1130_s28 = sshll.u32 %s12497_s2, 4  ;;  %s1105_s23 = int_to_ptr.vmem [resolvable:$true] %s1104_s23  ;;  %s1131_s28 = int_to_ptr.vmem [resolvable:$true] %s1130_s28 }
 0x10a   : > { %s11974_s3 = scalar_lea.hbm %s14630_s9, 8192 }
 0x10b   : > { %p11975_p6 = scmp.ne.s32.totalorder %s14630_s9, %s11974_s3  ;;  %p11981_p3 = scmp.lt.u32.totalorder %s11974_s3, %s14630_s9 }
 0x10d   : > { %p11977_p8 = pnand %p11975_p6, %p12730_p7 }
 0x10f   : > { %p11978_p2 = pneg %p11977_p8 }
 0x111   : > { %p11983_p9 = pnand %p11981_p3, %p11978_p2 }
 0x113   : > { %11986 = shalt.err (!%p11983_p9)
}
 0x114   : > { %s11987_s4 = scalar_lea.vmem %s1105_s23, 8192  ;;  %p11995_p13 = scmp.lt.s32.totalorder %s1105_s23, %s1105_s23 }
 0x115   : > { %p11988_p10 = scmp.ne.s32.totalorder %s1105_s23, %s11987_s4  ;;  %p11996_p0 = scmp.lt.s32.totalorder %s11987_s4, %s11987_s4 }
 0x117   : > { %p11990_p11 = pnand %p11988_p10, %p12730_p7  ;;  %p11997_p1 = por %p11996_p0, %p11995_p13 }
 0x119   : > { %p11991_p12 = pneg %p11990_p11 }
 0x11b   : > { %p11998_p4 = pnand %p11997_p1, %p11991_p12 }
 0x11d   : > { %12001 = shalt.err (!%p11998_p4)
}
 0x11e   : > { %11567 = dma.hbm_to_vmem [thread:$0]  (!%p12720_p5), %s14630_s9, 8192, %s1105_s23, [#allocation30], %s14638_s1, %s14638_s1, %s14641_s18  }
 0x11f   : > { %s12002_s16 = scalar_lea.hbm %s12667_s21, 64 }
 0x120   : > { %p12003_p6 = scmp.ne.s32.totalorder %s12667_s21, %s12002_s16  ;;  %p12009_p3 = scmp.lt.u32.totalorder %s12002_s16, %s12667_s21 }
 0x122   : > { %p12005_p8 = pnand %p12003_p6, %p12730_p7 }
 0x124   : > { %p12006_p2 = pneg %p12005_p8 }
 0x126   : > { %p12011_p9 = pnand %p12009_p3, %p12006_p2 }
 0x128   : > { %12014 = shalt.err (!%p12011_p9)
}
 0x129   : > { %s12015_s4 = scalar_lea.vmem %s1131_s28, 64  ;;  %p12023_p13 = scmp.lt.s32.totalorder %s1131_s28, %s1131_s28 }
 0x12a   : > { %p12016_p10 = scmp.ne.s32.totalorder %s1131_s28, %s12015_s4  ;;  %p12024_p0 = scmp.lt.s32.totalorder %s12015_s4, %s12015_s4 }
 0x12c   : > { %p12018_p11 = pnand %p12016_p10, %p12730_p7  ;;  %p12025_p1 = por %p12024_p0, %p12023_p13 }
 0x12e   : > { %p12019_p12 = pneg %p12018_p11 }
 0x130   : > { %p12026_p4 = pnand %p12025_p1, %p12019_p12 }
 0x132   : > { %12029 = shalt.err (!%p12026_p4)
}
 0x133   : > { %11573 = dma.hbm_to_vmem [thread:$0]  (!%p12720_p5), %s12667_s21, 64, %s1131_s28, [#allocation33], %s14640_s7, %s14640_s7, %s14639_s22  }
 0x134   : > { %s12498_s11 = smov [#allocation35]   ;;  %s12499_s2 = smov [#allocation3]  }
 0x135   : > { %s1156_s23 = sshll.u32 %s12498_s11, 4  ;;  %s874_s3 = sshll.u32 %s12499_s2, 4  ;;  %s1157_s23 = int_to_ptr.vmem [resolvable:$true] %s1156_s23  ;;  %s875_s3 = int_to_ptr.vmem [resolvable:$true] %s874_s3 }
 0x136   : > { %s12030_s16 = scalar_lea.hbm %s12677_s27, 512 }
 0x137   : > { %p12031_p6 = scmp.ne.s32.totalorder %s12677_s27, %s12030_s16  ;;  %p12037_p3 = scmp.lt.u32.totalorder %s12030_s16, %s12677_s27 }
 0x139   : > { %p12033_p8 = pnand %p12031_p6, %p12730_p7 }
 0x13b   : > { %p12034_p2 = pneg %p12033_p8 }
 0x13d   : > { %p12039_p9 = pnand %p12037_p3, %p12034_p2 }
 0x13f   : > { %12042 = shalt.err (!%p12039_p9)
}
 0x140   : > { %s12043_s4 = scalar_lea.vmem %s1157_s23, 512  ;;  %p12051_p13 = scmp.lt.s32.totalorder %s1157_s23, %s1157_s23 }
 0x141   : > { %p12044_p10 = scmp.ne.s32.totalorder %s1157_s23, %s12043_s4  ;;  %p12052_p0 = scmp.lt.s32.totalorder %s12043_s4, %s12043_s4 }
 0x143   : > { %p12046_p11 = pnand %p12044_p10, %p12730_p7  ;;  %p12053_p1 = por %p12052_p0, %p12051_p13 }
 0x145   : > { %p12047_p12 = pneg %p12046_p11 }
 0x147   : > { %p12054_p4 = pnand %p12053_p1, %p12047_p12 }
 0x149   : > { %12057 = shalt.err (!%p12054_p4)
}
 0x14a   : > { %11579 = dma.hbm_to_vmem [thread:$0]  (!%p12720_p5), %s12677_s27, 512, %s1157_s23, [#allocation36], %s14638_s1, %s14638_s1, %s14641_s18  }
 0x14b   : > { %s12058_s28 = scalar_lea.hbm %s12557_s29, 2048 }
 0x14c   : > { %p12059_p6 = scmp.ne.s32.totalorder %s12557_s29, %s12058_s28  ;;  %p12065_p3 = scmp.lt.u32.totalorder %s12058_s28, %s12557_s29 }
 0x14e   : > { %p12061_p8 = pnand %p12059_p6, %p12730_p7 }
 0x150   : > { %p12062_p2 = pneg %p12061_p8 }
 0x152   : > { %p12067_p9 = pnand %p12065_p3, %p12062_p2 }
 0x154   : > { %12070 = shalt.err (!%p12067_p9)
}
 0x155   : > { %s12071_s11 = scalar_lea.vmem %s875_s3, 2048  ;;  %p12079_p13 = scmp.lt.s32.totalorder %s875_s3, %s875_s3 }
 0x156   : > { %p12072_p10 = scmp.ne.s32.totalorder %s875_s3, %s12071_s11  ;;  %p12080_p0 = scmp.lt.s32.totalorder %s12071_s11, %s12071_s11 }
 0x158   : > { %p12074_p11 = pnand %p12072_p10, %p12730_p7  ;;  %p12081_p1 = por %p12080_p0, %p12079_p13 }
 0x15a   : > { %p12075_p12 = pneg %p12074_p11 }
 0x15c   : > { %p12082_p4 = pnand %p12081_p1, %p12075_p12 }
 0x15e   : > { %12085 = shalt.err (!%p12082_p4)
}
 0x15f   : > { %11516 = dma.hbm_to_vmem [thread:$0]  (!%p12720_p5), %s12557_s29, 2048, %s875_s3, [#allocation4], %s14638_s1, %s14638_s1, %s14641_s18  }
 0x160   : > { %s12500_s23 = smov [#allocation7]   ;;  %s12501_s16 = smov [#allocation10]  }
 0x161   : > { %s900_s2 = sshll.u32 %s12500_s23, 4  ;;  %s926_s4 = sshll.u32 %s12501_s16, 4  ;;  %s901_s2 = int_to_ptr.vmem [resolvable:$true] %s900_s2  ;;  %s927_s4 = int_to_ptr.vmem [resolvable:$true] %s926_s4 }
 0x162   : > { %s12086_s28 = scalar_lea.hbm %s14631_s8, 2048 }
 0x163   : > { %p12087_p6 = scmp.ne.s32.totalorder %s14631_s8, %s12086_s28  ;;  %p12093_p3 = scmp.lt.u32.totalorder %s12086_s28, %s14631_s8 }
 0x165   : > { %p12089_p8 = pnand %p12087_p6, %p12730_p7 }
 0x167   : > { %p12090_p2 = pneg %p12089_p8 }
 0x169   : > { %p12095_p9 = pnand %p12093_p3, %p12090_p2 }
 0x16b   : > { %12098 = shalt.err (!%p12095_p9)
}
 0x16c   : > { %s12099_s11 = scalar_lea.vmem %s901_s2, 2048  ;;  %p12107_p13 = scmp.lt.s32.totalorder %s901_s2, %s901_s2 }
 0x16d   : > { %p12100_p10 = scmp.ne.s32.totalorder %s901_s2, %s12099_s11  ;;  %p12108_p0 = scmp.lt.s32.totalorder %s12099_s11, %s12099_s11 }
 0x16f   : > { %p12102_p11 = pnand %p12100_p10, %p12730_p7  ;;  %p12109_p1 = por %p12108_p0, %p12107_p13 }
 0x171   : > { %p12103_p12 = pneg %p12102_p11 }
 0x173   : > { %p12110_p4 = pnand %p12109_p1, %p12103_p12 }
 0x175   : > { %12113 = shalt.err (!%p12110_p4)
}
 0x176   : > { %11522 = dma.hbm_to_vmem [thread:$0]  (!%p12720_p5), %s14631_s8, 2048, %s901_s2, [#allocation6], %s14638_s1, %s14638_s1, %s14641_s18  }
 0x177   : > { %s12114_s3 = scalar_lea.hbm %s12577_s19, 2048 }
 0x178   : > { %p12115_p6 = scmp.ne.s32.totalorder %s12577_s19, %s12114_s3  ;;  %p12121_p3 = scmp.lt.u32.totalorder %s12114_s3, %s12577_s19 }
 0x17a   : > { %p12117_p8 = pnand %p12115_p6, %p12730_p7 }
 0x17c   : > { %p12118_p2 = pneg %p12117_p8 }
 0x17e   : > { %p12123_p9 = pnand %p12121_p3, %p12118_p2 }
 0x180   : > { %12126 = shalt.err (!%p12123_p9)
}
 0x181   : > { %s12127_s23 = scalar_lea.vmem %s927_s4, 2048  ;;  %p12135_p13 = scmp.lt.s32.totalorder %s927_s4, %s927_s4 }
 0x182   : > { %p12128_p10 = scmp.ne.s32.totalorder %s927_s4, %s12127_s23  ;;  %p12136_p0 = scmp.lt.s32.totalorder %s12127_s23, %s12127_s23 }
 0x184   : > { %p12130_p11 = pnand %p12128_p10, %p12730_p7  ;;  %p12137_p1 = por %p12136_p0, %p12135_p13 }
 0x186   : > { %p12131_p12 = pneg %p12130_p11 }
 0x188   : > { %p12138_p4 = pnand %p12137_p1, %p12131_p12 }
 0x18a   : > { %12141 = shalt.err (!%p12138_p4)
}
 0x18b   : > { %s14642_s2 = sld [smem:[#allocation58_spill]]  ;;  %s12502_s16 = smov [#allocation13]  }
 0x18c   : > { %11528 = dma.hbm_to_vmem [thread:$0]  (!%p12720_p5), %s12577_s19, 2048, %s927_s4, [#allocation9], %s14638_s1, %s14638_s1, %s14641_s18  }
 0x18d   : > { %s952_s28 = sshll.u32 %s12502_s16, 4  ;;  %s12503_s11 = smov [#allocation16]   ;;  %s953_s28 = int_to_ptr.vmem [resolvable:$true] %s952_s28 }
 0x18e   : > { %s978_s3 = sshll.u32 %s12503_s11, 4  ;;  %s979_s3 = int_to_ptr.vmem [resolvable:$true] %s978_s3 }
 0x191   : > { %s12142_s23 = scalar_lea.hbm %s14642_s2, 2048 }
 0x192   : > { %p12143_p6 = scmp.ne.s32.totalorder %s14642_s2, %s12142_s23  ;;  %p12149_p3 = scmp.lt.u32.totalorder %s12142_s23, %s14642_s2 }
 0x194   : > { %p12145_p8 = pnand %p12143_p6, %p12730_p7 }
 0x196   : > { %p12146_p2 = pneg %p12145_p8 }
 0x198   : > { %p12151_p9 = pnand %p12149_p3, %p12146_p2 }
 0x19a   : > { %12154 = shalt.err (!%p12151_p9)
}
 0x19b   : > { %s12155_s6 = scalar_lea.vmem %s953_s28, 2048  ;;  %p12163_p13 = scmp.lt.s32.totalorder %s953_s28, %s953_s28 }
 0x19c   : > { %p12156_p10 = scmp.ne.s32.totalorder %s953_s28, %s12155_s6  ;;  %p12164_p0 = scmp.lt.s32.totalorder %s12155_s6, %s12155_s6 }
 0x19e   : > { %p12158_p11 = pnand %p12156_p10, %p12730_p7  ;;  %p12165_p1 = por %p12164_p0, %p12163_p13 }
 0x1a0   : > { %p12159_p12 = pneg %p12158_p11 }
 0x1a2   : > { %p12166_p4 = pnand %p12165_p1, %p12159_p12 }
 0x1a4   : > { %12169 = shalt.err (!%p12166_p4)
}
 0x1a5   : > { %s14643_s4 = sld [smem:[#allocation60_spill]] }
 0x1a6   : > { %11534 = dma.hbm_to_vmem [thread:$0]  (!%p12720_p5), %s14642_s2, 2048, %s953_s28, [#allocation12], %s14638_s1, %s14638_s1, %s14641_s18  }
 0x1ab   : > { %s12170_s16 = scalar_lea.hbm %s14643_s4, 64 }
 0x1ac   : > { %p12171_p6 = scmp.ne.s32.totalorder %s14643_s4, %s12170_s16  ;;  %p12177_p3 = scmp.lt.u32.totalorder %s12170_s16, %s14643_s4 }
 0x1ae   : > { %p12173_p8 = pnand %p12171_p6, %p12730_p7 }
 0x1b0   : > { %p12174_p2 = pneg %p12173_p8 }
 0x1b2   : > { %p12179_p9 = pnand %p12177_p3, %p12174_p2 }
 0x1b4   : > { %12182 = shalt.err (!%p12179_p9)
}
 0x1b5   : > { %s12183_s6 = scalar_lea.vmem %s979_s3, 64  ;;  %p12191_p13 = scmp.lt.s32.totalorder %s979_s3, %s979_s3 }
 0x1b6   : > { %p12184_p10 = scmp.ne.s32.totalorder %s979_s3, %s12183_s6  ;;  %p12192_p0 = scmp.lt.s32.totalorder %s12183_s6, %s12183_s6 }
 0x1b8   : > { %p12186_p11 = pnand %p12184_p10, %p12730_p7  ;;  %p12193_p1 = por %p12192_p0, %p12191_p13 }
 0x1ba   : > { %p12187_p12 = pneg %p12186_p11 }
 0x1bc   : > { %p12194_p4 = pnand %p12193_p1, %p12187_p12 }
 0x1be   : > { %12197 = shalt.err (!%p12194_p4)
}
 0x1bf   : > { %s14644_s28 = sld [smem:[#allocation61_spill]]  ;;  %s12504_s11 = smov [#allocation19]  }
 0x1c0   : > { %11540 = dma.hbm_to_vmem [thread:$0]  (!%p12720_p5), %s14643_s4, 64, %s979_s3, [#allocation15], %s14640_s7, %s14640_s7, %s14639_s22  }
 0x1c1   : > { %s1004_s23 = sshll.u32 %s12504_s11, 4  ;;  %s12505_s16 = smov [#allocation22]   ;;  %s1005_s23 = int_to_ptr.vmem [resolvable:$true] %s1004_s23 }
 0x1c2   : > { %s1036_s2 = sshll.u32 %s12505_s16, 4  ;;  %s1037_s2 = int_to_ptr.vmem [resolvable:$true] %s1036_s2 }
 0x1c5   : > { %s12198_s6 = scalar_lea.hbm %s14644_s28, 64 }
 0x1c6   : > { %p12199_p6 = scmp.ne.s32.totalorder %s14644_s28, %s12198_s6  ;;  %p12205_p3 = scmp.lt.u32.totalorder %s12198_s6, %s14644_s28 }
 0x1c8   : > { %p12201_p8 = pnand %p12199_p6, %p12730_p7 }
 0x1ca   : > { %p12202_p2 = pneg %p12201_p8 }
 0x1cc   : > { %p12207_p9 = pnand %p12205_p3, %p12202_p2 }
 0x1ce   : > { %12210 = shalt.err (!%p12207_p9)
}
 0x1cf   : > { %s12211_s8 = scalar_lea.vmem %s1005_s23, 64  ;;  %p12219_p13 = scmp.lt.s32.totalorder %s1005_s23, %s1005_s23 }
 0x1d0   : > { %p12212_p10 = scmp.ne.s32.totalorder %s1005_s23, %s12211_s8  ;;  %p12220_p0 = scmp.lt.s32.totalorder %s12211_s8, %s12211_s8 }
 0x1d2   : > { %p12214_p11 = pnand %p12212_p10, %p12730_p7  ;;  %p12221_p1 = por %p12220_p0, %p12219_p13 }
 0x1d4   : > { %p12215_p12 = pneg %p12214_p11 }
 0x1d6   : > { %p12222_p4 = pnand %p12221_p1, %p12215_p12 }
 0x1d8   : > { %12225 = shalt.err (!%p12222_p4)
}
 0x1d9   : > { %s14645_s3 = sld [smem:[#allocation65_spill]] }
 0x1da   : > { %11546 = dma.hbm_to_vmem [thread:$0]  (!%p12720_p5), %s14644_s28, 64, %s1005_s23, [#allocation18], %s14640_s7, %s14640_s7, %s14639_s22  }
 0x1df   : > { %s12226_s11 = scalar_lea.hbm %s14645_s3, 32 }
 0x1e0   : > { %p12227_p6 = scmp.ne.s32.totalorder %s14645_s3, %s12226_s11  ;;  %p12233_p3 = scmp.lt.u32.totalorder %s12226_s11, %s14645_s3 }
 0x1e2   : > { %p12229_p8 = pnand %p12227_p6, %p12730_p7 }
 0x1e4   : > { %p12230_p2 = pneg %p12229_p8 }
 0x1e6   : > { %p12235_p9 = pnand %p12233_p3, %p12230_p2 }
 0x1e8   : > { %12238 = shalt.err (!%p12235_p9)
}
 0x1e9   : > { %s12239_s8 = scalar_lea.vmem %s1037_s2, 32  ;;  %p12247_p13 = scmp.lt.s32.totalorder %s1037_s2, %s1037_s2 }
 0x1ea   : > { %p12240_p10 = scmp.ne.s32.totalorder %s1037_s2, %s12239_s8  ;;  %p12248_p0 = scmp.lt.s32.totalorder %s12239_s8, %s12239_s8 }
 0x1ec   : > { %p12242_p11 = pnand %p12240_p10, %p12730_p7  ;;  %p12249_p1 = por %p12248_p0, %p12247_p13 }
 0x1ee   : > { %p12243_p12 = pneg %p12242_p11 }
 0x1f0   : > { %p12250_p4 = pnand %p12249_p1, %p12243_p12 }
 0x1f2   : > { %12253 = shalt.err (!%p12250_p4)
}
 0x1f3   : > { %s14646_s23 = sld [smem:[#allocation67_spill]]  ;;  %s12506_s16 = smov [#allocation25]  }
 0x1f4   : > { %11552 = dma.hbm_to_vmem [thread:$0]  (!%p12720_p5), %s14645_s3, 32, %s1037_s2, [#allocation21], %s14640_s7, %s14640_s7, %s14639_s22  }
 0x1f5   : > { %s1062_s6 = sshll.u32 %s12506_s16, 4  ;;  %s12507_s11 = smov [#allocation28]   ;;  %s1063_s6 = int_to_ptr.vmem [resolvable:$true] %s1062_s6 }
 0x1f6   : > { %s1091_s4 = sshll.u32 %s12507_s11, 4  ;;  %s1092_s4 = int_to_ptr.vmem [resolvable:$true] %s1091_s4 }
 0x1f9   : > { %s12254_s8 = scalar_lea.hbm %s14646_s23, 64 }
 0x1fa   : > { %p12255_p6 = scmp.ne.s32.totalorder %s14646_s23, %s12254_s8  ;;  %p12261_p3 = scmp.lt.u32.totalorder %s12254_s8, %s14646_s23 }
 0x1fc   : > { %p12257_p8 = pnand %p12255_p6, %p12730_p7 }
 0x1fe   : > { %p12258_p2 = pneg %p12257_p8 }
 0x200   : > { %p12263_p9 = pnand %p12261_p3, %p12258_p2 }
 0x202   : > { %12266 = shalt.err (!%p12263_p9)
}
 0x203   : > { %s12267_s9 = scalar_lea.vmem %s1063_s6, 64  ;;  %p12275_p13 = scmp.lt.s32.totalorder %s1063_s6, %s1063_s6 }
 0x204   : > { %p12268_p10 = scmp.ne.s32.totalorder %s1063_s6, %s12267_s9  ;;  %p12276_p0 = scmp.lt.s32.totalorder %s12267_s9, %s12267_s9 }
 0x206   : > { %p12270_p11 = pnand %p12268_p10, %p12730_p7  ;;  %p12277_p1 = por %p12276_p0, %p12275_p13 }
 0x208   : > { %p12271_p12 = pneg %p12270_p11 }
 0x20a   : > { %p12278_p4 = pnand %p12277_p1, %p12271_p12 }
 0x20c   : > { %12281 = shalt.err (!%p12278_p4)
}
 0x20d   : > { %s14647_s2 = sld [smem:[#allocation69_spill]] }
 0x20e   : > { %11558 = dma.hbm_to_vmem [thread:$0]  (!%p12720_p5), %s14646_s23, 64, %s1063_s6, [#allocation24], %s14640_s7, %s14640_s7, %s14639_s22  }
 0x213   : > { %s12282_s16 = scalar_lea.hbm %s14647_s2, 2048 }
 0x214   : > { %p12283_p6 = scmp.ne.s32.totalorder %s14647_s2, %s12282_s16  ;;  %p12289_p3 = scmp.lt.u32.totalorder %s12282_s16, %s14647_s2 }
 0x216   : > { %p12285_p8 = pnand %p12283_p6, %p12730_p7 }
 0x218   : > { %p12286_p2 = pneg %p12285_p8 }
 0x21a   : > { %p12291_p9 = pnand %p12289_p3, %p12286_p2 }
 0x21c   : > { %12294 = shalt.err (!%p12291_p9)
}
 0x21d   : > { %s12295_s9 = scalar_lea.vmem %s1092_s4, 2048  ;;  %p12303_p13 = scmp.lt.s32.totalorder %s1092_s4, %s1092_s4 }
 0x21e   : > { %p12296_p10 = scmp.ne.s32.totalorder %s1092_s4, %s12295_s9  ;;  %p12304_p0 = scmp.lt.s32.totalorder %s12295_s9, %s12295_s9 }
 0x220   : > { %p12298_p11 = pnand %p12296_p10, %p12730_p7  ;;  %p12305_p1 = por %p12304_p0, %p12303_p13 }
 0x222   : > { %p12299_p12 = pneg %p12298_p11 }
 0x224   : > { %p12306_p4 = pnand %p12305_p1, %p12299_p12 }
 0x226   : > { %12309 = shalt.err (!%p12306_p4)
}
 0x227   : > { %s14648_s6 = sld [smem:[#allocation71_spill]]  ;;  %s12508_s11 = smov [#allocation31]  }
 0x228   : > { %11564 = dma.hbm_to_vmem [thread:$0]  (!%p12720_p5), %s14647_s2, 2048, %s1092_s4, [#allocation27], %s14638_s1, %s14638_s1, %s14641_s18  }
 0x229   : > { %s1117_s8 = sshll.u32 %s12508_s11, 4  ;;  %s12509_s16 = smov [#allocation34]   ;;  %s1118_s8 = int_to_ptr.vmem [resolvable:$true] %s1117_s8 }
 0x22a   : > { %s1143_s3 = sshll.u32 %s12509_s16, 4  ;;  %s1144_s3 = int_to_ptr.vmem [resolvable:$true] %s1143_s3 }
 0x22d   : > { %s12310_s9 = scalar_lea.hbm %s14648_s6, 64 }
 0x22e   : > { %p12311_p6 = scmp.ne.s32.totalorder %s14648_s6, %s12310_s9  ;;  %p12317_p3 = scmp.lt.u32.totalorder %s12310_s9, %s14648_s6 }
 0x230   : > { %p12313_p8 = pnand %p12311_p6, %p12730_p7 }
 0x232   : > { %p12314_p2 = pneg %p12313_p8 }
 0x234   : > { %p12319_p9 = pnand %p12317_p3, %p12314_p2 }
 0x236   : > { %12322 = shalt.err (!%p12319_p9)
}
 0x237   : > { %s12323_s13 = scalar_lea.vmem %s1118_s8, 64  ;;  %p12331_p13 = scmp.lt.s32.totalorder %s1118_s8, %s1118_s8 }
 0x238   : > { %p12324_p10 = scmp.ne.s32.totalorder %s1118_s8, %s12323_s13  ;;  %p12332_p0 = scmp.lt.s32.totalorder %s12323_s13, %s12323_s13 }
 0x23a   : > { %p12326_p11 = pnand %p12324_p10, %p12730_p7  ;;  %p12333_p1 = por %p12332_p0, %p12331_p13 }
 0x23c   : > { %p12327_p12 = pneg %p12326_p11 }
 0x23e   : > { %p12334_p4 = pnand %p12333_p1, %p12327_p12 }
 0x240   : > { %12337 = shalt.err (!%p12334_p4)
}
 0x241   : > { %s14649_s1 = sld [smem:[#allocation72_spill]] }
 0x242   : > { %11570 = dma.hbm_to_vmem [thread:$0]  (!%p12720_p5), %s14648_s6, 64, %s1118_s8, [#allocation30], %s14640_s7, %s14640_s7, %s14639_s22  }
 0x247   : > { %s12338_s18 = scalar_lea.hbm %s14649_s1, 64 }
 0x248   : > { %p12339_p6 = scmp.ne.s32.totalorder %s14649_s1, %s12338_s18  ;;  %p12345_p3 = scmp.lt.u32.totalorder %s12338_s18, %s14649_s1 }
 0x24a   : > { %p12341_p8 = pnand %p12339_p6, %p12730_p7 }
 0x24c   : > { %p12342_p2 = pneg %p12341_p8 }
 0x24e   : > { %p12347_p9 = pnand %p12345_p3, %p12342_p2 }
 0x250   : > { %12350 = shalt.err (!%p12347_p9)
}
 0x251   : > { %s12351_s13 = scalar_lea.vmem %s1144_s3, 64  ;;  %p12359_p13 = scmp.lt.s32.totalorder %s1144_s3, %s1144_s3 }
 0x252   : > { %p12352_p10 = scmp.ne.s32.totalorder %s1144_s3, %s12351_s13  ;;  %p12360_p0 = scmp.lt.s32.totalorder %s12351_s13, %s12351_s13 }
 0x254   : > { %p12354_p11 = pnand %p12352_p10, %p12730_p7  ;;  %p12361_p1 = por %p12360_p0, %p12359_p13 }
 0x256   : > { %p12355_p12 = pneg %p12354_p11 }
 0x258   : > { %p12362_p4 = pnand %p12361_p1, %p12355_p12 }
 0x25a   : > { %12365 = shalt.err (!%p12362_p4)
}
 0x25b   : > { %11576 = dma.hbm_to_vmem [thread:$0]  (!%p12720_p5), %s14649_s1, 64, %s1144_s3, [#allocation33], %s14640_s7, %s14640_s7, %s14639_s22  }
 0x25c   : > { %s12510_s4 = smov [#allocation37]   ;;  %s12366_s8 = scalar_lea.hbm %s12682_s25, 16 }
 0x25d   : > { %s1170_s11 = sshll.u32 %s12510_s4, 4  ;;  %p12367_p6 = scmp.ne.s32.totalorder %s12682_s25, %s12366_s8  ;;  %s1171_s11 = int_to_ptr.vmem [resolvable:$true] %s1170_s11 }
 0x25e   : > { %p12373_p3 = scmp.lt.u32.totalorder %s12366_s8, %s12682_s25 }
 0x25f   : > { %p12369_p8 = pnand %p12367_p6, %p12730_p7 }
 0x261   : > { %p12370_p2 = pneg %p12369_p8 }
 0x263   : > { %p12375_p9 = pnand %p12373_p3, %p12370_p2 }
 0x265   : > { %12378 = shalt.err (!%p12375_p9)
}
 0x266   : > { %s12379_s16 = scalar_lea.vmem %s1171_s11, 16  ;;  %s12386_s9 = scalar_lea.vmem %s1171_s11, 32 }
 0x267   : > { %p12380_p10 = scmp.ne.s32.totalorder %s1171_s11, %s12379_s16  ;;  %p12387_p13 = scmp.lt.s32.totalorder %s1171_s11, %s1171_s11 }
 0x268   : > { %p12388_p0 = scmp.lt.s32.totalorder %s12386_s9, %s12379_s16 }
 0x269   : > { %p12382_p11 = pnand %p12380_p10, %p12730_p7 }
 0x26a   : > { %p12389_p1 = por %p12388_p0, %p12387_p13 }
 0x26b   : > { %p12383_p12 = pneg %p12382_p11 }
 0x26d   : > { %p12390_p4 = pnand %p12389_p1, %p12383_p12 }
 0x26f   : > { %12393 = shalt.err (!%p12390_p4)
}
 0x270   : > { %11582 = dma.hbm_to_vmem [thread:$0]  (!%p12720_p5), %s12682_s25, 16, %s1171_s11, [#allocation36]  }
 0x271   : > { %p14650_p6 = scmp.ne.s32.totalorder %s14635_s5, 0 }
 0x273   : > { %1212 = sbr.rel (%p14650_p6) target bundleno = 11908 (0x2e84), region = 156 }
 0x27a   : > { %p14651_p8 = scmp.eq.s32.totalorder %s12703_s0, 0 }
 0x27c   : > { %12399 = dma.done.wait (%p14651_p8), [#allocation4], 2048   ;;  %p14652_p2 = pmov %p14651_p8 }
 0x27e   : > { %12401 = vsyncadd (%p14652_p2), [#allocation4], 4294965248  ;;  %p14653_p7 = pmov %p14652_p2 }
 0x27f   : > { %p14654_p3 = pmov %p14652_p2 }
 0x280   : > { %12403 = dma.done.wait (%p14653_p7), [#allocation6], 4096  }
 0x281   : > { %12405 = vsyncadd (%p14654_p3), [#allocation6], 4294963200  ;;  %p14655_p9 = pmov %p14652_p2 }
 0x282   : > { %p14656_p5 = pmov %p14652_p2 }
 0x283   : > { %12407 = dma.done.wait (%p14655_p9), [#allocation9], 2112  }
 0x284   : > { %12409 = vsyncadd (%p14656_p5), [#allocation9], 4294965184  ;;  %p14657_p10 = pmov %p14652_p2 }
 0x285   : > { %p14658_p11 = pmov %p14652_p2 }
 0x286   : > { %12411 = dma.done.wait (%p14657_p10), [#allocation12], 2112  }
 0x287   : > { %12413 = vsyncadd (%p14658_p11), [#allocation12], 4294965184  ;;  %p14659_p12 = pmov %p14652_p2 }
 0x288   : > { %p14660_p13 = pmov %p14652_p2 }
 0x289   : > { %12415 = dma.done.wait (%p14659_p12), [#allocation15], 2112  }
 0x28a   : > { %12417 = vsyncadd (%p14660_p13), [#allocation15], 4294965184  ;;  %p14661_p0 = pmov %p14652_p2 }
 0x28c   : > { %12419 = dma.done.wait (%p14661_p0), [#allocation18], 128   ;;  %p14662_p1 = pmov %p14661_p0 }
 0x28d   : > { %p14663_p4 = pmov %p14661_p0 }
 0x28e   : > { %12421 = vsyncadd (%p14662_p1), [#allocation18], 4294967168 }
 0x28f   : > { %12423 = dma.done.wait (%p14663_p4), [#allocation21], 64   ;;  %p14664_p6 = pmov %p14661_p0 }
 0x290   : > { %p14665_p8 = pmov %p14661_p0 }
 0x291   : > { %12425 = vsyncadd (%p14664_p6), [#allocation21], 4294967232 }
 0x292   : > { %12427 = dma.done.wait (%p14665_p8), [#allocation24], 2112   ;;  %p14666_p2 = pmov %p14661_p0 }
 0x293   : > { %p14667_p7 = pmov %p14661_p0 }
 0x294   : > { %12429 = vsyncadd (%p14666_p2), [#allocation24], 4294965184 }
 0x295   : > { %12431 = dma.done.wait (%p14667_p7), [#allocation27], 2112   ;;  %p14668_p3 = pmov %p14661_p0 }
 0x296   : > { %p14669_p9 = pmov %p14661_p0 }
 0x297   : > { %12433 = vsyncadd (%p14668_p3), [#allocation27], 4294965184 }
 0x298   : > { %12435 = dma.done.wait (%p14669_p9), [#allocation30], 8256   ;;  %p14670_p5 = pmov %p14661_p0 }
 0x299   : > { %p14671_p10 = pmov %p14661_p0 }
 0x29a   : > { %12437 = vsyncadd (%p14670_p5), [#allocation30], 4294959040 }
 0x29b   : > { %12439 = dma.done.wait (%p14671_p10), [#allocation33], 128   ;;  %p14672_p11 = pmov %p14661_p0 }
 0x29c   : > { %p14673_p12 = pmov %p14661_p0 }
 0x29d   : > { %12441 = vsyncadd (%p14672_p11), [#allocation33], 4294967168 }
 0x29e   : > { %12443 = dma.done.wait (%p14673_p12), [#allocation36], 528   ;;  %p14674_p13 = pmov %p14661_p0 }
 0x29f   : > { %v14601_v1 = vmov 0.0|0.0   ;;  %vm12512_vm0 = vmmov 0   ;;  %v14599_v2 = vmov 0.0   ;;  %v1457_v3 = vld [vmem:[#allocation7] sm:$0xff]  ;;  %v1458_v4 = vld [vmem:[#allocation7 + $0x8] sm:$0xff]  ;;  %v1459_v5 = vld [vmem:[#allocation7 + $0x10] sm:$0xff]  ;;  %v1632_v26 = vlaneseq }
 0x2a0   : > { %12445 = vsyncadd (%p14674_p13), [#allocation36], 4294966768  ;;  %10673 = vmatprep.subr.bf16.mxu0 %v14601_v1  ;;  %9550 = vmatprep.mubr.msk.f32.mxu0 %vm12512_vm0, %v14599_v2  ;;  %v10674_v6 = vpack.c.bf16 %v1458_v4, %v1457_v3  ;;  %v1460_v7 = vld [vmem:[#allocation7 + $0x18] sm:$0xff]  ;;  %v1543_v8 = vld [vmem:[#allocation10] sm:$0xff]  ;;  %vm1468_vm1 = vcmask 261120   ;;  %v12514_v12 = vmov 1.0  }
 0x2a1   : > { %10679 = vmatprep.subr.bf16.mxu1 %v14601_v1  ;;  %9561 = vmatprep.mubr.msk.f32.mxu1 %vm12512_vm0, %v14599_v2  ;;  %v1544_v9 = vld [vmem:[#allocation10 + $0x8] sm:$0xff]  ;;  %v10677_v11 = vpack.c.bf16 %v1460_v7, %v1459_v5  ;;  %v1545_v13 = vld [vmem:[#allocation10 + $0x10] sm:$0xff]  ;;  %v1546_v14 = vld [vmem:[#allocation10 + $0x18] sm:$0xff]  ;;  %s14675_s5 = sld [smem:[#allocation50_spill]]  ;;  %v12515_v24 = vmov 1966171168  }
 0x2a2   : > { %v10680_v10 = vpack.c.bf16 %v1544_v9, %v1543_v8  ;;  %10675 = vmatpush3.bf16.msra.mxu0 %v10674_v6  ;;  %v10683_v15 = vpack.c.bf16 %v1546_v14, %v1545_v13  ;;  %v8644_v16 = vld [vmem:[#allocation8] ss:$0 sm:$0xff]  ;;  %v1794_v21 = vld [vmem:[#allocation14] sm:$0xff]  ;;  %v1795_v22 = vld [vmem:[#allocation14 + $0x8] sm:$0xff]  ;;  %v1630_v25 = vunpack.c.l.s4 %v12515_v24  ;;  %p1394_p0 = scmp.lt.s32.totalorder %s12703_s0, 1  ;;  %v1633_v28 = vshrl.u32 %v1632_v26, 7 }
 0x2a3   : > { %10676 = vmatprep.subr.bf16.mxu0 %v14601_v1  ;;  %v10685_v23 = vpack.c.bf16 %v1795_v22, %v1794_v21  ;;  %v8646_v29 = vld [vmem:[#allocation11] ss:$0 sm:$0xff]  ;;  %s14677_s22 = sld [smem:[#allocation53_spill]]  ;;  %s14678_s7 = sld [smem:[#allocation51_spill]]  ;;  %v1796_v22 = vld [vmem:[#allocation14 + $0x10] sm:$0xff]  ;;  %v1791_v26 = vld [vmem:[#allocation13 + $0x8] sm:$0xff] }
 0x2a4   : > { %10681 = vmatpush3.bf16.msra.mxu1 %v10680_v10  ;;  %v1631_v27 = vunpack.c.0.s8 %v1630_v25  ;;  %s14698_s0 = smov (!%p1394_p0, %s12703_s0), 1  ;;  %v13114_v35 = vsub.s32 0, %v1633_v28  ;;  %v1790_v25 = vld [vmem:[#allocation13] sm:$0xff]  ;;  %s14679_s18 = sld [smem:[#allocation62_spill]]  ;;  %vm2686_vm2 = vcmask 523264   ;;  %vm3955_vm3 = vcmask 785408  }
 0x2a5   : > { %10682 = vmatprep.subr.bf16.mxu1 %v14601_v1  ;;  %s8808_s26 = sshll.u32 %s14698_s0, 4  ;;  %s14680_s13 = sld [smem:[#allocation64_spill]]  ;;  %vm8010_vm4 = vcmask 64512   ;;  %vm8253_vm5 = vcmask 3072  }
 0x2a6   : > { %10678 = vmatpush3.bf16.msra.mxu0 %v10677_v11  ;;  %v13107_v30 = vsub.s32 %v1631_v27, %v1633_v28  ;;  %v10693_v27 = vpack.c.bf16 %v1791_v26, %v1790_v25  ;;  %s14681_s4 = sld [smem:[#allocation68_spill]]  ;;  %s14682_s11 = sld [smem:[#allocation54_spill]] }
 0x2a7   : > { %9564 = vmatprep.subr.bf16.mxu0 %v14599_v2  ;;  %s1398_s10 = scalar_lea.vmem %s14675_s5, %s8808_s26  ;;  %s14684_s8 = sld [smem:[#allocation55_spill]] }
 0x2a8   : > { %10684 = vmatpush3.bf16.msra.mxu1 %v10683_v15  ;;  %14676 = vst [vmem:[#allocation73_spill] sm:$0xff] %v13107_v30  ;;  %v13117_v38 = vld [vmem:[%s1398_s10] sm:$0xff]  ;;  %v13119_v39 = vld [vmem:[%s1398_s10 + $0x8] sm:$0xff]  ;;  %s12516_s16 = smov 64   ;;  %s12517_s9 = smov 32  }
 0x2a9   : > { %9551 = vmatmul.mubr.msk.f32.vlgmr.msra.gmra.mrb[0].mxu0 %vm1468_vm1, %v12514_v12  ;;  %10686 = vmatprep.subr.bf16.mxu1 %v10685_v23  ;;  %v13157_v21 = vld [vmem:[%s14677_s22] sm:$0xff]   ;;  %s13166_s3 = scalar_lea.vmem %s14678_s7, %s8808_s26  ;;  %s12518_s5 = smov 96  }
 0x2aa   : > { %9580 = vmatprep.mubr.msk.bf16.mxu0 %vm12512_vm0, %v14599_v2  ;;  %v13169_v28 = vld [vmem:[%s13166_s3] sm:$0xff]  ;;  %s14696_s26 = sld [smem:[#allocation52_spill]]  ;;  %s8642_s10 = sshll.u32 %s14698_s0, 2 }
 0x2b0   : > { %s1407_s7 = scalar_lea.vmem %s14696_s26, %s8642_s10 }
 0x37c   : > { %v1538_v17 = vpop.f32.mrb[0].mxu0 }
 0x37d   : > { %v1539_v18 = vadd.f32 %v8644_v16, %v1538_v17  ;;  %v9552_v19 = vpop.f32.mrb[1].mxu0 }
 0x37f   : > { %v1542_v20 = vmax.f32 %v1539_v18, 0.0 }
 0x381   : > { %9562 = vmatmul.mubr.msk.f32.vlgmr.msra.gmra.mrb[0].mxu1 %vm1468_vm1, %v1542_v20 }
 0x382   : > { %10688 = vmatpush3.bf16.msra.mxu1 %v10685_v23  ;;  %v1797_v23 = vld [vmem:[#allocation14 + $0x18] sm:$0xff] }
 0x383   : > { %v10689_v24 = vpack.c.bf16 %v1797_v23, %v1796_v22 }
 0x385   : > { %10690 = vmatprep.subr.bf16.mxu1 %v10689_v24 }
 0x386   : > { %10692 = vmatpush3.bf16.msra.mxu1 %v10689_v24 }
 0x387   : > { %10694 = vmatprep.subr.bf16.mxu1 %v10693_v27 }
 0x454   : > { %v1623_v31 = vpop.f32.mrb[0].mxu1 }
 0x455   : > { %v1624_v32 = vadd.f32 %v8646_v29, %v1623_v31  ;;  %v9563_v33 = vpop.f32.mrb[1].mxu1  ;;  %v13172_v31 = vld [vmem:[%s13166_s3 + $0x8] sm:$0xff] }
 0x456   : > { %v1793_v33 = vld [vmem:[#allocation13 + $0x18] sm:$0xff] }
 0x457   : > { %v1635_v34 = vrot.slane %v1624_v32, %v13107_v30  ;;  %v1628_v40 = vcombine.high %v1624_v32, %v1624_v32  ;;  %v1792_v32 = vld [vmem:[#allocation13 + $0x10] sm:$0xff] }
 0x459   : > { %v1643_v36 = vcombine.high %v1635_v34, %v1635_v34  ;;  %v1651_v37 = vrot.slane %v1635_v34, %v13107_v30  ;;  %v1642_v47 = vrot.slane %v1628_v40, %v13107_v30 }
 0x45b   : > { %v1665_v41 = vrot.slane %v1643_v36, %v13107_v30  ;;  %v1673_v42 = vcombine.high %v1651_v37, %v1651_v37  ;;  %v1680_v43 = vrot.slane %v1651_v37, %v13114_v35  ;;  %v1644_v53 = vcombine.high %v1642_v47, %v1642_v47 }
 0x45c   : > { %v1658_v54 = vrot.slane %v1642_v47, %v13107_v30  ;;  %v2022_v47 = vld [vmem:[#allocation7 + $0x38] sm:$0xff] }
 0x45d   : > { %v1684_v44 = vrot.slane %v1665_v41, %v13114_v35  ;;  %v1717_v45 = vmul.f32 %v1680_v43, %v13117_v38  ;;  %v1718_v46 = vmul.f32 %v1680_v43, %v13119_v39  ;;  %v1675_v48 = vcombine.high %v1665_v41, %v1665_v41  ;;  %v2019_v43 = vld [vmem:[#allocation7 + $0x20] sm:$0xff] }
 0x45e   : > { %v1688_v49 = vrot.slane %v1673_v42, %v13114_v35  ;;  %v1672_v59 = vrot.slane %v1644_v53, %v13107_v30  ;;  %v1696_v60 = vrot.slane %v1658_v54, %v13114_v35  ;;  %v1674_v0 = vcombine.high %v1658_v54, %v1658_v54  ;;  %v2106_v53 = vld [vmem:[#allocation10 + $0x38] sm:$0xff] }
 0x45f   : > { %v1733_v50 = vpack.c.bf16 %v1718_v46, %v1717_v45  ;;  %v1719_v51 = vmul.f32 %v1684_v44, %v13117_v38  ;;  %v1720_v52 = vmul.f32 %v1684_v44, %v13119_v39  ;;  %v1692_v55 = vrot.slane %v1675_v48, %v13114_v35  ;;  %v2020_v44 = vld [vmem:[#allocation7 + $0x28] sm:$0xff]  ;;  %v2021_v46 = vld [vmem:[#allocation7 + $0x30] sm:$0xff] }
 0x460   : > { %v1721_v57 = vmul.f32 %v1688_v49, %v13117_v38  ;;  %v1722_v58 = vmul.f32 %v1688_v49, %v13119_v39  ;;  %v1700_v3 = vrot.slane %v1672_v59, %v13114_v35  ;;  %v1725_v5 = vmul.f32 %v1696_v60, %v13117_v38  ;;  %v2103_v49 = vld [vmem:[#allocation10 + $0x20] sm:$0xff] }
 0x461   : > { %9565 = vmatpush3.bf16.msra.mxu0 %v1733_v50  ;;  %v1734_v56 = vpack.c.bf16 %v1720_v52, %v1719_v51  ;;  %v1723_v62 = vmul.f32 %v1692_v55, %v13117_v38  ;;  %v1724_v63 = vmul.f32 %v1692_v55, %v13119_v39  ;;  %v1726_v6 = vmul.f32 %v1696_v60, %v13119_v39  ;;  %v2104_v50 = vld [vmem:[#allocation10 + $0x28] sm:$0xff]  ;;  %v2105_v52 = vld [vmem:[#allocation10 + $0x30] sm:$0xff]  ;;  %v8653_v55 = vld [vmem:[#allocation16] ss:$0 sm:$0xff] }
 0x462   : > { %9566 = vmatprep.subr.bf16.mxu0 %v14599_v2  ;;  %v1735_v61 = vpack.c.bf16 %v1722_v58, %v1721_v57  ;;  %v1676_v7 = vcombine.high %v1672_v59, %v1672_v59  ;;  %v1704_v8 = vrot.slane %v1674_v0, %v13114_v35  ;;  %v1727_v10 = vmul.f32 %v1700_v3, %v13117_v38 }
 0x463   : > { %v1736_v4 = vpack.c.bf16 %v1724_v63, %v1723_v62  ;;  %v1737_v9 = vpack.c.bf16 %v1726_v6, %v1725_v5  ;;  %v1728_v11 = vmul.f32 %v1700_v3, %v13119_v39  ;;  %v10697_v42 = vpack.c.bf16 %v1793_v33, %v1792_v32  ;;  %v8654_v32 = vld [vmem:[#allocation17] ss:$0 sm:$0xff]  ;;  %v8658_v33 = vld [vmem:[#allocation11 + $0x1] ss:$0 sm:$0xff] }
 0x464   : > { %v1729_v14 = vmul.f32 %v1704_v8, %v13117_v38  ;;  %v1730_v15 = vmul.f32 %v1704_v8, %v13119_v39  ;;  %v1708_v16 = vrot.slane %v1676_v7, %v13114_v35  ;;  %v10702_v45 = vpack.c.bf16 %v2020_v44, %v2019_v43 }
 0x465   : > { %9567 = vmatpush3.bf16.msra.mxu0 %v1734_v56  ;;  %v1738_v13 = vpack.c.bf16 %v1728_v11, %v1727_v10  ;;  %v10705_v48 = vpack.c.bf16 %v2022_v47, %v2021_v46  ;;  %v10708_v51 = vpack.c.bf16 %v2104_v50, %v2103_v49  ;;  %v10711_v54 = vpack.c.bf16 %v2106_v53, %v2105_v52 }
 0x466   : > { %9568 = vmatprep.subr.bf16.mxu0 %v14599_v2  ;;  %v1739_v17 = vpack.c.bf16 %v1730_v15, %v1729_v14  ;;  %v1731_v18 = vmul.f32 %v1708_v16, %v13117_v38  ;;  %v1732_v19 = vmul.f32 %v1708_v16, %v13119_v39 }
 0x468   : > { %v1740_v20 = vpack.c.bf16 %v1732_v19, %v1731_v18  ;;  %v2351_v18 = vld [vmem:[#allocation14 + $0x20] sm:$0xff]  ;;  %v2352_v19 = vld [vmem:[#allocation14 + $0x28] sm:$0xff] }
 0x469   : > { %9569 = vmatpush3.bf16.msra.mxu0 %v1735_v61  ;;  %v8656_v61 = vld [vmem:[#allocation8 + $0x1] ss:$0 sm:$0xff] }
 0x46a   : > { %9570 = vmatprep.subr.bf16.mxu0 %v14599_v2 }
 0x46d   : > { %9571 = vmatpush3.bf16.msra.mxu0 %v1736_v4 }
 0x46e   : > { %9572 = vmatprep.subr.bf16.mxu0 %v14599_v2 }
 0x471   : > { %9573 = vmatpush3.bf16.msra.mxu0 %v1737_v9 }
 0x472   : > { %9574 = vmatprep.subr.bf16.mxu0 %v14599_v2 }
 0x475   : > { %9575 = vmatpush3.bf16.msra.mxu0 %v1738_v13 }
 0x476   : > { %9576 = vmatprep.subr.bf16.mxu0 %v14599_v2 }
 0x479   : > { %9577 = vmatpush3.bf16.msra.mxu0 %v1739_v17 }
 0x47a   : > { %9578 = vmatprep.subr.bf16.mxu0 %v14599_v2 }
 0x47d   : > { %9579 = vmatpush3.bf16.msra.mxu0 %v1740_v20  ;;  %v10713_v20 = vpack.c.bf16 %v2352_v19, %v2351_v18 }
 0x47e   : > { %9628 = vmatprep.subr.bf16.mxu0 %v14599_v2 }
 0x480   : > { %9581 = vmatmul.mubr.bf16.vlgmr.msra.gmra.mrb[4].mxu0 %v13157_v21 }
 0x481   : > { %9644 = vmatprep.mubr.msk.bf16.mxu0 %vm12512_vm0, %v14599_v2 }
 0x553   : > { %v1781_v29 = vpop.f32.mrb[4].mxu0 }
 0x554   : > { %v1788_v34 = vadd.f32 %v1781_v29, %v13169_v28  ;;  %v9582_v36 = vpop.f32.mrb[5].mxu0 }
 0x555   : > { %v1784_v37 = vpop.f32.mrb[6].mxu0  ;;  %v8655_v36 = vld [vmem:[#allocation19] ss:$0 sm:$0xff] }
 0x556   : > { %v1789_v40 = vadd.f32 %v1784_v37, %v13172_v31  ;;  %v9583_v41 = vpop.f32.mrb[7].mxu0  ;;  %9592 = vmatprep.mubr.msk.f32.mxu1 %vm1468_vm1, %v1788_v34 }
 0x558   : > { %9593 = vmatmul.mubr.msk.f32.vlgmr.msra.gmra.mrb[2].mxu1 %vm1468_vm1, %v1789_v40 }
 0x559   : > { %10696 = vmatpush3.bf16.msra.mxu1 %v10693_v27  ;;  %9603 = vmatprep.mubr.msk.f32.mxu1 %vm1468_vm1, %v13117_v38 }
 0x55a   : > { %10698 = vmatprep.subr.bf16.mxu1 %v10697_v42 }
 0x55d   : > { %10700 = vmatpush3.bf16.msra.mxu1 %v10697_v42 }
 0x55e   : > { %10701 = vmatprep.subr.bf16.mxu1 %v14601_v1 }
 0x560   : > { %9604 = vmatmul.mubr.msk.f32.vlgmr.msra.gmra.mrb[2].mxu1 %vm1468_vm1, %v13119_v39 }
 0x561   : > { %10703 = vmatpush3.bf16.msra.mxu1 %v10702_v45  ;;  %9614 = vmatprep.mubr.msk.f32.mxu1 %vm12512_vm0, %v14599_v2 }
 0x562   : > { %10704 = vmatprep.subr.bf16.mxu1 %v14601_v1 }
 0x565   : > { %10706 = vmatpush3.bf16.msra.mxu1 %v10705_v48 }
 0x566   : > { %10707 = vmatprep.subr.bf16.mxu1 %v14601_v1 }
 0x568   : > { %9615 = vmatmul.mubr.msk.f32.vlgmr.msra.gmra.mrb[4].mxu1 %vm1468_vm1, %v12514_v12 }
 0x569   : > { %9625 = vmatprep.mubr.msk.f32.mxu1 %vm12512_vm0, %v14599_v2  ;;  %10709 = vmatpush3.bf16.msra.mxu1 %v10708_v51 }
 0x56a   : > { %10710 = vmatprep.subr.bf16.mxu1 %v14601_v1 }
 0x56d   : > { %10712 = vmatpush3.bf16.msra.mxu1 %v10711_v54 }
 0x56e   : > { %10714 = vmatprep.subr.bf16.mxu1 %v10713_v20 }
 0x633   : > { %v9605_v56 = vpop.f32.mrb[2].mxu1 }
 0x634   : > { %v1951_v57 = vpop.f32.mrb[3].mxu1  ;;  %v1968_v59 = vadd.f32 %v9605_v56, %v8653_v55 }
 0x635   : > { %v1967_v58 = vadd.f32 %v8653_v55, %v1951_v57 }
 0x636   : > { %v1972_v62 = vsel %vm1468_vm1, %v1968_v59, 0.0 }
 0x637   : > { %v1969_v60 = vsel %vm1468_vm1, %v1967_v58, 0.0 }
 0x638   : > { %1970 = vadd.xlane.f32.xlu0 %v1969_v60 }
 0x63b   : > { %v2097_v63 = vpop.f32.mrb[4].mxu1 }
 0x63c   : > { %1973 = vadd.xlane.f32.xlu0 %v1972_v62  ;;  %v2098_v0 = vadd.f32 %v8656_v61, %v2097_v63  ;;  %v9616_v3 = vpop.f32.mrb[5].mxu1 }
 0x63e   : > { %v2101_v4 = vmax.f32 %v2098_v0, 0.0 }
 0x640   : > { %9626 = vmatmul.mubr.msk.f32.vlgmr.msra.gmra.mrb[6].mxu1 %vm1468_vm1, %v2101_v4 }
 0x641   : > { %10716 = vmatpush3.bf16.msra.mxu1 %v10713_v20 }
 0x6c5   : > { %v1971_v5 = vpop.xlane.xlu0 %1970 }
 0x6c6   : > { %v1976_v6 = vmul.f32 0.03125, %v1971_v5 }
 0x6c8   : > { %v1978_v7 = vsub.f32 %v1967_v58, %v1976_v6 }
 0x6c9   : > { %v1974_v8 = vpop.xlane.xlu0 %1973 }
 0x6ca   : > { %v1977_v9 = vmul.f32 0.03125, %v1974_v8  ;;  %v1980_v10 = vmul.f32 %v1978_v7, %v1978_v7 }
 0x6cc   : > { %v1979_v11 = vsub.f32 %v1968_v59, %v1977_v9  ;;  %v1982_v13 = vsel %vm1468_vm1, %v1980_v10, 0.0 }
 0x6cd   : > { %1983 = vadd.xlane.f32.xlu1 %v1982_v13 }
 0x6ce   : > { %v1981_v14 = vmul.f32 %v1979_v11, %v1979_v11 }
 0x6d0   : > { %v1985_v15 = vsel %vm1468_vm1, %v1981_v14, 0.0 }
 0x6d1   : > { %1986 = vadd.xlane.f32.xlu1 %v1985_v15 }
 0x713   : > { %v2184_v16 = vpop.f32.mrb[6].mxu1 }
 0x714   : > { %v9627_v17 = vpop.f32.mrb[7].mxu1  ;;  %v2185_v40 = vadd.f32 %v8658_v33, %v2184_v16 }
 0x716   : > { %v2196_v44 = vrot.slane %v2185_v40, %v13107_v30  ;;  %v2189_v59 = vcombine.high %v2185_v40, %v2185_v40  ;;  %v2354_v40 = vld [vmem:[#allocation14 + $0x38] sm:$0xff] }
 0x718   : > { %v2204_v48 = vcombine.high %v2196_v44, %v2196_v44  ;;  %v2212_v49 = vrot.slane %v2196_v44, %v13107_v30  ;;  %v2203_v63 = vrot.slane %v2189_v59, %v13107_v30 }
 0x71a   : > { %v2241_v52 = vrot.slane %v2212_v49, %v13114_v35  ;;  %v2226_v54 = vrot.slane %v2204_v48, %v13107_v30  ;;  %v2234_v55 = vcombine.high %v2212_v49, %v2212_v49  ;;  %v2205_v6 = vcombine.high %v2203_v63, %v2203_v63 }
 0x71c   : > { %v2245_v56 = vrot.slane %v2226_v54, %v13114_v35  ;;  %v2236_v61 = vcombine.high %v2226_v54, %v2226_v54  ;;  %v2249_v62 = vrot.slane %v2234_v55, %v13114_v35  ;;  %v2233_v13 = vrot.slane %v2205_v6, %v13107_v30  ;;  %v2577_v6 = vld [vmem:[%s14679_s18] sm:$0xff] }
 0x71e   : > { %v2253_v4 = vrot.slane %v2236_v61, %v13114_v35  ;;  %v2261_v17 = vrot.slane %v2233_v13, %v13114_v35 }
 0x75a   : > { %v1984_v22 = vpop.xlane.xlu1 %1983 }
 0x75b   : > { %v1988_v23 = vmul.f32 0.03125, %v1984_v22  ;;  %v2237_v22 = vcombine.high %v2233_v13, %v2233_v13  ;;  %v2671_v13 = vld [vmem:[%s14680_s13] sm:$0xff] }
 0x75d   : > { %v1990_v24 = vadd.f32 1e-05, %v1988_v23 }
 0x75e   : > { %v1987_v25 = vpop.xlane.xlu1 %1986 }
 0x75f   : > { %11711 = vrsqrt.f32 %v1990_v24  ;;  %v1989_v26 = vmul.f32 0.03125, %v1987_v25 }
 0x761   : > { %v1991_v27 = vadd.f32 1e-05, %v1989_v26 }
 0x763   : > { %11713 = vrsqrt.f32 %v1991_v27 }
 0x769   : > { %v11712_v29 = vpop.eup %11711 }
 0x76a   : > { %v1994_v34 = vmul.f32 %v11712_v29, %v1978_v7  ;;  %v2219_v7 = vrot.slane %v2203_v63, %v13107_v30  ;;  %v2269_v29 = vrot.slane %v2237_v22, %v13114_v35 }
 0x76c   : > { %v2003_v37 = vmul.f32 %v8654_v32, %v1994_v34  ;;  %v2257_v10 = vrot.slane %v2219_v7, %v13114_v35  ;;  %v2235_v16 = vcombine.high %v2219_v7, %v2219_v7  ;;  %v2578_v7 = vld [vmem:[%s14679_s18 + $0x8] sm:$0xff] }
 0x76d   : > { %v11714_v41 = vpop.eup %11713 }
 0x76e   : > { %v2012_v42 = vadd.f32 %v8655_v36, %v2003_v37  ;;  %v1995_v43 = vmul.f32 %v11714_v41, %v1979_v11  ;;  %v2265_v23 = vrot.slane %v2235_v16, %v13114_v35  ;;  %v2353_v37 = vld [vmem:[#allocation14 + $0x30] sm:$0xff] }
 0x76f   : > { %v10717_v41 = vpack.c.bf16 %v2354_v40, %v2353_v37 }
 0x770   : > { %v2014_v45 = vmax.f32 %v2012_v42, 0.0  ;;  %v2004_v46 = vmul.f32 %v8654_v32, %v1995_v43  ;;  %v2346_v42 = vld [vmem:[#allocation13 + $0x20] sm:$0xff]  ;;  %v2347_v43 = vld [vmem:[#allocation13 + $0x28] sm:$0xff] }
 0x771   : > { %10718 = vmatprep.subr.bf16.mxu1 %v10717_v41  ;;  %v10721_v44 = vpack.c.bf16 %v2347_v43, %v2346_v42  ;;  %v2674_v42 = vld [vmem:[%s14680_s13 + $0x18] sm:$0xff] }
 0x772   : > { %v2013_v47 = vadd.f32 %v8655_v36, %v2004_v46  ;;  %v13200_v50 = vadd.f32 %v2014_v45, %v13117_v38  ;;  %10720 = vmatpush3.bf16.msra.mxu1 %v10717_v41  ;;  %v2348_v46 = vld [vmem:[#allocation13 + $0x30] sm:$0xff]  ;;  %v2673_v41 = vld [vmem:[%s14680_s13 + $0x10] sm:$0xff] }
 0x773   : > { %10722 = vmatprep.subr.bf16.mxu1 %v10721_v44 }
 0x774   : > { %v2015_v51 = vmax.f32 %v2013_v47, 0.0  ;;  %v2278_v57 = vmul.f32 %v2241_v52, %v13200_v50  ;;  %v2282_v5 = vmul.f32 %v2249_v62, %v13200_v50  ;;  %v2284_v11 = vmul.f32 %v2253_v4, %v13200_v50  ;;  %v2349_v47 = vld [vmem:[#allocation13 + $0x38] sm:$0xff] }
 0x775   : > { %v2286_v18 = vmul.f32 %v2257_v10, %v13200_v50  ;;  %v2288_v24 = vmul.f32 %v2261_v17, %v13200_v50  ;;  %v2290_v27 = vmul.f32 %v2265_v23, %v13200_v50  ;;  %v2292_v34 = vmul.f32 %v2269_v29, %v13200_v50 }
 0x776   : > { %v13204_v53 = vadd.f32 %v2015_v51, %v13119_v39  ;;  %v2280_v39 = vmul.f32 %v2245_v56, %v13200_v50 }
 0x778   : > { %v2279_v58 = vmul.f32 %v2241_v52, %v13204_v53  ;;  %v2281_v38 = vmul.f32 %v2245_v56, %v13204_v53  ;;  %v2283_v3 = vmul.f32 %v2249_v62, %v13204_v53  ;;  %v2285_v9 = vmul.f32 %v2253_v4, %v13204_v53 }
 0x779   : > { %v2287_v15 = vmul.f32 %v2257_v10, %v13204_v53  ;;  %v2289_v20 = vmul.f32 %v2261_v17, %v13204_v53  ;;  %v2291_v26 = vmul.f32 %v2265_v23, %v13204_v53  ;;  %v2293_v33 = vmul.f32 %v2269_v29, %v13204_v53  ;;  %v2580_v10 = vld [vmem:[%s14679_s18 + $0x18] sm:$0xff]  ;;  %v8666_v29 = vld [vmem:[#allocation19 + $0x1] ss:$0 sm:$0xff] }
 0x77a   : > { %v2294_v60 = vpack.c.bf16 %v2279_v58, %v2278_v57  ;;  %v2295_v0 = vpack.c.bf16 %v2281_v38, %v2280_v39  ;;  %v2296_v8 = vpack.c.bf16 %v2283_v3, %v2282_v5  ;;  %v2297_v14 = vpack.c.bf16 %v2285_v9, %v2284_v11 }
 0x77b   : > { %v2298_v19 = vpack.c.bf16 %v2287_v15, %v2286_v18  ;;  %v2299_v25 = vpack.c.bf16 %v2289_v20, %v2288_v24  ;;  %v2300_v32 = vpack.c.bf16 %v2291_v26, %v2290_v27  ;;  %v2301_v36 = vpack.c.bf16 %v2293_v33, %v2292_v34  ;;  %v8665_v24 = vld [vmem:[#allocation17 + $0x1] ss:$0 sm:$0xff] }
 0x77c   : > { %9629 = vmatpush3.bf16.msra.mxu0 %v2294_v60  ;;  %v10729_v9 = vpack.c.bf16 %v2578_v7, %v2577_v6 }
 0x77d   : > { %9630 = vmatprep.subr.bf16.mxu0 %v14599_v2 }
 0x780   : > { %9631 = vmatpush3.bf16.msra.mxu0 %v2295_v0 }
 0x781   : > { %9632 = vmatprep.subr.bf16.mxu0 %v14599_v2 }
 0x784   : > { %9633 = vmatpush3.bf16.msra.mxu0 %v2296_v8  ;;  %v2579_v8 = vld [vmem:[%s14679_s18 + $0x10] sm:$0xff] }
 0x785   : > { %9634 = vmatprep.subr.bf16.mxu0 %v14599_v2  ;;  %v10733_v11 = vpack.c.bf16 %v2580_v10, %v2579_v8  ;;  %v2867_v10 = vld [vmem:[%s14681_s4 + $0x28] sm:$0xff] }
 0x788   : > { %9635 = vmatpush3.bf16.msra.mxu0 %v2297_v14  ;;  %v2672_v14 = vld [vmem:[%s14680_s13 + $0x8] sm:$0xff] }
 0x789   : > { %9636 = vmatprep.subr.bf16.mxu0 %v14599_v2  ;;  %v10737_v15 = vpack.c.bf16 %v2672_v14, %v2671_v13  ;;  %v2868_v13 = vld [vmem:[%s14681_s4 + $0x30] sm:$0xff]  ;;  %v2869_v14 = vld [vmem:[%s14681_s4 + $0x38] sm:$0xff] }
 0x78c   : > { %9637 = vmatpush3.bf16.msra.mxu0 %v2298_v19 }
 0x78d   : > { %9638 = vmatprep.subr.bf16.mxu0 %v14599_v2 }
 0x790   : > { %9639 = vmatpush3.bf16.msra.mxu0 %v2299_v25 }
 0x791   : > { %9640 = vmatprep.subr.bf16.mxu0 %v14599_v2 }
 0x794   : > { %9641 = vmatpush3.bf16.msra.mxu0 %v2300_v32 }
 0x795   : > { %9642 = vmatprep.subr.bf16.mxu0 %v14599_v2 }
 0x798   : > { %9643 = vmatpush3.bf16.msra.mxu0 %v2301_v36 }
 0x79b   : > { %9645 = vmatmul.mubr.bf16.vlgmr.msra.gmra.mrb[8].mxu0 %v13157_v21  ;;  %v10725_v21 = vpack.c.bf16 %v2349_v47, %v2348_v46  ;;  %v2675_v46 = vld [vmem:[%s14680_s13 + $0x20] sm:$0xff]  ;;  %v2676_v47 = vld [vmem:[%s14680_s13 + $0x28] sm:$0xff] }
 0x86e   : > { %v2336_v45 = vpop.f32.mrb[8].mxu0 }
 0x86f   : > { %v2343_v48 = vadd.f32 %v2336_v45, %v13169_v28  ;;  %v9646_v49 = vpop.f32.mrb[9].mxu0  ;;  %v8664_v28 = vld [vmem:[#allocation16 + $0x1] ss:$0 sm:$0xff]  ;;  %v10741_v45 = vpack.c.bf16 %v2674_v42, %v2673_v41  ;;  %v13296_v42 = vld [vmem:[%s14682_s11] sm:$0xff] }
 0x870   : > { %v2339_v51 = vpop.f32.mrb[10].mxu0  ;;  %v2677_v49 = vld [vmem:[%s14680_s13 + $0x30] sm:$0xff] }
 0x871   : > { %v2344_v52 = vadd.f32 %v2339_v51, %v13172_v31  ;;  %v9647_v54 = vpop.f32.mrb[11].mxu0  ;;  %9656 = vmatprep.mubr.msk.f32.mxu1 %vm1468_vm1, %v2343_v48  ;;  %v10745_v48 = vpack.c.bf16 %v2676_v47, %v2675_v46  ;;  %v2678_v51 = vld [vmem:[%s14680_s13 + $0x38] sm:$0xff] }
 0x872   : > { %v8676_v46 = vld [vmem:[#allocation26] ss:$0 sm:$0xff] }
 0x873   : > { %9657 = vmatmul.mubr.msk.f32.vlgmr.msra.gmra.mrb[8].mxu1 %vm1468_vm1, %v2344_v52  ;;  %v10749_v52 = vpack.c.bf16 %v2678_v51, %v2677_v49 }
 0x874   : > { %10724 = vmatpush3.bf16.msra.mxu1 %v10721_v44  ;;  %9667 = vmatprep.mubr.msk.f32.mxu1 %vm1468_vm1, %v13200_v50 }
 0x875   : > { %10726 = vmatprep.subr.bf16.mxu1 %v10725_v21 }
 0x878   : > { %10728 = vmatpush3.bf16.msra.mxu1 %v10725_v21  ;;  %v8667_v21 = vld [vmem:[#allocation20] ss:$0 sm:$0xff] }
 0x879   : > { %10730 = vmatprep.subr.bf16.mxu1 %v10729_v9 }
 0x87b   : > { %9668 = vmatmul.mubr.msk.f32.vlgmr.msra.gmra.mrb[8].mxu1 %vm1468_vm1, %v13204_v53 }
 0x87c   : > { %10732 = vmatpush3.bf16.msra.mxu1 %v10729_v9  ;;  %v2866_v9 = vld [vmem:[%s14681_s4 + $0x20] sm:$0xff] }
 0x87d   : > { %10734 = vmatprep.subr.bf16.mxu1 %v10733_v11 }
 0x880   : > { %10736 = vmatpush3.bf16.msra.mxu1 %v10733_v11  ;;  %v10769_v11 = vpack.c.bf16 %v2867_v10, %v2866_v9 }
 0x881   : > { %10738 = vmatprep.subr.bf16.mxu1 %v10737_v15 }
 0x94e   : > { %v9669_v55 = vpop.f32.mrb[8].mxu1 }
 0x94f   : > { %v2526_v56 = vadd.f32 %v9669_v55, %v8664_v28  ;;  %v2508_v57 = vpop.f32.mrb[9].mxu1 }
 0x950   : > { %v2525_v31 = vadd.f32 %v8664_v28, %v2508_v57 }
 0x951   : > { %v2530_v58 = vsel %vm1468_vm1, %v2526_v56, 0.0 }
 0x952   : > { %2531 = vadd.xlane.f32.xlu1 %v2530_v58  ;;  %v2527_v59 = vsel %vm1468_vm1, %v2525_v31, 0.0 }
 0x953   : > { %2528 = vadd.xlane.f32.xlu0 %v2527_v59  ;;  %v2770_v59 = vld [vmem:[#allocation23 + $0x10] sm:$0xff] }
 0x9df   : > { %v2532_v60 = vpop.xlane.xlu1 %2531 }
 0x9e0   : > { %v2534_v38 = vmul.f32 0.03125, %v2532_v60  ;;  %v2529_v61 = vpop.xlane.xlu0 %2528  ;;  %v2771_v60 = vld [vmem:[#allocation23 + $0x18] sm:$0xff] }
 0x9e1   : > { %v2533_v62 = vmul.f32 0.03125, %v2529_v61  ;;  %v2862_v61 = vld [vmem:[%s14681_s4] sm:$0xff] }
 0x9e2   : > { %v2536_v39 = vsub.f32 %v2526_v56, %v2534_v38  ;;  %v10757_v38 = vpack.c.bf16 %v2771_v60, %v2770_v59 }
 0x9e3   : > { %v2535_v63 = vsub.f32 %v2525_v31, %v2533_v62  ;;  %v2863_v62 = vld [vmem:[%s14681_s4 + $0x8] sm:$0xff] }
 0x9e4   : > { %v2538_v0 = vmul.f32 %v2536_v39, %v2536_v39 }
 0x9e5   : > { %v2537_v3 = vmul.f32 %v2535_v63, %v2535_v63 }
 0x9e6   : > { %v2542_v4 = vsel %vm1468_vm1, %v2538_v0, 0.0 }
 0x9e7   : > { %2543 = vadd.xlane.f32.xlu1 %v2542_v4  ;;  %v2539_v5 = vsel %vm1468_vm1, %v2537_v3, 0.0  ;;  %v2864_v3 = vld [vmem:[%s14681_s4 + $0x10] sm:$0xff]  ;;  %v2865_v4 = vld [vmem:[%s14681_s4 + $0x18] sm:$0xff] }
 0x9e8   : > { %2540 = vadd.xlane.f32.xlu0 %v2539_v5  ;;  %v10765_v8 = vpack.c.bf16 %v2865_v4, %v2864_v3 }
 0xa74   : > { %v2544_v16 = vpop.xlane.xlu1 %2543 }
 0xa75   : > { %v2546_v17 = vmul.f32 0.03125, %v2544_v16  ;;  %v2541_v18 = vpop.xlane.xlu0 %2540  ;;  %v2870_v16 = vld [vmem:[%s14681_s4 + $0x40] sm:$0xff] }
 0xa76   : > { %v2545_v19 = vmul.f32 0.03125, %v2541_v18 }
 0xa77   : > { %v2548_v20 = vadd.f32 1e-05, %v2546_v17  ;;  %v2871_v17 = vld [vmem:[%s14681_s4 + $0x48] sm:$0xff] }
 0xa78   : > { %v2547_v22 = vadd.f32 1e-05, %v2545_v19  ;;  %v10777_v18 = vpack.c.bf16 %v2871_v17, %v2870_v16  ;;  %v2872_v19 = vld [vmem:[%s14681_s4 + $0x50] sm:$0xff] }
 0xa79   : > { %11715 = vrsqrt.f32 %v2548_v20  ;;  %v2873_v20 = vld [vmem:[%s14681_s4 + $0x58] sm:$0xff] }
 0xa7a   : > { %11717 = vrsqrt.f32 %v2547_v22  ;;  %v10781_v22 = vpack.c.bf16 %v2873_v20, %v2872_v19  ;;  %v13355_v19 = vld [vmem:[%s14684_s8] ss:$0 sm:$0xff]  ;;  %v13358_v20 = vld [vmem:[%s14684_s8 + $0x2] ss:$0 sm:$0xff] }
 0xa83   : > { %v11716_v23 = vpop.eup %11715 }
 0xa84   : > { %v11718_v25 = vpop.eup %11717  ;;  %v2552_v26 = vmul.f32 %v11716_v23, %v2536_v39  ;;  %v10761_v39 = vpack.c.bf16 %v2863_v62, %v2862_v61  ;;  %v2874_v23 = vld [vmem:[%s14681_s4 + $0x60] sm:$0xff] }
 0xa85   : > { %v2551_v27 = vmul.f32 %v11718_v25, %v2535_v63  ;;  %v8670_v63 = vld [vmem:[#allocation22] ss:$0 sm:$0xff] }
 0xa86   : > { %v2562_v32 = vmul.f32 %v8665_v24, %v2552_v26  ;;  %v2876_v26 = vld [vmem:[%s14681_s4 + $0x70] sm:$0xff] }
 0xa87   : > { %v2561_v33 = vmul.f32 %v8665_v24, %v2551_v27  ;;  %v2875_v24 = vld [vmem:[%s14681_s4 + $0x68] sm:$0xff]  ;;  %v2877_v27 = vld [vmem:[%s14681_s4 + $0x78] sm:$0xff] }
 0xa88   : > { %v2572_v34 = vadd.f32 %v8666_v29, %v2562_v32  ;;  %v10785_v25 = vpack.c.bf16 %v2875_v24, %v2874_v23  ;;  %v8673_v32 = vld [vmem:[#allocation25] ss:$0 sm:$0xff] }
 0xa89   : > { %v2571_v36 = vadd.f32 %v8666_v29, %v2561_v33  ;;  %v10789_v29 = vpack.c.bf16 %v2877_v27, %v2876_v26 }
 0xa8a   : > { %v2574_v37 = vmax.f32 %v2572_v34, 0.0 }
 0xa8b   : > { %v2573_v40 = vmax.f32 %v2571_v36, 0.0 }
 0xa8c   : > { %v2576_v44 = vadd.f32 %v2574_v37, %v13204_v53  ;;  %v2769_v53 = vld [vmem:[#allocation23 + $0x8] sm:$0xff] }
 0xa8d   : > { %v2575_v43 = vadd.f32 %v2573_v40, %v13200_v50  ;;  %v2768_v50 = vld [vmem:[#allocation23] sm:$0xff] }
 0xa8e   : > { %v10753_v54 = vpack.c.bf16 %v2769_v53, %v2768_v50 }
 0xa8f   : > { %9678 = vmatprep.mubr.msk.f32.mxu1 %vm1468_vm1, %v2575_v43  ;;  %v13299_v43 = vld [vmem:[%s14682_s11 + $0x8] sm:$0xff] }
 0xa90   : > { %9679 = vmatmul.mubr.msk.f32.vlgmr.msra.gmra.mrb[10].mxu1 %vm1468_vm1, %v2576_v44  ;;  %10754 = vmatprep.subr.bf16.mxu0 %v10753_v54  ;;  %v13303_v44 = vcombine.high %v13296_v42, %v13296_v42 }
 0xa91   : > { %10740 = vmatpush3.bf16.msra.mxu1 %v10737_v15  ;;  %10756 = vmatpush3.bf16.msra.mxu0 %v10753_v54  ;;  %v10773_v15 = vpack.c.bf16 %v2869_v14, %v2868_v13  ;;  %v13343_v13 = vld [vmem:[%s14684_s8 + $0x1] ss:$0 sm:$0xff]  ;;  %v13346_v14 = vld [vmem:[%s14684_s8 + $0x3] ss:$0 sm:$0xff] }
 0xa92   : > { %10742 = vmatprep.subr.bf16.mxu1 %v10741_v45  ;;  %10758 = vmatprep.subr.bf16.mxu0 %v10757_v38  ;;  %14683 = vst [vmem:[#allocation74_spill] sm:$0xff] %v13303_v44 }
 0xa95   : > { %10744 = vmatpush3.bf16.msra.mxu1 %v10741_v45  ;;  %10760 = vmatpush3.bf16.msra.mxu0 %v10757_v38  ;;  %v13307_v45 = vcombine.high %v13299_v43, %v13299_v43 }
 0xa96   : > { %10746 = vmatprep.subr.bf16.mxu1 %v10745_v48  ;;  %10762 = vmatprep.subr.bf16.mxu0 %v10761_v39 }
 0xa99   : > { %10748 = vmatpush3.bf16.msra.mxu1 %v10745_v48 }
 0xa9a   : > { %10750 = vmatprep.subr.bf16.mxu1 %v10749_v52 }
 0xa9d   : > { %10752 = vmatpush3.bf16.msra.mxu1 %v10749_v52 }
 0xb63   : > { %v9680_v28 = vpop.f32.mrb[10].mxu1 }
 0xb64   : > { %v2666_v55 = vadd.f32 %v9680_v28, %v8667_v21  ;;  %v2660_v56 = vpop.f32.mrb[11].mxu1 }
 0xb65   : > { %v2661_v57 = vadd.f32 %v8667_v21, %v2660_v56 }
 0xb66   : > { %v2670_v58 = vmax.f32 %v2666_v55, 0.0 }
 0xb67   : > { %v2669_v31 = vmax.f32 %v2661_v57, 0.0 }
 0xb69   : > { %9697 = vmatprep.mubr.msk.f32.mxu1 %vm2686_vm2, %v2669_v31 }
 0xb6a   : > { %9698 = vmatmul.mubr.msk.f32.vlgmr.msra.gmra.mrb[12].mxu1 %vm2686_vm2, %v2670_v58 }
 0xb6b   : > { %3306 = vmatprep.mubr.bf16.mxu1 %v13303_v44 }
 0xc3d   : > { %v9699_v0 = vpop.f32.mrb[12].mxu1 }
 0xc3e   : > { %v2759_v5 = vpop.f32.mrb[13].mxu1  ;;  %v13277_v7 = vadd.f32 %v9699_v0, %v8670_v63 }
 0xc3f   : > { %v13275_v6 = vadd.f32 %v8670_v63, %v2759_v5 }
 0xc41   : > { %9708 = vmatprep.mubr.msk.f32.mxu0 %vm1468_vm1, %v13275_v6 }
 0xc42   : > { %9709 = vmatmul.mubr.msk.f32.vlgmr.msra.gmra.mrb[2].mxu0 %vm1468_vm1, %v13277_v7 }
 0xc43   : > { %10764 = vmatpush3.bf16.msra.mxu0 %v10761_v39 }
 0xc44   : > { %10766 = vmatprep.subr.bf16.mxu0 %v10765_v8 }
 0xc47   : > { %10768 = vmatpush3.bf16.msra.mxu0 %v10765_v8 }
 0xc48   : > { %10770 = vmatprep.subr.bf16.mxu0 %v10769_v11 }
 0xc4b   : > { %10772 = vmatpush3.bf16.msra.mxu0 %v10769_v11 }
 0xc4c   : > { %10774 = vmatprep.subr.bf16.mxu0 %v10773_v15 }
 0xc4f   : > { %10776 = vmatpush3.bf16.msra.mxu0 %v10773_v15 }
 0xc50   : > { %10778 = vmatprep.subr.bf16.mxu0 %v10777_v18 }
 0xc53   : > { %10780 = vmatpush3.bf16.msra.mxu0 %v10777_v18 }
 0xc54   : > { %10782 = vmatprep.subr.bf16.mxu0 %v10781_v22 }
 0xc57   : > { %10784 = vmatpush3.bf16.msra.mxu0 %v10781_v22 }
 0xc58   : > { %10786 = vmatprep.subr.bf16.mxu0 %v10785_v25 }
 0xc5b   : > { %10788 = vmatpush3.bf16.msra.mxu0 %v10785_v25 }
 0xc5c   : > { %10790 = vmatprep.subr.bf16.mxu0 %v10789_v29 }
 0xc5f   : > { %10792 = vmatpush3.bf16.msra.mxu0 %v10789_v29 }
 0xd15   : > { %v9710_v33 = vpop.f32.mrb[2].mxu0 }
 0xd16   : > { %v2857_v34 = vadd.f32 %v9710_v33, %v8673_v32  ;;  %v2851_v36 = vpop.f32.mrb[3].mxu0 }
 0xd17   : > { %v2852_v37 = vadd.f32 %v8673_v32, %v2851_v36 }
 0xd18   : > { %v2861_v41 = vmax.f32 %v2857_v34, 0.0 }
 0xd19   : > { %v2860_v40 = vmax.f32 %v2852_v37, 0.0 }
 0xd1b   : > { %9743 = vmatprep.mubr.f32.mxu0 %v2860_v40 }
 0xd1c   : > { %9744 = vmatmul.mubr.f32.vlgmr.msra.gmra.mrb[12].mxu0 %v2861_v41 }
 0xd1d   : > { %3346 = vmatprep.mubr.bf16.mxu0 %v13307_v45 }
 0xdef   : > { %v9745_v47 = vpop.f32.mrb[12].mxu0 }
 0xdf0   : > { %v2957_v48 = vadd.f32 %v9745_v47, %v8676_v46  ;;  %v2951_v49 = vpop.f32.mrb[13].mxu0 }
 0xdf1   : > { %v2952_v51 = vadd.f32 %v8676_v46, %v2951_v49 }
 0xdf2   : > { %v3011_v52 = vcombine.high %v2957_v48, %v2957_v48  ;;  %v3018_v50 = vrot.slane %v2957_v48, %v13107_v30 }
 0xdf3   : > { %v2962_v53 = vcombine.high %v2952_v51, %v2952_v51  ;;  %v2969_v54 = vrot.slane %v2952_v51, %v13107_v30 }
 0xdf4   : > { %v3025_v21 = vrot.slane %v3011_v52, %v13107_v30  ;;  %v3026_v28 = vcombine.high %v3018_v50, %v3018_v50  ;;  %v13317_v58 = vrot.slane %v3018_v50, %v13107_v30 }
 0xdf5   : > { %v2976_v55 = vrot.slane %v2962_v53, %v13107_v30  ;;  %v2977_v56 = vcombine.high %v2969_v54, %v2969_v54  ;;  %v2985_v57 = vrot.slane %v2969_v54, %v13107_v30 }
 0xdf6   : > { %v3027_v31 = vcombine.high %v3025_v21, %v3025_v21  ;;  %v13320_v59 = vrot.slane %v3025_v21, %v13107_v30  ;;  %v13323_v60 = vrot.slane %v3026_v28, %v13107_v30  ;;  %v3056_v3 = vcombine.high %v13317_v58, %v13317_v58 }
 0xdf7   : > { %v2978_v38 = vcombine.high %v2976_v55, %v2976_v55  ;;  %v2999_v61 = vrot.slane %v2977_v56, %v13107_v30  ;;  %v2992_v62 = vrot.slane %v2976_v55, %v13107_v30  ;;  %v3007_v63 = vcombine.high %v2985_v57, %v2985_v57 }
 0xdf8   : > { %v13329_v0 = vrot.slane %v3027_v31, %v13107_v30  ;;  %v3057_v4 = vcombine.high %v13320_v59, %v13320_v59  ;;  %v13337_v5 = vrot.slane %v13317_v58, %v13114_v35  ;;  %v3058_v8 = vcombine.high %v13323_v60, %v13323_v60 }
 0xdf9   : > { %v3006_v39 = vrot.slane %v2978_v38, %v13107_v30  ;;  %v3009_v9 = vcombine.high %v2999_v61, %v2999_v61  ;;  %v3063_v11 = vrot.slane %v2985_v57, %v13114_v35  ;;  %v13350_v15 = vrot.slane %v13323_v60, %v13114_v35 }
 0xdfa   : > { %v3008_v16 = vcombine.high %v2992_v62, %v2992_v62  ;;  %v3067_v17 = vrot.slane %v2999_v61, %v13114_v35  ;;  %v3071_v18 = vrot.slane %v3007_v63, %v13114_v35  ;;  %v3079_v23 = vrot.slane %v2992_v62, %v13114_v35 }
 0xdfb   : > { %v3010_v10 = vcombine.high %v3006_v39, %v3006_v39  ;;  %v3075_v22 = vrot.slane %v3009_v9, %v13114_v35  ;;  %v3083_v24 = vrot.slane %v3006_v39, %v13114_v35  ;;  %v3180_v26 = vmul.f32 %v13343_v13, %v3063_v11 }
 0xdfc   : > { %v3181_v27 = vmul.f32 %v13343_v13, %v3067_v17  ;;  %v3212_v29 = vmul.f32 %v13346_v14, %v3063_v11  ;;  %v3213_v32 = vmul.f32 %v13346_v14, %v3067_v17  ;;  %v3164_v33 = vmul.f32 %v13355_v19, %v3063_v11 }
 0xdfd   : > { %v3091_v25 = vrot.slane %v3010_v10, %v13114_v35  ;;  %v3165_v34 = vmul.f32 %v13355_v19, %v3067_v17  ;;  %v3196_v36 = vmul.f32 %v13358_v20, %v3063_v11  ;;  %v3197_v37 = vmul.f32 %v13358_v20, %v3067_v17 }
 0xdfe   : > { %v3236_v40 = vpack.c.bf16 %v3181_v27, %v3180_v26  ;;  %v3252_v41 = vpack.c.bf16 %v3213_v32, %v3212_v29  ;;  %v3182_v46 = vmul.f32 %v13343_v13, %v3071_v18  ;;  %v3183_v47 = vmul.f32 %v13343_v13, %v3075_v22 }
 0xdff   : > { %v3228_v48 = vpack.c.bf16 %v3165_v34, %v3164_v33  ;;  %v3244_v49 = vpack.c.bf16 %v3197_v37, %v3196_v36  ;;  %v3214_v51 = vmul.f32 %v13346_v14, %v3071_v18  ;;  %v3215_v52 = vmul.f32 %v13346_v14, %v3075_v22 }
 0xe00   : > { %8912 = vmatprep.subr.bf16.mxu1 %v3236_v40  ;;  %8934 = vmatprep.subr.bf16.mxu0 %v3252_v41  ;;  %v3237_v50 = vpack.c.bf16 %v3183_v47, %v3182_v46  ;;  %v3166_v53 = vmul.f32 %v13355_v19, %v3071_v18  ;;  %v3167_v54 = vmul.f32 %v13355_v19, %v3075_v22 }
 0xe01   : > { %8913 = vmatpush3.bf16.msra.mxu1 %v3228_v48  ;;  %8935 = vmatpush3.bf16.msra.mxu0 %v3244_v49  ;;  %v3253_v21 = vpack.c.bf16 %v3215_v52, %v3214_v51  ;;  %v3198_v28 = vmul.f32 %v13358_v20, %v3071_v18  ;;  %v3199_v55 = vmul.f32 %v13358_v20, %v3075_v22 }
 0xe02   : > { %v3087_v56 = vrot.slane %v3008_v16, %v13114_v35  ;;  %8914 = vmatprep.subr.bf16.mxu1 %v3237_v50  ;;  %v3229_v57 = vpack.c.bf16 %v3167_v54, %v3166_v53  ;;  %v3184_v31 = vmul.f32 %v13343_v13, %v3079_v23  ;;  %v3185_v58 = vmul.f32 %v13343_v13, %v3083_v24 }
 0xe03   : > { %8936 = vmatprep.subr.bf16.mxu0 %v3253_v21  ;;  %v3245_v38 = vpack.c.bf16 %v3199_v55, %v3198_v28  ;;  %v3216_v61 = vmul.f32 %v13346_v14, %v3079_v23  ;;  %v3217_v62 = vmul.f32 %v13346_v14, %v3083_v24  ;;  %v3169_v39 = vmul.f32 %v13355_v19, %v3083_v24 }
 0xe04   : > { %v3103_v63 = vrot.slane %v3056_v3, %v13114_v35  ;;  %v3238_v9 = vpack.c.bf16 %v3185_v58, %v3184_v31  ;;  %v3168_v10 = vmul.f32 %v13355_v19, %v3079_v23  ;;  %v3201_v11 = vmul.f32 %v13358_v20, %v3083_v24 }
 0xe05   : > { %8915 = vmatpush3.bf16.msra.mxu1 %v3229_v57  ;;  %8937 = vmatpush3.bf16.msra.mxu0 %v3245_v38  ;;  %v3254_v16 = vpack.c.bf16 %v3217_v62, %v3216_v61  ;;  %v3200_v17 = vmul.f32 %v13358_v20, %v3079_v23  ;;  %v3187_v18 = vmul.f32 %v13343_v13, %v3091_v25 }
 0xe06   : > { %v3059_v22 = vcombine.high %v13329_v0, %v13329_v0  ;;  %8916 = vmatprep.subr.bf16.mxu1 %v3238_v9  ;;  %v3186_v26 = vmul.f32 %v13343_v13, %v3087_v56  ;;  %v3218_v3 = vmul.f32 %v13346_v14, %v3087_v56  ;;  %v3219_v27 = vmul.f32 %v13346_v14, %v3091_v25 }
 0xe07   : > { %8938 = vmatprep.subr.bf16.mxu0 %v3254_v16  ;;  %v3230_v29 = vpack.c.bf16 %v3169_v39, %v3168_v10  ;;  %v3246_v24 = vpack.c.bf16 %v3201_v11, %v3200_v17  ;;  %v3171_v32 = vmul.f32 %v13355_v19, %v3091_v25  ;;  %v3203_v33 = vmul.f32 %v13358_v20, %v3091_v25 }
 0xe08   : > { %v3107_v23 = vrot.slane %v3058_v8, %v13114_v35  ;;  %v3239_v34 = vpack.c.bf16 %v3187_v18, %v3186_v26  ;;  %v3255_v36 = vpack.c.bf16 %v3219_v27, %v3218_v3  ;;  %v3189_v37 = vmul.f32 %v13343_v13, %v13350_v15 }
 0xe09   : > { %8917 = vmatpush3.bf16.msra.mxu1 %v3230_v29  ;;  %8939 = vmatpush3.bf16.msra.mxu0 %v3246_v24  ;;  %v3170_v40 = vmul.f32 %v13355_v19, %v3087_v56  ;;  %v3202_v41 = vmul.f32 %v13358_v20, %v3087_v56  ;;  %v3221_v46 = vmul.f32 %v13346_v14, %v13350_v15 }
 0xe0a   : > { %v3115_v25 = vrot.slane %v13329_v0, %v13114_v35  ;;  %8918 = vmatprep.subr.bf16.mxu1 %v3239_v34  ;;  %8940 = vmatprep.subr.bf16.mxu0 %v3255_v36  ;;  %v3188_v60 = vmul.f32 %v13343_v13, %v13337_v5  ;;  %v3220_v8 = vmul.f32 %v13346_v14, %v13337_v5 }
 0xe0b   : > { %v3231_v47 = vpack.c.bf16 %v3171_v32, %v3170_v40  ;;  %v3247_v48 = vpack.c.bf16 %v3203_v33, %v3202_v41  ;;  %v3173_v49 = vmul.f32 %v13355_v19, %v13350_v15  ;;  %v3205_v51 = vmul.f32 %v13358_v20, %v13350_v15 }
 0xe0c   : > { %v3240_v52 = vpack.c.bf16 %v3189_v37, %v3188_v60  ;;  %v3256_v50 = vpack.c.bf16 %v3221_v46, %v3220_v8  ;;  %v3191_v0 = vmul.f32 %v13343_v13, %v3107_v23  ;;  %v3223_v53 = vmul.f32 %v13346_v14, %v3107_v23  ;;  %v3358_v60 = vld [vmem:[#allocation29] sm:$0xff]  ;;  %v3359_v8 = vld [vmem:[#allocation29 + $0x8] sm:$0xff] }
 0xe0d   : > { %v3111_v54 = vrot.slane %v13320_v59, %v13114_v35  ;;  %8919 = vmatpush3.bf16.msra.mxu1 %v3231_v47  ;;  %8941 = vmatpush3.bf16.msra.mxu0 %v3247_v48  ;;  %v3172_v21 = vmul.f32 %v13355_v19, %v13337_v5  ;;  %v3204_v28 = vmul.f32 %v13358_v20, %v13337_v5 }
 0xe0e   : > { %v3123_v55 = vrot.slane %v3059_v22, %v13114_v35  ;;  %8920 = vmatprep.subr.bf16.mxu1 %v3240_v52  ;;  %8942 = vmatprep.subr.bf16.mxu0 %v3256_v50  ;;  %v3190_v15 = vmul.f32 %v13343_v13, %v3103_v63  ;;  %v3222_v56 = vmul.f32 %v13346_v14, %v3103_v63  ;;  %v3360_v50 = vld [vmem:[#allocation29 + $0x10] sm:$0xff] }
 0xe0f   : > { %v3232_v57 = vpack.c.bf16 %v3173_v49, %v3172_v21  ;;  %v3248_v31 = vpack.c.bf16 %v3205_v51, %v3204_v28  ;;  %v3175_v58 = vmul.f32 %v13355_v19, %v3107_v23  ;;  %v3207_v38 = vmul.f32 %v13358_v20, %v3107_v23  ;;  %v3364_v21 = vld [vmem:[#allocation29 + $0x30] sm:$0xff]  ;;  %v3365_v28 = vld [vmem:[#allocation29 + $0x38] sm:$0xff] }
 0xe10   : > { %v3241_v61 = vpack.c.bf16 %v3191_v0, %v3190_v15  ;;  %v3257_v62 = vpack.c.bf16 %v3223_v53, %v3222_v56  ;;  %v3193_v39 = vmul.f32 %v13343_v13, %v3115_v25  ;;  %v3225_v5 = vmul.f32 %v13346_v14, %v3115_v25  ;;  %v3361_v0 = vld [vmem:[#allocation29 + $0x18] sm:$0xff]  ;;  %v3363_v53 = vld [vmem:[#allocation29 + $0x28] sm:$0xff]  ;;  %v3366_v15 = vld [vmem:[#allocation29 + $0x40] sm:$0xff] }
 0xe11   : > { %8921 = vmatpush3.bf16.msra.mxu1 %v3232_v57  ;;  %8943 = vmatpush3.bf16.msra.mxu0 %v3248_v31  ;;  %v3174_v9 = vmul.f32 %v13355_v19, %v3103_v63  ;;  %v3206_v10 = vmul.f32 %v13358_v20, %v3103_v63  ;;  %v3119_v11 = vrot.slane %v3057_v4, %v13114_v35  ;;  %v3367_v56 = vld [vmem:[#allocation29 + $0x48] sm:$0xff]  ;;  %v3368_v31 = vld [vmem:[#allocation29 + $0x50] sm:$0xff] }
 0xe12   : > { %8922 = vmatprep.subr.bf16.mxu1 %v3241_v61  ;;  %8944 = vmatprep.subr.bf16.mxu0 %v3257_v62  ;;  %v3192_v16 = vmul.f32 %v13343_v13, %v3111_v54  ;;  %v3224_v17 = vmul.f32 %v13346_v14, %v3111_v54  ;;  %v3177_v26 = vmul.f32 %v13355_v19, %v3115_v25  ;;  %v3354_v61 = vld [vmem:[#allocation28] sm:$0xff]  ;;  %v3355_v62 = vld [vmem:[#allocation28 + $0x8] sm:$0xff] }
 0xe13   : > { %v3233_v18 = vpack.c.bf16 %v3175_v58, %v3174_v9  ;;  %v3249_v22 = vpack.c.bf16 %v3207_v38, %v3206_v10  ;;  %v3209_v3 = vmul.f32 %v13358_v20, %v3115_v25  ;;  %v3195_v63 = vmul.f32 %v13343_v13, %v3123_v55  ;;  %v3369_v58 = vld [vmem:[#allocation29 + $0x58] sm:$0xff]  ;;  %v3371_v9 = vld [vmem:[#allocation29 + $0x68] sm:$0xff]  ;;  %v3356_v10 = vld [vmem:[#allocation28 + $0x10] sm:$0xff] }
 0xe14   : > { %v3242_v27 = vpack.c.bf16 %v3193_v39, %v3192_v16  ;;  %v3258_v29 = vpack.c.bf16 %v3225_v5, %v3224_v17  ;;  %v3227_v24 = vmul.f32 %v13346_v14, %v3123_v55  ;;  %v3176_v59 = vmul.f32 %v13355_v19, %v3111_v54  ;;  %v3370_v5 = vld [vmem:[#allocation29 + $0x60] sm:$0xff]  ;;  %v3357_v16 = vld [vmem:[#allocation28 + $0x18] sm:$0xff]  ;;  %v3372_v17 = vld [vmem:[#allocation29 + $0x70] sm:$0xff] }
 0xe15   : > { %8923 = vmatpush3.bf16.msra.mxu1 %v3233_v18  ;;  %8945 = vmatpush3.bf16.msra.mxu0 %v3249_v22  ;;  %v3208_v4 = vmul.f32 %v13358_v20, %v3111_v54  ;;  %v3194_v32 = vmul.f32 %v13343_v13, %v3119_v11  ;;  %v3226_v33 = vmul.f32 %v13346_v14, %v3119_v11  ;;  %v3373_v18 = vld [vmem:[#allocation29 + $0x78] sm:$0xff] }
 0xe16   : > { %8924 = vmatprep.subr.bf16.mxu1 %v3242_v27  ;;  %8946 = vmatprep.subr.bf16.mxu0 %v3258_v29  ;;  %v3234_v23 = vpack.c.bf16 %v3177_v26, %v3176_v59  ;;  %v3179_v36 = vmul.f32 %v13355_v19, %v3123_v55  ;;  %v3211_v37 = vmul.f32 %v13358_v20, %v3123_v55  ;;  %v1426_v27 = vld [vmem:[#allocation3 + $0x8] sm:$0xff] }
 0xe17   : > { %v3250_v34 = vpack.c.bf16 %v3209_v3, %v3208_v4  ;;  %v3243_v40 = vpack.c.bf16 %v3195_v63, %v3194_v32  ;;  %v3259_v41 = vpack.c.bf16 %v3227_v24, %v3226_v33  ;;  %v3178_v46 = vmul.f32 %v13355_v19, %v3119_v11  ;;  %v1425_v3 = vld [vmem:[#allocation3] sm:$0xff]  ;;  %v1427_v63 = vld [vmem:[#allocation3 + $0x10] sm:$0xff]  ;;  %v1428_v24 = vld [vmem:[#allocation3 + $0x18] sm:$0xff] }
 0xe18   : > { %v3210_v25 = vmul.f32 %v13358_v20, %v3119_v11  ;;  %v13455_v49 = vcombine.low %v13296_v42, %v13296_v42  ;;  %v13459_v51 = vcombine.low %v13299_v43, %v13299_v43  ;;  %v10794_v52 = vpack.c.bf16 %v3359_v8, %v3358_v60  ;;  %v3362_v43 = vld [vmem:[#allocation29 + $0x20] sm:$0xff]  ;;  %v1430_v32 = vld [vmem:[#allocation3 + $0x28] sm:$0xff]  ;;  %v1431_v33 = vld [vmem:[#allocation3 + $0x30] sm:$0xff] }
 0xe19   : > { %8925 = vmatpush3.bf16.msra.mxu1 %v3234_v23  ;;  %8947 = vmatpush3.bf16.msra.mxu0 %v3250_v34  ;;  %v3235_v47 = vpack.c.bf16 %v3179_v36, %v3178_v46  ;;  %v10797_v42 = vpack.c.bf16 %v3361_v0, %v3360_v50  ;;  %v10800_v54 = vpack.c.bf16 %v3363_v53, %v3362_v43  ;;  %v1429_v4 = vld [vmem:[#allocation3 + $0x20] sm:$0xff]  ;;  %v1432_v23 = vld [vmem:[#allocation3 + $0x38] sm:$0xff]  ;;  %v1438_v8 = vld [vmem:[#allocation3 + $0x68] sm:$0xff] }
 0xe1a   : > { %8926 = vmatprep.subr.bf16.mxu1 %v3243_v40  ;;  %8948 = vmatprep.subr.bf16.mxu0 %v3259_v41  ;;  %v3251_v48 = vpack.c.bf16 %v3211_v37, %v3210_v25  ;;  %v10803_v55 = vpack.c.bf16 %v3365_v28, %v3364_v21  ;;  %v10806_v57 = vpack.c.bf16 %v3367_v56, %v3366_v15  ;;  %v1433_v36 = vld [vmem:[#allocation3 + $0x40] sm:$0xff]  ;;  %v1434_v37 = vld [vmem:[#allocation3 + $0x48] sm:$0xff]  ;;  %v1435_v41 = vld [vmem:[#allocation3 + $0x50] sm:$0xff] }
 0xe1b   : > { %v10809_v38 = vpack.c.bf16 %v3369_v58, %v3368_v31  ;;  %v10818_v39 = vpack.c.bf16 %v3355_v62, %v3354_v61  ;;  %v10812_v11 = vpack.c.bf16 %v3371_v9, %v3370_v5  ;;  %v10821_v22 = vpack.c.bf16 %v3357_v16, %v3356_v10  ;;  %v1436_v46 = vld [vmem:[#allocation3 + $0x58] sm:$0xff]  ;;  %v1437_v60 = vld [vmem:[#allocation3 + $0x60] sm:$0xff]  ;;  %v1439_v56 = vld [vmem:[#allocation3 + $0x70] sm:$0xff] }
 0xe1c   : > { %v10815_v26 = vpack.c.bf16 %v3373_v18, %v3372_v17  ;;  %v13478_v29 = vpack.c.bf16 %v1426_v27, %v1425_v3  ;;  %v13487_v59 = vpack.c.bf16 %v1428_v24, %v1427_v63  ;;  %v13495_v34 = vpack.c.bf16 %v1432_v23, %v1431_v33  ;;  %v8686_v62 = vld [vmem:[#allocation31] ss:$0 sm:$0xff]  ;;  %v3754_v10 = vld [vmem:[#allocation23 + $0x20] sm:$0xff]  ;;  %v1442_v18 = vld [vmem:[#allocation5 + $0x8] sm:$0xff] }
 0xe1d   : > { %8927 = vmatpush3.bf16.msra.mxu1 %v3235_v47  ;;  %8949 = vmatpush3.bf16.msra.mxu0 %v3251_v48  ;;  %v13499_v40 = vpack.c.bf16 %v1434_v37, %v1433_v36  ;;  %v13503_v25 = vpack.c.bf16 %v1436_v46, %v1435_v41  ;;  %v13507_v47 = vpack.c.bf16 %v1438_v8, %v1437_v60  ;;  %v1441_v17 = vld [vmem:[#allocation5] sm:$0xff]  ;;  %v1444_v3 = vld [vmem:[#allocation5 + $0x18] sm:$0xff]  ;;  %v1446_v24 = vld [vmem:[#allocation5 + $0x28] sm:$0xff] }
 0xe1e   : > { %10793 = vmatprep.subr.bf16.mxu1 %v14601_v1  ;;  %10817 = vmatprep.subr.bf16.mxu0 %v14601_v1  ;;  %v1445_v63 = vld [vmem:[#allocation5 + $0x20] sm:$0xff]  ;;  %v3756_v33 = vld [vmem:[#allocation23 + $0x30] sm:$0xff]  ;;  %v3757_v23 = vld [vmem:[#allocation23 + $0x38] sm:$0xff] }
 0xe1f   : > { %v10899_v46 = vpack.c.bf16 %v3757_v23, %v3756_v33  ;;  %v8692_v60 = vld [vmem:[%s14681_s4 + $0x80] sm:$0xff]  ;;  %v8693_v8 = vld [vmem:[%s14681_s4 + $0x88] sm:$0xff] }
 0xe20   : > { %3307 = vmatmul.mubr.bf16.vlgmr.msra.gmra.mrb[16].mxu1 %v13455_v49  ;;  %3347 = vmatmul.mubr.bf16.vlgmr.msra.gmra.mrb[16].mxu0 %v13459_v51  ;;  %v1453_v33 = vld [vmem:[#allocation5 + $0x60] sm:$0xff]  ;;  %v1454_v23 = vld [vmem:[#allocation5 + $0x68] sm:$0xff] }
 0xe21   : > { %10795 = vmatpush3.bf16.msra.mxu1 %v10794_v52  ;;  %9789 = vmatprep.mubr.msk.f32.mxu0 %vm12512_vm0, %v14599_v2 }
 0xe22   : > { %10796 = vmatprep.subr.bf16.mxu1 %v14601_v1  ;;  %9778 = vmatprep.mubr.msk.f32.mxu1 %vm12512_vm0, %v14599_v2 }
 0xe23   : > { %10819 = vmatpush3.bf16.msra.mxu0 %v10818_v39 }
 0xe24   : > { %10820 = vmatprep.subr.bf16.mxu0 %v14601_v1 }
 0xe25   : > { %10798 = vmatpush3.bf16.msra.mxu1 %v10797_v42 }
 0xe26   : > { %10799 = vmatprep.subr.bf16.mxu1 %v14601_v1 }
 0xe27   : > { %10822 = vmatpush3.bf16.msra.mxu0 %v10821_v22  ;;  %v13534_v22 = vpack.c.bf16 %v1442_v18, %v1441_v17  ;;  %v8706_v18 = vld [vmem:[%s14681_s4 + $0xf0] sm:$0xff] }
 0xe28   : > { %10847 = vmatprep.subr.bf16.mxu0 %v14601_v1 }
 0xe29   : > { %10801 = vmatpush3.bf16.msra.mxu1 %v10800_v54 }
 0xe2a   : > { %10802 = vmatprep.subr.bf16.mxu1 %v14601_v1  ;;  %9790 = vmatmul.mubr.msk.f32.vlgmr.msra.gmra.mrb[14].mxu0 %vm1468_vm1, %v12514_v12  ;;  %v13491_v12 = vpack.c.bf16 %v1430_v32, %v1429_v4  ;;  %v13542_v4 = vpack.c.bf16 %v1446_v24, %v1445_v63  ;;  %v1452_v24 = vld [vmem:[#allocation5 + $0x58] sm:$0xff] }
 0xe2b   : > { %10849 = vmatpush3.bf16.msra.mxu0 %v13478_v29  ;;  %9859 = vmatprep.mubr.msk.f32.mxu0 %vm12512_vm0, %v14599_v2 }
 0xe2c   : > { %10850 = vmatprep.subr.bf16.mxu0 %v14601_v1 }
 0xe2d   : > { %10804 = vmatpush3.bf16.msra.mxu1 %v10803_v55 }
 0xe2e   : > { %10805 = vmatprep.subr.bf16.mxu1 %v14601_v1 }
 0xe2f   : > { %10852 = vmatpush3.bf16.msra.mxu0 %v13487_v59 }
 0xe30   : > { %10853 = vmatprep.subr.bf16.mxu0 %v14601_v1 }
 0xe31   : > { %10807 = vmatpush3.bf16.msra.mxu1 %v10806_v57  ;;  %v1440_v57 = vld [vmem:[#allocation3 + $0x78] sm:$0xff] }
 0xe32   : > { %10808 = vmatprep.subr.bf16.mxu1 %v14601_v1  ;;  %v13527_v31 = vpack.c.bf16 %v1440_v57, %v1439_v56  ;;  %v8702_v57 = vld [vmem:[%s14681_s4 + $0xd0] sm:$0xff] }
 0xe33   : > { %10855 = vmatpush3.bf16.msra.mxu0 %v13491_v12 }
 0xe34   : > { %10856 = vmatprep.subr.bf16.mxu0 %v14601_v1 }
 0xe35   : > { %10810 = vmatpush3.bf16.msra.mxu1 %v10809_v38 }
 0xe36   : > { %10811 = vmatprep.subr.bf16.mxu1 %v14601_v1 }
 0xe37   : > { %10858 = vmatpush3.bf16.msra.mxu0 %v13495_v34 }
 0xe38   : > { %10859 = vmatprep.subr.bf16.mxu0 %v14601_v1 }
 0xe39   : > { %10813 = vmatpush3.bf16.msra.mxu1 %v10812_v11  ;;  %v3755_v11 = vld [vmem:[#allocation23 + $0x28] sm:$0xff] }
 0xe3a   : > { %10814 = vmatprep.subr.bf16.mxu1 %v14601_v1  ;;  %v10895_v16 = vpack.c.bf16 %v3755_v11, %v3754_v10  ;;  %v1449_v11 = vld [vmem:[#allocation5 + $0x40] sm:$0xff] }
 0xe3b   : > { %10861 = vmatpush3.bf16.msra.mxu0 %v13499_v40 }
 0xe3c   : > { %10862 = vmatprep.subr.bf16.mxu0 %v14601_v1 }
 0xe3d   : > { %10816 = vmatpush3.bf16.msra.mxu1 %v10815_v26  ;;  %v1443_v26 = vld [vmem:[#allocation5 + $0x10] sm:$0xff] }
 0xe3e   : > { %10823 = vmatprep.subr.bf16.mxu1 %v14601_v1  ;;  %v13538_v27 = vpack.c.bf16 %v1444_v3, %v1443_v26  ;;  %v8707_v26 = vld [vmem:[%s14681_s4 + $0xf8] sm:$0xff] }
 0xe3f   : > { %10864 = vmatpush3.bf16.msra.mxu0 %v13503_v25  ;;  %v1451_v3 = vld [vmem:[#allocation5 + $0x50] sm:$0xff]  ;;  %v10931_v63 = vpack.c.bf16 %v8707_v26, %v8706_v18 }
 0xe40   : > { %10865 = vmatprep.subr.bf16.mxu0 %v14601_v1 }
 0xe43   : > { %10867 = vmatpush3.bf16.msra.mxu0 %v13507_v47 }
 0xe44   : > { %10868 = vmatprep.subr.bf16.mxu0 %v14601_v1 }
 0xe47   : > { %10870 = vmatpush3.bf16.msra.mxu0 %v13527_v31 }
 0xe48   : > { %10896 = vmatprep.subr.bf16.mxu0 %v10895_v16 }
 0xef3   : > { %v8928_v48 = vpop.f32.mrb[16].mxu1  ;;  %v8950_v52 = vpop.f32.mrb[16].mxu0 }
 0xef4   : > { %v8929_v50 = vpop.f32.mrb[17].mxu1  ;;  %v8951_v0 = vpop.f32.mrb[17].mxu0 }
 0xef5   : > { %v8930_v42 = vadd.f32 %v8929_v50, %v8928_v48  ;;  %v8952_v43 = vadd.f32 %v8951_v0, %v8950_v52  ;;  %v8931_v53 = vpop.f32.mrb[18].mxu1  ;;  %v8953_v54 = vpop.f32.mrb[18].mxu0  ;;  %v10903_v48 = vpack.c.bf16 %v8693_v8, %v8692_v60  ;;  %v8694_v52 = vld [vmem:[%s14681_s4 + $0x90] sm:$0xff]  ;;  %v8695_v50 = vld [vmem:[%s14681_s4 + $0x98] sm:$0xff] }
 0xef6   : > { %v8932_v21 = vpop.f32.mrb[19].mxu1  ;;  %v8954_v28 = vpop.f32.mrb[19].mxu0  ;;  %v10907_v0 = vpack.c.bf16 %v8695_v50, %v8694_v52  ;;  %v8698_v54 = vld [vmem:[%s14681_s4 + $0xb0] sm:$0xff]  ;;  %v8689_v50 = vld [vmem:[#allocation25 + $0x1] ss:$0 sm:$0xff] }
 0xef7   : > { %v3309_v55 = vadd.f32 1.0, %v8930_v42  ;;  %v8696_v42 = vld [vmem:[%s14681_s4 + $0xa0] sm:$0xff]  ;;  %v8699_v21 = vld [vmem:[%s14681_s4 + $0xb8] sm:$0xff] }
 0xef8   : > { %v10915_v28 = vpack.c.bf16 %v8699_v21, %v8698_v54 }
 0xef9   : > { %v3349_v15 = vadd.f32 %v8952_v43, %v3309_v55  ;;  %v8697_v43 = vld [vmem:[%s14681_s4 + $0xa8] sm:$0xff]  ;;  %v8700_v55 = vld [vmem:[%s14681_s4 + $0xc0] sm:$0xff] }
 0xefa   : > { %v10911_v53 = vpack.c.bf16 %v8697_v43, %v8696_v42 }
 0xefb   : > { %9779 = vmatmul.mubr.f32.vlgmr.msra.gmra.mrb[14].mxu1 %v3349_v15  ;;  %v8701_v15 = vld [vmem:[%s14681_s4 + $0xc8] sm:$0xff] }
 0xefc   : > { %10825 = vmatpush3.bf16.msra.mxu1 %v13478_v29  ;;  %9824 = vmatprep.mubr.msk.f32.mxu1 %vm12512_vm0, %v14599_v2  ;;  %v10919_v56 = vpack.c.bf16 %v8701_v15, %v8700_v55  ;;  %v8687_v55 = vld [vmem:[#allocation32] ss:$0 sm:$0xff] }
 0xefd   : > { %10826 = vmatprep.subr.bf16.mxu1 %v14601_v1  ;;  %v3510_v58 = vpop.f32.mrb[14].mxu0 }
 0xefe   : > { %v9791_v38 = vpop.f32.mrb[15].mxu0 }
 0xeff   : > { %v1447_v38 = vld [vmem:[#allocation5 + $0x30] sm:$0xff] }
 0xf00   : > { %10828 = vmatpush3.bf16.msra.mxu1 %v13487_v59 }
 0xf01   : > { %10829 = vmatprep.subr.bf16.mxu1 %v14601_v1 }
 0xf04   : > { %10831 = vmatpush3.bf16.msra.mxu1 %v13491_v12 }
 0xf05   : > { %10832 = vmatprep.subr.bf16.mxu1 %v14601_v1 }
 0xf08   : > { %10834 = vmatpush3.bf16.msra.mxu1 %v13495_v34 }
 0xf09   : > { %10835 = vmatprep.subr.bf16.mxu1 %v14601_v1 }
 0xf0c   : > { %10837 = vmatpush3.bf16.msra.mxu1 %v13499_v40 }
 0xf0d   : > { %10838 = vmatprep.subr.bf16.mxu1 %v14601_v1 }
 0xf10   : > { %10840 = vmatpush3.bf16.msra.mxu1 %v13503_v25 }
 0xf11   : > { %10841 = vmatprep.subr.bf16.mxu1 %v14601_v1 }
 0xf14   : > { %10843 = vmatpush3.bf16.msra.mxu1 %v13507_v47 }
 0xf15   : > { %10844 = vmatprep.subr.bf16.mxu1 %v14601_v1 }
 0xf18   : > { %10846 = vmatpush3.bf16.msra.mxu1 %v13527_v31 }
 0xf19   : > { %10871 = vmatprep.subr.bf16.mxu1 %v14601_v1 }
 0xfce   : > { %v3440_v61 = vpop.f32.mrb[14].mxu1 }
 0xfcf   : > { %v3511_v39 = vadd.f32 %v3510_v58, %v3440_v61  ;;  %v9780_v5 = vpop.f32.mrb[15].mxu1  ;;  %v8703_v58 = vld [vmem:[%s14681_s4 + $0xd8] sm:$0xff] }
 0xfd0   : > { %v10923_v61 = vpack.c.bf16 %v8703_v58, %v8702_v57  ;;  %v8705_v5 = vld [vmem:[%s14681_s4 + $0xe8] sm:$0xff] }
 0xfd1   : > { %v3521_v9 = vadd.f32 %v8686_v62, %v3511_v39  ;;  %v1448_v62 = vld [vmem:[#allocation5 + $0x38] sm:$0xff] }
 0xfd2   : > { %v8704_v39 = vld [vmem:[%s14681_s4 + $0xe0] sm:$0xff] }
 0xfd3   : > { %9825 = vmatmul.mubr.f32.vlgmr.msra.gmra.mrb[20].mxu1 %v3521_v9  ;;  %v10927_v10 = vpack.c.bf16 %v8705_v5, %v8704_v39 }
 0xfd4   : > { %9894 = vmatprep.mubr.msk.f32.mxu1 %vm12512_vm0, %v14599_v2  ;;  %10873 = vmatpush3.bf16.msra.mxu1 %v13534_v22 }
 0xfd5   : > { %10874 = vmatprep.subr.bf16.mxu1 %v14601_v1 }
 0xfd8   : > { %10876 = vmatpush3.bf16.msra.mxu1 %v13538_v27 }
 0xfd9   : > { %10877 = vmatprep.subr.bf16.mxu1 %v14601_v1 }
 0xfdc   : > { %10879 = vmatpush3.bf16.msra.mxu1 %v13542_v4 }
 0xfdd   : > { %10880 = vmatprep.subr.bf16.mxu1 %v14601_v1 }
0x10a6   : > { %v3588_v32 = vpop.f32.mrb[20].mxu1 }
0x10a7   : > { %v13546_v36 = vsub.f32 %v3521_v9, %v3588_v32  ;;  %v9826_v37 = vpop.f32.mrb[21].mxu1  ;;  %v13568_v9 = vpack.c.bf16 %v1448_v62, %v1447_v38  ;;  %v13578_v32 = vpack.c.bf16 %v1452_v24, %v1451_v3 }
0x10a8   : > { %v13581_v37 = vpack.c.bf16 %v1454_v23, %v1453_v33 }
0x10a9   : > { %v3593_v41 = vmul.f32 %v13546_v36, %v13546_v36  ;;  %10882 = vmatpush3.bf16.msra.mxu1 %v13568_v9 }
0x10aa   : > { %10883 = vmatprep.subr.bf16.mxu1 %v14601_v1 }
0x10ab   : > { %9860 = vmatmul.mubr.f32.vlgmr.msra.gmra.mrb[20].mxu0 %v3593_v41  ;;  %v1455_v41 = vld [vmem:[#allocation5 + $0x70] sm:$0xff] }
0x10ac   : > { %10898 = vmatpush3.bf16.msra.mxu0 %v10895_v16  ;;  %9905 = vmatprep.mubr.msk.f32.mxu0 %vm1468_vm1, %v13275_v6  ;;  %v1450_v16 = vld [vmem:[#allocation5 + $0x48] sm:$0xff] }
0x10ad   : > { %10900 = vmatprep.subr.bf16.mxu0 %v10899_v46  ;;  %v13571_v17 = vpack.c.bf16 %v1450_v16, %v1449_v11 }
0x10af   : > { %10885 = vmatpush3.bf16.msra.mxu1 %v13571_v17 }
0x10b0   : > { %10902 = vmatpush3.bf16.msra.mxu0 %v10899_v46  ;;  %10886 = vmatprep.subr.bf16.mxu1 %v14601_v1  ;;  %v1456_v46 = vld [vmem:[#allocation5 + $0x78] sm:$0xff] }
0x10b1   : > { %10904 = vmatprep.subr.bf16.mxu0 %v10903_v48  ;;  %v13585_v60 = vpack.c.bf16 %v1456_v46, %v1455_v41 }
0x10b3   : > { %9906 = vmatmul.mubr.msk.f32.vlgmr.msra.gmra.mrb[22].mxu0 %vm1468_vm1, %v13277_v7  ;;  %10888 = vmatpush3.bf16.msra.mxu1 %v13578_v32 }
0x10b4   : > { %10906 = vmatpush3.bf16.msra.mxu0 %v10903_v48  ;;  %10889 = vmatprep.subr.bf16.mxu1 %v14601_v1 }
0x10b5   : > { %10908 = vmatprep.subr.bf16.mxu0 %v10907_v0 }
0x10b7   : > { %10891 = vmatpush3.bf16.msra.mxu1 %v13581_v37 }
0x10b8   : > { %10910 = vmatpush3.bf16.msra.mxu0 %v10907_v0  ;;  %10892 = vmatprep.subr.bf16.mxu1 %v14601_v1 }
0x10b9   : > { %10912 = vmatprep.subr.bf16.mxu0 %v10911_v53 }
0x10bb   : > { %10894 = vmatpush3.bf16.msra.mxu1 %v13585_v60 }
0x10bc   : > { %10914 = vmatpush3.bf16.msra.mxu0 %v10911_v53 }
0x10bd   : > { %10916 = vmatprep.subr.bf16.mxu0 %v10915_v28 }
0x10c0   : > { %10918 = vmatpush3.bf16.msra.mxu0 %v10915_v28 }
0x10c1   : > { %10920 = vmatprep.subr.bf16.mxu0 %v10919_v56 }
0x10c4   : > { %10922 = vmatpush3.bf16.msra.mxu0 %v10919_v56  ;;  %v8688_v56 = vld [vmem:[#allocation34] ss:$0 sm:$0xff] }
0x10c5   : > { %10924 = vmatprep.subr.bf16.mxu0 %v10923_v61 }
0x10c8   : > { %10926 = vmatpush3.bf16.msra.mxu0 %v10923_v61 }
0x10c9   : > { %10928 = vmatprep.subr.bf16.mxu0 %v10927_v10 }
0x10cc   : > { %10930 = vmatpush3.bf16.msra.mxu0 %v10927_v10 }
0x10cd   : > { %10932 = vmatprep.subr.bf16.mxu0 %v10931_v63 }
0x10d0   : > { %10934 = vmatpush3.bf16.msra.mxu0 %v10931_v63 }
0x117e   : > { %v3660_v8 = vpop.f32.mrb[20].mxu0 }
0x117f   : > { %v3661_v48 = vadd.f32 1e-05, %v3660_v8  ;;  %v9861_v52 = vpop.f32.mrb[21].mxu0 }
0x1181   : > { %11719 = vrsqrt.f32 %v3661_v48 }
0x1186   : > { %v9907_v0 = vpop.f32.mrb[22].mxu0 }
0x1187   : > { %v3838_v42 = vadd.f32 %v9907_v0, %v8689_v50  ;;  %v3832_v43 = vpop.f32.mrb[23].mxu0 }
0x1188   : > { %v3833_v53 = vadd.f32 %v8689_v50, %v3832_v43 }
0x1189   : > { %v3842_v28 = vmax.f32 %v3838_v42, 0.0 }
0x118a   : > { %v3841_v54 = vmax.f32 %v3833_v53, 0.0 }
0x118b   : > { %v11720_v21 = vpop.eup %11719 }
0x118c   : > { %9940 = vmatprep.mubr.f32.mxu0 %v3841_v54  ;;  %v3665_v15 = vmul.f32 %v11720_v21, %v13546_v36  ;;  %v8708_v36 = vld [vmem:[#allocation26 + $0x1] ss:$0 sm:$0xff] }
0x118d   : > { %9941 = vmatmul.mubr.f32.vlgmr.msra.gmra.mrb[24].mxu0 %v3842_v28 }
0x118e   : > { %v3673_v57 = vmul.f32 %v8687_v55, %v3665_v15  ;;  %4321 = vmatprep.mubr.bf16.mxu0 %v13307_v45 }
0x1190   : > { %v3681_v58 = vadd.f32 %v8688_v56, %v3673_v57 }
0x1192   : > { %v3682_v38 = vmax.f32 %v3681_v58, 0.0 }
0x1194   : > { %9895 = vmatmul.mubr.f32.vlgmr.msra.gmra.mrb[22].mxu1 %v3682_v38 }
0x1195   : > { %4281 = vmatprep.mubr.bf16.mxu1 %v13303_v44 }
0x1260   : > { %v9942_v61 = vpop.f32.mrb[24].mxu0 }
0x1261   : > { %v3934_v62 = vpop.f32.mrb[25].mxu0  ;;  %v3940_v11 = vadd.f32 %v9942_v61, %v8708_v36 }
0x1262   : > { %v3935_v16 = vadd.f32 %v8708_v36, %v3934_v62 }
0x1263   : > { %v4008_v18 = vcombine.high %v3940_v11, %v3940_v11  ;;  %v4015_v3 = vrot.slane %v3940_v11, %v13107_v30 }
0x1264   : > { %v3959_v26 = vcombine.high %v3935_v16, %v3935_v16  ;;  %v3966_v24 = vrot.slane %v3935_v16, %v13107_v30 }
0x1265   : > { %v4022_v63 = vrot.slane %v4008_v18, %v13107_v30  ;;  %v4023_v23 = vcombine.high %v4015_v3, %v4015_v3  ;;  %v13605_v48 = vrot.slane %v4015_v3, %v13107_v30 }
0x1266   : > { %v3973_v33 = vrot.slane %v3959_v26, %v13107_v30  ;;  %v3974_v46 = vcombine.high %v3966_v24, %v3966_v24  ;;  %v3982_v42 = vrot.slane %v3966_v24, %v13107_v30 }
0x1267   : > { %v3749_v39 = vpop.f32.mrb[22].mxu1  ;;  %v4024_v41 = vcombine.high %v4022_v63, %v4022_v63  ;;  %v13608_v52 = vrot.slane %v4023_v23, %v13107_v30  ;;  %v13611_v50 = vrot.slane %v4022_v63, %v13107_v30  ;;  %v4053_v21 = vcombine.high %v13605_v48, %v13605_v48 }
0x1268   : > { %v9896_v5 = vpop.f32.mrb[23].mxu1  ;;  %v13592_v10 = vadd.f32 1.0, %v3749_v39  ;;  %v3975_v8 = vcombine.high %v3973_v33, %v3973_v33  ;;  %v3996_v43 = vrot.slane %v3974_v46, %v13107_v30  ;;  %v3989_v53 = vrot.slane %v3973_v33, %v13107_v30 }
0x1269   : > { %v13614_v0 = vrot.slane %v4024_v41, %v13107_v30  ;;  %v4055_v28 = vcombine.high %v13608_v52, %v13608_v52  ;;  %v4054_v55 = vcombine.high %v13611_v50, %v13611_v50  ;;  %v4004_v57 = vcombine.high %v3982_v42, %v3982_v42 }
0x126a   : > { %3947 = vrot.lane.b32.xlu1 %v13592_v10, %s12516_s16  ;;  %3944 = vrot.lane.b32.xlu0 %v13592_v10, %s12517_s9  ;;  %v4003_v54 = vrot.slane %v3975_v8, %v13107_v30  ;;  %v4006_v58 = vcombine.high %v3996_v43, %v3996_v43  ;;  %v4005_v39 = vcombine.high %v3989_v53, %v3989_v53 }
0x126b   : > { %v4056_v15 = vcombine.high %v13614_v0, %v13614_v0  ;;  %v13635_v11 = vrot.slane %v4053_v21, %v13114_v35  ;;  %v13638_v16 = vrot.slane %v4055_v28, %v13114_v35  ;;  %v13645_v3 = vrot.slane %v4054_v55, %v13114_v35 }
0x126c   : > { %v4007_v5 = vcombine.high %v4003_v54, %v4003_v54  ;;  %v4060_v24 = vrot.slane %v3982_v42, %v13114_v35  ;;  %v4064_v33 = vrot.slane %v3996_v43, %v13114_v35  ;;  %v4068_v23 = vrot.slane %v4004_v57, %v13114_v35 }
0x126d   : > { %v13648_v63 = vrot.slane %v4056_v15, %v13114_v35  ;;  %v4072_v41 = vrot.slane %v4006_v58, %v13114_v35  ;;  %v4076_v46 = vrot.slane %v3989_v53, %v13114_v35  ;;  %v4080_v28 = vrot.slane %v4003_v54, %v13114_v35 }
0x126e   : > { %3950 = vrot.lane.b32.xlu1 %v13592_v10, %s12518_s5  ;;  %v4084_v55 = vrot.slane %v4005_v39, %v13114_v35  ;;  %v4088_v15 = vrot.slane %v4007_v5, %v13114_v35 }
0x12dc   : > { %v3948_v38 = vpop.permute.xlu1 %3947  ;;  %v3945_v61 = vpop.permute.xlu0 %3944 }
0x12dd   : > { %v3953_v36 = vsel %vm1468_vm1, %v13592_v10, %v3945_v61 }
0x12de   : > { %v3954_v21 = vsel %vm2686_vm2, %v3953_v36, %v3948_v38 }
0x12e0   : > { %v3951_v8 = vpop.permute.xlu1 %3950 }
0x12e1   : > { %v13660_v61 = vsel %vm3955_vm3, %v3954_v21, %v3951_v8 }
0x12e2   : > { %v4137_v42 = vmul.f32 %v4060_v24, %v13660_v61  ;;  %v4138_v43 = vmul.f32 %v4064_v33, %v13660_v61  ;;  %v4139_v57 = vmul.f32 %v4068_v23, %v13660_v61  ;;  %v4140_v53 = vmul.f32 %v4072_v41, %v13660_v61 }
0x12e3   : > { %v4141_v58 = vmul.f32 %v4076_v46, %v13660_v61  ;;  %v4142_v38 = vmul.f32 %v4080_v28, %v13660_v61  ;;  %v4143_v54 = vmul.f32 %v4084_v55, %v13660_v61  ;;  %v4144_v39 = vmul.f32 %v4088_v15, %v13660_v61 }
0x12e4   : > { %v4169_v5 = vmul.f32 %v13343_v13, %v4137_v42  ;;  %v4170_v36 = vmul.f32 %v13343_v13, %v4138_v43  ;;  %v4201_v24 = vmul.f32 %v13346_v14, %v4137_v42  ;;  %v4202_v33 = vmul.f32 %v13346_v14, %v4138_v43 }
0x12e5   : > { %v4153_v23 = vmul.f32 %v13355_v19, %v4137_v42  ;;  %v4154_v41 = vmul.f32 %v13355_v19, %v4138_v43  ;;  %v4185_v46 = vmul.f32 %v13358_v20, %v4137_v42  ;;  %v4186_v8 = vmul.f32 %v13358_v20, %v4138_v43 }
0x12e6   : > { %v4225_v21 = vpack.c.bf16 %v4170_v36, %v4169_v5  ;;  %v4241_v28 = vpack.c.bf16 %v4202_v33, %v4201_v24  ;;  %v4171_v55 = vmul.f32 %v13343_v13, %v4139_v57  ;;  %v4172_v15 = vmul.f32 %v13343_v13, %v4140_v53 }
0x12e7   : > { %v4217_v2 = vpack.c.bf16 %v4154_v41, %v4153_v23  ;;  %v4233_v1 = vpack.c.bf16 %v4186_v8, %v4185_v46  ;;  %v4203_v26 = vmul.f32 %v13346_v14, %v4139_v57  ;;  %v4204_v18 = vmul.f32 %v13346_v14, %v4140_v53 }
0x12e8   : > { %9053 = vmatprep.subr.bf16.mxu1 %v4225_v21  ;;  %9075 = vmatprep.subr.bf16.mxu0 %v4241_v28  ;;  %v4226_v62 = vpack.c.bf16 %v4172_v15, %v4171_v55  ;;  %v4155_v56 = vmul.f32 %v13355_v19, %v4139_v57  ;;  %v4156_v42 = vmul.f32 %v13355_v19, %v4140_v53 }
0x12e9   : > { %9054 = vmatpush3.bf16.msra.mxu1 %v4217_v2  ;;  %9076 = vmatpush3.bf16.msra.mxu0 %v4233_v1  ;;  %v4242_v43 = vpack.c.bf16 %v4204_v18, %v4203_v26  ;;  %v4187_v5 = vmul.f32 %v13358_v20, %v4139_v57  ;;  %v4188_v36 = vmul.f32 %v13358_v20, %v4140_v53  ;;  %v13695_v57 = vld [vmem:[%s14684_s8 + $0x1] ss:$0 sm:$0xff] }
0x12ea   : > { %9055 = vmatprep.subr.bf16.mxu1 %v4226_v62  ;;  %v4218_v24 = vpack.c.bf16 %v4156_v42, %v4155_v56  ;;  %v4173_v33 = vmul.f32 %v13343_v13, %v4141_v58  ;;  %v4174_v23 = vmul.f32 %v13343_v13, %v4142_v38  ;;  %v4205_v41 = vmul.f32 %v13346_v14, %v4141_v58  ;;  %v13710_v42 = vld [vmem:[%s14684_s8 + $0x2] ss:$0 sm:$0xff] }
0x12eb   : > { %9077 = vmatprep.subr.bf16.mxu0 %v4242_v43  ;;  %v4234_v46 = vpack.c.bf16 %v4188_v36, %v4187_v5  ;;  %v4206_v2 = vmul.f32 %v13346_v14, %v4142_v38  ;;  %v4157_v1 = vmul.f32 %v13355_v19, %v4141_v58  ;;  %v4158_v18 = vmul.f32 %v13355_v19, %v4142_v38  ;;  %v13700_v19 = vld [vmem:[%s14684_s8 + $0x3] ss:$0 sm:$0xff] }
0x12ec   : > { %v4227_v26 = vpack.c.bf16 %v4174_v23, %v4173_v33  ;;  %v4189_v62 = vmul.f32 %v13358_v20, %v4141_v58  ;;  %v4190_v56 = vmul.f32 %v13358_v20, %v4142_v38  ;;  %v4175_v13 = vmul.f32 %v13695_v57, %v4143_v54  ;;  %v13705_v20 = vld [vmem:[%s14684_s8] ss:$0 sm:$0xff] }
0x12ed   : > { %9056 = vmatpush3.bf16.msra.mxu1 %v4218_v24  ;;  %9078 = vmatpush3.bf16.msra.mxu0 %v4234_v46  ;;  %v4243_v53 = vpack.c.bf16 %v4206_v2, %v4205_v41  ;;  %v4219_v8 = vpack.c.bf16 %v4158_v18, %v4157_v1  ;;  %v4176_v14 = vmul.f32 %v13695_v57, %v4144_v39 }
0x12ee   : > { %9057 = vmatprep.subr.bf16.mxu1 %v4227_v26  ;;  %v4235_v21 = vpack.c.bf16 %v4190_v56, %v4189_v62  ;;  %v4207_v28 = vmul.f32 %v13700_v19, %v4143_v54  ;;  %v4208_v58 = vmul.f32 %v13700_v19, %v4144_v39  ;;  %v4159_v38 = vmul.f32 %v13705_v20, %v4143_v54 }
0x12ef   : > { %9079 = vmatprep.subr.bf16.mxu0 %v4243_v53  ;;  %v4228_v55 = vpack.c.bf16 %v4176_v14, %v4175_v13  ;;  %v4160_v15 = vmul.f32 %v13705_v20, %v4144_v39  ;;  %v4191_v43 = vmul.f32 %v13710_v42, %v4143_v54  ;;  %v4192_v5 = vmul.f32 %v13710_v42, %v4144_v39 }
0x12f0   : > { %v4244_v36 = vpack.c.bf16 %v4208_v58, %v4207_v28  ;;  %v14685_v24 = vrot.slane %v13605_v48, %v13114_v35  ;;  %v14686_v23 = vrot.slane %v13608_v52, %v13114_v35  ;;  %v4147_v46 = vmul.f32 %v13635_v11, %v13660_v61 }
0x12f1   : > { %9058 = vmatpush3.bf16.msra.mxu1 %v4219_v8  ;;  %9080 = vmatpush3.bf16.msra.mxu0 %v4235_v21  ;;  %v4220_v2 = vpack.c.bf16 %v4160_v15, %v4159_v38  ;;  %v4236_v54 = vpack.c.bf16 %v4192_v5, %v4191_v43  ;;  %v4148_v39 = vmul.f32 %v13638_v16, %v13660_v61 }
0x12f2   : > { %v4145_v33 = vmul.f32 %v14685_v24, %v13660_v61  ;;  %v4146_v41 = vmul.f32 %v14686_v23, %v13660_v61  ;;  %9059 = vmatprep.subr.bf16.mxu1 %v4228_v55  ;;  %9081 = vmatprep.subr.bf16.mxu0 %v4244_v36  ;;  %v4179_v16 = vmul.f32 %v13695_v57, %v4147_v46 }
0x12f3   : > { %v4180_v53 = vmul.f32 %v13695_v57, %v4148_v39  ;;  %v4211_v21 = vmul.f32 %v13700_v19, %v4147_v46  ;;  %v4212_v38 = vmul.f32 %v13700_v19, %v4148_v39  ;;  %v4163_v55 = vmul.f32 %v13705_v20, %v4147_v46 }
0x12f4   : > { %v4177_v48 = vmul.f32 %v13695_v57, %v4145_v33  ;;  %v4178_v1 = vmul.f32 %v13695_v57, %v4146_v41  ;;  %v4209_v18 = vmul.f32 %v13700_v19, %v4145_v33  ;;  %v4210_v52 = vmul.f32 %v13700_v19, %v4146_v41 }
0x12f5   : > { %v4161_v26 = vmul.f32 %v13705_v20, %v4145_v33  ;;  %v4162_v11 = vmul.f32 %v13705_v20, %v4146_v41  ;;  %v4193_v62 = vmul.f32 %v13710_v42, %v4145_v33  ;;  %v4194_v13 = vmul.f32 %v13710_v42, %v4146_v41  ;;  %9060 = vmatpush3.bf16.msra.mxu1 %v4220_v2 }
0x12f6   : > { %v4229_v56 = vpack.c.bf16 %v4178_v1, %v4177_v48  ;;  %9082 = vmatpush3.bf16.msra.mxu0 %v4236_v54  ;;  %v4245_v8 = vpack.c.bf16 %v4210_v52, %v4209_v18  ;;  %v4230_v58 = vpack.c.bf16 %v4180_v53, %v4179_v16  ;;  %v4164_v15 = vmul.f32 %v13705_v20, %v4148_v39 }
0x12f7   : > { %v4221_v14 = vpack.c.bf16 %v4162_v11, %v4161_v26  ;;  %v4237_v28 = vpack.c.bf16 %v4194_v13, %v4193_v62  ;;  %v4195_v43 = vmul.f32 %v13710_v42, %v4147_v46  ;;  %v4196_v5 = vmul.f32 %v13710_v42, %v4148_v39 }
0x12f8   : > { %9061 = vmatprep.subr.bf16.mxu1 %v4229_v56  ;;  %9083 = vmatprep.subr.bf16.mxu0 %v4245_v8  ;;  %v14687_v36 = vrot.slane %v13611_v50, %v13114_v35  ;;  %v4246_v33 = vpack.c.bf16 %v4212_v38, %v4211_v21  ;;  %v14688_v23 = vrot.slane %v13614_v0, %v13114_v35  ;;  %v4330_v38 = vld [vmem:[#allocation28 + $0x20] sm:$0xff] }
0x12f9   : > { %v4151_v2 = vmul.f32 %v13645_v3, %v13660_v61  ;;  %v4152_v54 = vmul.f32 %v13648_v63, %v13660_v61  ;;  %9062 = vmatpush3.bf16.msra.mxu1 %v4221_v14  ;;  %v4222_v46 = vpack.c.bf16 %v4164_v15, %v4163_v55  ;;  %v4238_v39 = vpack.c.bf16 %v4196_v5, %v4195_v43  ;;  %v4331_v55 = vld [vmem:[#allocation28 + $0x28] sm:$0xff]  ;;  %v4335_v5 = vld [vmem:[#allocation29 + $0x80] sm:$0xff] }
0x12fa   : > { %v4149_v24 = vmul.f32 %v14687_v36, %v13660_v61  ;;  %v4150_v41 = vmul.f32 %v14688_v23, %v13660_v61  ;;  %9084 = vmatpush3.bf16.msra.mxu0 %v4237_v28  ;;  %9063 = vmatprep.subr.bf16.mxu1 %v4230_v58  ;;  %v10960_v36 = vpack.c.bf16 %v4331_v55, %v4330_v38  ;;  %v4337_v23 = vld [vmem:[#allocation29 + $0x90] sm:$0xff] }
0x12fb   : > { %9085 = vmatprep.subr.bf16.mxu0 %v4246_v33  ;;  %v4183_v11 = vmul.f32 %v13695_v57, %v4151_v2  ;;  %v4184_v62 = vmul.f32 %v13695_v57, %v4152_v54  ;;  %v4215_v56 = vmul.f32 %v13700_v19, %v4151_v2  ;;  %v4216_v53 = vmul.f32 %v13700_v19, %v4152_v54  ;;  %v4333_v33 = vld [vmem:[#allocation28 + $0x38] sm:$0xff] }
0x12fc   : > { %v4181_v48 = vmul.f32 %v13695_v57, %v4149_v24  ;;  %v4182_v50 = vmul.f32 %v13695_v57, %v4150_v41  ;;  %v4213_v1 = vmul.f32 %v13700_v19, %v4149_v24  ;;  %v4214_v0 = vmul.f32 %v13700_v19, %v4150_v41  ;;  %v4336_v19 = vld [vmem:[#allocation29 + $0x88] sm:$0xff] }
0x12fd   : > { %v4165_v18 = vmul.f32 %v13705_v20, %v4149_v24  ;;  %v4166_v3 = vmul.f32 %v13705_v20, %v4150_v41  ;;  %v4197_v63 = vmul.f32 %v13710_v42, %v4149_v24  ;;  %v4198_v61 = vmul.f32 %v13710_v42, %v4150_v41  ;;  %9064 = vmatpush3.bf16.msra.mxu1 %v4222_v46  ;;  %v4332_v24 = vld [vmem:[#allocation28 + $0x30] sm:$0xff]  ;;  %v4338_v41 = vld [vmem:[#allocation29 + $0x98] sm:$0xff] }
0x12fe   : > { %v4231_v52 = vpack.c.bf16 %v4182_v50, %v4181_v48  ;;  %v4247_v26 = vpack.c.bf16 %v4214_v0, %v4213_v1  ;;  %9086 = vmatpush3.bf16.msra.mxu0 %v4238_v39  ;;  %v4167_v8 = vmul.f32 %v13705_v20, %v4151_v2  ;;  %v4168_v14 = vmul.f32 %v13705_v20, %v4152_v54  ;;  %v4339_v39 = vld [vmem:[#allocation29 + $0xa0] sm:$0xff]  ;;  %v4340_v48 = vld [vmem:[#allocation29 + $0xa8] sm:$0xff]  ;;  %v4341_v1 = vld [vmem:[#allocation29 + $0xb0] sm:$0xff] }
0x12ff   : > { %v4223_v13 = vpack.c.bf16 %v4166_v3, %v4165_v18  ;;  %v4239_v16 = vpack.c.bf16 %v4198_v61, %v4197_v63  ;;  %v4199_v21 = vmul.f32 %v13710_v42, %v4151_v2  ;;  %v4200_v28 = vmul.f32 %v13710_v42, %v4152_v54  ;;  %v4342_v0 = vld [vmem:[#allocation29 + $0xb8] sm:$0xff]  ;;  %v4343_v3 = vld [vmem:[#allocation29 + $0xc0] sm:$0xff]  ;;  %v4344_v63 = vld [vmem:[#allocation29 + $0xc8] sm:$0xff] }
0x1300   : > { %9065 = vmatprep.subr.bf16.mxu1 %v4231_v52  ;;  %9087 = vmatprep.subr.bf16.mxu0 %v4247_v26  ;;  %v4232_v58 = vpack.c.bf16 %v4184_v62, %v4183_v11  ;;  %v4248_v57 = vpack.c.bf16 %v4216_v53, %v4215_v56  ;;  %v4224_v15 = vpack.c.bf16 %v4168_v14, %v4167_v8  ;;  %v14689_v20 = vmov 0.0|0.0   ;;  %v4345_v52 = vld [vmem:[#allocation29 + $0xd0] sm:$0xff]  ;;  %v4346_v26 = vld [vmem:[#allocation29 + $0xd8] sm:$0xff]  ;;  %v4347_v62 = vld [vmem:[#allocation29 + $0xe0] sm:$0xff] }
0x1301   : > { %9066 = vmatpush3.bf16.msra.mxu1 %v4223_v13  ;;  %v4240_v43 = vpack.c.bf16 %v4200_v28, %v4199_v21  ;;  %v10936_v42 = vpack.c.bf16 %v4336_v19, %v4335_v5  ;;  %v10963_v2 = vpack.c.bf16 %v4333_v33, %v4332_v24  ;;  %v14690_v54 = vmov 0.0   ;;  %v4348_v56 = vld [vmem:[#allocation29 + $0xe8] sm:$0xff]  ;;  %v4349_v13 = vld [vmem:[#allocation29 + $0xf0] sm:$0xff]  ;;  %v4350_v53 = vld [vmem:[#allocation29 + $0xf8] sm:$0xff] }
0x1302   : > { %9088 = vmatpush3.bf16.msra.mxu0 %v4239_v16  ;;  %9067 = vmatprep.subr.bf16.mxu1 %v4232_v58  ;;  %v10939_v46 = vpack.c.bf16 %v4338_v41, %v4337_v23  ;;  %v10942_v50 = vpack.c.bf16 %v4340_v48, %v4339_v39  ;;  %v10945_v18 = vpack.c.bf16 %v4342_v0, %v4341_v1  ;;  %v8710_v23 = vld [vmem:[#allocation31 + $0x1] ss:$0 sm:$0xff] }
0x1303   : > { %9089 = vmatprep.subr.bf16.mxu0 %v4248_v57  ;;  %v10948_v61 = vpack.c.bf16 %v4344_v63, %v4343_v3  ;;  %v10951_v11 = vpack.c.bf16 %v4346_v26, %v4345_v52  ;;  %v10954_v16 = vpack.c.bf16 %v4348_v56, %v4347_v62  ;;  %v10957_v8 = vpack.c.bf16 %v4350_v53, %v4349_v13  ;;  %v4736_v0 = vld [vmem:[#allocation7 + $0x40] sm:$0xff]  ;;  %v8712_v56 = vld [vmem:[#allocation34 + $0x1] ss:$0 sm:$0xff] }
0x1305   : > { %9068 = vmatpush3.bf16.msra.mxu1 %v4224_v15 }
0x1306   : > { %9090 = vmatpush3.bf16.msra.mxu0 %v4240_v43  ;;  %10935 = vmatprep.subr.bf16.mxu1 %v14689_v20 }
0x1307   : > { %10959 = vmatprep.subr.bf16.mxu0 %v14689_v20 }
0x1308   : > { %4282 = vmatmul.mubr.bf16.vlgmr.msra.gmra.mrb[24].mxu1 %v13455_v49 }
0x1309   : > { %4322 = vmatmul.mubr.bf16.vlgmr.msra.gmra.mrb[28].mxu0 %v13459_v51  ;;  %10937 = vmatpush3.bf16.msra.mxu1 %v10936_v42 }
0x130a   : > { %10961 = vmatpush3.bf16.msra.mxu0 %v10960_v36  ;;  %9986 = vmatprep.mubr.msk.f32.mxu0 %vm12512_vm0, %v14690_v54 }
0x130b   : > { %10962 = vmatprep.subr.bf16.mxu0 %v14689_v20  ;;  %10938 = vmatprep.subr.bf16.mxu1 %v14689_v20 }
0x130c   : > { %9975 = vmatprep.mubr.msk.f32.mxu1 %vm12512_vm0, %v14690_v54 }
0x130d   : > { %10940 = vmatpush3.bf16.msra.mxu1 %v10939_v46 }
0x130e   : > { %10964 = vmatpush3.bf16.msra.mxu0 %v10963_v2  ;;  %10941 = vmatprep.subr.bf16.mxu1 %v14689_v20 }
0x130f   : > { %10965 = vmatprep.subr.bf16.mxu0 %v14689_v20 }
0x1311   : > { %9987 = vmatmul.mubr.msk.f32.vlgmr.msra.gmra.mrb[26].mxu0 %vm1468_vm1, %v13592_v10  ;;  %10943 = vmatpush3.bf16.msra.mxu1 %v10942_v50 }
0x1312   : > { %10967 = vmatpush3.bf16.msra.mxu0 %v13478_v29  ;;  %10021 = vmatprep.mubr.msk.f32.mxu0 %vm12512_vm0, %v14690_v54 }
0x1313   : > { %10968 = vmatprep.subr.bf16.mxu0 %v14689_v20  ;;  %10944 = vmatprep.subr.bf16.mxu1 %v14689_v20 }
0x1315   : > { %10946 = vmatpush3.bf16.msra.mxu1 %v10945_v18  ;;  %v4737_v18 = vld [vmem:[#allocation7 + $0x48] sm:$0xff] }
0x1316   : > { %10970 = vmatpush3.bf16.msra.mxu0 %v13487_v59  ;;  %10947 = vmatprep.subr.bf16.mxu1 %v14689_v20  ;;  %v11038_v3 = vpack.c.bf16 %v4737_v18, %v4736_v0 }
0x1317   : > { %10971 = vmatprep.subr.bf16.mxu0 %v14689_v20 }
0x1319   : > { %10949 = vmatpush3.bf16.msra.mxu1 %v10948_v61 }
0x131a   : > { %10973 = vmatpush3.bf16.msra.mxu0 %v13491_v12  ;;  %10950 = vmatprep.subr.bf16.mxu1 %v14689_v20 }
0x131b   : > { %10974 = vmatprep.subr.bf16.mxu0 %v14689_v20 }
0x131d   : > { %10952 = vmatpush3.bf16.msra.mxu1 %v10951_v11  ;;  %v8711_v11 = vld [vmem:[#allocation32 + $0x1] ss:$0 sm:$0xff] }
0x131e   : > { %10976 = vmatpush3.bf16.msra.mxu0 %v13495_v34  ;;  %10953 = vmatprep.subr.bf16.mxu1 %v14689_v20 }
0x131f   : > { %10977 = vmatprep.subr.bf16.mxu0 %v14689_v20 }
0x1321   : > { %10955 = vmatpush3.bf16.msra.mxu1 %v10954_v16 }
0x1322   : > { %10979 = vmatpush3.bf16.msra.mxu0 %v13499_v40  ;;  %10956 = vmatprep.subr.bf16.mxu1 %v14689_v20 }
0x1323   : > { %10980 = vmatprep.subr.bf16.mxu0 %v14689_v20 }
0x1325   : > { %10958 = vmatpush3.bf16.msra.mxu1 %v10957_v8  ;;  %v4738_v8 = vld [vmem:[#allocation7 + $0x50] sm:$0xff] }
0x1326   : > { %10982 = vmatpush3.bf16.msra.mxu0 %v13503_v25  ;;  %10989 = vmatprep.subr.bf16.mxu1 %v14689_v20 }
0x1327   : > { %10983 = vmatprep.subr.bf16.mxu0 %v14689_v20 }
0x132a   : > { %10985 = vmatpush3.bf16.msra.mxu0 %v13507_v47 }
0x132b   : > { %10986 = vmatprep.subr.bf16.mxu0 %v14689_v20 }
0x132e   : > { %10988 = vmatpush3.bf16.msra.mxu0 %v13527_v31 }
0x132f   : > { %11013 = vmatprep.subr.bf16.mxu0 %v14689_v20 }
0x13db   : > { %v9069_v14 = vpop.f32.mrb[24].mxu1 }
0x13dc   : > { %v9091_v21 = vpop.f32.mrb[28].mxu0  ;;  %v9070_v28 = vpop.f32.mrb[25].mxu1 }
0x13dd   : > { %v9092_v58 = vpop.f32.mrb[29].mxu0  ;;  %v9071_v57 = vadd.f32 %v9070_v28, %v9069_v14  ;;  %v9072_v55 = vpop.f32.mrb[26].mxu1  ;;  %v4739_v14 = vld [vmem:[#allocation7 + $0x58] sm:$0xff]  ;;  %v4823_v28 = vld [vmem:[#allocation10 + $0x40] sm:$0xff] }
0x13de   : > { %v9093_v38 = vadd.f32 %v9092_v58, %v9091_v21  ;;  %v9094_v15 = vpop.f32.mrb[30].mxu0  ;;  %v9073_v43 = vpop.f32.mrb[27].mxu1  ;;  %v11041_v21 = vpack.c.bf16 %v4739_v14, %v4738_v8  ;;  %v4824_v58 = vld [vmem:[#allocation10 + $0x48] sm:$0xff] }
0x13df   : > { %v9095_v5 = vpop.f32.mrb[31].mxu0  ;;  %v4284_v19 = vadd.f32 1.0, %v9071_v57  ;;  %v4825_v43 = vld [vmem:[#allocation10 + $0x50] sm:$0xff] }
0x13e0   : > { %v4826_v5 = vld [vmem:[#allocation10 + $0x58] sm:$0xff] }
0x13e1   : > { %v4324_v36 = vadd.f32 %v9093_v38, %v4284_v19  ;;  %v11044_v38 = vpack.c.bf16 %v4824_v58, %v4823_v28  ;;  %v11047_v19 = vpack.c.bf16 %v4826_v5, %v4825_v43 }
0x13e3   : > { %9976 = vmatmul.mubr.f32.vlgmr.msra.gmra.mrb[28].mxu1 %v4324_v36  ;;  %v8713_v36 = vld [vmem:[#allocation8 + $0x2] ss:$0 sm:$0xff] }
0x13e4   : > { %v4489_v24 = vpop.f32.mrb[26].mxu0  ;;  %10991 = vmatpush3.bf16.msra.mxu1 %v13478_v29  ;;  %10056 = vmatprep.mubr.msk.f32.mxu1 %vm12512_vm0, %v14690_v54 }
0x13e5   : > { %v9988_v33 = vpop.f32.mrb[27].mxu0  ;;  %10992 = vmatprep.subr.bf16.mxu1 %v14689_v20 }
0x13e8   : > { %10994 = vmatpush3.bf16.msra.mxu1 %v13487_v59 }
0x13e9   : > { %10995 = vmatprep.subr.bf16.mxu1 %v14689_v20 }
0x13ec   : > { %10997 = vmatpush3.bf16.msra.mxu1 %v13491_v12 }
0x13ed   : > { %10998 = vmatprep.subr.bf16.mxu1 %v14689_v20 }
0x13f0   : > { %11000 = vmatpush3.bf16.msra.mxu1 %v13495_v34 }
0x13f1   : > { %11001 = vmatprep.subr.bf16.mxu1 %v14689_v20 }
0x13f4   : > { %11003 = vmatpush3.bf16.msra.mxu1 %v13499_v40 }
0x13f5   : > { %11004 = vmatprep.subr.bf16.mxu1 %v14689_v20 }
0x13f8   : > { %11006 = vmatpush3.bf16.msra.mxu1 %v13503_v25 }
0x13f9   : > { %11007 = vmatprep.subr.bf16.mxu1 %v14689_v20 }
0x13fc   : > { %11009 = vmatpush3.bf16.msra.mxu1 %v13507_v47 }
0x13fd   : > { %11010 = vmatprep.subr.bf16.mxu1 %v14689_v20 }
0x1400   : > { %11012 = vmatpush3.bf16.msra.mxu1 %v13527_v31 }
0x1401   : > { %11037 = vmatprep.subr.bf16.mxu1 %v14689_v20 }
0x14b6   : > { %v4417_v42 = vpop.f32.mrb[28].mxu1 }
0x14b7   : > { %v4490_v41 = vadd.f32 %v4489_v24, %v4417_v42  ;;  %v9977_v2 = vpop.f32.mrb[29].mxu1 }
0x14b9   : > { %v4501_v46 = vadd.f32 %v8710_v23, %v4490_v41  ;;  %v5071_v23 = vld [vmem:[#allocation14 + $0x40] sm:$0xff]  ;;  %v5072_v41 = vld [vmem:[#allocation14 + $0x48] sm:$0xff] }
0x14ba   : > { %v11049_v2 = vpack.c.bf16 %v5072_v41, %v5071_v23 }
0x14bb   : > { %10022 = vmatmul.mubr.f32.vlgmr.msra.gmra.mrb[32].mxu0 %v4501_v46 }
0x14bc   : > { %11015 = vmatpush3.bf16.msra.mxu0 %v13534_v22  ;;  %10091 = vmatprep.mubr.msk.f32.mxu0 %vm12512_vm0, %v14690_v54 }
0x14bd   : > { %11016 = vmatprep.subr.bf16.mxu0 %v14689_v20 }
0x14c0   : > { %11018 = vmatpush3.bf16.msra.mxu0 %v13538_v27 }
0x14c1   : > { %11019 = vmatprep.subr.bf16.mxu0 %v14689_v20 }
0x14c4   : > { %11021 = vmatpush3.bf16.msra.mxu0 %v13542_v4 }
0x14c5   : > { %11022 = vmatprep.subr.bf16.mxu0 %v14689_v20 }
0x14c8   : > { %11024 = vmatpush3.bf16.msra.mxu0 %v13568_v9 }
0x14c9   : > { %11025 = vmatprep.subr.bf16.mxu0 %v14689_v20 }
0x14cc   : > { %11027 = vmatpush3.bf16.msra.mxu0 %v13571_v17 }
0x14cd   : > { %11028 = vmatprep.subr.bf16.mxu0 %v14689_v20 }
0x14d0   : > { %11030 = vmatpush3.bf16.msra.mxu0 %v13578_v32 }
0x14d1   : > { %11031 = vmatprep.subr.bf16.mxu0 %v14689_v20 }
0x14d4   : > { %11033 = vmatpush3.bf16.msra.mxu0 %v13581_v37 }
0x14d5   : > { %11034 = vmatprep.subr.bf16.mxu0 %v14689_v20 }
0x14d8   : > { %11036 = vmatpush3.bf16.msra.mxu0 %v13585_v60 }
0x14d9   : > { %11050 = vmatprep.subr.bf16.mxu0 %v11049_v2 }
0x158e   : > { %v4568_v39 = vpop.f32.mrb[32].mxu0 }
0x158f   : > { %v4572_v48 = vsub.f32 %v4501_v46, %v4568_v39  ;;  %v10023_v50 = vpop.f32.mrb[33].mxu0  ;;  %v8715_v46 = vld [vmem:[#allocation11 + $0x2] ss:$0 sm:$0xff] }
0x1591   : > { %v4573_v1 = vmul.f32 %v4572_v48, %v4572_v48 }
0x1593   : > { %10057 = vmatmul.mubr.f32.vlgmr.msra.gmra.mrb[30].mxu1 %v4573_v1 }
0x1594   : > { %10102 = vmatprep.mubr.msk.f32.mxu1 %vm12512_vm0, %v14690_v54  ;;  %11039 = vmatpush3.bf16.msra.mxu1 %v11038_v3 }
0x1595   : > { %11040 = vmatprep.subr.bf16.mxu1 %v14689_v20 }
0x1598   : > { %11042 = vmatpush3.bf16.msra.mxu1 %v11041_v21 }
0x1599   : > { %11043 = vmatprep.subr.bf16.mxu1 %v14689_v20 }
0x1666   : > { %v4640_v63 = vpop.f32.mrb[30].mxu1 }
0x1667   : > { %v4641_v61 = vadd.f32 1e-05, %v4640_v63  ;;  %v10058_v52 = vpop.f32.mrb[31].mxu1 }
0x1669   : > { %11721 = vrsqrt.f32 %v4641_v61 }
0x1673   : > { %v11722_v26 = vpop.eup %11721 }
0x1674   : > { %v4645_v62 = vmul.f32 %v11722_v26, %v4572_v48 }
0x1676   : > { %v4654_v13 = vmul.f32 %v8711_v11, %v4645_v62 }
0x1678   : > { %v4663_v16 = vadd.f32 %v8712_v56, %v4654_v13 }
0x167a   : > { %v4664_v53 = vmax.f32 %v4663_v16, 0.0 }
0x167c   : > { %10092 = vmatmul.mubr.f32.vlgmr.msra.gmra.mrb[34].mxu0 %v4664_v53 }
0x167d   : > { %11052 = vmatpush3.bf16.msra.mxu0 %v11049_v2 }
0x174f   : > { %v4731_v57 = vpop.f32.mrb[34].mxu0 }
0x1750   : > { %v13848_v55 = vadd.f32 %v4731_v57, %v13592_v10  ;;  %v10093_v15 = vpop.f32.mrb[35].mxu0 }
0x1752   : > { %10103 = vmatmul.mubr.msk.f32.vlgmr.msra.gmra.mrb[32].mxu1 %vm1468_vm1, %v13848_v55 }
0x1753   : > { %11045 = vmatpush3.bf16.msra.mxu1 %v11044_v38  ;;  %10113 = vmatprep.mubr.msk.f32.mxu1 %vm12512_vm0, %v14690_v54 }
0x1754   : > { %11046 = vmatprep.subr.bf16.mxu1 %v14689_v20 }
0x1757   : > { %11048 = vmatpush3.bf16.msra.mxu1 %v11047_v19 }
0x1758   : > { %10116 = vmatprep.subr.bf16.mxu1 %v14690_v54 }
0x1825   : > { %v4817_v24 = vpop.f32.mrb[32].mxu1 }
0x1826   : > { %v4818_v10 = vadd.f32 %v8713_v36, %v4817_v24  ;;  %v10104_v33 = vpop.f32.mrb[33].mxu1 }
0x1828   : > { %v4821_v42 = vmax.f32 %v4818_v10, 0.0 }
0x182a   : > { %10114 = vmatmul.mubr.msk.f32.vlgmr.msra.gmra.mrb[34].mxu1 %vm1468_vm1, %v4821_v42 }
0x182b   : > { %10132 = vmatprep.mubr.msk.bf16.mxu1 %vm12512_vm0, %v14690_v54 }
0x18fd   : > { %v4904_v39 = vpop.f32.mrb[34].mxu1 }
0x18fe   : > { %v4905_v48 = vadd.f32 %v8715_v46, %v4904_v39  ;;  %v10115_v50 = vpop.f32.mrb[35].mxu1 }
0x1900   : > { %v4916_v1 = vrot.slane %v4905_v48, %v13107_v30  ;;  %v4909_v3 = vcombine.high %v4905_v48, %v4905_v48 }
0x1902   : > { %v4924_v0 = vcombine.high %v4916_v1, %v4916_v1  ;;  %v4932_v18 = vrot.slane %v4916_v1, %v13107_v30  ;;  %v4923_v56 = vrot.slane %v4909_v3, %v13107_v30 }
0x1904   : > { %v4946_v63 = vrot.slane %v4924_v0, %v13107_v30  ;;  %v4954_v61 = vcombine.high %v4932_v18, %v4932_v18  ;;  %v4961_v52 = vrot.slane %v4932_v18, %v13114_v35  ;;  %v4925_v21 = vcombine.high %v4923_v56, %v4923_v56 }
0x1905   : > { %v4939_v28 = vrot.slane %v4923_v56, %v13107_v30  ;;  %v5074_v56 = vld [vmem:[#allocation14 + $0x58] sm:$0xff] }
0x1906   : > { %v4965_v26 = vrot.slane %v4946_v63, %v13114_v35  ;;  %v4998_v11 = vmul.f32 %v4961_v52, %v13275_v6  ;;  %v4999_v62 = vmul.f32 %v4961_v52, %v13277_v7  ;;  %v4956_v13 = vcombine.high %v4946_v63, %v4946_v63 }
0x1907   : > { %v4969_v16 = vrot.slane %v4954_v61, %v13114_v35  ;;  %v4953_v43 = vrot.slane %v4925_v21, %v13107_v30  ;;  %v4977_v5 = vrot.slane %v4939_v28, %v13114_v35  ;;  %v4955_v10 = vcombine.high %v4939_v28, %v4939_v28  ;;  %v5068_v21 = vld [vmem:[#allocation13 + $0x50] sm:$0xff]  ;;  %v5069_v28 = vld [vmem:[#allocation13 + $0x58] sm:$0xff] }
0x1908   : > { %v5014_v53 = vpack.c.bf16 %v4999_v62, %v4998_v11  ;;  %v5000_v8 = vmul.f32 %v4965_v26, %v13275_v6  ;;  %v5001_v14 = vmul.f32 %v4965_v26, %v13277_v7  ;;  %v4973_v58 = vrot.slane %v4956_v13, %v13114_v35  ;;  %v13898_v11 = vld [vmem:[%s14677_s22] sm:$0xff]  }
0x1909   : > { %v5002_v38 = vmul.f32 %v4969_v16, %v13275_v6  ;;  %v5003_v15 = vmul.f32 %v4969_v16, %v13277_v7  ;;  %v4981_v33 = vrot.slane %v4953_v43, %v13114_v35  ;;  %v5006_v23 = vmul.f32 %v4977_v5, %v13275_v6  ;;  %v5073_v62 = vld [vmem:[#allocation14 + $0x50] sm:$0xff]  ;;  %v5066_v16 = vld [vmem:[#allocation13 + $0x40] sm:$0xff] }
0x190a   : > { %10117 = vmatpush3.bf16.msra.mxu1 %v5014_v53  ;;  %v5015_v57 = vpack.c.bf16 %v5001_v14, %v5000_v8  ;;  %v5004_v36 = vmul.f32 %v4973_v58, %v13275_v6  ;;  %v5005_v24 = vmul.f32 %v4973_v58, %v13277_v7  ;;  %v5007_v41 = vmul.f32 %v4977_v5, %v13277_v7  ;;  %v5067_v53 = vld [vmem:[#allocation13 + $0x48] sm:$0xff]  ;;  %v13904_v58 = vld [vmem:[%s13166_s3] sm:$0xff] }
0x190b   : > { %10118 = vmatprep.subr.bf16.mxu1 %v14690_v54  ;;  %v5016_v19 = vpack.c.bf16 %v5003_v15, %v5002_v38  ;;  %v4957_v2 = vcombine.high %v4953_v43, %v4953_v43  ;;  %v4985_v46 = vrot.slane %v4955_v10, %v13114_v35  ;;  %v5008_v48 = vmul.f32 %v4981_v33, %v13275_v6  ;;  %v13908_v43 = vld [vmem:[%s13166_s3 + $0x8] sm:$0xff]  ;;  %s1411_s3 = scalar_lea.vmem %s12695_s30, %s8642_s10 }
0x190c   : > { %v5017_v42 = vpack.c.bf16 %v5005_v24, %v5004_v36  ;;  %v5018_v39 = vpack.c.bf16 %v5007_v41, %v5006_v23  ;;  %v5009_v50 = vmul.f32 %v4981_v33, %v13277_v7  ;;  %v11053_v13 = vpack.c.bf16 %v5074_v56, %v5073_v62  ;;  %v5292_v24 = vld [vmem:[#allocation7 + $0x60] sm:$0xff]  ;;  %v5293_v10 = vld [vmem:[#allocation7 + $0x68] sm:$0xff]  ;;  %v5295_v23 = vld [vmem:[#allocation7 + $0x78] sm:$0xff] }
0x190d   : > { %v5010_v0 = vmul.f32 %v4985_v46, %v13275_v6  ;;  %v5011_v18 = vmul.f32 %v4985_v46, %v13277_v7  ;;  %v4989_v3 = vrot.slane %v4957_v2, %v13114_v35  ;;  %v11057_v8 = vpack.c.bf16 %v5067_v53, %v5066_v16  ;;  %v5376_v2 = vld [vmem:[#allocation10 + $0x60] sm:$0xff]  ;;  %v5377_v46 = vld [vmem:[#allocation10 + $0x68] sm:$0xff]  ;;  %v8724_v62 = vld [vmem:[#allocation8 + $0x3] ss:$0 sm:$0xff] }
0x190e   : > { %10119 = vmatpush3.bf16.msra.mxu1 %v5015_v57  ;;  %v5019_v1 = vpack.c.bf16 %v5009_v50, %v5008_v48  ;;  %11054 = vmatprep.subr.bf16.mxu0 %v11053_v13  ;;  %v11061_v36 = vpack.c.bf16 %v5069_v28, %v5068_v21  ;;  %v11066_v33 = vpack.c.bf16 %v5293_v10, %v5292_v24  ;;  %v5378_v48 = vld [vmem:[#allocation10 + $0x70] sm:$0xff]  ;;  %v5379_v50 = vld [vmem:[#allocation10 + $0x78] sm:$0xff] }
0x190f   : > { %10120 = vmatprep.subr.bf16.mxu1 %v14690_v54  ;;  %v5020_v63 = vpack.c.bf16 %v5011_v18, %v5010_v0  ;;  %v5012_v61 = vmul.f32 %v4989_v3, %v13275_v6  ;;  %v5013_v52 = vmul.f32 %v4989_v3, %v13277_v7  ;;  %11056 = vmatpush3.bf16.msra.mxu0 %v11053_v13  ;;  %v8721_v0 = vld [vmem:[#allocation16 + $0x2] ss:$0 sm:$0xff] }
0x1910   : > { %11058 = vmatprep.subr.bf16.mxu0 %v11057_v8 }
0x1911   : > { %v5021_v26 = vpack.c.bf16 %v5013_v52, %v5012_v61 }
0x1912   : > { %10121 = vmatpush3.bf16.msra.mxu1 %v5016_v19 }
0x1913   : > { %10122 = vmatprep.subr.bf16.mxu1 %v14690_v54 }
0x1916   : > { %10123 = vmatpush3.bf16.msra.mxu1 %v5017_v42  ;;  %v5294_v42 = vld [vmem:[#allocation7 + $0x70] sm:$0xff] }
0x1917   : > { %10124 = vmatprep.subr.bf16.mxu1 %v14690_v54  ;;  %v11069_v41 = vpack.c.bf16 %v5295_v23, %v5294_v42  ;;  %v5625_v42 = vld [vmem:[#allocation14 + $0x68] sm:$0xff] }
0x191a   : > { %10125 = vmatpush3.bf16.msra.mxu1 %v5018_v39  ;;  %v11072_v39 = vpack.c.bf16 %v5377_v46, %v5376_v2 }
0x191b   : > { %10126 = vmatprep.subr.bf16.mxu1 %v14690_v54 }
0x191e   : > { %10127 = vmatpush3.bf16.msra.mxu1 %v5019_v1  ;;  %v11075_v1 = vpack.c.bf16 %v5379_v50, %v5378_v48 }
0x191f   : > { %10128 = vmatprep.subr.bf16.mxu1 %v14690_v54 }
0x1922   : > { %10129 = vmatpush3.bf16.msra.mxu1 %v5020_v63 }
0x1923   : > { %10130 = vmatprep.subr.bf16.mxu1 %v14690_v54 }
0x1926   : > { %10131 = vmatpush3.bf16.msra.mxu1 %v5021_v26 }
0x1927   : > { %10180 = vmatprep.subr.bf16.mxu1 %v14690_v54 }
0x1929   : > { %10133 = vmatmul.mubr.bf16.vlgmr.msra.gmra.mrb[36].mxu1 %v13898_v11 }
0x192a   : > { %10196 = vmatprep.mubr.msk.bf16.mxu1 %vm12512_vm0, %v14690_v54 }
0x19fc   : > { %v5056_v14 = vpop.f32.mrb[36].mxu1 }
0x19fd   : > { %v5063_v57 = vadd.f32 %v13904_v58, %v5056_v14  ;;  %v10134_v38 = vpop.f32.mrb[37].mxu1 }
0x19fe   : > { %v5059_v15 = vpop.f32.mrb[38].mxu1 }
0x19ff   : > { %v5064_v5 = vadd.f32 %v13908_v43, %v5059_v15  ;;  %v10135_v19 = vpop.f32.mrb[39].mxu1  ;;  %10144 = vmatprep.mubr.msk.f32.mxu0 %vm1468_vm1, %v5063_v57 }
0x1a01   : > { %10145 = vmatmul.mubr.msk.f32.vlgmr.msra.gmra.mrb[36].mxu0 %vm1468_vm1, %v5064_v5 }
0x1a02   : > { %11060 = vmatpush3.bf16.msra.mxu0 %v11057_v8  ;;  %10155 = vmatprep.mubr.msk.f32.mxu0 %vm1468_vm1, %v13275_v6 }
0x1a03   : > { %11062 = vmatprep.subr.bf16.mxu0 %v11061_v36 }
0x1a06   : > { %11064 = vmatpush3.bf16.msra.mxu0 %v11061_v36 }
0x1a07   : > { %11065 = vmatprep.subr.bf16.mxu0 %v14689_v20 }
0x1a09   : > { %10156 = vmatmul.mubr.msk.f32.vlgmr.msra.gmra.mrb[36].mxu0 %vm1468_vm1, %v13277_v7 }
0x1a0a   : > { %11067 = vmatpush3.bf16.msra.mxu0 %v11066_v33  ;;  %10166 = vmatprep.mubr.msk.f32.mxu0 %vm12512_vm0, %v14690_v54  ;;  %v5624_v33 = vld [vmem:[#allocation14 + $0x60] sm:$0xff] }
0x1a0b   : > { %11068 = vmatprep.subr.bf16.mxu0 %v14689_v20  ;;  %v11077_v23 = vpack.c.bf16 %v5625_v42, %v5624_v33 }
0x1a0e   : > { %11070 = vmatpush3.bf16.msra.mxu0 %v11069_v41 }
0x1a0f   : > { %11071 = vmatprep.subr.bf16.mxu0 %v14689_v20 }
0x1a11   : > { %10167 = vmatmul.mubr.msk.f32.vlgmr.msra.gmra.mrb[38].mxu0 %vm1468_vm1, %v13848_v55 }
0x1a12   : > { %10177 = vmatprep.mubr.msk.f32.mxu0 %vm12512_vm0, %v14690_v54  ;;  %11073 = vmatpush3.bf16.msra.mxu0 %v11072_v39 }
0x1a13   : > { %11074 = vmatprep.subr.bf16.mxu0 %v14689_v20 }
0x1a16   : > { %11076 = vmatpush3.bf16.msra.mxu0 %v11075_v1  ;;  %v8726_v1 = vld [vmem:[#allocation11 + $0x3] ss:$0 sm:$0xff] }
0x1a17   : > { %11078 = vmatprep.subr.bf16.mxu0 %v11077_v23 }
0x1adc   : > { %v10157_v18 = vpop.f32.mrb[36].mxu0 }
0x1add   : > { %v5240_v3 = vadd.f32 %v10157_v18, %v8721_v0  ;;  %v5222_v63 = vpop.f32.mrb[37].mxu0 }
0x1ade   : > { %v5239_v61 = vadd.f32 %v8721_v0, %v5222_v63 }
0x1adf   : > { %v5244_v52 = vsel %vm1468_vm1, %v5240_v3, 0.0 }
0x1ae0   : > { %5245 = vadd.xlane.f32.xlu0 %v5244_v52  ;;  %v5241_v26 = vsel %vm1468_vm1, %v5239_v61, 0.0 }
0x1ae1   : > { %5242 = vadd.xlane.f32.xlu1 %v5241_v26 }
0x1ae4   : > { %v5370_v56 = vpop.f32.mrb[38].mxu0 }
0x1ae5   : > { %v5371_v13 = vadd.f32 %v8724_v62, %v5370_v56  ;;  %v10168_v16 = vpop.f32.mrb[39].mxu0 }
0x1ae7   : > { %v5374_v53 = vmax.f32 %v5371_v13, 0.0 }
0x1ae9   : > { %10178 = vmatmul.mubr.msk.f32.vlgmr.msra.gmra.mrb[40].mxu0 %vm1468_vm1, %v5374_v53 }
0x1aea   : > { %11080 = vmatpush3.bf16.msra.mxu0 %v11077_v23 }
0x1b6d   : > { %v5246_v8 = vpop.xlane.xlu0 %5245 }
0x1b6e   : > { %v5248_v14 = vmul.f32 0.03125, %v5246_v8  ;;  %v5243_v21 = vpop.xlane.xlu1 %5242 }
0x1b6f   : > { %v5247_v28 = vmul.f32 0.03125, %v5243_v21 }
0x1b70   : > { %v5250_v57 = vsub.f32 %v5240_v3, %v5248_v14  ;;  %v8722_v3 = vld [vmem:[#allocation17 + $0x2] ss:$0 sm:$0xff] }
0x1b71   : > { %v5249_v38 = vsub.f32 %v5239_v61, %v5247_v28  ;;  %v8723_v61 = vld [vmem:[#allocation19 + $0x2] ss:$0 sm:$0xff] }
0x1b72   : > { %v5252_v19 = vmul.f32 %v5250_v57, %v5250_v57 }
0x1b73   : > { %v5251_v15 = vmul.f32 %v5249_v38, %v5249_v38 }
0x1b74   : > { %v5256_v36 = vsel %vm1468_vm1, %v5252_v19, 0.0 }
0x1b75   : > { %v5253_v5 = vsel %vm1468_vm1, %v5251_v15, 0.0 }
0x1b76   : > { %5254 = vadd.xlane.f32.xlu0 %v5253_v5 }
0x1b7a   : > { %5257 = vadd.xlane.f32.xlu0 %v5256_v36 }
0x1bbc   : > { %v5457_v24 = vpop.f32.mrb[40].mxu0 }
0x1bbd   : > { %v10179_v10 = vpop.f32.mrb[41].mxu0  ;;  %v5458_v0 = vadd.f32 %v8726_v1, %v5457_v24 }
0x1bbf   : > { %v5469_v52 = vrot.slane %v5458_v0, %v13107_v30  ;;  %v5462_v36 = vcombine.high %v5458_v0, %v5458_v0 }
0x1bc1   : > { %v5477_v16 = vcombine.high %v5469_v52, %v5469_v52  ;;  %v5485_v14 = vrot.slane %v5469_v52, %v13107_v30 }
0x1bc3   : > { %v5499_v28 = vrot.slane %v5477_v16, %v13107_v30  ;;  %v5507_v24 = vcombine.high %v5485_v14, %v5485_v14 }
0x1c03   : > { %v5255_v41 = vpop.xlane.xlu0 %5254 }
0x1c04   : > { %v5259_v2 = vmul.f32 0.03125, %v5255_v41  ;;  %v5509_v41 = vcombine.high %v5499_v28, %v5499_v28 }
0x1c06   : > { %v5261_v46 = vadd.f32 1e-05, %v5259_v2  ;;  %v5522_v2 = vrot.slane %v5507_v24, %v13114_v35  ;;  %v5526_v1 = vrot.slane %v5509_v41, %v13114_v35 }
0x1c07   : > { %v5258_v39 = vpop.xlane.xlu0 %5257 }
0x1c08   : > { %11723 = vrsqrt.f32 %v5261_v46  ;;  %v5260_v48 = vmul.f32 0.03125, %v5258_v39 }
0x1c0a   : > { %v5262_v50 = vadd.f32 1e-05, %v5260_v48 }
0x1c0c   : > { %11725 = vrsqrt.f32 %v5262_v50 }
0x1c12   : > { %v11724_v18 = vpop.eup %11723 }
0x1c13   : > { %v5265_v63 = vmul.f32 %v11724_v18, %v5249_v38  ;;  %v5514_v38 = vrot.slane %v5485_v14, %v13114_v35 }
0x1c15   : > { %v5275_v26 = vmul.f32 %v8722_v3, %v5265_v63 }
0x1c16   : > { %v11726_v62 = vpop.eup %11725 }
0x1c17   : > { %v5285_v56 = vadd.f32 %v8723_v61, %v5275_v26  ;;  %v5266_v13 = vmul.f32 %v11726_v62, %v5250_v57  ;;  %v5518_v57 = vrot.slane %v5499_v28, %v13114_v35 }
0x1c19   : > { %v5287_v53 = vmax.f32 %v5285_v56, 0.0  ;;  %v5276_v8 = vmul.f32 %v8722_v3, %v5266_v13 }
0x1c1b   : > { %v5286_v21 = vadd.f32 %v8723_v61, %v5276_v8  ;;  %v13936_v15 = vadd.f32 %v5287_v53, %v13275_v6  ;;  %v5476_v6 = vrot.slane %v5462_v36, %v13107_v30 }
0x1c1d   : > { %v5288_v5 = vmax.f32 %v5286_v21, 0.0  ;;  %v5551_v10 = vmul.f32 %v5514_v38, %v13936_v15  ;;  %v5478_v48 = vcombine.high %v5476_v6, %v5476_v6  ;;  %v5492_v50 = vrot.slane %v5476_v6, %v13107_v30  ;;  %v5627_v6 = vld [vmem:[#allocation14 + $0x78] sm:$0xff] }
0x1c1e   : > { %v5555_v0 = vmul.f32 %v5522_v2, %v13936_v15  ;;  %v5557_v52 = vmul.f32 %v5526_v1, %v13936_v15 }
0x1c1f   : > { %v13940_v19 = vadd.f32 %v5288_v5, %v13277_v7  ;;  %v5553_v7 = vmul.f32 %v5518_v57, %v13936_v15  ;;  %v5506_v63 = vrot.slane %v5478_v48, %v13107_v30  ;;  %v5530_v61 = vrot.slane %v5492_v50, %v13114_v35  ;;  %v5621_v48 = vld [vmem:[#allocation13 + $0x70] sm:$0xff] }
0x1c20   : > { %v5508_v56 = vcombine.high %v5492_v50, %v5492_v50  ;;  %v5622_v50 = vld [vmem:[#allocation13 + $0x78] sm:$0xff] }
0x1c21   : > { %v5552_v33 = vmul.f32 %v5514_v38, %v13940_v19  ;;  %v5554_v23 = vmul.f32 %v5518_v57, %v13940_v19  ;;  %v5556_v39 = vmul.f32 %v5522_v2, %v13940_v19  ;;  %v5558_v3 = vmul.f32 %v5526_v1, %v13940_v19  ;;  %v5619_v2 = vld [vmem:[#allocation13 + $0x60] sm:$0xff] }
0x1c22   : > { %v5560_v62 = vmul.f32 %v5530_v61, %v13940_v19  ;;  %v5534_v13 = vrot.slane %v5506_v63, %v13114_v35  ;;  %v5559_v16 = vmul.f32 %v5530_v61, %v13936_v15  ;;  %v5510_v14 = vcombine.high %v5506_v63, %v5506_v63 }
0x1c23   : > { %v5567_v42 = vpack.c.bf16 %v5552_v33, %v5551_v10  ;;  %v5568_v46 = vpack.c.bf16 %v5554_v23, %v5553_v7  ;;  %v5569_v18 = vpack.c.bf16 %v5556_v39, %v5555_v0  ;;  %v5570_v26 = vpack.c.bf16 %v5558_v3, %v5557_v52  ;;  %v5626_v23 = vld [vmem:[#allocation14 + $0x70] sm:$0xff]  ;;  %v5620_v7 = vld [vmem:[#allocation13 + $0x68] sm:$0xff] }
0x1c24   : > { %v5571_v53 = vpack.c.bf16 %v5560_v62, %v5559_v16  ;;  %v5562_v8 = vmul.f32 %v5534_v13, %v13940_v19  ;;  %v5538_v21 = vrot.slane %v5508_v56, %v13114_v35  ;;  %v5561_v28 = vmul.f32 %v5534_v13, %v13936_v15 }
0x1c25   : > { %10181 = vmatpush3.bf16.msra.mxu1 %v5567_v42  ;;  %v5542_v24 = vrot.slane %v5510_v14, %v13114_v35  ;;  %v11081_v41 = vpack.c.bf16 %v5627_v6, %v5626_v23  ;;  %v8742_v6 = vld [vmem:[%s14680_s13 + $0x40] sm:$0xff] }
0x1c26   : > { %10182 = vmatprep.subr.bf16.mxu1 %v14690_v54  ;;  %v5572_v5 = vpack.c.bf16 %v5562_v8, %v5561_v28  ;;  %v5564_v38 = vmul.f32 %v5538_v21, %v13940_v19  ;;  %v5563_v36 = vmul.f32 %v5538_v21, %v13936_v15 }
0x1c27   : > { %v5566_v10 = vmul.f32 %v5542_v24, %v13940_v19  ;;  %v5565_v33 = vmul.f32 %v5542_v24, %v13936_v15  ;;  %11082 = vmatprep.subr.bf16.mxu0 %v11081_v41  ;;  %v8735_v24 = vld [vmem:[%s14679_s18 + $0x20] sm:$0xff] }
0x1c28   : > { %v5573_v57 = vpack.c.bf16 %v5564_v38, %v5563_v36  ;;  %11084 = vmatpush3.bf16.msra.mxu0 %v11081_v41  ;;  %v8743_v41 = vld [vmem:[%s14680_s13 + $0x48] sm:$0xff] }
0x1c29   : > { %10183 = vmatpush3.bf16.msra.mxu1 %v5568_v46  ;;  %v5574_v42 = vpack.c.bf16 %v5566_v10, %v5565_v33  ;;  %v11085_v46 = vpack.c.bf16 %v5620_v7, %v5619_v2  ;;  %v8737_v10 = vld [vmem:[%s14679_s18 + $0x30] sm:$0xff]  ;;  %v11101_v2 = vpack.c.bf16 %v8743_v41, %v8742_v6 }
0x1c2a   : > { %10184 = vmatprep.subr.bf16.mxu1 %v14690_v54 }
0x1c2b   : > { %11086 = vmatprep.subr.bf16.mxu0 %v11085_v46 }
0x1c2d   : > { %10185 = vmatpush3.bf16.msra.mxu1 %v5569_v18 }
0x1c2e   : > { %10186 = vmatprep.subr.bf16.mxu1 %v14690_v54 }
0x1c31   : > { %10187 = vmatpush3.bf16.msra.mxu1 %v5570_v26 }
0x1c32   : > { %10188 = vmatprep.subr.bf16.mxu1 %v14690_v54 }
0x1c35   : > { %10189 = vmatpush3.bf16.msra.mxu1 %v5571_v53 }
0x1c36   : > { %10190 = vmatprep.subr.bf16.mxu1 %v14690_v54 }
0x1c39   : > { %10191 = vmatpush3.bf16.msra.mxu1 %v5572_v5 }
0x1c3a   : > { %10192 = vmatprep.subr.bf16.mxu1 %v14690_v54 }
0x1c3d   : > { %10193 = vmatpush3.bf16.msra.mxu1 %v5573_v57  ;;  %v8736_v57 = vld [vmem:[%s14679_s18 + $0x28] sm:$0xff] }
0x1c3e   : > { %10194 = vmatprep.subr.bf16.mxu1 %v14690_v54  ;;  %v11093_v33 = vpack.c.bf16 %v8736_v57, %v8735_v24  ;;  %v6046_v57 = vld [vmem:[#allocation23 + $0x48] sm:$0xff] }
0x1c41   : > { %10195 = vmatpush3.bf16.msra.mxu1 %v5574_v42  ;;  %v8738_v42 = vld [vmem:[%s14679_s18 + $0x38] sm:$0xff] }
0x1c42   : > { %v11097_v23 = vpack.c.bf16 %v8738_v42, %v8737_v10  ;;  %v8739_v10 = vld [vmem:[#allocation20 + $0x1] ss:$0 sm:$0xff] }
0x1c44   : > { %10197 = vmatmul.mubr.bf16.vlgmr.msra.gmra.mrb[40].mxu1 %v13898_v11  ;;  %v11089_v11 = vpack.c.bf16 %v5622_v50, %v5621_v48 }
0x1d17   : > { %v5609_v39 = vpop.f32.mrb[40].mxu1 }
0x1d18   : > { %v5616_v1 = vadd.f32 %v13904_v58, %v5609_v39  ;;  %v10198_v0 = vpop.f32.mrb[41].mxu1  ;;  %v8732_v58 = vld [vmem:[#allocation16 + $0x3] ss:$0 sm:$0xff] }
0x1d19   : > { %v5612_v18 = vpop.f32.mrb[42].mxu1 }
0x1d1a   : > { %v5617_v3 = vadd.f32 %v13908_v43, %v5612_v18  ;;  %v10199_v63 = vpop.f32.mrb[43].mxu1  ;;  %10208 = vmatprep.mubr.msk.f32.mxu0 %vm1468_vm1, %v5616_v1  ;;  %v8733_v18 = vld [vmem:[#allocation17 + $0x3] ss:$0 sm:$0xff] }
0x1d1c   : > { %10209 = vmatmul.mubr.msk.f32.vlgmr.msra.gmra.mrb[42].mxu0 %vm1468_vm1, %v5617_v3 }
0x1d1d   : > { %11088 = vmatpush3.bf16.msra.mxu0 %v11085_v46  ;;  %10219 = vmatprep.mubr.msk.f32.mxu0 %vm1468_vm1, %v13936_v15 }
0x1d1e   : > { %11090 = vmatprep.subr.bf16.mxu0 %v11089_v11 }
0x1d21   : > { %11092 = vmatpush3.bf16.msra.mxu0 %v11089_v11 }
0x1d22   : > { %11094 = vmatprep.subr.bf16.mxu0 %v11093_v33 }
0x1d24   : > { %10220 = vmatmul.mubr.msk.f32.vlgmr.msra.gmra.mrb[42].mxu0 %vm1468_vm1, %v13940_v19 }
0x1d25   : > { %11096 = vmatpush3.bf16.msra.mxu0 %v11093_v33 }
0x1d26   : > { %11098 = vmatprep.subr.bf16.mxu0 %v11097_v23 }
0x1d29   : > { %11100 = vmatpush3.bf16.msra.mxu0 %v11097_v23 }
0x1d2a   : > { %11102 = vmatprep.subr.bf16.mxu0 %v11101_v2 }
0x1df7   : > { %v10221_v61 = vpop.f32.mrb[42].mxu0 }
0x1df8   : > { %v5799_v52 = vadd.f32 %v10221_v61, %v8732_v58  ;;  %v5781_v26 = vpop.f32.mrb[43].mxu0 }
0x1df9   : > { %v5798_v43 = vadd.f32 %v8732_v58, %v5781_v26  ;;  %v8734_v58 = vld [vmem:[#allocation19 + $0x3] ss:$0 sm:$0xff] }
0x1dfa   : > { %v5803_v62 = vsel %vm1468_vm1, %v5799_v52, 0.0 }
0x1dfb   : > { %5804 = vadd.xlane.f32.xlu0 %v5803_v62  ;;  %v5800_v56 = vsel %vm1468_vm1, %v5798_v43, 0.0 }
0x1dfc   : > { %5801 = vadd.xlane.f32.xlu1 %v5800_v56 }
0x1e88   : > { %v5805_v13 = vpop.xlane.xlu0 %5804 }
0x1e89   : > { %v5807_v16 = vmul.f32 0.03125, %v5805_v13  ;;  %v5802_v53 = vpop.xlane.xlu1 %5801  ;;  %v8744_v13 = vld [vmem:[%s14680_s13 + $0x50] sm:$0xff] }
0x1e8a   : > { %v5806_v8 = vmul.f32 0.03125, %v5802_v53 }
0x1e8b   : > { %v5809_v14 = vsub.f32 %v5799_v52, %v5807_v16  ;;  %v8745_v16 = vld [vmem:[%s14680_s13 + $0x58] sm:$0xff] }
0x1e8c   : > { %v5808_v21 = vsub.f32 %v5798_v43, %v5806_v8 }
0x1e8d   : > { %v5811_v28 = vmul.f32 %v5809_v14, %v5809_v14 }
0x1e8e   : > { %v5810_v5 = vmul.f32 %v5808_v21, %v5808_v21 }
0x1e8f   : > { %v5815_v38 = vsel %vm1468_vm1, %v5811_v28, 0.0  ;;  %v11105_v28 = vpack.c.bf16 %v8745_v16, %v8744_v13  ;;  %v8763_v13 = vld [vmem:[%s14681_s4 + $0x138] sm:$0xff] }
0x1e90   : > { %5816 = vadd.xlane.f32.xlu0 %v5815_v38  ;;  %v5812_v36 = vsel %vm1468_vm1, %v5810_v5, 0.0  ;;  %v8748_v38 = vld [vmem:[%s14680_s13 + $0x70] sm:$0xff] }
0x1e91   : > { %5813 = vadd.xlane.f32.xlu1 %v5812_v36  ;;  %v8749_v36 = vld [vmem:[%s14680_s13 + $0x78] sm:$0xff] }
0x1e92   : > { %v11113_v24 = vpack.c.bf16 %v8749_v36, %v8748_v38  ;;  %v8768_v38 = vld [vmem:[%s14681_s4 + $0x160] sm:$0xff]  ;;  %v8769_v36 = vld [vmem:[%s14681_s4 + $0x168] sm:$0xff] }
0x1ea2   : > { %6240 = vrot.lane.b32.xlu1 %v13848_v55, %s12517_s9 }
0x1ea6   : > { %6243 = vrot.lane.b32.xlu0 %v13848_v55, %s12516_s16  ;;  %6246 = vrot.lane.b32.xlu1 %v13848_v55, %s12518_s5 }
0x1f1d   : > { %v5817_v7 = vpop.xlane.xlu0 %5816 }
0x1f1e   : > { %v5819_v46 = vmul.f32 0.03125, %v5817_v7  ;;  %v5814_v39 = vpop.xlane.xlu1 %5813  ;;  %v6047_v7 = vld [vmem:[#allocation23 + $0x50] sm:$0xff] }
0x1f1f   : > { %v5818_v48 = vmul.f32 0.03125, %v5814_v39 }
0x1f20   : > { %v5821_v50 = vadd.f32 1e-05, %v5819_v46  ;;  %v6048_v46 = vld [vmem:[#allocation23 + $0x58] sm:$0xff] }
0x1f21   : > { %v5820_v1 = vadd.f32 1e-05, %v5818_v48  ;;  %v11121_v39 = vpack.c.bf16 %v6048_v46, %v6047_v7  ;;  %v8756_v48 = vld [vmem:[%s14681_s4 + $0x100] sm:$0xff]  ;;  %v8772_v7 = vld [vmem:[#allocation26 + $0x2] ss:$0 sm:$0xff] }
0x1f22   : > { %11727 = vrsqrt.f32 %v5821_v50  ;;  %v8757_v50 = vld [vmem:[%s14681_s4 + $0x108] sm:$0xff] }
0x1f23   : > { %11729 = vrsqrt.f32 %v5820_v1  ;;  %v11125_v1 = vpack.c.bf16 %v8757_v50, %v8756_v48  ;;  %v6241_v50 = vpop.permute.xlu1 %6240 }
0x1f2c   : > { %v11728_v0 = vpop.eup %11727 }
0x1f2d   : > { %v11730_v3 = vpop.eup %11729  ;;  %v5825_v63 = vmul.f32 %v11728_v0, %v5809_v14  ;;  %v8746_v14 = vld [vmem:[%s14680_s13 + $0x60] sm:$0xff]  ;;  %v8750_v0 = vld [vmem:[#allocation22 + $0x1] ss:$0 sm:$0xff] }
0x1f2e   : > { %v5824_v11 = vmul.f32 %v11730_v3, %v5808_v21  ;;  %v8747_v21 = vld [vmem:[%s14680_s13 + $0x68] sm:$0xff]  ;;  %v8758_v3 = vld [vmem:[%s14681_s4 + $0x110] sm:$0xff] }
0x1f2f   : > { %v5835_v61 = vmul.f32 %v8733_v18, %v5825_v63  ;;  %v11109_v5 = vpack.c.bf16 %v8747_v21, %v8746_v14  ;;  %v8759_v63 = vld [vmem:[%s14681_s4 + $0x118] sm:$0xff]  ;;  %v8766_v14 = vld [vmem:[%s14681_s4 + $0x150] sm:$0xff] }
0x1f30   : > { %v5834_v52 = vmul.f32 %v8733_v18, %v5824_v11  ;;  %v8767_v21 = vld [vmem:[%s14681_s4 + $0x158] sm:$0xff] }
0x1f31   : > { %v5845_v26 = vadd.f32 %v8734_v58, %v5835_v61 }
0x1f32   : > { %v5844_v43 = vadd.f32 %v8734_v58, %v5834_v52  ;;  %v11129_v52 = vpack.c.bf16 %v8759_v63, %v8758_v3 }
0x1f33   : > { %v5847_v62 = vmax.f32 %v5845_v26, 0.0  ;;  %v8760_v26 = vld [vmem:[%s14681_s4 + $0x120] sm:$0xff] }
0x1f34   : > { %v5846_v56 = vmax.f32 %v5844_v43, 0.0  ;;  %v8761_v43 = vld [vmem:[%s14681_s4 + $0x128] sm:$0xff] }
0x1f35   : > { %v5849_v8 = vadd.f32 %v5847_v62, %v13940_v19  ;;  %v11133_v62 = vpack.c.bf16 %v8761_v43, %v8760_v26 }
0x1f36   : > { %v5848_v53 = vadd.f32 %v5846_v56, %v13936_v15  ;;  %v6045_v15 = vld [vmem:[#allocation23 + $0x40] sm:$0xff]  ;;  %v8762_v56 = vld [vmem:[%s14681_s4 + $0x130] sm:$0xff] }
0x1f37   : > { %v11117_v19 = vpack.c.bf16 %v6046_v57, %v6045_v15  ;;  %v11137_v16 = vpack.c.bf16 %v8763_v13, %v8762_v56  ;;  %v8770_v15 = vld [vmem:[%s14681_s4 + $0x170] sm:$0xff]  ;;  %v8771_v57 = vld [vmem:[%s14681_s4 + $0x178] sm:$0xff]  ;;  %v6249_v56 = vsel %vm1468_vm1, %v13848_v55, %v6241_v50 }
0x1f38   : > { %10230 = vmatprep.mubr.msk.f32.mxu0 %vm1468_vm1, %v5848_v53  ;;  %v8764_v53 = vld [vmem:[%s14681_s4 + $0x140] sm:$0xff] }
0x1f39   : > { %10231 = vmatmul.mubr.msk.f32.vlgmr.msra.gmra.mrb[44].mxu0 %vm1468_vm1, %v5849_v8  ;;  %11118 = vmatprep.subr.bf16.mxu1 %v11117_v19  ;;  %v8765_v8 = vld [vmem:[%s14681_s4 + $0x148] sm:$0xff] }
0x1f3a   : > { %11104 = vmatpush3.bf16.msra.mxu0 %v11101_v2  ;;  %11120 = vmatpush3.bf16.msra.mxu1 %v11117_v19  ;;  %v11153_v19 = vpack.c.bf16 %v8771_v57, %v8770_v15 }
0x1f3b   : > { %11106 = vmatprep.subr.bf16.mxu0 %v11105_v28  ;;  %11122 = vmatprep.subr.bf16.mxu1 %v11121_v39 }
0x1f3e   : > { %11108 = vmatpush3.bf16.msra.mxu0 %v11105_v28  ;;  %11124 = vmatpush3.bf16.msra.mxu1 %v11121_v39  ;;  %v11141_v28 = vpack.c.bf16 %v8765_v8, %v8764_v53  ;;  %v6247_v8 = vpop.permute.xlu1 %6246 }
0x1f3f   : > { %11110 = vmatprep.subr.bf16.mxu0 %v11109_v5  ;;  %11126 = vmatprep.subr.bf16.mxu1 %v11125_v1 }
0x1f42   : > { %11112 = vmatpush3.bf16.msra.mxu0 %v11109_v5  ;;  %v11145_v5 = vpack.c.bf16 %v8767_v21, %v8766_v14 }
0x1f43   : > { %11114 = vmatprep.subr.bf16.mxu0 %v11113_v24 }
0x1f46   : > { %11116 = vmatpush3.bf16.msra.mxu0 %v11113_v24  ;;  %v11149_v24 = vpack.c.bf16 %v8769_v36, %v8768_v38  ;;  %v6244_v38 = vpop.permute.xlu0 %6243 }
0x1f47   : > { %v6250_v57 = vsel %vm2686_vm2, %v6249_v56, %v6244_v38 }
0x200c   : > { %v10232_v33 = vpop.f32.mrb[44].mxu0 }
0x200d   : > { %v5941_v42 = vadd.f32 %v10232_v33, %v8739_v10  ;;  %v5935_v23 = vpop.f32.mrb[45].mxu0 }
0x200e   : > { %v5936_v6 = vadd.f32 %v8739_v10, %v5935_v23  ;;  %v8753_v10 = vld [vmem:[#allocation25 + $0x2] ss:$0 sm:$0xff] }
0x200f   : > { %v5945_v2 = vmax.f32 %v5941_v42, 0.0 }
0x2010   : > { %v5944_v41 = vmax.f32 %v5936_v6, 0.0 }
0x2012   : > { %10249 = vmatprep.mubr.msk.f32.mxu0 %vm2686_vm2, %v5944_v41 }
0x2013   : > { %10250 = vmatmul.mubr.msk.f32.vlgmr.msra.gmra.mrb[46].mxu0 %vm2686_vm2, %v5945_v2 }
0x2014   : > { %6576 = vmatprep.mubr.bf16.mxu0 %v13303_v44 }
0x20e6   : > { %v10251_v18 = vpop.f32.mrb[46].mxu0 }
0x20e7   : > { %v6035_v11 = vpop.f32.mrb[47].mxu0  ;;  %v14019_v61 = vadd.f32 %v10251_v18, %v8750_v0 }
0x20e8   : > { %v14017_v58 = vadd.f32 %v8750_v0, %v6035_v11 }
0x20ea   : > { %10260 = vmatprep.mubr.msk.f32.mxu1 %vm1468_vm1, %v14017_v58 }
0x20eb   : > { %10261 = vmatmul.mubr.msk.f32.vlgmr.msra.gmra.mrb[44].mxu1 %vm1468_vm1, %v14019_v61 }
0x20ec   : > { %11128 = vmatpush3.bf16.msra.mxu1 %v11125_v1 }
0x20ed   : > { %11130 = vmatprep.subr.bf16.mxu1 %v11129_v52 }
0x20f0   : > { %11132 = vmatpush3.bf16.msra.mxu1 %v11129_v52 }
0x20f1   : > { %11134 = vmatprep.subr.bf16.mxu1 %v11133_v62 }
0x20f4   : > { %11136 = vmatpush3.bf16.msra.mxu1 %v11133_v62 }
0x20f5   : > { %11138 = vmatprep.subr.bf16.mxu1 %v11137_v16 }
0x20f8   : > { %11140 = vmatpush3.bf16.msra.mxu1 %v11137_v16 }
0x20f9   : > { %11142 = vmatprep.subr.bf16.mxu1 %v11141_v28 }
0x20fc   : > { %11144 = vmatpush3.bf16.msra.mxu1 %v11141_v28 }
0x20fd   : > { %11146 = vmatprep.subr.bf16.mxu1 %v11145_v5 }
0x2100   : > { %11148 = vmatpush3.bf16.msra.mxu1 %v11145_v5 }
0x2101   : > { %11150 = vmatprep.subr.bf16.mxu1 %v11149_v24 }
0x2104   : > { %11152 = vmatpush3.bf16.msra.mxu1 %v11149_v24 }
0x2105   : > { %11154 = vmatprep.subr.bf16.mxu1 %v11153_v19 }
0x2108   : > { %11156 = vmatpush3.bf16.msra.mxu1 %v11153_v19 }
0x21be   : > { %v10262_v33 = vpop.f32.mrb[44].mxu1 }
0x21bf   : > { %v6135_v42 = vadd.f32 %v10262_v33, %v8753_v10  ;;  %v6129_v23 = vpop.f32.mrb[45].mxu1 }
0x21c0   : > { %v6130_v6 = vadd.f32 %v8753_v10, %v6129_v23 }
0x21c1   : > { %v6139_v2 = vmax.f32 %v6135_v42, 0.0  ;;  %v14061_v42 = vsel %vm3955_vm3, %v6250_v57, %v6247_v8 }
0x21c2   : > { %v6138_v41 = vmax.f32 %v6130_v6, 0.0 }
0x21c4   : > { %10295 = vmatprep.mubr.f32.mxu1 %v6138_v41 }
0x21c5   : > { %10296 = vmatmul.mubr.f32.vlgmr.msra.gmra.mrb[46].mxu1 %v6139_v2 }
0x21c6   : > { %6616 = vmatprep.mubr.bf16.mxu1 %v13307_v45 }
0x2298   : > { %v10297_v46 = vpop.f32.mrb[46].mxu1 }
0x2299   : > { %v6237_v39 = vadd.f32 %v10297_v46, %v8772_v7  ;;  %v6231_v48 = vpop.f32.mrb[47].mxu1 }
0x229a   : > { %v6232_v1 = vadd.f32 %v8772_v7, %v6231_v48 }
0x229b   : > { %v6303_v0 = vcombine.high %v6237_v39, %v6237_v39  ;;  %v6310_v18 = vrot.slane %v6237_v39, %v13107_v30 }
0x229c   : > { %v6254_v3 = vcombine.high %v6232_v1, %v6232_v1  ;;  %v6261_v63 = vrot.slane %v6232_v1, %v13107_v30 }
0x229d   : > { %v6317_v11 = vrot.slane %v6303_v0, %v13107_v30  ;;  %v6318_v52 = vcombine.high %v6310_v18, %v6310_v18  ;;  %v6326_v26 = vrot.slane %v6310_v18, %v13107_v30 }
0x229e   : > { %v6268_v43 = vrot.slane %v6254_v3, %v13107_v30  ;;  %v6269_v62 = vcombine.high %v6261_v63, %v6261_v63  ;;  %v6277_v5 = vrot.slane %v6261_v63, %v13107_v30 }
0x229f   : > { %v6319_v13 = vcombine.high %v6317_v11, %v6317_v11  ;;  %v14046_v16 = vrot.slane %v6317_v11, %v13107_v30  ;;  %v6340_v53 = vrot.slane %v6318_v52, %v13107_v30  ;;  %v6348_v28 = vcombine.high %v6326_v26, %v6326_v26 }
0x22a0   : > { %v6387_v14 = vrot.slane %v6326_v26, %v13114_v35  ;;  %v6270_v21 = vcombine.high %v6268_v43, %v6268_v43  ;;  %v6284_v19 = vrot.slane %v6268_v43, %v13107_v30  ;;  %v6291_v10 = vrot.slane %v6269_v62, %v13107_v30 }
0x22a1   : > { %v14052_v36 = vrot.slane %v6319_v13, %v13107_v30  ;;  %v6349_v24 = vcombine.high %v14046_v16, %v14046_v16  ;;  %v6350_v15 = vcombine.high %v6340_v53, %v6340_v53  ;;  %v6391_v23 = vrot.slane %v6340_v53, %v13114_v35 }
0x22a2   : > { %v6298_v33 = vrot.slane %v6270_v21, %v13107_v30  ;;  %v6395_v6 = vrot.slane %v6348_v28, %v13114_v35  ;;  %v6403_v41 = vrot.slane %v14046_v16, %v13114_v35  ;;  %v14068_v2 = vmul.f32 %v6387_v14, %v14061_v42 }
0x22a3   : > { %v6299_v7 = vcombine.high %v6277_v5, %v6277_v5  ;;  %v14073_v39 = vrot.slane %v6350_v15, %v13114_v35  ;;  %v14078_v50 = vrot.slane %v6349_v24, %v13114_v35  ;;  %v6300_v1 = vcombine.high %v6284_v19, %v6284_v19  ;;  %v14102_v24 = vld [vmem:[%s14684_s8 + $0x3] ss:$0 sm:$0xff] }
0x22a4   : > { %v6301_v0 = vcombine.high %v6291_v10, %v6291_v10  ;;  %v6302_v18 = vcombine.high %v6298_v33, %v6298_v33  ;;  %v6355_v3 = vrot.slane %v6277_v5, %v13114_v35  ;;  %v6359_v63 = vrot.slane %v6291_v10, %v13114_v35  ;;  %v14098_v5 = vld [vmem:[%s14684_s8 + $0x1] ss:$0 sm:$0xff]  ;;  %v14108_v10 = vld [vmem:[%s14684_s8] ss:$0 sm:$0xff] }
0x22a5   : > { %v6363_v11 = vrot.slane %v6299_v7, %v13114_v35  ;;  %v6371_v52 = vrot.slane %v6284_v19, %v13114_v35  ;;  %v6375_v26 = vrot.slane %v6298_v33, %v13114_v35  ;;  %v14086_v43 = vmul.f32 %v6391_v23, %v14061_v42  ;;  %v14113_v7 = vld [vmem:[%s14684_s8 + $0x2] ss:$0 sm:$0xff] }
0x22a6   : > { %v6367_v62 = vrot.slane %v6301_v0, %v13114_v35  ;;  %v6379_v56 = vrot.slane %v6300_v1, %v13114_v35  ;;  %v6432_v13 = vmul.f32 %v6355_v3, %v14061_v42  ;;  %v6383_v16 = vrot.slane %v6302_v18, %v13114_v35 }
0x22a7   : > { %v6433_v53 = vmul.f32 %v6359_v63, %v14061_v42  ;;  %v6434_v8 = vmul.f32 %v6363_v11, %v14061_v42  ;;  %v6436_v28 = vmul.f32 %v6371_v52, %v14061_v42  ;;  %v6437_v21 = vmul.f32 %v6375_v26, %v14061_v42 }
0x22a8   : > { %v6435_v14 = vmul.f32 %v6367_v62, %v14061_v42  ;;  %v6464_v38 = vmul.f32 %v14098_v5, %v6432_v13  ;;  %v6496_v15 = vmul.f32 %v14102_v24, %v6432_v13  ;;  %v6448_v33 = vmul.f32 %v14108_v10, %v6432_v13 }
0x22a9   : > { %v6465_v57 = vmul.f32 %v14098_v5, %v6433_v53  ;;  %v6497_v19 = vmul.f32 %v14102_v24, %v6433_v53  ;;  %v6449_v23 = vmul.f32 %v14108_v10, %v6433_v53  ;;  %v6480_v1 = vmul.f32 %v14113_v7, %v6432_v13 }
0x22aa   : > { %v6481_v0 = vmul.f32 %v14113_v7, %v6433_v53  ;;  %v6466_v18 = vmul.f32 %v14098_v5, %v6434_v8  ;;  %v6467_v3 = vmul.f32 %v14098_v5, %v6435_v14  ;;  %v6438_v63 = vmul.f32 %v6379_v56, %v14061_v42 }
0x22ab   : > { %v6520_v11 = vpack.c.bf16 %v6465_v57, %v6464_v38  ;;  %v6536_v52 = vpack.c.bf16 %v6497_v19, %v6496_v15  ;;  %v6512_v26 = vpack.c.bf16 %v6449_v23, %v6448_v33  ;;  %v6498_v48 = vmul.f32 %v14102_v24, %v6434_v8 }
0x22ac   : > { %v6528_v62 = vpack.c.bf16 %v6481_v0, %v6480_v1  ;;  %v6521_v46 = vpack.c.bf16 %v6467_v3, %v6466_v18  ;;  %v6499_v30 = vmul.f32 %v14102_v24, %v6435_v14  ;;  %v6450_v13 = vmul.f32 %v14108_v10, %v6434_v8 }
0x22ad   : > { %9272 = vmatprep.subr.bf16.mxu0 %v6520_v11  ;;  %9294 = vmatprep.subr.bf16.mxu1 %v6536_v52  ;;  %v6451_v53 = vmul.f32 %v14108_v10, %v6435_v14  ;;  %v6483_v44 = vmul.f32 %v14113_v7, %v6435_v14  ;;  %v6482_v38 = vmul.f32 %v14113_v7, %v6434_v8 }
0x22ae   : > { %9273 = vmatpush3.bf16.msra.mxu0 %v6512_v26  ;;  %9295 = vmatpush3.bf16.msra.mxu1 %v6528_v62  ;;  %v6537_v56 = vpack.c.bf16 %v6499_v30, %v6498_v48  ;;  %v6469_v15 = vmul.f32 %v14098_v5, %v6437_v21  ;;  %v14128_v57 = vmul.f32 %v6395_v6, %v14061_v42 }
0x22af   : > { %9274 = vmatprep.subr.bf16.mxu0 %v6521_v46  ;;  %v6468_v19 = vmul.f32 %v14098_v5, %v6436_v28  ;;  %v6500_v33 = vmul.f32 %v14102_v24, %v6436_v28  ;;  %v6501_v23 = vmul.f32 %v14102_v24, %v6437_v21  ;;  %v14134_v1 = vmul.f32 %v6403_v41, %v14061_v42 }
0x22b0   : > { %9296 = vmatprep.subr.bf16.mxu1 %v6537_v56  ;;  %v6513_v14 = vpack.c.bf16 %v6451_v53, %v6450_v13  ;;  %v6529_v30 = vpack.c.bf16 %v6483_v44, %v6482_v38  ;;  %v6453_v48 = vmul.f32 %v14108_v10, %v6437_v21  ;;  %v6485_v6 = vmul.f32 %v14113_v7, %v6437_v21 }
0x22b1   : > { %v6522_v8 = vpack.c.bf16 %v6469_v15, %v6468_v19  ;;  %v6538_v0 = vpack.c.bf16 %v6501_v23, %v6500_v33  ;;  %v6439_v46 = vmul.f32 %v6383_v16, %v14061_v42  ;;  %v6452_v18 = vmul.f32 %v14108_v10, %v6436_v28 }
0x22b2   : > { %9275 = vmatpush3.bf16.msra.mxu0 %v6513_v14  ;;  %9297 = vmatpush3.bf16.msra.mxu1 %v6529_v30  ;;  %v6484_v3 = vmul.f32 %v14113_v7, %v6436_v28  ;;  %v6470_v41 = vmul.f32 %v14098_v5, %v6438_v63  ;;  %v6502_v11 = vmul.f32 %v14102_v24, %v6438_v63 }
0x22b3   : > { %9276 = vmatprep.subr.bf16.mxu0 %v6522_v8  ;;  %9298 = vmatprep.subr.bf16.mxu1 %v6538_v0  ;;  %v6471_v44 = vmul.f32 %v14098_v5, %v6439_v46  ;;  %v6503_v52 = vmul.f32 %v14102_v24, %v6439_v46  ;;  %v6514_v26 = vpack.c.bf16 %v6453_v48, %v6452_v18 }
0x22b4   : > { %v6530_v21 = vpack.c.bf16 %v6485_v6, %v6484_v3  ;;  %v6455_v16 = vmul.f32 %v14108_v10, %v6439_v46  ;;  %v6487_v62 = vmul.f32 %v14113_v7, %v6439_v46  ;;  %v6443_v13 = vmul.f32 %v14073_v39, %v14061_v42 }
0x22b5   : > { %v6523_v28 = vpack.c.bf16 %v6471_v44, %v6470_v41  ;;  %v6539_v53 = vpack.c.bf16 %v6503_v52, %v6502_v11  ;;  %v6473_v56 = vmul.f32 %v14098_v5, %v14086_v43  ;;  %v6454_v38 = vmul.f32 %v14108_v10, %v6438_v63 }
0x22b6   : > { %9277 = vmatpush3.bf16.msra.mxu0 %v6514_v26  ;;  %9299 = vmatpush3.bf16.msra.mxu1 %v6530_v21  ;;  %v6486_v15 = vmul.f32 %v14113_v7, %v6438_v63  ;;  %v6505_v19 = vmul.f32 %v14102_v24, %v14086_v43  ;;  %v14691_v33 = vrot.slane %v14052_v36, %v13114_v35 }
0x22b7   : > { %9278 = vmatprep.subr.bf16.mxu0 %v6523_v28  ;;  %9300 = vmatprep.subr.bf16.mxu1 %v6539_v53  ;;  %v6472_v39 = vmul.f32 %v14098_v5, %v14068_v2  ;;  %v6504_v14 = vmul.f32 %v14102_v24, %v14068_v2  ;;  %v6515_v30 = vpack.c.bf16 %v6455_v16, %v6454_v38 }
0x22b8   : > { %v6445_v23 = vmul.f32 %v14691_v33, %v14061_v42  ;;  %v6531_v48 = vpack.c.bf16 %v6487_v62, %v6486_v15  ;;  %v6457_v63 = vmul.f32 %v14108_v10, %v14086_v43  ;;  %v6489_v8 = vmul.f32 %v14113_v7, %v14086_v43 }
0x22b9   : > { %v6524_v0 = vpack.c.bf16 %v6473_v56, %v6472_v39  ;;  %v6540_v6 = vpack.c.bf16 %v6505_v19, %v6504_v14  ;;  %v6475_v46 = vmul.f32 %v14098_v5, %v6443_v13  ;;  %v6507_v18 = vmul.f32 %v14102_v24, %v6443_v13 }
0x22ba   : > { %v14692_v3 = vcombine.high %v14052_v36, %v14052_v36  ;;  %9279 = vmatpush3.bf16.msra.mxu0 %v6515_v30  ;;  %9301 = vmatpush3.bf16.msra.mxu1 %v6531_v48  ;;  %v6456_v44 = vmul.f32 %v14108_v10, %v14068_v2  ;;  %v6488_v11 = vmul.f32 %v14113_v7, %v14068_v2 }
0x22bb   : > { %9280 = vmatprep.subr.bf16.mxu0 %v6524_v0  ;;  %9302 = vmatprep.subr.bf16.mxu1 %v6540_v6  ;;  %v6474_v43 = vmul.f32 %v14098_v5, %v14128_v57  ;;  %v6506_v52 = vmul.f32 %v14102_v24, %v14128_v57  ;;  %v6459_v26 = vmul.f32 %v14108_v10, %v6443_v13 }
0x22bc   : > { %v6415_v41 = vrot.slane %v14692_v3, %v13114_v35  ;;  %v6516_v36 = vpack.c.bf16 %v6457_v63, %v6456_v44  ;;  %v6532_v21 = vpack.c.bf16 %v6489_v8, %v6488_v11  ;;  %v6458_v16 = vmul.f32 %v14108_v10, %v14128_v57 }
0x22bd   : > { %v6491_v62 = vmul.f32 %v14113_v7, %v6443_v13  ;;  %v6525_v28 = vpack.c.bf16 %v6475_v46, %v6474_v43  ;;  %v6541_v53 = vpack.c.bf16 %v6507_v18, %v6506_v52  ;;  %v6477_v2 = vmul.f32 %v14098_v5, %v6445_v23  ;;  %v6625_v52 = vld [vmem:[#allocation28 + $0x40] sm:$0xff] }
0x22be   : > { %v6509_v56 = vmul.f32 %v14102_v24, %v6445_v23  ;;  %v6446_v38 = vmul.f32 %v14078_v50, %v14061_v42  ;;  %9281 = vmatpush3.bf16.msra.mxu0 %v6516_v36  ;;  %9303 = vmatpush3.bf16.msra.mxu1 %v6532_v21  ;;  %v6490_v15 = vmul.f32 %v14113_v7, %v14128_v57 }
0x22bf   : > { %9282 = vmatprep.subr.bf16.mxu0 %v6525_v28  ;;  %9304 = vmatprep.subr.bf16.mxu1 %v6541_v53  ;;  %v6517_v19 = vpack.c.bf16 %v6459_v26, %v6458_v16  ;;  %v6476_v13 = vmul.f32 %v14098_v5, %v14134_v1  ;;  %v6508_v33 = vmul.f32 %v14102_v24, %v14134_v1  ;;  %v6626_v26 = vld [vmem:[#allocation28 + $0x48] sm:$0xff]  ;;  %v6630_v16 = vld [vmem:[#allocation29 + $0x100] sm:$0xff]  ;;  %v6627_v53 = vld [vmem:[#allocation28 + $0x50] sm:$0xff] }
0x22c0   : > { %v6533_v39 = vpack.c.bf16 %v6491_v62, %v6490_v15  ;;  %v6461_v14 = vmul.f32 %v14108_v10, %v6445_v23  ;;  %v6493_v30 = vmul.f32 %v14113_v7, %v6445_v23  ;;  %v6447_v50 = vmul.f32 %v6415_v41, %v14061_v42  ;;  %v6631_v62 = vld [vmem:[#allocation29 + $0x108] sm:$0xff]  ;;  %v6632_v15 = vld [vmem:[#allocation29 + $0x110] sm:$0xff] }
0x22c1   : > { %v6526_v48 = vpack.c.bf16 %v6477_v2, %v6476_v13  ;;  %v6542_v63 = vpack.c.bf16 %v6509_v56, %v6508_v33  ;;  %v6460_v57 = vmul.f32 %v14108_v10, %v14134_v1  ;;  %v6492_v8 = vmul.f32 %v14113_v7, %v14134_v1  ;;  %v6628_v2 = vld [vmem:[#allocation28 + $0x58] sm:$0xff]  ;;  %v6634_v33 = vld [vmem:[#allocation29 + $0x120] sm:$0xff] }
0x22c2   : > { %9283 = vmatpush3.bf16.msra.mxu0 %v6517_v19  ;;  %9305 = vmatpush3.bf16.msra.mxu1 %v6533_v39  ;;  %v6479_v0 = vmul.f32 %v14098_v5, %v6447_v50  ;;  %v6511_v6 = vmul.f32 %v14102_v24, %v6447_v50  ;;  %v6478_v23 = vmul.f32 %v14098_v5, %v6446_v38  ;;  %v6635_v39 = vld [vmem:[#allocation29 + $0x128] sm:$0xff] }
0x22c3   : > { %9284 = vmatprep.subr.bf16.mxu0 %v6526_v48  ;;  %9306 = vmatprep.subr.bf16.mxu1 %v6542_v63  ;;  %v6510_v42 = vmul.f32 %v14102_v24, %v6446_v38  ;;  %v6518_v46 = vpack.c.bf16 %v6461_v14, %v6460_v57  ;;  %v6534_v18 = vpack.c.bf16 %v6493_v30, %v6492_v8  ;;  %v6636_v30 = vld [vmem:[#allocation29 + $0x130] sm:$0xff]  ;;  %v6638_v63 = vld [vmem:[#allocation29 + $0x140] sm:$0xff]  ;;  %v6639_v57 = vld [vmem:[#allocation29 + $0x148] sm:$0xff] }
0x22c4   : > { %v6463_v3 = vmul.f32 %v14108_v10, %v6447_v50  ;;  %v6495_v41 = vmul.f32 %v14113_v7, %v6447_v50  ;;  %v6527_v44 = vpack.c.bf16 %v6479_v0, %v6478_v23  ;;  %v6462_v1 = vmul.f32 %v14108_v10, %v6446_v38  ;;  %v6637_v50 = vld [vmem:[#allocation29 + $0x138] sm:$0xff]  ;;  %v6640_v0 = vld [vmem:[#allocation29 + $0x150] sm:$0xff] }
0x22c5   : > { %v6543_v11 = vpack.c.bf16 %v6511_v6, %v6510_v42  ;;  %v6494_v43 = vmul.f32 %v14113_v7, %v6446_v38  ;;  %v11182_v28 = vpack.c.bf16 %v6626_v26, %v6625_v52  ;;  %v11158_v56 = vpack.c.bf16 %v6631_v62, %v6630_v16  ;;  %v6633_v38 = vld [vmem:[#allocation29 + $0x118] sm:$0xff]  ;;  %v6642_v42 = vld [vmem:[#allocation29 + $0x160] sm:$0xff] }
0x22c6   : > { %9285 = vmatpush3.bf16.msra.mxu0 %v6518_v46  ;;  %9307 = vmatpush3.bf16.msra.mxu1 %v6534_v18  ;;  %v6519_v36 = vpack.c.bf16 %v6463_v3, %v6462_v1  ;;  %v11185_v19 = vpack.c.bf16 %v6628_v2, %v6627_v53  ;;  %v11161_v13 = vpack.c.bf16 %v6633_v38, %v6632_v15  ;;  %v6641_v6 = vld [vmem:[#allocation29 + $0x158] sm:$0xff]  ;;  %v6643_v46 = vld [vmem:[#allocation29 + $0x168] sm:$0xff]  ;;  %v6644_v18 = vld [vmem:[#allocation29 + $0x170] sm:$0xff] }
0x22c7   : > { %9286 = vmatprep.subr.bf16.mxu0 %v6527_v44  ;;  %9308 = vmatprep.subr.bf16.mxu1 %v6543_v11  ;;  %v6535_v21 = vpack.c.bf16 %v6495_v41, %v6494_v43  ;;  %v11164_v14 = vpack.c.bf16 %v6635_v39, %v6634_v33  ;;  %v11167_v48 = vpack.c.bf16 %v6637_v50, %v6636_v30  ;;  %v6645_v41 = vld [vmem:[#allocation29 + $0x178] sm:$0xff]  ;;  %v7030_v30 = vld [vmem:[#allocation23 + $0x68] sm:$0xff] }
0x22c8   : > { %v11170_v8 = vpack.c.bf16 %v6639_v57, %v6638_v63  ;;  %v11173_v23 = vpack.c.bf16 %v6641_v6, %v6640_v0  ;;  %v11176_v3 = vpack.c.bf16 %v6643_v46, %v6642_v42  ;;  %v11179_v44 = vpack.c.bf16 %v6645_v41, %v6644_v18  ;;  %v7031_v63 = vld [vmem:[#allocation23 + $0x70] sm:$0xff]  ;;  %v7032_v57 = vld [vmem:[#allocation23 + $0x78] sm:$0xff]  ;;  %v8780_v42 = vld [vmem:[%s14681_s4 + $0x180] sm:$0xff] }
0x22c9   : > { %v8781_v46 = vld [vmem:[%s14681_s4 + $0x188] sm:$0xff]  ;;  %v8783_v41 = vld [vmem:[%s14681_s4 + $0x198] sm:$0xff] }
0x22ca   : > { %9287 = vmatpush3.bf16.msra.mxu0 %v6519_v36  ;;  %9309 = vmatpush3.bf16.msra.mxu1 %v6535_v21  ;;  %v11267_v18 = vpack.c.bf16 %v8781_v46, %v8780_v42  ;;  %v8776_v46 = vld [vmem:[#allocation34 + $0x2] ss:$0 sm:$0xff] }
0x22cb   : > { %11181 = vmatprep.subr.bf16.mxu1 %v14689_v20  ;;  %11157 = vmatprep.subr.bf16.mxu0 %v14689_v20 }
0x22cd   : > { %6577 = vmatmul.mubr.bf16.vlgmr.msra.gmra.mrb[48].mxu0 %v13455_v49  ;;  %6617 = vmatmul.mubr.bf16.vlgmr.msra.gmra.mrb[48].mxu1 %v13459_v51 }
0x22ce   : > { %11183 = vmatpush3.bf16.msra.mxu1 %v11182_v28  ;;  %10341 = vmatprep.mubr.msk.f32.mxu1 %vm12512_vm0, %v14690_v54 }
0x22cf   : > { %11184 = vmatprep.subr.bf16.mxu1 %v14689_v20  ;;  %11159 = vmatpush3.bf16.msra.mxu0 %v11158_v56 }
0x22d0   : > { %11160 = vmatprep.subr.bf16.mxu0 %v14689_v20  ;;  %10330 = vmatprep.mubr.msk.f32.mxu0 %vm12512_vm0, %v14690_v54 }
0x22d2   : > { %11186 = vmatpush3.bf16.msra.mxu1 %v11185_v19  ;;  %v8774_v19 = vld [vmem:[#allocation31 + $0x2] ss:$0 sm:$0xff] }
0x22d3   : > { %11162 = vmatpush3.bf16.msra.mxu0 %v11161_v13  ;;  %11211 = vmatprep.subr.bf16.mxu1 %v14689_v20 }
0x22d4   : > { %11163 = vmatprep.subr.bf16.mxu0 %v14689_v20 }
0x22d5   : > { %10342 = vmatmul.mubr.msk.f32.vlgmr.msra.gmra.mrb[52].mxu1 %vm1468_vm1, %v13848_v55 }
0x22d6   : > { %11213 = vmatpush3.bf16.msra.mxu1 %v13478_v29  ;;  %10411 = vmatprep.mubr.msk.f32.mxu1 %vm12512_vm0, %v14690_v54 }
0x22d7   : > { %11165 = vmatpush3.bf16.msra.mxu0 %v11164_v14  ;;  %11214 = vmatprep.subr.bf16.mxu1 %v14689_v20  ;;  %v7029_v14 = vld [vmem:[#allocation23 + $0x60] sm:$0xff] }
0x22d8   : > { %11166 = vmatprep.subr.bf16.mxu0 %v14689_v20  ;;  %v11259_v50 = vpack.c.bf16 %v7030_v30, %v7029_v14  ;;  %v8777_v14 = vld [vmem:[#allocation25 + $0x3] ss:$0 sm:$0xff] }
0x22da   : > { %11216 = vmatpush3.bf16.msra.mxu1 %v13487_v59 }
0x22db   : > { %11168 = vmatpush3.bf16.msra.mxu0 %v11167_v48  ;;  %11217 = vmatprep.subr.bf16.mxu1 %v14689_v20 }
0x22dc   : > { %11169 = vmatprep.subr.bf16.mxu0 %v14689_v20 }
0x22de   : > { %11219 = vmatpush3.bf16.msra.mxu1 %v13491_v12 }
0x22df   : > { %11171 = vmatpush3.bf16.msra.mxu0 %v11170_v8  ;;  %11220 = vmatprep.subr.bf16.mxu1 %v14689_v20 }
0x22e0   : > { %11172 = vmatprep.subr.bf16.mxu0 %v14689_v20 }
0x22e2   : > { %11222 = vmatpush3.bf16.msra.mxu1 %v13495_v34 }
0x22e3   : > { %11174 = vmatpush3.bf16.msra.mxu0 %v11173_v23  ;;  %11223 = vmatprep.subr.bf16.mxu1 %v14689_v20  ;;  %v11263_v23 = vpack.c.bf16 %v7032_v57, %v7031_v63 }
0x22e4   : > { %11175 = vmatprep.subr.bf16.mxu0 %v14689_v20 }
0x22e6   : > { %11225 = vmatpush3.bf16.msra.mxu1 %v13499_v40 }
0x22e7   : > { %11226 = vmatprep.subr.bf16.mxu1 %v14689_v20  ;;  %11177 = vmatpush3.bf16.msra.mxu0 %v11176_v3  ;;  %v8782_v3 = vld [vmem:[%s14681_s4 + $0x190] sm:$0xff] }
0x22e8   : > { %11178 = vmatprep.subr.bf16.mxu0 %v14689_v20 }
0x22ea   : > { %11228 = vmatpush3.bf16.msra.mxu1 %v13503_v25 }
0x22eb   : > { %11229 = vmatprep.subr.bf16.mxu1 %v14689_v20  ;;  %11180 = vmatpush3.bf16.msra.mxu0 %v11179_v44  ;;  %v11271_v44 = vpack.c.bf16 %v8783_v41, %v8782_v3 }
0x22ec   : > { %11187 = vmatprep.subr.bf16.mxu0 %v14689_v20 }
0x22ee   : > { %11231 = vmatpush3.bf16.msra.mxu1 %v13507_v47 }
0x22ef   : > { %11232 = vmatprep.subr.bf16.mxu1 %v14689_v20 }
0x22f2   : > { %11234 = vmatpush3.bf16.msra.mxu1 %v13527_v31 }
0x22f3   : > { %11260 = vmatprep.subr.bf16.mxu1 %v11259_v50 }
0x23a0   : > { %v9288_v11 = vpop.f32.mrb[48].mxu0  ;;  %v9310_v1 = vpop.f32.mrb[48].mxu1 }
0x23a1   : > { %v9289_v43 = vpop.f32.mrb[49].mxu0  ;;  %v9311_v52 = vpop.f32.mrb[49].mxu1 }
0x23a2   : > { %v9290_v26 = vadd.f32 %v9289_v43, %v9288_v11  ;;  %v9312_v36 = vadd.f32 %v9311_v52, %v9310_v1  ;;  %v9291_v21 = vpop.f32.mrb[50].mxu0  ;;  %v9313_v16 = vpop.f32.mrb[50].mxu1  ;;  %v8784_v11 = vld [vmem:[%s14681_s4 + $0x1a0] sm:$0xff]  ;;  %v8785_v1 = vld [vmem:[%s14681_s4 + $0x1a8] sm:$0xff]  ;;  %v8787_v52 = vld [vmem:[%s14681_s4 + $0x1b8] sm:$0xff] }
0x23a3   : > { %v9292_v62 = vpop.f32.mrb[51].mxu0  ;;  %v9314_v28 = vpop.f32.mrb[51].mxu1  ;;  %v11275_v43 = vpack.c.bf16 %v8785_v1, %v8784_v11  ;;  %v8789_v21 = vld [vmem:[%s14681_s4 + $0x1c8] sm:$0xff] }
0x23a4   : > { %v6579_v53 = vadd.f32 1.0, %v9290_v26  ;;  %v8791_v62 = vld [vmem:[%s14681_s4 + $0x1d8] sm:$0xff]  ;;  %v8792_v28 = vld [vmem:[%s14681_s4 + $0x1e0] sm:$0xff] }
0x23a6   : > { %v6619_v2 = vadd.f32 %v9312_v36, %v6579_v53  ;;  %v8788_v36 = vld [vmem:[%s14681_s4 + $0x1c0] sm:$0xff] }
0x23a7   : > { %v11283_v16 = vpack.c.bf16 %v8789_v21, %v8788_v36 }
0x23a8   : > { %10331 = vmatmul.mubr.f32.vlgmr.msra.gmra.mrb[52].mxu0 %v6619_v2  ;;  %v6782_v56 = vpop.f32.mrb[52].mxu1  ;;  %v8793_v2 = vld [vmem:[%s14681_s4 + $0x1e8] sm:$0xff] }
0x23a9   : > { %v10343_v15 = vpop.f32.mrb[53].mxu1  ;;  %11189 = vmatpush3.bf16.msra.mxu0 %v13478_v29  ;;  %10376 = vmatprep.mubr.msk.f32.mxu0 %vm12512_vm0, %v14690_v54 }
0x23aa   : > { %11190 = vmatprep.subr.bf16.mxu0 %v14689_v20  ;;  %v8794_v15 = vld [vmem:[%s14681_s4 + $0x1f0] sm:$0xff] }
0x23ad   : > { %11192 = vmatpush3.bf16.msra.mxu0 %v13487_v59 }
0x23ae   : > { %11193 = vmatprep.subr.bf16.mxu0 %v14689_v20 }
0x23b1   : > { %11195 = vmatpush3.bf16.msra.mxu0 %v13491_v12 }
0x23b2   : > { %11196 = vmatprep.subr.bf16.mxu0 %v14689_v20 }
0x23b5   : > { %11198 = vmatpush3.bf16.msra.mxu0 %v13495_v34 }
0x23b6   : > { %11199 = vmatprep.subr.bf16.mxu0 %v14689_v20 }
0x23b9   : > { %11201 = vmatpush3.bf16.msra.mxu0 %v13499_v40 }
0x23ba   : > { %11202 = vmatprep.subr.bf16.mxu0 %v14689_v20 }
0x23bd   : > { %11204 = vmatpush3.bf16.msra.mxu0 %v13503_v25 }
0x23be   : > { %11205 = vmatprep.subr.bf16.mxu0 %v14689_v20 }
0x23c1   : > { %11207 = vmatpush3.bf16.msra.mxu0 %v13507_v47 }
0x23c2   : > { %11208 = vmatprep.subr.bf16.mxu0 %v14689_v20 }
0x23c5   : > { %11210 = vmatpush3.bf16.msra.mxu0 %v13527_v31 }
0x23c6   : > { %11235 = vmatprep.subr.bf16.mxu0 %v14689_v20 }
0x247b   : > { %v6712_v38 = vpop.f32.mrb[52].mxu0 }
0x247c   : > { %v6783_v13 = vadd.f32 %v6782_v56, %v6712_v38  ;;  %v10332_v33 = vpop.f32.mrb[53].mxu0  ;;  %v11291_v56 = vpack.c.bf16 %v8793_v2, %v8792_v28  ;;  %v8795_v38 = vld [vmem:[%s14681_s4 + $0x1f8] sm:$0xff] }
0x247e   : > { %v6794_v39 = vadd.f32 %v8774_v19, %v6783_v13  ;;  %v11295_v19 = vpack.c.bf16 %v8795_v38, %v8794_v15 }
0x2480   : > { %10377 = vmatmul.mubr.f32.vlgmr.msra.gmra.mrb[54].mxu0 %v6794_v39 }
0x2481   : > { %11237 = vmatpush3.bf16.msra.mxu0 %v13534_v22  ;;  %10446 = vmatprep.mubr.msk.f32.mxu0 %vm12512_vm0, %v14690_v54 }
0x2482   : > { %11238 = vmatprep.subr.bf16.mxu0 %v14689_v20 }
0x2485   : > { %11240 = vmatpush3.bf16.msra.mxu0 %v13538_v27 }
0x2486   : > { %11241 = vmatprep.subr.bf16.mxu0 %v14689_v20 }
0x2489   : > { %11243 = vmatpush3.bf16.msra.mxu0 %v13542_v4 }
0x248a   : > { %11244 = vmatprep.subr.bf16.mxu0 %v14689_v20 }
0x248d   : > { %11246 = vmatpush3.bf16.msra.mxu0 %v13568_v9 }
0x248e   : > { %11247 = vmatprep.subr.bf16.mxu0 %v14689_v20 }
0x2491   : > { %11249 = vmatpush3.bf16.msra.mxu0 %v13571_v17 }
0x2492   : > { %11250 = vmatprep.subr.bf16.mxu0 %v14689_v20 }
0x2495   : > { %11252 = vmatpush3.bf16.msra.mxu0 %v13578_v32 }
0x2496   : > { %11253 = vmatprep.subr.bf16.mxu0 %v14689_v20 }
0x2499   : > { %11255 = vmatpush3.bf16.msra.mxu0 %v13581_v37 }
0x249a   : > { %11256 = vmatprep.subr.bf16.mxu0 %v14689_v20 }
0x249d   : > { %11258 = vmatpush3.bf16.msra.mxu0 %v13585_v60 }
0x2553   : > { %v6861_v48 = vpop.f32.mrb[54].mxu0 }
0x2554   : > { %v14282_v8 = vsub.f32 %v6794_v39, %v6861_v48  ;;  %v10378_v0 = vpop.f32.mrb[55].mxu0 }
0x2556   : > { %v6866_v6 = vmul.f32 %v14282_v8, %v14282_v8 }
0x2558   : > { %10412 = vmatmul.mubr.f32.vlgmr.msra.gmra.mrb[54].mxu1 %v6866_v6 }
0x2559   : > { %11262 = vmatpush3.bf16.msra.mxu1 %v11259_v50  ;;  %10457 = vmatprep.mubr.msk.f32.mxu1 %vm1468_vm1, %v14017_v58  ;;  %v8786_v58 = vld [vmem:[%s14681_s4 + $0x1b0] sm:$0xff] }
0x255a   : > { %11264 = vmatprep.subr.bf16.mxu1 %v11263_v23  ;;  %v11279_v26 = vpack.c.bf16 %v8787_v52, %v8786_v58 }
0x255d   : > { %11266 = vmatpush3.bf16.msra.mxu1 %v11263_v23  ;;  %v8775_v23 = vld [vmem:[#allocation32 + $0x2] ss:$0 sm:$0xff] }
0x255e   : > { %11268 = vmatprep.subr.bf16.mxu1 %v11267_v18 }
0x2560   : > { %10458 = vmatmul.mubr.msk.f32.vlgmr.msra.gmra.mrb[56].mxu1 %vm1468_vm1, %v14019_v61  ;;  %v8790_v61 = vld [vmem:[%s14681_s4 + $0x1d0] sm:$0xff] }
0x2561   : > { %11270 = vmatpush3.bf16.msra.mxu1 %v11267_v18  ;;  %v11287_v53 = vpack.c.bf16 %v8791_v62, %v8790_v61 }
0x2562   : > { %11272 = vmatprep.subr.bf16.mxu1 %v11271_v44 }
0x2565   : > { %11274 = vmatpush3.bf16.msra.mxu1 %v11271_v44  ;;  %v14693_v44 = vld [vmem:[#allocation74_spill] sm:$0xff] }
0x2566   : > { %11276 = vmatprep.subr.bf16.mxu1 %v11275_v43 }
0x2569   : > { %11278 = vmatpush3.bf16.msra.mxu1 %v11275_v43 }
0x256a   : > { %11280 = vmatprep.subr.bf16.mxu1 %v11279_v26 }
0x256d   : > { %11282 = vmatpush3.bf16.msra.mxu1 %v11279_v26 }
0x256e   : > { %11284 = vmatprep.subr.bf16.mxu1 %v11283_v16 }
0x2571   : > { %11286 = vmatpush3.bf16.msra.mxu1 %v11283_v16  ;;  %v14694_v16 = vld [vmem:[#allocation73_spill] sm:$0xff] }
0x2572   : > { %11288 = vmatprep.subr.bf16.mxu1 %v11287_v53 }
0x2575   : > { %11290 = vmatpush3.bf16.msra.mxu1 %v11287_v53 }
0x2576   : > { %11292 = vmatprep.subr.bf16.mxu1 %v11291_v56 }
0x2579   : > { %11294 = vmatpush3.bf16.msra.mxu1 %v11291_v56 }
0x257a   : > { %11296 = vmatprep.subr.bf16.mxu1 %v11295_v19 }
0x257d   : > { %11298 = vmatpush3.bf16.msra.mxu1 %v11295_v19 }
0x262b   : > { %v6933_v13 = vpop.f32.mrb[54].mxu1 }
0x262c   : > { %v6934_v33 = vadd.f32 1e-05, %v6933_v13  ;;  %v10413_v39 = vpop.f32.mrb[55].mxu1 }
0x262e   : > { %11731 = vrsqrt.f32 %v6934_v33 }
0x2633   : > { %v10459_v30 = vpop.f32.mrb[56].mxu1 }
0x2634   : > { %v7113_v50 = vadd.f32 %v10459_v30, %v8777_v14  ;;  %v7107_v48 = vpop.f32.mrb[57].mxu1 }
0x2635   : > { %v7108_v63 = vadd.f32 %v8777_v14, %v7107_v48 }
0x2636   : > { %v7117_v6 = vmax.f32 %v7113_v50, 0.0 }
0x2637   : > { %v7116_v57 = vmax.f32 %v7108_v63, 0.0 }
0x2638   : > { %v11732_v0 = vpop.eup %11731 }
0x2639   : > { %10492 = vmatprep.mubr.f32.mxu1 %v7116_v57  ;;  %v6938_v42 = vmul.f32 %v11732_v0, %v14282_v8 }
0x263a   : > { %10493 = vmatmul.mubr.f32.vlgmr.msra.gmra.mrb[58].mxu1 %v7117_v6 }
0x263b   : > { %v6947_v18 = vmul.f32 %v8775_v23, %v6938_v42  ;;  %7595 = vmatprep.mubr.bf16.mxu1 %v13307_v45  ;;  %v8796_v45 = vld [vmem:[#allocation26 + $0x3] ss:$0 sm:$0xff] }
0x263d   : > { %v6956_v3 = vadd.f32 %v8776_v46, %v6947_v18 }
0x263f   : > { %v6957_v41 = vmax.f32 %v6956_v3, 0.0 }
0x2641   : > { %10447 = vmatmul.mubr.f32.vlgmr.msra.gmra.mrb[56].mxu0 %v6957_v41 }
0x2642   : > { %7555 = vmatprep.mubr.bf16.mxu0 %v14693_v44 }
0x270d   : > { %v10494_v11 = vpop.f32.mrb[58].mxu1 }
0x270e   : > { %v7209_v1 = vpop.f32.mrb[59].mxu1  ;;  %v7215_v8 = vadd.f32 %v10494_v11, %v8796_v45 }
0x270f   : > { %v7210_v26 = vadd.f32 %v8796_v45, %v7209_v1 }
0x2710   : > { %v7282_v36 = vcombine.high %v7215_v8, %v7215_v8  ;;  %v7289_v61 = vrot.slane %v7215_v8, %v14694_v16 }
0x2711   : > { %v7233_v21 = vcombine.high %v7210_v26, %v7210_v26 }
0x2712   : > { %v7296_v62 = vrot.slane %v7282_v36, %v14694_v16  ;;  %v7297_v53 = vcombine.high %v7289_v61, %v7289_v61  ;;  %v14323_v15 = vrot.slane %v7289_v61, %v14694_v16 }
0x2713   : > { %v7247_v28 = vrot.slane %v7233_v21, %v14694_v16 }
0x2714   : > { %v7024_v43 = vpop.f32.mrb[56].mxu0  ;;  %v7298_v2 = vcombine.high %v7296_v62, %v7296_v62  ;;  %v14326_v19 = vrot.slane %v7296_v62, %v14694_v16  ;;  %v14329_v13 = vrot.slane %v7297_v53, %v14694_v16  ;;  %v7327_v30 = vcombine.high %v14323_v15, %v14323_v15 }
0x2715   : > { %v10448_v58 = vpop.f32.mrb[57].mxu0  ;;  %v14310_v52 = vadd.f32 %v7024_v43, %v13848_v55  ;;  %v7240_v55 = vrot.slane %v7210_v26, %v14694_v16  ;;  %v7249_v38 = vcombine.high %v7247_v28, %v7247_v28  ;;  %v7263_v50 = vrot.slane %v7247_v28, %v14694_v16 }
0x2716   : > { %v14332_v33 = vrot.slane %v7298_v2, %v14694_v16  ;;  %v7328_v63 = vcombine.high %v14326_v19, %v14326_v19  ;;  %v7329_v57 = vcombine.high %v14329_v13, %v14329_v13  ;;  %v7366_v23 = vrot.slane %v14323_v15, %v13114_v35 }
0x2717   : > { %7225 = vrot.lane.b32.xlu0 %v14310_v52, %s12518_s5  ;;  %7219 = vrot.lane.b32.xlu1 %v14310_v52, %s12517_s9  ;;  %v7248_v56 = vcombine.high %v7240_v55, %v7240_v55  ;;  %v7256_v39 = vrot.slane %v7240_v55, %v14694_v16  ;;  %v7277_v48 = vrot.slane %v7249_v38, %v14694_v16 }
0x2718   : > { %v7330_v0 = vcombine.high %v14332_v33, %v14332_v33  ;;  %v7370_v18 = vrot.slane %v14329_v13, %v13114_v35  ;;  %v14351_v3 = vrot.slane %v7327_v30, %v13114_v35  ;;  %v7279_v41 = vcombine.high %v7263_v50, %v7263_v50 }
0x2719   : > { %v7270_v14 = vrot.slane %v7248_v56, %v14694_v16  ;;  %v7278_v42 = vcombine.high %v7256_v39, %v7256_v39  ;;  %v7281_v44 = vcombine.high %v7277_v48, %v7277_v48  ;;  %v14354_v11 = vrot.slane %v7329_v57, %v13114_v35 }
0x271a   : > { %v7382_v1 = vrot.slane %v14326_v19, %v13114_v35  ;;  %v14361_v58 = vrot.slane %v7328_v63, %v13114_v35  ;;  %v14364_v45 = vrot.slane %v7330_v0, %v13114_v35  ;;  %v7334_v8 = vrot.slane %v7256_v39, %v13114_v35 }
0x271b   : > { %7222 = vrot.lane.b32.xlu1 %v14310_v52, %s12516_s16  ;;  %v7280_v46 = vcombine.high %v7270_v14, %v7270_v14  ;;  %v7338_v26 = vrot.slane %v7270_v14, %v13114_v35  ;;  %v7342_v16 = vrot.slane %v7278_v42, %v13114_v35  ;;  %v7350_v62 = vrot.slane %v7263_v50, %v13114_v35 }
0x271c   : > { %v7354_v53 = vrot.slane %v7277_v48, %v13114_v35  ;;  %v7358_v2 = vrot.slane %v7279_v41, %v13114_v35  ;;  %v7362_v56 = vrot.slane %v7281_v44, %v13114_v35 }
0x271d   : > { %v7346_v61 = vrot.slane %v7280_v46, %v13114_v35 }
0x2789   : > { %v7220_v6 = vpop.permute.xlu1 %7219  ;;  %v7226_v55 = vpop.permute.xlu0 %7225 }
0x278a   : > { %v7228_v36 = vsel %vm1468_vm1, %v14310_v52, %v7220_v6 }
0x278d   : > { %v7223_v21 = vpop.permute.xlu1 %7222 }
0x278e   : > { %v7229_v28 = vsel %vm2686_vm2, %v7228_v36, %v7223_v21 }
0x278f   : > { %v14378_v38 = vsel %vm3955_vm3, %v7229_v28, %v7226_v55 }
0x2790   : > { %v7411_v39 = vmul.f32 %v7334_v8, %v14378_v38  ;;  %v7412_v14 = vmul.f32 %v7338_v26, %v14378_v38  ;;  %v7413_v30 = vmul.f32 %v7342_v16, %v14378_v38  ;;  %v7414_v50 = vmul.f32 %v7346_v61, %v14378_v38 }
0x2791   : > { %v7415_v63 = vmul.f32 %v7350_v62, %v14378_v38  ;;  %v7416_v57 = vmul.f32 %v7354_v53, %v14378_v38  ;;  %v7417_v48 = vmul.f32 %v7358_v2, %v14378_v38  ;;  %v7418_v0 = vmul.f32 %v7362_v56, %v14378_v38 }
0x2792   : > { %v7443_v6 = vmul.f32 %v14098_v5, %v7411_v39  ;;  %v7444_v42 = vmul.f32 %v14098_v5, %v7412_v14  ;;  %v7475_v46 = vmul.f32 %v14102_v24, %v7411_v39  ;;  %v7476_v41 = vmul.f32 %v14102_v24, %v7412_v14 }
0x2793   : > { %v7427_v44 = vmul.f32 %v14108_v10, %v7411_v39  ;;  %v7428_v8 = vmul.f32 %v14108_v10, %v7412_v14  ;;  %v7459_v26 = vmul.f32 %v14113_v7, %v7411_v39  ;;  %v7460_v36 = vmul.f32 %v14113_v7, %v7412_v14 }
0x2794   : > { %v7499_v21 = vpack.c.bf16 %v7444_v42, %v7443_v6  ;;  %v7515_v16 = vpack.c.bf16 %v7476_v41, %v7475_v46  ;;  %v7445_v61 = vmul.f32 %v14098_v5, %v7413_v30  ;;  %v7446_v62 = vmul.f32 %v14098_v5, %v7414_v50 }
0x2795   : > { %v7491_v55 = vpack.c.bf16 %v7428_v8, %v7427_v44  ;;  %v7507_v28 = vpack.c.bf16 %v7460_v36, %v7459_v26  ;;  %v7477_v53 = vmul.f32 %v14102_v24, %v7413_v30  ;;  %v7478_v2 = vmul.f32 %v14102_v24, %v7414_v50 }
0x2796   : > { %9413 = vmatprep.subr.bf16.mxu0 %v7499_v21  ;;  %9435 = vmatprep.subr.bf16.mxu1 %v7515_v16  ;;  %v7500_v56 = vpack.c.bf16 %v7446_v62, %v7445_v61  ;;  %v7429_v43 = vmul.f32 %v14108_v10, %v7413_v30  ;;  %v7430_v39 = vmul.f32 %v14108_v10, %v7414_v50 }
0x2797   : > { %9414 = vmatpush3.bf16.msra.mxu0 %v7491_v55  ;;  %9436 = vmatpush3.bf16.msra.mxu1 %v7507_v28  ;;  %v7516_v14 = vpack.c.bf16 %v7478_v2, %v7477_v53  ;;  %v7461_v6 = vmul.f32 %v14113_v7, %v7413_v30  ;;  %v7462_v42 = vmul.f32 %v14113_v7, %v7414_v50 }
0x2798   : > { %9415 = vmatprep.subr.bf16.mxu0 %v7500_v56  ;;  %v7492_v46 = vpack.c.bf16 %v7430_v39, %v7429_v43  ;;  %v7447_v41 = vmul.f32 %v14098_v5, %v7415_v63  ;;  %v7448_v44 = vmul.f32 %v14098_v5, %v7416_v57  ;;  %v7479_v8 = vmul.f32 %v14102_v24, %v7415_v63 }
0x2799   : > { %9437 = vmatprep.subr.bf16.mxu1 %v7516_v14  ;;  %v7508_v26 = vpack.c.bf16 %v7462_v42, %v7461_v6  ;;  %v7480_v36 = vmul.f32 %v14102_v24, %v7416_v57  ;;  %v7431_v21 = vmul.f32 %v14108_v10, %v7415_v63  ;;  %v7432_v16 = vmul.f32 %v14108_v10, %v7416_v57 }
0x279a   : > { %v7501_v61 = vpack.c.bf16 %v7448_v44, %v7447_v41  ;;  %v7463_v30 = vmul.f32 %v14113_v7, %v7415_v63  ;;  %v7464_v50 = vmul.f32 %v14113_v7, %v7416_v57  ;;  %v7449_v43 = vmul.f32 %v14098_v5, %v7417_v48 }
0x279b   : > { %9416 = vmatpush3.bf16.msra.mxu0 %v7492_v46  ;;  %9438 = vmatpush3.bf16.msra.mxu1 %v7508_v26  ;;  %v7517_v62 = vpack.c.bf16 %v7480_v36, %v7479_v8  ;;  %v7493_v55 = vpack.c.bf16 %v7432_v16, %v7431_v21  ;;  %v7450_v28 = vmul.f32 %v14098_v5, %v7418_v0 }
0x279c   : > { %9417 = vmatprep.subr.bf16.mxu0 %v7501_v61  ;;  %v7509_v53 = vpack.c.bf16 %v7464_v50, %v7463_v30  ;;  %v7481_v2 = vmul.f32 %v14102_v24, %v7417_v48  ;;  %v7482_v56 = vmul.f32 %v14102_v24, %v7418_v0  ;;  %v7433_v39 = vmul.f32 %v14108_v10, %v7417_v48 }
0x279d   : > { %9439 = vmatprep.subr.bf16.mxu1 %v7517_v62  ;;  %v7502_v63 = vpack.c.bf16 %v7450_v28, %v7449_v43  ;;  %v7434_v57 = vmul.f32 %v14108_v10, %v7418_v0  ;;  %v7465_v14 = vmul.f32 %v14113_v7, %v7417_v48  ;;  %v7466_v6 = vmul.f32 %v14113_v7, %v7418_v0 }
0x279e   : > { %v7518_v42 = vpack.c.bf16 %v7482_v56, %v7481_v2  ;;  %v7419_v46 = vmul.f32 %v7366_v23, %v14378_v38  ;;  %v7420_v41 = vmul.f32 %v7370_v18, %v14378_v38  ;;  %v7421_v44 = vmul.f32 %v14351_v3, %v14378_v38 }
0x279f   : > { %9418 = vmatpush3.bf16.msra.mxu0 %v7493_v55  ;;  %9440 = vmatpush3.bf16.msra.mxu1 %v7509_v53  ;;  %v7494_v8 = vpack.c.bf16 %v7434_v57, %v7433_v39  ;;  %v7510_v48 = vpack.c.bf16 %v7466_v6, %v7465_v14  ;;  %v7422_v0 = vmul.f32 %v14354_v11, %v14378_v38 }
0x27a0   : > { %9419 = vmatprep.subr.bf16.mxu0 %v7502_v63  ;;  %9441 = vmatprep.subr.bf16.mxu1 %v7518_v42  ;;  %v7451_v15 = vmul.f32 %v14098_v5, %v7419_v46  ;;  %v7452_v23 = vmul.f32 %v14098_v5, %v7420_v41  ;;  %v7483_v26 = vmul.f32 %v14102_v24, %v7419_v46 }
0x27a1   : > { %v7484_v13 = vmul.f32 %v14102_v24, %v7420_v41  ;;  %v7435_v18 = vmul.f32 %v14108_v10, %v7419_v46  ;;  %v7436_v3 = vmul.f32 %v14108_v10, %v7420_v41  ;;  %v7467_v36 = vmul.f32 %v14113_v7, %v7419_v46 }
0x27a2   : > { %v7503_v21 = vpack.c.bf16 %v7452_v23, %v7451_v15  ;;  %v7468_v16 = vmul.f32 %v14113_v7, %v7420_v41  ;;  %v7453_v11 = vmul.f32 %v14098_v5, %v7421_v44  ;;  %v7454_v61 = vmul.f32 %v14098_v5, %v7422_v0 }
0x27a3   : > { %9420 = vmatpush3.bf16.msra.mxu0 %v7494_v8  ;;  %9442 = vmatpush3.bf16.msra.mxu1 %v7510_v48  ;;  %v7519_v30 = vpack.c.bf16 %v7484_v13, %v7483_v26  ;;  %v7495_v50 = vpack.c.bf16 %v7436_v3, %v7435_v18  ;;  %v7485_v43 = vmul.f32 %v14102_v24, %v7421_v44  ;;  %v11749_v48 = vld [vmem:[%s14684_s8 + $0x2] ss:$0 sm:$0xff] }
0x27a4   : > { %9421 = vmatprep.subr.bf16.mxu0 %v7503_v21  ;;  %v7511_v62 = vpack.c.bf16 %v7468_v16, %v7467_v36  ;;  %v7504_v55 = vpack.c.bf16 %v7454_v61, %v7453_v11  ;;  %v7486_v28 = vmul.f32 %v14102_v24, %v7422_v0  ;;  %v7437_v53 = vmul.f32 %v14108_v10, %v7421_v44 }
0x27a5   : > { %9443 = vmatprep.subr.bf16.mxu1 %v7519_v30  ;;  %v7438_v2 = vmul.f32 %v14108_v10, %v7422_v0  ;;  %v7469_v56 = vmul.f32 %v14113_v7, %v7421_v44  ;;  %v7470_v39 = vmul.f32 %v14113_v7, %v7422_v0  ;;  %v7423_v63 = vmul.f32 %v7382_v1, %v14378_v38  ;;  %v11746_v1 = vld [vmem:[%s14684_s8 + $0x1] ss:$0 sm:$0xff]  ;;  %v11748_v44 = vld [vmem:[%s14684_s8] ss:$0 sm:$0xff] }
0x27a6   : > { %v7520_v57 = vpack.c.bf16 %v7486_v28, %v7485_v43  ;;  %v14695_v24 = vrot.slane %v14332_v33, %v13114_v35  ;;  %v7425_v10 = vmul.f32 %v14361_v58, %v14378_v38  ;;  %v7426_v6 = vmul.f32 %v14364_v45, %v14378_v38  ;;  %v11747_v35 = vld [vmem:[%s14684_s8 + $0x3] ss:$0 sm:$0xff]  ;;  %v7605_v43 = vld [vmem:[#allocation28 + $0x68] sm:$0xff] }
0x27a7   : > { %9422 = vmatpush3.bf16.msra.mxu0 %v7495_v50  ;;  %9444 = vmatpush3.bf16.msra.mxu1 %v7511_v62  ;;  %v7496_v7 = vpack.c.bf16 %v7438_v2, %v7437_v53  ;;  %v7512_v42 = vpack.c.bf16 %v7470_v39, %v7469_v56  ;;  %v7455_v19 = vmul.f32 %v14098_v5, %v7423_v63  ;;  %v7604_v50 = vld [vmem:[#allocation28 + $0x60] sm:$0xff]  ;;  %v7610_v53 = vld [vmem:[#allocation29 + $0x188] sm:$0xff]  ;;  %v7606_v56 = vld [vmem:[#allocation28 + $0x70] sm:$0xff] }
0x27a8   : > { %v7424_v14 = vmul.f32 %v14695_v24, %v14378_v38  ;;  %9423 = vmatprep.subr.bf16.mxu0 %v7504_v55  ;;  %9445 = vmatprep.subr.bf16.mxu1 %v7520_v57  ;;  %v7487_v33 = vmul.f32 %v11747_v35, %v7423_v63  ;;  %v7439_v8 = vmul.f32 %v11748_v44, %v7423_v63  ;;  %v7609_v28 = vld [vmem:[#allocation29 + $0x180] sm:$0xff]  ;;  %v7607_v39 = vld [vmem:[#allocation28 + $0x78] sm:$0xff]  ;;  %v7611_v57 = vld [vmem:[#allocation29 + $0x190] sm:$0xff] }
0x27a9   : > { %v7471_v0 = vmul.f32 %v11749_v48, %v7423_v63  ;;  %v7457_v23 = vmul.f32 %v11746_v1, %v7425_v10  ;;  %v7458_v26 = vmul.f32 %v11746_v1, %v7426_v6  ;;  %v7489_v5 = vmul.f32 %v11747_v35, %v7425_v10  ;;  %v7612_v24 = vld [vmem:[#allocation29 + $0x198] sm:$0xff] }
0x27aa   : > { %v7456_v46 = vmul.f32 %v11746_v1, %v7424_v14  ;;  %v7488_v41 = vmul.f32 %v11747_v35, %v7424_v14  ;;  %v7440_v58 = vmul.f32 %v11748_v44, %v7424_v14  ;;  %v7472_v45 = vmul.f32 %v11749_v48, %v7424_v14  ;;  %v7617_v1 = vld [vmem:[#allocation29 + $0x1c0] sm:$0xff] }
0x27ab   : > { %9424 = vmatpush3.bf16.msra.mxu0 %v7496_v7  ;;  %9446 = vmatpush3.bf16.msra.mxu1 %v7512_v42  ;;  %v7490_v3 = vmul.f32 %v11747_v35, %v7426_v6  ;;  %v7441_v36 = vmul.f32 %v11748_v44, %v7425_v10  ;;  %v7442_v21 = vmul.f32 %v11748_v44, %v7426_v6  ;;  %v7614_v7 = vld [vmem:[#allocation29 + $0x1a8] sm:$0xff]  ;;  %v7616_v42 = vld [vmem:[#allocation29 + $0x1b8] sm:$0xff] }
0x27ac   : > { %v7505_v38 = vpack.c.bf16 %v7456_v46, %v7455_v19  ;;  %v7521_v15 = vpack.c.bf16 %v7488_v41, %v7487_v33  ;;  %v7497_v13 = vpack.c.bf16 %v7440_v58, %v7439_v8  ;;  %v7513_v18 = vpack.c.bf16 %v7472_v45, %v7471_v0  ;;  %v7618_v46 = vld [vmem:[#allocation29 + $0x1c8] sm:$0xff]  ;;  %v7619_v33 = vld [vmem:[#allocation29 + $0x1d0] sm:$0xff]  ;;  %v7620_v41 = vld [vmem:[#allocation29 + $0x1d8] sm:$0xff] }
0x27ad   : > { %v7473_v16 = vmul.f32 %v11749_v48, %v7425_v10  ;;  %v7474_v11 = vmul.f32 %v11749_v48, %v7426_v6  ;;  %v7506_v61 = vpack.c.bf16 %v7458_v26, %v7457_v23  ;;  %v7522_v30 = vpack.c.bf16 %v7490_v3, %v7489_v5  ;;  %v7613_v6 = vld [vmem:[#allocation29 + $0x1a0] sm:$0xff]  ;;  %v7622_v58 = vld [vmem:[#allocation29 + $0x1e8] sm:$0xff]  ;;  %v7623_v48 = vld [vmem:[#allocation29 + $0x1f0] sm:$0xff] }
0x27ae   : > { %9425 = vmatprep.subr.bf16.mxu0 %v7505_v38  ;;  %9447 = vmatprep.subr.bf16.mxu1 %v7521_v15  ;;  %v7498_v62 = vpack.c.bf16 %v7442_v21, %v7441_v36  ;;  %v11324_v2 = vpack.c.bf16 %v7605_v43, %v7604_v50  ;;  %v11300_v63 = vpack.c.bf16 %v7610_v53, %v7609_v28  ;;  %v7621_v8 = vld [vmem:[#allocation29 + $0x1e0] sm:$0xff]  ;;  %v7624_v45 = vld [vmem:[#allocation29 + $0x1f8] sm:$0xff]  ;;  %v8084_v28 = vld [vmem:[#allocation35] sm:$0xff] }
0x27af   : > { %9426 = vmatpush3.bf16.msra.mxu0 %v7497_v13  ;;  %9448 = vmatpush3.bf16.msra.mxu1 %v7513_v18  ;;  %v7514_v55 = vpack.c.bf16 %v7474_v11, %v7473_v16  ;;  %v11327_v14 = vpack.c.bf16 %v7607_v39, %v7606_v56  ;;  %v11303_v10 = vpack.c.bf16 %v7612_v24, %v7611_v57  ;;  %v8085_v53 = vld [vmem:[#allocation35 + $0x8] sm:$0xff]  ;;  %v8086_v24 = vld [vmem:[#allocation35 + $0x10] sm:$0xff] }
0x27b0   : > { %9427 = vmatprep.subr.bf16.mxu0 %v7506_v61  ;;  %9449 = vmatprep.subr.bf16.mxu1 %v7522_v30  ;;  %v11312_v35 = vpack.c.bf16 %v7618_v46, %v7617_v1  ;;  %v11315_v44 = vpack.c.bf16 %v7620_v41, %v7619_v33  ;;  %v11318_v0 = vpack.c.bf16 %v7622_v58, %v7621_v8  ;;  %v8802_v46 = vld [vmem:[#allocation37] ss:$0 sm:$0xff]  ;;  %v8804_v8 = vld [vmem:[#allocation2] ss:$0 sm:$0xff] }
0x27b1   : > { %v11321_v38 = vpack.c.bf16 %v7624_v45, %v7623_v48  ;;  %v11402_v57 = vpack.c.bf16 %v8085_v53, %v8084_v28 }
0x27b3   : > { %9428 = vmatpush3.bf16.msra.mxu0 %v7498_v62  ;;  %9450 = vmatpush3.bf16.msra.mxu1 %v7514_v55 }
0x27b4   : > { %11323 = vmatprep.subr.bf16.mxu1 %v14689_v20  ;;  %11299 = vmatprep.subr.bf16.mxu0 %v14689_v20 }
0x27b6   : > { %7556 = vmatmul.mubr.bf16.vlgmr.msra.gmra.mrb[60].mxu0 %v13455_v49  ;;  %7596 = vmatmul.mubr.bf16.vlgmr.msra.gmra.mrb[60].mxu1 %v13459_v51  ;;  %v11306_v49 = vpack.c.bf16 %v7614_v7, %v7613_v6  ;;  %v7615_v51 = vld [vmem:[#allocation29 + $0x1b0] sm:$0xff]  ;;  %v8170_v6 = vld [vmem:[%s12687_s12 + $0x8] sm:$0xff] }
0x27b7   : > { %11325 = vmatpush3.bf16.msra.mxu1 %v11324_v2  ;;  %10538 = vmatprep.mubr.msk.f32.mxu1 %vm12512_vm0, %v14690_v54  ;;  %v11309_v19 = vpack.c.bf16 %v7616_v42, %v7615_v51  ;;  %v8171_v42 = vld [vmem:[%s12687_s12 + $0x10] sm:$0xff] }
0x27b8   : > { %11326 = vmatprep.subr.bf16.mxu1 %v14689_v20  ;;  %11301 = vmatpush3.bf16.msra.mxu0 %v11300_v63  ;;  %v8009_v63 = vld [vmem:[%s1407_s7] sm:$0xf] }
0x27b9   : > { %11302 = vmatprep.subr.bf16.mxu0 %v14689_v20  ;;  %10527 = vmatprep.mubr.msk.f32.mxu0 %vm12512_vm0, %v14690_v54 }
0x27bb   : > { %11328 = vmatpush3.bf16.msra.mxu1 %v11327_v14  ;;  %v8087_v14 = vld [vmem:[#allocation35 + $0x18] sm:$0xff] }
0x27bc   : > { %11304 = vmatpush3.bf16.msra.mxu0 %v11303_v10  ;;  %11329 = vmatprep.subr.bf16.mxu1 %v14689_v20  ;;  %v11405_v10 = vpack.c.bf16 %v8087_v14, %v8086_v24 }
0x27bd   : > { %11305 = vmatprep.subr.bf16.mxu0 %v14689_v20 }
0x27be   : > { %10539 = vmatmul.mubr.msk.f32.vlgmr.msra.gmra.mrb[64].mxu1 %vm1468_vm1, %v14310_v52 }
0x27bf   : > { %11331 = vmatpush3.bf16.msra.mxu1 %v13478_v29  ;;  %10573 = vmatprep.mubr.msk.f32.mxu1 %vm12512_vm0, %v14690_v54 }
0x27c0   : > { %11307 = vmatpush3.bf16.msra.mxu0 %v11306_v49  ;;  %11332 = vmatprep.subr.bf16.mxu1 %v14689_v20 }
0x27c1   : > { %11308 = vmatprep.subr.bf16.mxu0 %v14689_v20 }
0x27c3   : > { %11334 = vmatpush3.bf16.msra.mxu1 %v13487_v59 }
0x27c4   : > { %11310 = vmatpush3.bf16.msra.mxu0 %v11309_v19  ;;  %11335 = vmatprep.subr.bf16.mxu1 %v14689_v20  ;;  %v8172_v19 = vld [vmem:[%s12687_s12 + $0x18] sm:$0xff] }
0x27c5   : > { %11311 = vmatprep.subr.bf16.mxu0 %v14689_v20  ;;  %v11411_v1 = vpack.c.bf16 %v8172_v19, %v8171_v42 }
0x27c7   : > { %11337 = vmatpush3.bf16.msra.mxu1 %v13491_v12 }
0x27c8   : > { %11313 = vmatpush3.bf16.msra.mxu0 %v11312_v35  ;;  %11338 = vmatprep.subr.bf16.mxu1 %v14689_v20 }
0x27c9   : > { %11314 = vmatprep.subr.bf16.mxu0 %v14689_v20 }
0x27cb   : > { %11340 = vmatpush3.bf16.msra.mxu1 %v13495_v34 }
0x27cc   : > { %11316 = vmatpush3.bf16.msra.mxu0 %v11315_v44  ;;  %11341 = vmatprep.subr.bf16.mxu1 %v14689_v20 }
0x27cd   : > { %11317 = vmatprep.subr.bf16.mxu0 %v14689_v20 }
0x27cf   : > { %11343 = vmatpush3.bf16.msra.mxu1 %v13499_v40 }
0x27d0   : > { %11344 = vmatprep.subr.bf16.mxu1 %v14689_v20  ;;  %11319 = vmatpush3.bf16.msra.mxu0 %v11318_v0 }
0x27d1   : > { %11320 = vmatprep.subr.bf16.mxu0 %v14689_v20 }
0x27d3   : > { %11346 = vmatpush3.bf16.msra.mxu1 %v13503_v25 }
0x27d4   : > { %11347 = vmatprep.subr.bf16.mxu1 %v14689_v20  ;;  %11322 = vmatpush3.bf16.msra.mxu0 %v11321_v38 }
0x27d5   : > { %11353 = vmatprep.subr.bf16.mxu0 %v14689_v20 }
0x27d7   : > { %11349 = vmatpush3.bf16.msra.mxu1 %v13507_v47 }
0x27d8   : > { %11350 = vmatprep.subr.bf16.mxu1 %v14689_v20 }
0x27db   : > { %11352 = vmatpush3.bf16.msra.mxu1 %v13527_v31 }
0x27dc   : > { %11377 = vmatprep.subr.bf16.mxu1 %v14689_v20 }
0x2889   : > { %v9429_v15 = vpop.f32.mrb[60].mxu0  ;;  %v9451_v23 = vpop.f32.mrb[60].mxu1 }
0x288a   : > { %v9430_v26 = vpop.f32.mrb[61].mxu0  ;;  %v9452_v5 = vpop.f32.mrb[61].mxu1 }
0x288b   : > { %v9431_v13 = vadd.f32 %v9430_v26, %v9429_v15  ;;  %v9453_v18 = vadd.f32 %v9452_v5, %v9451_v23  ;;  %v9432_v3 = vpop.f32.mrb[62].mxu0  ;;  %v9454_v36 = vpop.f32.mrb[62].mxu1 }
0x288c   : > { %v9433_v21 = vpop.f32.mrb[63].mxu0  ;;  %v9455_v16 = vpop.f32.mrb[63].mxu1 }
0x288d   : > { %v7558_v11 = vadd.f32 1.0, %v9431_v13 }
0x288f   : > { %v7598_v61 = vadd.f32 %v9453_v18, %v7558_v11 }
0x2891   : > { %10528 = vmatmul.mubr.f32.vlgmr.msra.gmra.mrb[58].mxu0 %v7598_v61  ;;  %v7763_v30 = vpop.f32.mrb[64].mxu1 }
0x2892   : > { %v10540_v50 = vpop.f32.mrb[65].mxu1  ;;  %11355 = vmatpush3.bf16.msra.mxu0 %v13478_v29  ;;  %10608 = vmatprep.mubr.msk.f32.mxu0 %vm12512_vm0, %v14690_v54 }
0x2893   : > { %11356 = vmatprep.subr.bf16.mxu0 %v14689_v20 }
0x2896   : > { %11358 = vmatpush3.bf16.msra.mxu0 %v13487_v59  ;;  %v8798_v59 = vld [vmem:[#allocation31 + $0x3] ss:$0 sm:$0xff] }
0x2897   : > { %11359 = vmatprep.subr.bf16.mxu0 %v14689_v20 }
0x289a   : > { %11361 = vmatpush3.bf16.msra.mxu0 %v13491_v12 }
0x289b   : > { %11362 = vmatprep.subr.bf16.mxu0 %v14689_v20 }
0x289e   : > { %11364 = vmatpush3.bf16.msra.mxu0 %v13495_v34 }
0x289f   : > { %11365 = vmatprep.subr.bf16.mxu0 %v14689_v20 }
0x28a2   : > { %11367 = vmatpush3.bf16.msra.mxu0 %v13499_v40 }
0x28a3   : > { %11368 = vmatprep.subr.bf16.mxu0 %v14689_v20 }
0x28a6   : > { %11370 = vmatpush3.bf16.msra.mxu0 %v13503_v25 }
0x28a7   : > { %11371 = vmatprep.subr.bf16.mxu0 %v14689_v20 }
0x28aa   : > { %11373 = vmatpush3.bf16.msra.mxu0 %v13507_v47 }
0x28ab   : > { %11374 = vmatprep.subr.bf16.mxu0 %v14689_v20 }
0x28ae   : > { %11376 = vmatpush3.bf16.msra.mxu0 %v13527_v31 }
0x28af   : > { %10646 = vmatprep.subr.mxu0 %v14690_v54 }
0x2964   : > { %v7691_v29 = vpop.f32.mrb[58].mxu0 }
0x2965   : > { %v7764_v12 = vadd.f32 %v7763_v30, %v7691_v29  ;;  %v10529_v34 = vpop.f32.mrb[59].mxu0 }
0x2967   : > { %v7775_v43 = vadd.f32 %v8798_v59, %v7764_v12 }
0x2969   : > { %10574 = vmatmul.mubr.f32.vlgmr.msra.gmra.mrb[66].mxu1 %v7775_v43 }
0x296a   : > { %11379 = vmatpush3.bf16.msra.mxu1 %v13534_v22  ;;  %10643 = vmatprep.mubr.msk.f32.mxu1 %vm12512_vm0, %v14690_v54 }
0x296b   : > { %11380 = vmatprep.subr.bf16.mxu1 %v14689_v20 }
0x296e   : > { %11382 = vmatpush3.bf16.msra.mxu1 %v13538_v27 }
0x296f   : > { %11383 = vmatprep.subr.bf16.mxu1 %v14689_v20 }
0x2972   : > { %11385 = vmatpush3.bf16.msra.mxu1 %v13542_v4 }
0x2973   : > { %11386 = vmatprep.subr.bf16.mxu1 %v14689_v20 }
0x2976   : > { %11388 = vmatpush3.bf16.msra.mxu1 %v13568_v9 }
0x2977   : > { %11389 = vmatprep.subr.bf16.mxu1 %v14689_v20 }
0x297a   : > { %11391 = vmatpush3.bf16.msra.mxu1 %v13571_v17  ;;  %v8799_v17 = vld [vmem:[#allocation32 + $0x3] ss:$0 sm:$0xff] }
0x297b   : > { %11392 = vmatprep.subr.bf16.mxu1 %v14689_v20 }
0x297e   : > { %11394 = vmatpush3.bf16.msra.mxu1 %v13578_v32 }
0x297f   : > { %11395 = vmatprep.subr.bf16.mxu1 %v14689_v20 }
0x2982   : > { %11397 = vmatpush3.bf16.msra.mxu1 %v13581_v37  ;;  %v8800_v37 = vld [vmem:[#allocation34 + $0x3] ss:$0 sm:$0xff] }
0x2983   : > { %11398 = vmatprep.subr.bf16.mxu1 %v14689_v20 }
0x2986   : > { %11400 = vmatpush3.bf16.msra.mxu1 %v13585_v60 }
0x2a3c   : > { %v7842_v40 = vpop.f32.mrb[66].mxu1 }
0x2a3d   : > { %v7846_v25 = vsub.f32 %v7775_v43, %v7842_v40  ;;  %v10575_v47 = vpop.f32.mrb[67].mxu1 }
0x2a3f   : > { %v7847_v31 = vmul.f32 %v7846_v25, %v7846_v25 }
0x2a41   : > { %10609 = vmatmul.mubr.f32.vlgmr.msra.gmra.mrb[64].mxu0 %v7847_v31 }
0x2a42   : > { %10648 = vmatprep.mubr.msk.f32.mxu0 %vm12512_vm0, %v14690_v54 }
0x2b14   : > { %v7914_v22 = vpop.f32.mrb[64].mxu0 }
0x2b15   : > { %v7915_v27 = vadd.f32 1e-05, %v7914_v22  ;;  %v10610_v4 = vpop.f32.mrb[65].mxu0 }
0x2b17   : > { %11733 = vrsqrt.f32 %v7915_v27 }
0x2b21   : > { %v11734_v9 = vpop.eup %11733 }
0x2b22   : > { %v7919_v32 = vmul.f32 %v11734_v9, %v7846_v25 }
0x2b24   : > { %v7928_v60 = vmul.f32 %v8799_v17, %v7919_v32 }
0x2b26   : > { %v7937_v62 = vadd.f32 %v8800_v37, %v7928_v60 }
0x2b28   : > { %v7938_v55 = vmax.f32 %v7937_v62, 0.0 }
0x2b2a   : > { %10644 = vmatmul.mubr.f32.vlgmr.msra.gmra.mrb[68].mxu1 %v7938_v55 }
0x2bfd   : > { %v8005_v2 = vpop.f32.mrb[68].mxu1 }
0x2bfe   : > { %v8006_v56 = vadd.f32 %v8005_v2, %v14310_v52  ;;  %v10645_v39 = vpop.f32.mrb[69].mxu1  ;;  %v8169_v52 = vld [vmem:[%s12687_s12] sm:$0xff] }
0x2bff   : > { %v11408_v7 = vpack.c.bf16 %v8170_v6, %v8169_v52 }
0x2c00   : > { %10647 = vmatpush3.msra.mxu0 %v8006_v56 }
0x2c01   : > { %10649 = vmatmul.mubr.msk.f32.vlgmr.msra.gmra.mrb[66].mxu0 %vm8010_vm4, %v8009_v63  ;;  %11401 = vmatprep.subr.bf16.mxu0 %v14689_v20 }
0x2c02   : > { %11403 = vmatpush3.bf16.msra.mxu0 %v11402_v57  ;;  %10659 = vmatprep.mubr.msk.f32.mxu0 %vm12512_vm0, %v14690_v54 }
0x2c03   : > { %11404 = vmatprep.subr.bf16.mxu0 %v14689_v20 }
0x2c06   : > { %11406 = vmatpush3.bf16.msra.mxu0 %v11405_v10 }
0x2c07   : > { %11407 = vmatprep.subr.bf16.mxu0 %v14689_v20 }
0x2cd4   : > { %v8080_v49 = vpop.f32.mrb[66].mxu0 }
0x2cd5   : > { %v10650_v51 = vpop.f32.mrb[67].mxu0  ;;  %10660 = vmatmul.mubr.msk.f32.vlgmr.msra.gmra.mrb[68].mxu0 %vm1468_vm1, %v8080_v49 }
0x2cd6   : > { %11409 = vmatpush3.bf16.msra.mxu0 %v11408_v7  ;;  %10670 = vmatprep.mubr.msk.f32.mxu0 %vm12512_vm0, %v14690_v54 }
0x2cd7   : > { %11410 = vmatprep.subr.bf16.mxu0 %v14689_v20 }
0x2cda   : > { %11412 = vmatpush3.bf16.msra.mxu0 %v11411_v1 }
0x2da8   : > { %v8164_v35 = vpop.f32.mrb[68].mxu0 }
0x2da9   : > { %v8165_v33 = vadd.f32 %v8802_v46, %v8164_v35  ;;  %v10661_v41 = vpop.f32.mrb[69].mxu0 }
0x2dab   : > { %v8168_v44 = vmax.f32 %v8165_v33, 0.0 }
0x2dad   : > { %10671 = vmatmul.mubr.msk.f32.vlgmr.msra.gmra.mrb[70].mxu0 %vm1468_vm1, %v8168_v44 }
0x2e80   : > { %v8249_v58 = vpop.f32.mrb[70].mxu0 }
0x2e81   : > { %v8250_v48 = vadd.f32 %v8804_v8, %v8249_v58  ;;  %v10672_v54 = vpop.f32.mrb[71].mxu0 }
0x2e83   : > { %8254 = vst.msk [vmem:[%s1411_s3] sm:$0xf] %vm8253_vm5, %v8250_v48 }
0x2e84 PF: > { %s93_s15 = sadd.s32 1, %s12448_s15  }
0x2e85   : > { %p90_p1 = scmp.ge.s32.totalorder %s93_s15, 4  }
0x2e87   :  { %92 = sbr.rel (!%p90_p1) target bundleno = 77 (0x4d), region = 377 }
0x2e8e   :  { %8274 = vsyncpa [#allocation4], 1 }
0x2e8f   :  { %8276 = vsyncpa [#allocation4 + $0x1], 1 }
0x2e90   :  { %8277 = vsyncpa [#allocation6], 1 }
0x2e91   :  { %8278 = vsyncpa [#allocation9], 1 }
0x2e92   :  { %8279 = vsyncpa [#allocation12], 1 }
0x2e93   :  { %8280 = vsyncpa [#allocation15], 1 }
0x2e94   :  { %8281 = vsyncpa [#allocation18], 1 }
0x2e95   :  { %8282 = vsyncpa [#allocation21], 1 }
0x2e96   :  { %8283 = vsyncpa [#allocation24], 1 }
0x2e97   :  { %8284 = vsyncpa [#allocation27], 1 }
0x2e98   :  { %8285 = vsyncpa [#allocation30], 1 }
0x2e99   :  { %8286 = vsyncpa [#allocation33], 1 }
0x2e9a   :  { %8287 = vsyncpa [#allocation36], 1 }

</bundles_post_ra>
